<compile_context>
chip_gen: v5e
topology: v5e:2x2
jax: 0.10.0
libtpu: 0.0.40
codegen_flags: <defaults>
</compile_context>

<pallas_src>
import math

import jax
import jax.numpy as jnp
from jax.experimental import pallas as pl
from jax.experimental.pallas import tpu as pltpu


# ----------------------------- Fused LSTM + FC kernel -----------------------------
def _lstm_fused_kernel(x_ref, wih_ref, whh_ref, b_ref, wfc_ref, o_ref, hs_ref):
    Hp = whh_ref.shape[0]             # padded hidden (256)
    Bp, THp = hs_ref.shape            # padded batch, T * Hp
    T = THp // Hp

    # Hoisted input projection + bias for ALL time steps in one bf16 MXU dot
    # (f32 accumulation).  Gate order along columns: [i | f | g | o].
    xp = jnp.dot(x_ref[...].astype(jnp.bfloat16), wih_ref[...],
                 preferred_element_type=jnp.float32) + b_ref[...]   # (T*Bp, 4Hp) f32

    # Packed recurrent weight loaded once; the fully-unrolled loop reuses the
    # same value so its MXU weight loads can stay hoisted out of the steps.
    whh = whh_ref[...]                # (Hp, 4Hp) bf16

    h = jnp.zeros((Bp, Hp), jnp.float32)
    c = jnp.zeros((Bp, Hp), jnp.float32)

    # T is small & static (8): fully unrolled serial recurrence.  Only the
    # single packed h @ whh dot + f32 gate math sits on the serial chain.
    for t in range(T):
        z = xp[t * Bp:(t + 1) * Bp, :] + jnp.dot(
            h.astype(jnp.bfloat16), whh,
            preferred_element_type=jnp.float32)                     # (Bp, 4Hp) f32
        i_g = jax.nn.sigmoid(z[:, 0:Hp])
        f_g = jax.nn.sigmoid(z[:, Hp:2 * Hp])
        g_g = jnp.tanh(z[:, 2 * Hp:3 * Hp])
        o_g = jax.nn.sigmoid(z[:, 3 * Hp:4 * Hp])
        c = f_g * c + i_g * g_g
        h = o_g * jnp.tanh(c)
        hs_ref[:, t * Hp:(t + 1) * Hp] = h                          # lane-aligned store

    # Single lane-dense FC after the loop (off the recurrent critical path):
    # (Bp, T*Hp) @ (T*Hp, 128) -> (Bp, 128), unmasked vst output store.
    o_ref[...] = jnp.dot(hs_ref[...].astype(jnp.bfloat16), wfc_ref[...],
                         preferred_element_type=jnp.float32)


def lstm_model_forward(x, mask, params, num_classes=3):
    """x, mask: (B, max_length, num_sentences, embed_size) float32 -> (B, num_classes)."""
    B, T, NS, E = x.shape
    Din = NS * E
    Bp = ((B + 7) // 8) * 8           # pad batch to full sublane tile

    # masked_fill folded into the wrapper op that already transposes/reshapes
    # (XLA fuses it) -> the mask never travels into VMEM.
    xm = jnp.where(mask == 0, jnp.float32(1e-20), x)
    x3 = xm.reshape(B, T, Din).transpose(1, 0, 2)                   # (T, B, Din)
    x2d = jnp.pad(x3, ((0, 0), (0, Bp - B), (0, 0))).reshape(T * Bp, Din)

    Hp = params["whh"].shape[0]
    Cp = params["wfc"].shape[-1]

    out = pl.pallas_call(
        _lstm_fused_kernel,
        out_shape=jax.ShapeDtypeStruct((Bp, Cp), jnp.float32),
        in_specs=[pl.BlockSpec(memory_space=pltpu.MemorySpace.VMEM)] * 5,
        out_specs=pl.BlockSpec(memory_space=pltpu.MemorySpace.VMEM),
        scratch_shapes=[pltpu.VMEM((Bp, T * Hp), jnp.float32)],     # hs buffer
    )(x2d, params["wih"], params["whh"], params["b"], params["wfc"])
    return out[:B, :num_classes]


# ----------------------------- Parameter init / packing -----------------------------
def init_params(key, num_sentences, max_length, embed_size,
                hidden=200, hidden_pad=256, num_classes=3, class_pad=128):
    """Returns (packed_params_for_kernel, raw_pytorch_layout_params)."""
    Din = num_sentences * embed_size
    k = 1.0 / math.sqrt(hidden)
    k1, k2, k3, k4, k5 = jax.random.split(key, 5)
    w_ih = jax.random.uniform(k1, (4 * hidden, Din), jnp.float32, -k, k)
    w_hh = jax.random.uniform(k2, (4 * hidden, hidden), jnp.float32, -k, k)
    b_ih = jax.random.uniform(k3, (4 * hidden,), jnp.float32, -k, k)
    b_hh = jax.random.uniform(k4, (4 * hidden,), jnp.float32, -k, k)
    lstm_hidden = hidden * max_length
    kf = 1.0 / math.sqrt(lstm_hidden)
    w_fc = jax.random.uniform(k5, (num_classes, lstm_hidden), jnp.float32, -kf, kf)

    H, Hp, T, C, Cp = hidden, hidden_pad, max_length, num_classes, class_pad
    pad = Hp - H
    # Per-gate (i, f, g, o) transposed matrices, zero-padded to Hp, packed
    # column-wise as [i | f | g | o]; matmul operands stored as bf16.
    wih_g = w_ih.reshape(4, H, Din).transpose(0, 2, 1)                  # (4, Din, H)
    whh_g = w_hh.reshape(4, H, H).transpose(0, 2, 1)                    # (4, H, H)
    b_g = (b_ih + b_hh).reshape(4, H)                                   # (4, H)
    wih_gp = jnp.pad(wih_g, ((0, 0), (0, 0), (0, pad)))                 # (4, Din, Hp)
    whh_gp = jnp.pad(whh_g, ((0, 0), (0, pad), (0, pad)))               # (4, Hp, Hp)
    b_gp = jnp.pad(b_g, ((0, 0), (0, pad)))                             # (4, Hp)
    wih_p = wih_gp.transpose(1, 0, 2).reshape(Din, 4 * Hp).astype(jnp.bfloat16)
    whh_p = whh_gp.transpose(1, 0, 2).reshape(Hp, 4 * Hp).astype(jnp.bfloat16)
    b_p = b_gp.reshape(1, 4 * Hp)                                       # (1, 4Hp) f32
    # fc weight: (C, T*H) -> per-timestep (T, H, C) -> pad H->Hp, C->Cp
    #            -> 2-D (T*Hp, Cp) so the post-loop FC is one lane-dense dot.
    wfc_t = w_fc.T.reshape(T, H, C)                                     # (T, H, C)
    wfc_p = jnp.pad(wfc_t, ((0, 0), (0, pad), (0, Cp - C)))             # (T, Hp, Cp)
    wfc_p = wfc_p.reshape(T * Hp, Cp).astype(jnp.bfloat16)              # (T*Hp, Cp)

    packed = dict(wih=wih_p, whh=whh_p, b=b_p, wfc=wfc_p)
    raw = dict(w_ih=w_ih, w_hh=w_hh, b_ih=b_ih, b_hh=b_hh, w_fc=w_fc)
    return packed, raw


# ----------------------------- Pure-JAX reference (PyTorch-layout weights) -----------------------------
def reference_forward(x, mask, raw):
    B, T, NS, E = x.shape
    Din = NS * E
    xm = jnp.where(mask == 0, jnp.float32(1e-20), x).reshape(B, T, Din)
    H = raw["w_hh"].shape[1]
    w_ih, w_hh = raw["w_ih"], raw["w_hh"]           # (4H, Din), (4H, H)
    b = raw["b_ih"] + raw["b_hh"]                   # (4H,)

    def step(carry, x_t):
        h, c = carry
        z = x_t @ w_ih.T + h @ w_hh.T + b           # (B, 4H), gate order i,f,g,o
        i = jax.nn.sigmoid(z[:, 0:H])
        f = jax.nn.sigmoid(z[:, H:2 * H])
        g = jnp.tanh(z[:, 2 * H:3 * H])
        o = jax.nn.sigmoid(z[:, 3 * H:4 * H])
        c = f * c + i * g
        h = o * jnp.tanh(c)
        return (h, c), h

    h0 = jnp.zeros((B, H), jnp.float32)
    c0 = jnp.zeros((B, H), jnp.float32)
    _, hs = jax.lax.scan(step, (h0, c0), xm.transpose(1, 0, 2))
    y_flat = hs.transpose(1, 0, 2).reshape(B, -1)   # (B, T*H)
    return y_flat @ raw["w_fc"].T                   # (B, C)


if __name__ == "__main__":
    B, NS, ML, E = 2, 4, 8, 16          # batch, num_sentences, max_length, embed_size
    key = jax.random.PRNGKey(0)
    kx, km, kp = jax.random.split(key, 3)
    x = jax.random.normal(kx, (B, ML, NS, E), jnp.float32)
    mask = (jax.random.uniform(km, (B, ML, NS, E)) > 0.2).astype(jnp.float32)
    params, raw = init_params(kp, NS, ML, E)

    fwd = jax.jit(lambda xx, mm: lstm_model_forward(xx, mm, params, num_classes=3))
    out = jax.block_until_ready(fwd(x, mask))

    ref = reference_forward(x, mask, raw)
    assert out.shape == (B, 3), out.shape
    # bf16 matmul operands with f32 accumulation: checked deliberately at 1e-2.
    assert jnp.allclose(out, ref, rtol=1e-2, atol=1e-2), (out, ref)
    print("KERNEL_OK")
</pallas_src>

<mosaic_0001>
module attributes {stable_mosaic.version = 11 : i64} {
  func.func @_lstm_fused_kernel(%arg0: memref<64x64xf32, #tpu.memory_space<vmem>>, %arg1: memref<64x1024xbf16, #tpu.memory_space<vmem>>, %arg2: memref<256x1024xbf16, #tpu.memory_space<vmem>>, %arg3: memref<1x1024xf32, #tpu.memory_space<vmem>>, %arg4: memref<2048x128xbf16, #tpu.memory_space<vmem>>, %arg5: memref<8x128xf32, #tpu.memory_space<vmem>>, %arg6: memref<8x2048xf32, #tpu.memory_space<vmem>>) attributes {dimension_semantics = [], scalar_prefetch = 0 : i64, scratch_operands = 1 : i64, tpu.core_type = #tpu.core_type<tc>} {
    %c0 = arith.constant 0 : index
    %c0_0 = arith.constant 0 : index
    %0 = vector.load %arg0[%c0, %c0_0] : memref<64x64xf32, #tpu.memory_space<vmem>>, vector<64x64xf32>
    %1 = arith.truncf %0 : vector<64x64xf32> to vector<64x64xbf16>
    %c0_1 = arith.constant 0 : index
    %c0_2 = arith.constant 0 : index
    %2 = vector.load %arg1[%c0_1, %c0_2] : memref<64x1024xbf16, #tpu.memory_space<vmem>>, vector<64x1024xbf16>
    %cst = arith.constant dense<0.000000e+00> : vector<64x1024xf32>
    %3 = tpu.matmul %1, %2, %cst {dimension_numbers = #tpu.dot_dimension_numbers<[1], [0], [0], [1], [0, 0, 1, 1], [], []>} : vector<64x64xbf16>, vector<64x1024xbf16>, vector<64x1024xf32> -> vector<64x1024xf32>
    %c0_3 = arith.constant 0 : index
    %c0_4 = arith.constant 0 : index
    %4 = vector.load %arg3[%c0_3, %c0_4] : memref<1x1024xf32, #tpu.memory_space<vmem>>, vector<1x1024xf32>
    %5 = vector.broadcast %4 : vector<1x1024xf32> to vector<64x1024xf32>
    %6 = arith.addf %3, %5 : vector<64x1024xf32>
    %c0_5 = arith.constant 0 : index
    %c0_6 = arith.constant 0 : index
    %7 = vector.load %arg2[%c0_5, %c0_6] : memref<256x1024xbf16, #tpu.memory_space<vmem>>, vector<256x1024xbf16>
    %cst_7 = arith.constant 0.000000e+00 : f32
    %8 = vector.broadcast %cst_7 : f32 to vector<8x256xf32>
    %cst_8 = arith.constant 0.000000e+00 : f32
    %9 = vector.broadcast %cst_8 : f32 to vector<8x256xf32>
    %10 = vector.extract_strided_slice %6 {offsets = [0, 0], sizes = [8, 1024], strides = [1, 1]} : vector<64x1024xf32> to vector<8x1024xf32>
    %11 = arith.truncf %8 : vector<8x256xf32> to vector<8x256xbf16>
    %cst_9 = arith.constant dense<0.000000e+00> : vector<8x1024xf32>
    %12 = tpu.matmul %11, %7, %cst_9 {dimension_numbers = #tpu.dot_dimension_numbers<[1], [0], [0], [1], [0, 0, 1, 1], [], []>} : vector<8x256xbf16>, vector<256x1024xbf16>, vector<8x1024xf32> -> vector<8x1024xf32>
    %13 = arith.addf %10, %12 : vector<8x1024xf32>
    %14 = vector.extract_strided_slice %13 {offsets = [0, 0], sizes = [8, 256], strides = [1, 1]} : vector<8x1024xf32> to vector<8x256xf32>
    %15 = arith.negf %14 : vector<8x256xf32>
    %16 = math.exp %15 : vector<8x256xf32>
    %cst_10 = arith.constant 1.000000e+00 : f32
    %17 = vector.broadcast %cst_10 : f32 to vector<8x256xf32>
    %18 = arith.addf %17, %16 : vector<8x256xf32>
    %19 = arith.divf %17, %18 : vector<8x256xf32>
    %20 = vector.extract_strided_slice %13 {offsets = [0, 256], sizes = [8, 256], strides = [1, 1]} : vector<8x1024xf32> to vector<8x256xf32>
    %21 = arith.negf %20 : vector<8x256xf32>
    %22 = math.exp %21 : vector<8x256xf32>
    %cst_11 = arith.constant 1.000000e+00 : f32
    %23 = vector.broadcast %cst_11 : f32 to vector<8x256xf32>
    %24 = arith.addf %23, %22 : vector<8x256xf32>
    %25 = arith.divf %23, %24 : vector<8x256xf32>
    %26 = vector.extract_strided_slice %13 {offsets = [0, 512], sizes = [8, 256], strides = [1, 1]} : vector<8x1024xf32> to vector<8x256xf32>
    %27 = math.tanh %26 : vector<8x256xf32>
    %28 = vector.extract_strided_slice %13 {offsets = [0, 768], sizes = [8, 256], strides = [1, 1]} : vector<8x1024xf32> to vector<8x256xf32>
    %29 = arith.negf %28 : vector<8x256xf32>
    %30 = math.exp %29 : vector<8x256xf32>
    %cst_12 = arith.constant 1.000000e+00 : f32
    %31 = vector.broadcast %cst_12 : f32 to vector<8x256xf32>
    %32 = arith.addf %31, %30 : vector<8x256xf32>
    %33 = arith.divf %31, %32 : vector<8x256xf32>
    %34 = arith.mulf %25, %9 : vector<8x256xf32>
    %35 = arith.mulf %19, %27 : vector<8x256xf32>
    %36 = arith.addf %34, %35 : vector<8x256xf32>
    %37 = math.tanh %36 : vector<8x256xf32>
    %38 = arith.mulf %33, %37 : vector<8x256xf32>
    %c0_13 = arith.constant 0 : index
    %c0_14 = arith.constant 0 : index
    %39 = vector.load %arg6[%c0_13, %c0_14] : memref<8x2048xf32, #tpu.memory_space<vmem>>, vector<8x256xf32>
    tpu.vector_store %arg6[%c0_13, %c0_14], %38 {strides = array<i32>} : memref<8x2048xf32, #tpu.memory_space<vmem>>, vector<8x256xf32>,
    %40 = vector.extract_strided_slice %6 {offsets = [8, 0], sizes = [8, 1024], strides = [1, 1]} : vector<64x1024xf32> to vector<8x1024xf32>
    %41 = arith.truncf %38 : vector<8x256xf32> to vector<8x256xbf16>
    %cst_15 = arith.constant dense<0.000000e+00> : vector<8x1024xf32>
    %42 = tpu.matmul %41, %7, %cst_15 {dimension_numbers = #tpu.dot_dimension_numbers<[1], [0], [0], [1], [0, 0, 1, 1], [], []>} : vector<8x256xbf16>, vector<256x1024xbf16>, vector<8x1024xf32> -> vector<8x1024xf32>
    %43 = arith.addf %40, %42 : vector<8x1024xf32>
    %44 = vector.extract_strided_slice %43 {offsets = [0, 0], sizes = [8, 256], strides = [1, 1]} : vector<8x1024xf32> to vector<8x256xf32>
    %45 = arith.negf %44 : vector<8x256xf32>
    %46 = math.exp %45 : vector<8x256xf32>
    %cst_16 = arith.constant 1.000000e+00 : f32
    %47 = vector.broadcast %cst_16 : f32 to vector<8x256xf32>
    %48 = arith.addf %47, %46 : vector<8x256xf32>
    %49 = arith.divf %47, %48 : vector<8x256xf32>
    %50 = vector.extract_strided_slice %43 {offsets = [0, 256], sizes = [8, 256], strides = [1, 1]} : vector<8x1024xf32> to vector<8x256xf32>
    %51 = arith.negf %50 : vector<8x256xf32>
    %52 = math.exp %51 : vector<8x256xf32>
    %cst_17 = arith.constant 1.000000e+00 : f32
    %53 = vector.broadcast %cst_17 : f32 to vector<8x256xf32>
    %54 = arith.addf %53, %52 : vector<8x256xf32>
    %55 = arith.divf %53, %54 : vector<8x256xf32>
    %56 = vector.extract_strided_slice %43 {offsets = [0, 512], sizes = [8, 256], strides = [1, 1]} : vector<8x1024xf32> to vector<8x256xf32>
    %57 = math.tanh %56 : vector<8x256xf32>
    %58 = vector.extract_strided_slice %43 {offsets = [0, 768], sizes = [8, 256], strides = [1, 1]} : vector<8x1024xf32> to vector<8x256xf32>
    %59 = arith.negf %58 : vector<8x256xf32>
    %60 = math.exp %59 : vector<8x256xf32>
    %cst_18 = arith.constant 1.000000e+00 : f32
    %61 = vector.broadcast %cst_18 : f32 to vector<8x256xf32>
    %62 = arith.addf %61, %60 : vector<8x256xf32>
    %63 = arith.divf %61, %62 : vector<8x256xf32>
    %64 = arith.mulf %55, %36 : vector<8x256xf32>
    %65 = arith.mulf %49, %57 : vector<8x256xf32>
    %66 = arith.addf %64, %65 : vector<8x256xf32>
    %67 = math.tanh %66 : vector<8x256xf32>
    %68 = arith.mulf %63, %67 : vector<8x256xf32>
    %c0_19 = arith.constant 0 : index
    %c256 = arith.constant 256 : index
    %69 = vector.load %arg6[%c0_19, %c256] : memref<8x2048xf32, #tpu.memory_space<vmem>>, vector<8x256xf32>
    tpu.vector_store %arg6[%c0_19, %c256], %68 {strides = array<i32>} : memref<8x2048xf32, #tpu.memory_space<vmem>>, vector<8x256xf32>,
    %70 = vector.extract_strided_slice %6 {offsets = [16, 0], sizes = [8, 1024], strides = [1, 1]} : vector<64x1024xf32> to vector<8x1024xf32>
    %71 = arith.truncf %68 : vector<8x256xf32> to vector<8x256xbf16>
    %cst_20 = arith.constant dense<0.000000e+00> : vector<8x1024xf32>
    %72 = tpu.matmul %71, %7, %cst_20 {dimension_numbers = #tpu.dot_dimension_numbers<[1], [0], [0], [1], [0, 0, 1, 1], [], []>} : vector<8x256xbf16>, vector<256x1024xbf16>, vector<8x1024xf32> -> vector<8x1024xf32>
    %73 = arith.addf %70, %72 : vector<8x1024xf32>
    %74 = vector.extract_strided_slice %73 {offsets = [0, 0], sizes = [8, 256], strides = [1, 1]} : vector<8x1024xf32> to vector<8x256xf32>
    %75 = arith.negf %74 : vector<8x256xf32>
    %76 = math.exp %75 : vector<8x256xf32>
    %cst_21 = arith.constant 1.000000e+00 : f32
    %77 = vector.broadcast %cst_21 : f32 to vector<8x256xf32>
    %78 = arith.addf %77, %76 : vector<8x256xf32>
    %79 = arith.divf %77, %78 : vector<8x256xf32>
    %80 = vector.extract_strided_slice %73 {offsets = [0, 256], sizes = [8, 256], strides = [1, 1]} : vector<8x1024xf32> to vector<8x256xf32>
    %81 = arith.negf %80 : vector<8x256xf32>
    %82 = math.exp %81 : vector<8x256xf32>
    %cst_22 = arith.constant 1.000000e+00 : f32
    %83 = vector.broadcast %cst_22 : f32 to vector<8x256xf32>
    %84 = arith.addf %83, %82 : vector<8x256xf32>
    %85 = arith.divf %83, %84 : vector<8x256xf32>
    %86 = vector.extract_strided_slice %73 {offsets = [0, 512], sizes = [8, 256], strides = [1, 1]} : vector<8x1024xf32> to vector<8x256xf32>
    %87 = math.tanh %86 : vector<8x256xf32>
    %88 = vector.extract_strided_slice %73 {offsets = [0, 768], sizes = [8, 256], strides = [1, 1]} : vector<8x1024xf32> to vector<8x256xf32>
    %89 = arith.negf %88 : vector<8x256xf32>
    %90 = math.exp %89 : vector<8x256xf32>
    %cst_23 = arith.constant 1.000000e+00 : f32
    %91 = vector.broadcast %cst_23 : f32 to vector<8x256xf32>
    %92 = arith.addf %91, %90 : vector<8x256xf32>
    %93 = arith.divf %91, %92 : vector<8x256xf32>
    %94 = arith.mulf %85, %66 : vector<8x256xf32>
    %95 = arith.mulf %79, %87 : vector<8x256xf32>
    %96 = arith.addf %94, %95 : vector<8x256xf32>
    %97 = math.tanh %96 : vector<8x256xf32>
    %98 = arith.mulf %93, %97 : vector<8x256xf32>
    %c0_24 = arith.constant 0 : index
    %c512 = arith.constant 512 : index
    %99 = vector.load %arg6[%c0_24, %c512] : memref<8x2048xf32, #tpu.memory_space<vmem>>, vector<8x256xf32>
    tpu.vector_store %arg6[%c0_24, %c512], %98 {strides = array<i32>} : memref<8x2048xf32, #tpu.memory_space<vmem>>, vector<8x256xf32>,
    %100 = vector.extract_strided_slice %6 {offsets = [24, 0], sizes = [8, 1024], strides = [1, 1]} : vector<64x1024xf32> to vector<8x1024xf32>
    %101 = arith.truncf %98 : vector<8x256xf32> to vector<8x256xbf16>
    %cst_25 = arith.constant dense<0.000000e+00> : vector<8x1024xf32>
    %102 = tpu.matmul %101, %7, %cst_25 {dimension_numbers = #tpu.dot_dimension_numbers<[1], [0], [0], [1], [0, 0, 1, 1], [], []>} : vector<8x256xbf16>, vector<256x1024xbf16>, vector<8x1024xf32> -> vector<8x1024xf32>
    %103 = arith.addf %100, %102 : vector<8x1024xf32>
    %104 = vector.extract_strided_slice %103 {offsets = [0, 0], sizes = [8, 256], strides = [1, 1]} : vector<8x1024xf32> to vector<8x256xf32>
    %105 = arith.negf %104 : vector<8x256xf32>
    %106 = math.exp %105 : vector<8x256xf32>
    %cst_26 = arith.constant 1.000000e+00 : f32
    %107 = vector.broadcast %cst_26 : f32 to vector<8x256xf32>
    %108 = arith.addf %107, %106 : vector<8x256xf32>
    %109 = arith.divf %107, %108 : vector<8x256xf32>
    %110 = vector.extract_strided_slice %103 {offsets = [0, 256], sizes = [8, 256], strides = [1, 1]} : vector<8x1024xf32> to vector<8x256xf32>
    %111 = arith.negf %110 : vector<8x256xf32>
    %112 = math.exp %111 : vector<8x256xf32>
    %cst_27 = arith.constant 1.000000e+00 : f32
    %113 = vector.broadcast %cst_27 : f32 to vector<8x256xf32>
    %114 = arith.addf %113, %112 : vector<8x256xf32>
    %115 = arith.divf %113, %114 : vector<8x256xf32>
    %116 = vector.extract_strided_slice %103 {offsets = [0, 512], sizes = [8, 256], strides = [1, 1]} : vector<8x1024xf32> to vector<8x256xf32>
    %117 = math.tanh %116 : vector<8x256xf32>
    %118 = vector.extract_strided_slice %103 {offsets = [0, 768], sizes = [8, 256], strides = [1, 1]} : vector<8x1024xf32> to vector<8x256xf32>
    %119 = arith.negf %118 : vector<8x256xf32>
    %120 = math.exp %119 : vector<8x256xf32>
    %cst_28 = arith.constant 1.000000e+00 : f32
    %121 = vector.broadcast %cst_28 : f32 to vector<8x256xf32>
    %122 = arith.addf %121, %120 : vector<8x256xf32>
    %123 = arith.divf %121, %122 : vector<8x256xf32>
    %124 = arith.mulf %115, %96 : vector<8x256xf32>
    %125 = arith.mulf %109, %117 : vector<8x256xf32>
    %126 = arith.addf %124, %125 : vector<8x256xf32>
    %127 = math.tanh %126 : vector<8x256xf32>
    %128 = arith.mulf %123, %127 : vector<8x256xf32>
    %c0_29 = arith.constant 0 : index
    %c768 = arith.constant 768 : index
    %129 = vector.load %arg6[%c0_29, %c768] : memref<8x2048xf32, #tpu.memory_space<vmem>>, vector<8x256xf32>
    tpu.vector_store %arg6[%c0_29, %c768], %128 {strides = array<i32>} : memref<8x2048xf32, #tpu.memory_space<vmem>>, vector<8x256xf32>,
    %130 = vector.extract_strided_slice %6 {offsets = [32, 0], sizes = [8, 1024], strides = [1, 1]} : vector<64x1024xf32> to vector<8x1024xf32>
    %131 = arith.truncf %128 : vector<8x256xf32> to vector<8x256xbf16>
    %cst_30 = arith.constant dense<0.000000e+00> : vector<8x1024xf32>
    %132 = tpu.matmul %131, %7, %cst_30 {dimension_numbers = #tpu.dot_dimension_numbers<[1], [0], [0], [1], [0, 0, 1, 1], [], []>} : vector<8x256xbf16>, vector<256x1024xbf16>, vector<8x1024xf32> -> vector<8x1024xf32>
    %133 = arith.addf %130, %132 : vector<8x1024xf32>
    %134 = vector.extract_strided_slice %133 {offsets = [0, 0], sizes = [8, 256], strides = [1, 1]} : vector<8x1024xf32> to vector<8x256xf32>
    %135 = arith.negf %134 : vector<8x256xf32>
    %136 = math.exp %135 : vector<8x256xf32>
    %cst_31 = arith.constant 1.000000e+00 : f32
    %137 = vector.broadcast %cst_31 : f32 to vector<8x256xf32>
    %138 = arith.addf %137, %136 : vector<8x256xf32>
    %139 = arith.divf %137, %138 : vector<8x256xf32>
    %140 = vector.extract_strided_slice %133 {offsets = [0, 256], sizes = [8, 256], strides = [1, 1]} : vector<8x1024xf32> to vector<8x256xf32>
    %141 = arith.negf %140 : vector<8x256xf32>
    %142 = math.exp %141 : vector<8x256xf32>
    %cst_32 = arith.constant 1.000000e+00 : f32
    %143 = vector.broadcast %cst_32 : f32 to vector<8x256xf32>
    %144 = arith.addf %143, %142 : vector<8x256xf32>
    %145 = arith.divf %143, %144 : vector<8x256xf32>
    %146 = vector.extract_strided_slice %133 {offsets = [0, 512], sizes = [8, 256], strides = [1, 1]} : vector<8x1024xf32> to vector<8x256xf32>
    %147 = math.tanh %146 : vector<8x256xf32>
    %148 = vector.extract_strided_slice %133 {offsets = [0, 768], sizes = [8, 256], strides = [1, 1]} : vector<8x1024xf32> to vector<8x256xf32>
    %149 = arith.negf %148 : vector<8x256xf32>
    %150 = math.exp %149 : vector<8x256xf32>
    %cst_33 = arith.constant 1.000000e+00 : f32
    %151 = vector.broadcast %cst_33 : f32 to vector<8x256xf32>
    %152 = arith.addf %151, %150 : vector<8x256xf32>
    %153 = arith.divf %151, %152 : vector<8x256xf32>
    %154 = arith.mulf %145, %126 : vector<8x256xf32>
    %155 = arith.mulf %139, %147 : vector<8x256xf32>
    %156 = arith.addf %154, %155 : vector<8x256xf32>
    %157 = math.tanh %156 : vector<8x256xf32>
    %158 = arith.mulf %153, %157 : vector<8x256xf32>
    %c0_34 = arith.constant 0 : index
    %c1024 = arith.constant 1024 : index
    %159 = vector.load %arg6[%c0_34, %c1024] : memref<8x2048xf32, #tpu.memory_space<vmem>>, vector<8x256xf32>
    tpu.vector_store %arg6[%c0_34, %c1024], %158 {strides = array<i32>} : memref<8x2048xf32, #tpu.memory_space<vmem>>, vector<8x256xf32>,
    %160 = vector.extract_strided_slice %6 {offsets = [40, 0], sizes = [8, 1024], strides = [1, 1]} : vector<64x1024xf32> to vector<8x1024xf32>
    %161 = arith.truncf %158 : vector<8x256xf32> to vector<8x256xbf16>
    %cst_35 = arith.constant dense<0.000000e+00> : vector<8x1024xf32>
    %162 = tpu.matmul %161, %7, %cst_35 {dimension_numbers = #tpu.dot_dimension_numbers<[1], [0], [0], [1], [0, 0, 1, 1], [], []>} : vector<8x256xbf16>, vector<256x1024xbf16>, vector<8x1024xf32> -> vector<8x1024xf32>
    %163 = arith.addf %160, %162 : vector<8x1024xf32>
    %164 = vector.extract_strided_slice %163 {offsets = [0, 0], sizes = [8, 256], strides = [1, 1]} : vector<8x1024xf32> to vector<8x256xf32>
    %165 = arith.negf %164 : vector<8x256xf32>
    %166 = math.exp %165 : vector<8x256xf32>
    %cst_36 = arith.constant 1.000000e+00 : f32
    %167 = vector.broadcast %cst_36 : f32 to vector<8x256xf32>
    %168 = arith.addf %167, %166 : vector<8x256xf32>
    %169 = arith.divf %167, %168 : vector<8x256xf32>
    %170 = vector.extract_strided_slice %163 {offsets = [0, 256], sizes = [8, 256], strides = [1, 1]} : vector<8x1024xf32> to vector<8x256xf32>
    %171 = arith.negf %170 : vector<8x256xf32>
    %172 = math.exp %171 : vector<8x256xf32>
    %cst_37 = arith.constant 1.000000e+00 : f32
    %173 = vector.broadcast %cst_37 : f32 to vector<8x256xf32>
    %174 = arith.addf %173, %172 : vector<8x256xf32>
    %175 = arith.divf %173, %174 : vector<8x256xf32>
    %176 = vector.extract_strided_slice %163 {offsets = [0, 512], sizes = [8, 256], strides = [1, 1]} : vector<8x1024xf32> to vector<8x256xf32>
    %177 = math.tanh %176 : vector<8x256xf32>
    %178 = vector.extract_strided_slice %163 {offsets = [0, 768], sizes = [8, 256], strides = [1, 1]} : vector<8x1024xf32> to vector<8x256xf32>
    %179 = arith.negf %178 : vector<8x256xf32>
    %180 = math.exp %179 : vector<8x256xf32>
    %cst_38 = arith.constant 1.000000e+00 : f32
    %181 = vector.broadcast %cst_38 : f32 to vector<8x256xf32>
    %182 = arith.addf %181, %180 : vector<8x256xf32>
    %183 = arith.divf %181, %182 : vector<8x256xf32>
    %184 = arith.mulf %175, %156 : vector<8x256xf32>
    %185 = arith.mulf %169, %177 : vector<8x256xf32>
    %186 = arith.addf %184, %185 : vector<8x256xf32>
    %187 = math.tanh %186 : vector<8x256xf32>
    %188 = arith.mulf %183, %187 : vector<8x256xf32>
    %c0_39 = arith.constant 0 : index
    %c1280 = arith.constant 1280 : index
    %189 = vector.load %arg6[%c0_39, %c1280] : memref<8x2048xf32, #tpu.memory_space<vmem>>, vector<8x256xf32>
    tpu.vector_store %arg6[%c0_39, %c1280], %188 {strides = array<i32>} : memref<8x2048xf32, #tpu.memory_space<vmem>>, vector<8x256xf32>,
    %190 = vector.extract_strided_slice %6 {offsets = [48, 0], sizes = [8, 1024], strides = [1, 1]} : vector<64x1024xf32> to vector<8x1024xf32>
    %191 = arith.truncf %188 : vector<8x256xf32> to vector<8x256xbf16>
    %cst_40 = arith.constant dense<0.000000e+00> : vector<8x1024xf32>
    %192 = tpu.matmul %191, %7, %cst_40 {dimension_numbers = #tpu.dot_dimension_numbers<[1], [0], [0], [1], [0, 0, 1, 1], [], []>} : vector<8x256xbf16>, vector<256x1024xbf16>, vector<8x1024xf32> -> vector<8x1024xf32>
    %193 = arith.addf %190, %192 : vector<8x1024xf32>
    %194 = vector.extract_strided_slice %193 {offsets = [0, 0], sizes = [8, 256], strides = [1, 1]} : vector<8x1024xf32> to vector<8x256xf32>
    %195 = arith.negf %194 : vector<8x256xf32>
    %196 = math.exp %195 : vector<8x256xf32>
    %cst_41 = arith.constant 1.000000e+00 : f32
    %197 = vector.broadcast %cst_41 : f32 to vector<8x256xf32>
    %198 = arith.addf %197, %196 : vector<8x256xf32>
    %199 = arith.divf %197, %198 : vector<8x256xf32>
    %200 = vector.extract_strided_slice %193 {offsets = [0, 256], sizes = [8, 256], strides = [1, 1]} : vector<8x1024xf32> to vector<8x256xf32>
    %201 = arith.negf %200 : vector<8x256xf32>
    %202 = math.exp %201 : vector<8x256xf32>
    %cst_42 = arith.constant 1.000000e+00 : f32
    %203 = vector.broadcast %cst_42 : f32 to vector<8x256xf32>
    %204 = arith.addf %203, %202 : vector<8x256xf32>
    %205 = arith.divf %203, %204 : vector<8x256xf32>
    %206 = vector.extract_strided_slice %193 {offsets = [0, 512], sizes = [8, 256], strides = [1, 1]} : vector<8x1024xf32> to vector<8x256xf32>
    %207 = math.tanh %206 : vector<8x256xf32>
    %208 = vector.extract_strided_slice %193 {offsets = [0, 768], sizes = [8, 256], strides = [1, 1]} : vector<8x1024xf32> to vector<8x256xf32>
    %209 = arith.negf %208 : vector<8x256xf32>
    %210 = math.exp %209 : vector<8x256xf32>
    %cst_43 = arith.constant 1.000000e+00 : f32
    %211 = vector.broadcast %cst_43 : f32 to vector<8x256xf32>
    %212 = arith.addf %211, %210 : vector<8x256xf32>
    %213 = arith.divf %211, %212 : vector<8x256xf32>
    %214 = arith.mulf %205, %186 : vector<8x256xf32>
    %215 = arith.mulf %199, %207 : vector<8x256xf32>
    %216 = arith.addf %214, %215 : vector<8x256xf32>
    %217 = math.tanh %216 : vector<8x256xf32>
    %218 = arith.mulf %213, %217 : vector<8x256xf32>
    %c0_44 = arith.constant 0 : index
    %c1536 = arith.constant 1536 : index
    %219 = vector.load %arg6[%c0_44, %c1536] : memref<8x2048xf32, #tpu.memory_space<vmem>>, vector<8x256xf32>
    tpu.vector_store %arg6[%c0_44, %c1536], %218 {strides = array<i32>} : memref<8x2048xf32, #tpu.memory_space<vmem>>, vector<8x256xf32>,
    %220 = vector.extract_strided_slice %6 {offsets = [56, 0], sizes = [8, 1024], strides = [1, 1]} : vector<64x1024xf32> to vector<8x1024xf32>
    %221 = arith.truncf %218 : vector<8x256xf32> to vector<8x256xbf16>
    %cst_45 = arith.constant dense<0.000000e+00> : vector<8x1024xf32>
    %222 = tpu.matmul %221, %7, %cst_45 {dimension_numbers = #tpu.dot_dimension_numbers<[1], [0], [0], [1], [0, 0, 1, 1], [], []>} : vector<8x256xbf16>, vector<256x1024xbf16>, vector<8x1024xf32> -> vector<8x1024xf32>
    %223 = arith.addf %220, %222 : vector<8x1024xf32>
    %224 = vector.extract_strided_slice %223 {offsets = [0, 0], sizes = [8, 256], strides = [1, 1]} : vector<8x1024xf32> to vector<8x256xf32>
    %225 = arith.negf %224 : vector<8x256xf32>
    %226 = math.exp %225 : vector<8x256xf32>
    %cst_46 = arith.constant 1.000000e+00 : f32
    %227 = vector.broadcast %cst_46 : f32 to vector<8x256xf32>
    %228 = arith.addf %227, %226 : vector<8x256xf32>
    %229 = arith.divf %227, %228 : vector<8x256xf32>
    %230 = vector.extract_strided_slice %223 {offsets = [0, 256], sizes = [8, 256], strides = [1, 1]} : vector<8x1024xf32> to vector<8x256xf32>
    %231 = arith.negf %230 : vector<8x256xf32>
    %232 = math.exp %231 : vector<8x256xf32>
    %cst_47 = arith.constant 1.000000e+00 : f32
    %233 = vector.broadcast %cst_47 : f32 to vector<8x256xf32>
    %234 = arith.addf %233, %232 : vector<8x256xf32>
    %235 = arith.divf %233, %234 : vector<8x256xf32>
    %236 = vector.extract_strided_slice %223 {offsets = [0, 512], sizes = [8, 256], strides = [1, 1]} : vector<8x1024xf32> to vector<8x256xf32>
    %237 = math.tanh %236 : vector<8x256xf32>
    %238 = vector.extract_strided_slice %223 {offsets = [0, 768], sizes = [8, 256], strides = [1, 1]} : vector<8x1024xf32> to vector<8x256xf32>
    %239 = arith.negf %238 : vector<8x256xf32>
    %240 = math.exp %239 : vector<8x256xf32>
    %cst_48 = arith.constant 1.000000e+00 : f32
    %241 = vector.broadcast %cst_48 : f32 to vector<8x256xf32>
    %242 = arith.addf %241, %240 : vector<8x256xf32>
    %243 = arith.divf %241, %242 : vector<8x256xf32>
    %244 = arith.mulf %235, %216 : vector<8x256xf32>
    %245 = arith.mulf %229, %237 : vector<8x256xf32>
    %246 = arith.addf %244, %245 : vector<8x256xf32>
    %247 = math.tanh %246 : vector<8x256xf32>
    %248 = arith.mulf %243, %247 : vector<8x256xf32>
    %c0_49 = arith.constant 0 : index
    %c1792 = arith.constant 1792 : index
    %249 = vector.load %arg6[%c0_49, %c1792] : memref<8x2048xf32, #tpu.memory_space<vmem>>, vector<8x256xf32>
    tpu.vector_store %arg6[%c0_49, %c1792], %248 {strides = array<i32>} : memref<8x2048xf32, #tpu.memory_space<vmem>>, vector<8x256xf32>,
    %c0_50 = arith.constant 0 : index
    %c0_51 = arith.constant 0 : index
    %250 = vector.load %arg6[%c0_50, %c0_51] : memref<8x2048xf32, #tpu.memory_space<vmem>>, vector<8x2048xf32>
    %251 = arith.truncf %250 : vector<8x2048xf32> to vector<8x2048xbf16>
    %c0_52 = arith.constant 0 : index
    %c0_53 = arith.constant 0 : index
    %252 = vector.load %arg4[%c0_52, %c0_53] : memref<2048x128xbf16, #tpu.memory_space<vmem>>, vector<2048x128xbf16>
    %cst_54 = arith.constant dense<0.000000e+00> : vector<8x128xf32>
    %253 = tpu.matmul %251, %252, %cst_54 {dimension_numbers = #tpu.dot_dimension_numbers<[1], [0], [0], [1], [0, 0, 1, 1], [], []>} : vector<8x2048xbf16>, vector<2048x128xbf16>, vector<8x128xf32> -> vector<8x128xf32>
    %c0_55 = arith.constant 0 : index
    %c0_56 = arith.constant 0 : index
    %254 = vector.load %arg5[%c0_55, %c0_56] : memref<8x128xf32, #tpu.memory_space<vmem>>, vector<8x128xf32>
    tpu.vector_store %arg5[%c0_55, %c0_56], %253 {strides = array<i32>} : memref<8x128xf32, #tpu.memory_space<vmem>>, vector<8x128xf32>,
    return
  }
}

</mosaic_0001>

<bundles_post_ra>
// kernel: _lambda_.1
= control target key start
LH: loop header
LB: loop body
LE: loop exit
PB: predicated region body
PF: predicated region fallthrough
CT: control target
= control target key end

     0   :  { %10 = vsyncpa [#allocation4], 0  ;;  %s9667_s0 = inlined_call_operand.vmem [shape: f32[64,64], index: 0, kind: input, shape index: {}]   ;;  %s9668_s1 = inlined_call_operand.vmem [shape: bf16[64,1024], index: 1, kind: input, shape index: {}]   ;;  %s9669_s2 = inlined_call_operand.hbm [shape: bf16[256,1024], index: 2, kind: input, shape index: {}]   ;;  %s9670_s3 = inlined_call_operand.vmem [shape: f32[1,1024], index: 3, kind: input, shape index: {}]   ;;  %s9671_s4 = inlined_call_operand.hbm [shape: bf16[2048,128], index: 4, kind: input, shape index: {}]   ;;  %s9672_s5 = inlined_call_operand.vmem [shape: f32[8,128], index: 5, kind: output, shape index: {}]  }
   0x1   :  { %s20_s20 = sshll.u32 %s9669_s2, 4  ;;  %s21_s20 = int_to_ptr.hbm [resolvable:$true] %s20_s20 }
   0x2   :  { %11 = vsyncpa [#allocation6], 0  ;;  %s7160_s21 = smov [#allocation3]   ;;  %s35_s25 = sshll.u32 %s9671_s4, 4  ;;  %s36_s25 = int_to_ptr.hbm [resolvable:$true] %s35_s25 }
   0x3   :  { %s22_s22 = sshll.u32 %s7160_s21, 4  ;;  %s7161_s26 = smov 512   ;;  %s23_s22 = int_to_ptr.vmem [resolvable:$true] %s22_s22 }
   0x4   :  { %s7162_s27 = smov 32   ;;  %s7163_s28 = smov [#allocation5]  }
   0x5   :  { %28 = dma.hbm_to_vmem [thread:$0]  %s21_s20, 16384, %s23_s22, [#allocation4], %s7161_s26, %s7161_s26, %s7162_s27  }
   0x6   :  { %s37_s29 = sshll.u32 %s7163_s28, 4  ;;  %s7164_s30 = smov 64   ;;  %s38_s29 = int_to_ptr.vmem [resolvable:$true] %s37_s29 }
   0x7   :  { %s7165_s6 = smov 4  }
   0x8   :  { %43 = dma.hbm_to_vmem [thread:$0]  %s36_s25, 16384, %s38_s29, [#allocation6], %s7164_s30, %s7164_s30, %s7165_s6  }
   0x9   :  { %7156 = dma.done.wait [#allocation4], 16384  }
   0xa   :  { %7157 = vsyncadd [#allocation4], 4294950912 }
   0xb   :  { %7158 = dma.done.wait [#allocation6], 16384  }
   0xc   :  { %7159 = vsyncadd [#allocation6], 4294950912  ;;  %v5423_v0 = vld [vmem:[%s9668_s1 + $0xc0] sm:$0xf]  ;;  %v6581_v2 = vld [vmem:[%s9668_s1 + $0xc4] sm:$0xf] }
   0xd   :  { %v6585_v1 = vld [vmem:[%s9668_s1 + $0xdc] sm:$0xf0]  ;;  %v5425_v4 = vld [vmem:[%s9668_s1 + $0xe0] sm:$0xf0]  ;;  %v5431_v5 = vld [vmem:[%s9668_s1 + $0xc8] sm:$0xf] }
   0xe   :  { %v5424_v3 = vor.u32 %v6585_v1, %v5423_v0  ;;  %v6586_v6 = vld [vmem:[%s9668_s1 + $0xe4] sm:$0xf0]  ;;  %v5428_v7 = vor.u32 %v6581_v2, %v5425_v4  ;;  %v6582_v9 = vld [vmem:[%s9668_s1 + $0xcc] sm:$0xf]  ;;  %v5391_v11 = vld [vmem:[%s9668_s1 + $0x80] sm:$0xf] }
   0xf   :  { %v5432_v8 = vor.u32 %v6586_v6, %v5431_v5  ;;  %v5433_v10 = vld [vmem:[%s9668_s1 + $0xe8] sm:$0xf0]  ;;  %v6577_v13 = vld [vmem:[%s9668_s1 + $0x9c] sm:$0xf0]  ;;  %v6573_v14 = vld [vmem:[%s9668_s1 + $0x84] sm:$0xf] }
  0x10   :  { %292 = vmatpush.bf16.msra.mxu0 %v5424_v3  ;;  %v5436_v12 = vor.u32 %v6582_v9, %v5433_v10  ;;  %v5393_v15 = vld [vmem:[%s9668_s1 + $0xa0] sm:$0xf0]  ;;  %321 = vmatpush.bf16.msra.mxu1 %v5428_v7  ;;  %v5392_v16 = vor.u32 %v6577_v13, %v5391_v11  ;;  %v5399_v18 = vld [vmem:[%s9668_s1 + $0x88] sm:$0xf]  ;;  %v6574_v20 = vld [vmem:[%s9668_s1 + $0x8c] sm:$0xf] }
  0x11   :  { %350 = vmatpush.bf16.msra.mxu2 %v5432_v8  ;;  %v5396_v17 = vor.u32 %v6573_v14, %v5393_v15  ;;  %v6578_v19 = vld [vmem:[%s9668_s1 + $0xa4] sm:$0xf0]  ;;  %v5401_v22 = vld [vmem:[%s9668_s1 + $0xa8] sm:$0xf0]  ;;  %v5359_v23 = vld [vmem:[%s9668_s1 + $0x40] sm:$0xf] }
  0x12   :  { %379 = vmatpush.bf16.msra.mxu3 %v5436_v12  ;;  %v5400_v21 = vor.u32 %v6578_v19, %v5399_v18  ;;  %v6569_v24 = vld [vmem:[%s9668_s1 + $0x5c] sm:$0xf0]  ;;  %v5404_v25 = vor.u32 %v6574_v20, %v5401_v22  ;;  %v6565_v26 = vld [vmem:[%s9668_s1 + $0x44] sm:$0xf]  ;;  %v5367_v28 = vld [vmem:[%s9668_s1 + $0x48] sm:$0xf] }
  0x13   :  { %v5361_v27 = vld [vmem:[%s9668_s1 + $0x60] sm:$0xf0]  ;;  %v5360_v29 = vor.u32 %v6569_v24, %v5359_v23  ;;  %v6570_v30 = vld [vmem:[%s9668_s1 + $0x64] sm:$0xf0]  ;;  %v6566_v31 = vld [vmem:[%s9668_s1 + $0x4c] sm:$0xf] }
  0x14   :  { %293 = vmatpush.bf16.msra.mxu0 %v5392_v16  ;;  %v5369_v32 = vld [vmem:[%s9668_s1 + $0x68] sm:$0xf0]  ;;  %322 = vmatpush.bf16.msra.mxu1 %v5396_v17  ;;  %v5364_v33 = vor.u32 %v6565_v26, %v5361_v27  ;;  %v5368_v34 = vor.u32 %v6570_v30, %v5367_v28  ;;  %v5327_v35 = vld [vmem:[%s9668_s1] sm:$0xf]  ;;  %v6557_v37 = vld [vmem:[%s9668_s1 + $0x4] sm:$0xf] }
  0x15   :  { %351 = vmatpush.bf16.msra.mxu2 %v5400_v21  ;;  %v6561_v36 = vld [vmem:[%s9668_s1 + $0x1c] sm:$0xf0]  ;;  %v5372_v38 = vor.u32 %v6566_v31, %v5369_v32  ;;  %v5329_v39 = vld [vmem:[%s9668_s1 + $0x20] sm:$0xf0]  ;;  %v5335_v40 = vld [vmem:[%s9668_s1 + $0x8] sm:$0xf] }
  0x16   :  { %380 = vmatpush.bf16.msra.mxu3 %v5404_v25  ;;  %v6562_v41 = vld [vmem:[%s9668_s1 + $0x24] sm:$0xf0]  ;;  %v6558_v42 = vld [vmem:[%s9668_s1 + $0xc] sm:$0xf]  ;;  %v5328_v44 = vor.u32 %v6561_v36, %v5327_v35  ;;  %v53_v45 = vld [vmem:[%s9667_s0] sm:$0xff]  ;;  %v5332_v47 = vor.u32 %v6557_v37, %v5329_v39  ;;  %vm275_vm0 = vcmask 523264  }
  0x17   :  { %v5337_v43 = vld [vmem:[%s9668_s1 + $0x28] sm:$0xf0]  ;;  %v5336_v48 = vor.u32 %v6562_v41, %v5335_v40  ;;  %v55_v51 = vld [vmem:[%s9667_s0 + $0x10] sm:$0xff]  ;;  %v56_v52 = vld [vmem:[%s9667_s0 + $0x18] sm:$0xff] }
  0x18   :  { %294 = vmatpush.bf16.msra.mxu0 %v5360_v29  ;;  %v54_v46 = vld [vmem:[%s9667_s0 + $0x8] sm:$0xff]  ;;  %323 = vmatpush.bf16.msra.mxu1 %v5364_v33  ;;  %v5340_v49 = vor.u32 %v6558_v42, %v5337_v43  ;;  %v7321_v53 = vpack.c.bf16 %v56_v52, %v55_v51  ;;  %v5439_v54 = vld [vmem:[%s9668_s1 + $0xd0] sm:$0xf]  ;;  %v6583_v56 = vld [vmem:[%s9668_s1 + $0xd4] sm:$0xf] }
  0x19   :  { %352 = vmatpush.bf16.msra.mxu2 %v5368_v34  ;;  %v7305_v50 = vpack.c.bf16 %v54_v46, %v53_v45  ;;  %v6587_v55 = vld [vmem:[%s9668_s1 + $0xec] sm:$0xf0]  ;;  %v5441_v58 = vld [vmem:[%s9668_s1 + $0xf0] sm:$0xf0]  ;;  %v5447_v59 = vld [vmem:[%s9668_s1 + $0xd8] sm:$0xf] }
  0x1a   :  { %381 = vmatpush.bf16.msra.mxu3 %v5372_v38  ;;  %v5440_v57 = vor.u32 %v6587_v55, %v5439_v54  ;;  %v6588_v60 = vld [vmem:[%s9668_s1 + $0xf4] sm:$0xf0]  ;;  %v5444_v61 = vor.u32 %v6583_v56, %v5441_v58  ;;  %v6584_v63 = vld [vmem:[%s9668_s1 + $0xdc] sm:$0xf]  ;;  %v5407_v1 = vld [vmem:[%s9668_s1 + $0x90] sm:$0xf] }
  0x1b   :  { %v5448_v62 = vor.u32 %v6588_v60, %v5447_v59  ;;  %v5449_v0 = vld [vmem:[%s9668_s1 + $0xf8] sm:$0xf0]  ;;  %v6579_v3 = vld [vmem:[%s9668_s1 + $0xac] sm:$0xf0]  ;;  %v6575_v4 = vld [vmem:[%s9668_s1 + $0x94] sm:$0xf] }
  0x1c   :  { %295 = vmatpush.bf16.msra.mxu0 %v5328_v44  ;;  %324 = vmatpush.bf16.msra.mxu1 %v5332_v47  ;;  %v5452_v2 = vor.u32 %v6584_v63, %v5449_v0  ;;  %v5409_v5 = vld [vmem:[%s9668_s1 + $0xb0] sm:$0xf0]  ;;  %v5408_v6 = vor.u32 %v6579_v3, %v5407_v1  ;;  %v5415_v8 = vld [vmem:[%s9668_s1 + $0x98] sm:$0xf]  ;;  %v6576_v10 = vld [vmem:[%s9668_s1 + $0x9c] sm:$0xf] }
  0x1d   :  { %353 = vmatpush.bf16.msra.mxu2 %v5336_v48  ;;  %v5412_v7 = vor.u32 %v6575_v4, %v5409_v5  ;;  %v6580_v9 = vld [vmem:[%s9668_s1 + $0xb4] sm:$0xf0]  ;;  %v5417_v12 = vld [vmem:[%s9668_s1 + $0xb8] sm:$0xf0]  ;;  %v5375_v13 = vld [vmem:[%s9668_s1 + $0x50] sm:$0xf] }
  0x1e   :  { %382 = vmatpush.bf16.msra.mxu3 %v5340_v49  ;;  %v5416_v11 = vor.u32 %v6580_v9, %v5415_v8  ;;  %v6571_v14 = vld [vmem:[%s9668_s1 + $0x6c] sm:$0xf0]  ;;  %v5420_v15 = vor.u32 %v6576_v10, %v5417_v12  ;;  %v6567_v16 = vld [vmem:[%s9668_s1 + $0x54] sm:$0xf]  ;;  %v5383_v18 = vld [vmem:[%s9668_s1 + $0x58] sm:$0xf] }
  0x1f   :  { %5453 = vmatmul.msk.bf16.vlgmr.msra.gmra.mxu0 %vm275_vm0, %v7305_v50  ;;  %5457 = vmatmul.msk.bf16.vlgmr.msra.gmra.mxu1 %vm275_vm0, %v7305_v50  ;;  %v5377_v17 = vld [vmem:[%s9668_s1 + $0x70] sm:$0xf0]  ;;  %v5376_v19 = vor.u32 %v6571_v14, %v5375_v13  ;;  %v6572_v20 = vld [vmem:[%s9668_s1 + $0x74] sm:$0xf0]  ;;  %v6568_v21 = vld [vmem:[%s9668_s1 + $0x5c] sm:$0xf] }
  0x20   :  { %5461 = vmatmul.msk.bf16.vlgmr.msra.gmra.mxu2 %vm275_vm0, %v7305_v50  ;;  %408 = vmatpush.bf16.msrb.mxu0 %v5440_v57  ;;  %v5385_v22 = vld [vmem:[%s9668_s1 + $0x78] sm:$0xf0]  ;;  %v57_v23 = vld [vmem:[%s9667_s0 + $0x20] sm:$0xff]  ;;  %v5380_v24 = vor.u32 %v6567_v16, %v5377_v17  ;;  %v5384_v25 = vor.u32 %v6572_v20, %v5383_v18  ;;  %v5343_v26 = vld [vmem:[%s9668_s1 + $0x10] sm:$0xf] }
  0x21   :  { %5465 = vmatmul.msk.bf16.vlgmr.msra.gmra.mxu3 %vm275_vm0, %v7305_v50  ;;  %437 = vmatpush.bf16.msrb.mxu1 %v5444_v61  ;;  %v6563_v27 = vld [vmem:[%s9668_s1 + $0x2c] sm:$0xf0]  ;;  %v58_v28 = vld [vmem:[%s9667_s0 + $0x28] sm:$0xff]  ;;  %v5388_v29 = vor.u32 %v6568_v21, %v5385_v22  ;;  %v6559_v30 = vld [vmem:[%s9668_s1 + $0x14] sm:$0xf] }
  0x22   :  { %466 = vmatpush.bf16.msrb.mxu2 %v5448_v62  ;;  %495 = vmatpush.bf16.msrb.mxu3 %v5452_v2  ;;  %v5345_v31 = vld [vmem:[%s9668_s1 + $0x30] sm:$0xf0]  ;;  %v5344_v32 = vor.u32 %v6563_v27, %v5343_v26  ;;  %v5351_v33 = vld [vmem:[%s9668_s1 + $0x18] sm:$0xf]  ;;  %v7427_v35 = vpack.c.bf16 %v58_v28, %v57_v23  ;;  %v6560_v37 = vld [vmem:[%s9668_s1 + $0x1c] sm:$0xf] }
  0x23   :  { %v6564_v34 = vld [vmem:[%s9668_s1 + $0x34] sm:$0xf0]  ;;  %v5348_v36 = vor.u32 %v6559_v30, %v5345_v31  ;;  %v5353_v38 = vld [vmem:[%s9668_s1 + $0x38] sm:$0xf0]  ;;  %v5711_v41 = vld [vmem:[#allocation3 + $0x1c0] sm:$0xf] }
  0x24   :  { %409 = vmatpush.bf16.msrb.mxu0 %v5408_v6  ;;  %v5352_v39 = vor.u32 %v6564_v34, %v5351_v33  ;;  %v5356_v40 = vor.u32 %v6560_v37, %v5353_v38  ;;  %v6649_v42 = vld [vmem:[#allocation3 + $0x1dc] sm:$0xf0]  ;;  %v6645_v46 = vld [vmem:[#allocation3 + $0x1c4] sm:$0xf]  ;;  %v59_v0 = vld [vmem:[%s9667_s0 + $0x30] sm:$0xff] }
  0x25   :  { %438 = vmatpush.bf16.msrb.mxu1 %v5412_v7  ;;  %v5967_v43 = vld [vmem:[#allocation3 + $0x3c0] sm:$0xf]  ;;  %v7443_v44 = vor.u32 %v6649_v42, %v5711_v41  ;;  %v5713_v47 = vld [vmem:[#allocation3 + $0x1e0] sm:$0xf0]  ;;  %v60_v1 = vld [vmem:[%s9667_s0 + $0x38] sm:$0xff] }
  0x26   :  { %467 = vmatpush.bf16.msrb.mxu2 %v5416_v11  ;;  %496 = vmatpush.bf16.msrb.mxu3 %v5420_v15  ;;  %v6713_v45 = vld [vmem:[#allocation3 + $0x3dc] sm:$0xf0]  ;;  %v7447_v49 = vor.u32 %v6645_v46, %v5713_v47  ;;  %v6709_v51 = vld [vmem:[#allocation3 + $0x3c4] sm:$0xf]  ;;  %v7481_v17 = vpack.c.bf16 %v60_v1, %v59_v0 }
  0x27   :  { %9972 = vst [vmem:[#allocation9_spill] sm:$0xff] %v7443_v44  ;;  %v7445_v48 = vor.u32 %v6713_v45, %v5967_v43  ;;  %v5969_v52 = vld [vmem:[#allocation3 + $0x3e0] sm:$0xf0]  ;;  %v5679_v54 = vld [vmem:[#allocation3 + $0x180] sm:$0xf] }
  0x28   :  { %410 = vmatpush.bf16.msrb.mxu0 %v5376_v19  ;;  %9974 = vst [vmem:[#allocation11_spill] sm:$0xff] %v7447_v49  ;;  %v7450_v55 = vor.u32 %v6709_v51, %v5969_v52  ;;  %v6641_v56 = vld [vmem:[#allocation3 + $0x19c] sm:$0xf0]  ;;  %v6637_v61 = vld [vmem:[#allocation3 + $0x184] sm:$0xf] }
  0x29   :  { %439 = vmatpush.bf16.msrb.mxu1 %v5380_v24  ;;  %9973 = vst [vmem:[#allocation10_spill] sm:$0xff] %v7445_v48  ;;  %v5935_v57 = vld [vmem:[#allocation3 + $0x380] sm:$0xf]  ;;  %v7454_v59 = vor.u32 %v6641_v56, %v5679_v54  ;;  %v5681_v62 = vld [vmem:[#allocation3 + $0x1a0] sm:$0xf0] }
  0x2a   :  { %468 = vmatpush.bf16.msrb.mxu2 %v5384_v25  ;;  %497 = vmatpush.bf16.msrb.mxu3 %v5388_v29  ;;  %9975 = vst [vmem:[#allocation12_spill] sm:$0xff] %v7450_v55  ;;  %v6705_v58 = vld [vmem:[#allocation3 + $0x39c] sm:$0xf0]  ;;  %v6701_v63 = vld [vmem:[#allocation3 + $0x384] sm:$0xf]  ;;  %v7465_v2 = vor.u32 %v6637_v61, %v5681_v62 }
  0x2b   :  { %9976 = vst [vmem:[#allocation13_spill] sm:$0xff] %v7454_v59  ;;  %v7456_v60 = vor.u32 %v6705_v58, %v5935_v57  ;;  %v5937_v3 = vld [vmem:[#allocation3 + $0x3a0] sm:$0xf0]  ;;  %v5647_v4 = vld [vmem:[#allocation3 + $0x140] sm:$0xf] }
  0x2c   :  { %411 = vmatpush.bf16.msrb.mxu0 %v5344_v32  ;;  %9978 = vst [vmem:[#allocation15_spill] sm:$0xff] %v7465_v2  ;;  %v6633_v5 = vld [vmem:[#allocation3 + $0x15c] sm:$0xf0]  ;;  %v7467_v6 = vor.u32 %v6701_v63, %v5937_v3  ;;  %v6629_v9 = vld [vmem:[#allocation3 + $0x144] sm:$0xf] }
  0x2d   :  { %440 = vmatpush.bf16.msrb.mxu1 %v5348_v36  ;;  %9977 = vst [vmem:[#allocation14_spill] sm:$0xff] %v7456_v60  ;;  %v5903_v7 = vld [vmem:[#allocation3 + $0x340] sm:$0xf]  ;;  %v7470_v10 = vor.u32 %v6633_v5, %v5647_v4  ;;  %v5649_v11 = vld [vmem:[#allocation3 + $0x160] sm:$0xf0] }
  0x2e   :  { %469 = vmatpush.bf16.msrb.mxu2 %v5352_v39  ;;  %498 = vmatpush.bf16.msrb.mxu3 %v5356_v40  ;;  %9979 = vst [vmem:[#allocation16_spill] sm:$0xff] %v7467_v6  ;;  %v6697_v8 = vld [vmem:[#allocation3 + $0x35c] sm:$0xf0]  ;;  %v6693_v12 = vld [vmem:[#allocation3 + $0x344] sm:$0xf]  ;;  %v7476_v15 = vor.u32 %v6629_v9, %v5649_v11 }
  0x2f   :  { %5454 = vmatmul.msk.bf16.gmra.mxu0 %vm275_vm0, %v7321_v53  ;;  %5458 = vmatmul.msk.bf16.gmra.mxu1 %vm275_vm0, %v7321_v53  ;;  %9980 = vst [vmem:[#allocation17_spill] sm:$0xff] %v7470_v10  ;;  %v5905_v13 = vld [vmem:[#allocation3 + $0x360] sm:$0xf0]  ;;  %v7474_v14 = vor.u32 %v6697_v8, %v5903_v7  ;;  %v5615_v18 = vld [vmem:[#allocation3 + $0x100] sm:$0xf] }
  0x30   :  { %5462 = vmatmul.msk.bf16.gmra.mxu2 %vm275_vm0, %v7321_v53  ;;  %1288 = vmatpush.bf16.msra.mxu0 %v7443_v44  ;;  %9982 = vst [vmem:[#allocation19_spill] sm:$0xff] %v7476_v15  ;;  %v7479_v16 = vor.u32 %v6693_v12, %v5905_v13  ;;  %v6625_v19 = vld [vmem:[#allocation3 + $0x11c] sm:$0xf0]  ;;  %v6621_v23 = vld [vmem:[#allocation3 + $0x104] sm:$0xf] }
  0x31   :  { %5466 = vmatmul.msk.bf16.gmra.mxu3 %vm275_vm0, %v7321_v53  ;;  %1301 = vmatpush.bf16.msra.mxu1 %v7445_v48  ;;  %9981 = vst [vmem:[#allocation18_spill] sm:$0xff] %v7474_v14  ;;  %v5871_v20 = vld [vmem:[#allocation3 + $0x300] sm:$0xf]  ;;  %v7495_v21 = vor.u32 %v6625_v19, %v5615_v18  ;;  %v5617_v24 = vld [vmem:[#allocation3 + $0x120] sm:$0xf0] }
  0x32   :  { %1314 = vmatpush.bf16.msra.mxu2 %v7447_v49  ;;  %1327 = vmatpush.bf16.msra.mxu3 %v7450_v55  ;;  %9983 = vst [vmem:[#allocation20_spill] sm:$0xff] %v7479_v16  ;;  %v6689_v22 = vld [vmem:[#allocation3 + $0x31c] sm:$0xf0]  ;;  %v7499_v26 = vor.u32 %v6621_v23, %v5617_v24  ;;  %v6685_v27 = vld [vmem:[#allocation3 + $0x304] sm:$0xf] }
  0x33   :  { %9984 = vst [vmem:[#allocation21_spill] sm:$0xff] %v7495_v21  ;;  %v7497_v25 = vor.u32 %v6689_v22, %v5871_v20  ;;  %v5873_v28 = vld [vmem:[#allocation3 + $0x320] sm:$0xf0]  ;;  %v5583_v29 = vld [vmem:[#allocation3 + $0xc0] sm:$0xf] }
  0x34   :  { %1289 = vmatpush.bf16.msra.mxu0 %v7454_v59  ;;  %9986 = vst [vmem:[#allocation23_spill] sm:$0xff] %v7499_v26  ;;  %v7502_v30 = vor.u32 %v6685_v27, %v5873_v28  ;;  %v6617_v31 = vld [vmem:[#allocation3 + $0xdc] sm:$0xf0]  ;;  %v6613_v37 = vld [vmem:[#allocation3 + $0xc4] sm:$0xf] }
  0x35   :  { %1302 = vmatpush.bf16.msra.mxu1 %v7456_v60  ;;  %9985 = vst [vmem:[#allocation22_spill] sm:$0xff] %v7497_v25  ;;  %v5839_v32 = vld [vmem:[#allocation3 + $0x2c0] sm:$0xf]  ;;  %v7506_v34 = vor.u32 %v6617_v31, %v5583_v29  ;;  %v5585_v38 = vld [vmem:[#allocation3 + $0xe0] sm:$0xf0] }
  0x36   :  { %1315 = vmatpush.bf16.msra.mxu2 %v7465_v2  ;;  %1328 = vmatpush.bf16.msra.mxu3 %v7467_v6  ;;  %9987 = vst [vmem:[#allocation24_spill] sm:$0xff] %v7502_v30  ;;  %v6681_v33 = vld [vmem:[#allocation3 + $0x2dc] sm:$0xf0]  ;;  %v6677_v39 = vld [vmem:[#allocation3 + $0x2c4] sm:$0xf]  ;;  %v7511_v40 = vor.u32 %v6613_v37, %v5585_v38 }
  0x37   :  { %9988 = vst [vmem:[#allocation25_spill] sm:$0xff] %v7506_v34  ;;  %v7508_v36 = vor.u32 %v6681_v33, %v5839_v32  ;;  %v5841_v41 = vld [vmem:[#allocation3 + $0x2e0] sm:$0xf0]  ;;  %v5551_v42 = vld [vmem:[#allocation3 + $0x80] sm:$0xf] }
  0x38   :  { %1290 = vmatpush.bf16.msra.mxu0 %v7470_v10  ;;  %9990 = vst [vmem:[#allocation27_spill] sm:$0xff] %v7511_v40  ;;  %v6609_v43 = vld [vmem:[#allocation3 + $0x9c] sm:$0xf0]  ;;  %v7513_v45 = vor.u32 %v6677_v39, %v5841_v41  ;;  %v6605_v51 = vld [vmem:[#allocation3 + $0x84] sm:$0xf] }
  0x39   :  { %1303 = vmatpush.bf16.msra.mxu1 %v7474_v14  ;;  %9989 = vst [vmem:[#allocation26_spill] sm:$0xff] %v7508_v36  ;;  %v5807_v46 = vld [vmem:[#allocation3 + $0x280] sm:$0xf]  ;;  %v7516_v52 = vor.u32 %v6609_v43, %v5551_v42  ;;  %v5553_v54 = vld [vmem:[#allocation3 + $0xa0] sm:$0xf0] }
  0x3a   :  { %1316 = vmatpush.bf16.msra.mxu2 %v7476_v15  ;;  %1329 = vmatpush.bf16.msra.mxu3 %v7479_v16  ;;  %9991 = vst [vmem:[#allocation28_spill] sm:$0xff] %v7513_v45  ;;  %v6673_v47 = vld [vmem:[#allocation3 + $0x29c] sm:$0xf0]  ;;  %v6669_v56 = vld [vmem:[#allocation3 + $0x284] sm:$0xf]  ;;  %v7522_v61 = vor.u32 %v6605_v51, %v5553_v54 }
  0x3b   :  { %9992 = vst [vmem:[#allocation29_spill] sm:$0xff] %v7516_v52  ;;  %v5809_v57 = vld [vmem:[#allocation3 + $0x2a0] sm:$0xf0]  ;;  %v7520_v58 = vor.u32 %v6673_v47, %v5807_v46  ;;  %v5519_v63 = vld [vmem:[#allocation3 + $0x40] sm:$0xf] }
  0x3c   :  { %1291 = vmatpush.bf16.msra.mxu0 %v7495_v21  ;;  %9994 = vst [vmem:[#allocation31_spill] sm:$0xff] %v7522_v61  ;;  %v7525_v62 = vor.u32 %v6669_v56, %v5809_v57  ;;  %v6601_v0 = vld [vmem:[#allocation3 + $0x5c] sm:$0xf0]  ;;  %v6597_v4 = vld [vmem:[#allocation3 + $0x44] sm:$0xf] }
  0x3d   :  { %1304 = vmatpush.bf16.msra.mxu1 %v7497_v25  ;;  %9993 = vst [vmem:[#allocation30_spill] sm:$0xff] %v7520_v58  ;;  %v5775_v1 = vld [vmem:[#allocation3 + $0x240] sm:$0xf]  ;;  %v5521_v5 = vld [vmem:[#allocation3 + $0x60] sm:$0xf0]  ;;  %v7531_v9 = vor.u32 %v6601_v0, %v5519_v63 }
  0x3e   :  { %1317 = vmatpush.bf16.msra.mxu2 %v7499_v26  ;;  %1330 = vmatpush.bf16.msra.mxu3 %v7502_v30  ;;  %9995 = vst [vmem:[#allocation32_spill] sm:$0xff] %v7525_v62  ;;  %v6665_v3 = vld [vmem:[#allocation3 + $0x25c] sm:$0xf0]  ;;  %v6661_v7 = vld [vmem:[#allocation3 + $0x244] sm:$0xf]  ;;  %v7535_v12 = vor.u32 %v6597_v4, %v5521_v5 }
  0x3f   :  { %5455 = vmatmul.msk.bf16.gmra.mxu0 %vm275_vm0, %v7427_v35  ;;  %5459 = vmatmul.msk.bf16.gmra.mxu1 %vm275_vm0, %v7427_v35  ;;  %v5777_v8 = vld [vmem:[#allocation3 + $0x260] sm:$0xf0]  ;;  %9996 = vst [vmem:[#allocation33_spill] sm:$0xff] %v7531_v9  ;;  %v7533_v11 = vor.u32 %v6665_v3, %v5775_v1  ;;  %v5487_v18 = vld [vmem:[#allocation3] sm:$0xf] }
  0x40   :  { %5463 = vmatmul.msk.bf16.gmra.mxu2 %vm275_vm0, %v7427_v35  ;;  %1292 = vmatpush.bf16.msra.mxu0 %v7506_v34  ;;  %9998 = vst [vmem:[#allocation35_spill] sm:$0xff] %v7535_v12  ;;  %v7539_v13 = vor.u32 %v6661_v7, %v5777_v8  ;;  %v6593_v19 = vld [vmem:[#allocation3 + $0x1c] sm:$0xf0]  ;;  %v6589_v24 = vld [vmem:[#allocation3 + $0x4] sm:$0xf] }
  0x41   :  { %5467 = vmatmul.msk.bf16.gmra.mxu3 %vm275_vm0, %v7427_v35  ;;  %1305 = vmatpush.bf16.msra.mxu1 %v7508_v36  ;;  %9997 = vst [vmem:[#allocation34_spill] sm:$0xff] %v7533_v11  ;;  %v5743_v20 = vld [vmem:[#allocation3 + $0x200] sm:$0xf]  ;;  %v7548_v22 = vor.u32 %v6593_v19, %v5487_v18  ;;  %v5489_v27 = vld [vmem:[#allocation3 + $0x20] sm:$0xf0] }
  0x42   :  { %1318 = vmatpush.bf16.msra.mxu2 %v7511_v40  ;;  %1331 = vmatpush.bf16.msra.mxu3 %v7513_v45  ;;  %9999 = vst [vmem:[#allocation36_spill] sm:$0xff] %v7539_v13  ;;  %v6657_v23 = vld [vmem:[#allocation3 + $0x21c] sm:$0xf0]  ;;  %v7554_v29 = vor.u32 %v6589_v24, %v5489_v27  ;;  %v6653_v31 = vld [vmem:[#allocation3 + $0x204] sm:$0xf] }
  0x43   :  { %10000 = vst [vmem:[#allocation37_spill] sm:$0xff] %v7548_v22  ;;  %v7552_v28 = vor.u32 %v6657_v23, %v5743_v20  ;;  %v5745_v32 = vld [vmem:[#allocation3 + $0x220] sm:$0xf0]  ;;  %v5719_v33 = vld [vmem:[#allocation3 + $0x1c8] sm:$0xf] }
  0x44   :  { %1293 = vmatpush.bf16.msra.mxu0 %v7516_v52  ;;  %10002 = vst [vmem:[#allocation39_spill] sm:$0xff] %v7554_v29  ;;  %v6650_v37 = vld [vmem:[#allocation3 + $0x1e4] sm:$0xf0]  ;;  %v6646_v43 = vld [vmem:[#allocation3 + $0x1cc] sm:$0xf] }
  0x45   :  { %1306 = vmatpush.bf16.msra.mxu1 %v7520_v58  ;;  %10001 = vst [vmem:[#allocation38_spill] sm:$0xff] %v7552_v28  ;;  %v5975_v38 = vld [vmem:[#allocation3 + $0x3c8] sm:$0xf]  ;;  %v7559_v41 = vor.u32 %v6650_v37, %v5719_v33  ;;  %v5721_v46 = vld [vmem:[#allocation3 + $0x1e8] sm:$0xf0] }
  0x46   :  { %1319 = vmatpush.bf16.msra.mxu2 %v7522_v61  ;;  %1332 = vmatpush.bf16.msra.mxu3 %v7525_v62  ;;  %v6714_v39 = vld [vmem:[#allocation3 + $0x3e4] sm:$0xf0]  ;;  %v6710_v47 = vld [vmem:[#allocation3 + $0x3cc] sm:$0xf]  ;;  %v7564_v51 = vor.u32 %v6646_v43, %v5721_v46 }
  0x47   :  { %10004 = vst [vmem:[#allocation41_spill] sm:$0xff] %v7559_v41  ;;  %v7561_v42 = vor.u32 %v6714_v39, %v5975_v38  ;;  %v5977_v54 = vld [vmem:[#allocation3 + $0x3e8] sm:$0xf0]  ;;  %v5687_v56 = vld [vmem:[#allocation3 + $0x188] sm:$0xf] }
  0x48   :  { %1294 = vmatpush.bf16.msra.mxu0 %v7531_v9  ;;  %10006 = vst [vmem:[#allocation43_spill] sm:$0xff] %v7564_v51  ;;  %v6642_v57 = vld [vmem:[#allocation3 + $0x1a4] sm:$0xf0]  ;;  %v7568_v63 = vor.u32 %v6710_v47, %v5977_v54  ;;  %v6638_v3 = vld [vmem:[#allocation3 + $0x18c] sm:$0xf] }
  0x49   :  { %1307 = vmatpush.bf16.msra.mxu1 %v7533_v11  ;;  %10005 = vst [vmem:[#allocation42_spill] sm:$0xff] %v7561_v42  ;;  %v5943_v0 = vld [vmem:[#allocation3 + $0x388] sm:$0xf]  ;;  %v7572_v4 = vor.u32 %v6642_v57, %v5687_v56  ;;  %v5689_v5 = vld [vmem:[#allocation3 + $0x1a8] sm:$0xf0] }
  0x4a   :  { %1320 = vmatpush.bf16.msra.mxu2 %v7535_v12  ;;  %1333 = vmatpush.bf16.msra.mxu3 %v7539_v13  ;;  %10007 = vst [vmem:[#allocation44_spill] sm:$0xff] %v7568_v63  ;;  %v6706_v1 = vld [vmem:[#allocation3 + $0x3a4] sm:$0xf0]  ;;  %v6702_v7 = vld [vmem:[#allocation3 + $0x38c] sm:$0xf]  ;;  %v7578_v19 = vor.u32 %v6638_v3, %v5689_v5 }
  0x4b   :  { %10008 = vst [vmem:[#allocation45_spill] sm:$0xff] %v7572_v4  ;;  %v5945_v8 = vld [vmem:[#allocation3 + $0x3a8] sm:$0xf0]  ;;  %v7576_v18 = vor.u32 %v6706_v1, %v5943_v0  ;;  %v5655_v23 = vld [vmem:[#allocation3 + $0x148] sm:$0xf] }
  0x4c   :  { %1295 = vmatpush.bf16.msra.mxu0 %v7548_v22  ;;  %10010 = vst [vmem:[#allocation47_spill] sm:$0xff] %v7578_v19  ;;  %v7581_v20 = vor.u32 %v6702_v7, %v5945_v8  ;;  %v6634_v24 = vld [vmem:[#allocation3 + $0x164] sm:$0xf0]  ;;  %v5657_v33 = vld [vmem:[#allocation3 + $0x168] sm:$0xf0] }
  0x4d   :  { %1308 = vmatpush.bf16.msra.mxu1 %v7552_v28  ;;  %10009 = vst [vmem:[#allocation46_spill] sm:$0xff] %v7576_v18  ;;  %v5911_v27 = vld [vmem:[#allocation3 + $0x348] sm:$0xf]  ;;  %v6694_v37 = vld [vmem:[#allocation3 + $0x34c] sm:$0xf]  ;;  %v7587_v39 = vor.u32 %v6634_v24, %v5655_v23 }
  0x4e   :  { %1321 = vmatpush.bf16.msra.mxu2 %v7554_v29  ;;  %10011 = vst [vmem:[#allocation48_spill] sm:$0xff] %v7581_v20  ;;  %v5913_v38 = vld [vmem:[#allocation3 + $0x368] sm:$0xf0]  ;;  %v5623_v47 = vld [vmem:[#allocation3 + $0x108] sm:$0xf] }
  0x4f   :  { %5456 = vmatmul.msk.bf16.gmra.mxu0 %vm275_vm0, %v7481_v17  ;;  %5460 = vmatmul.msk.bf16.gmra.mxu1 %vm275_vm0, %v7481_v17  ;;  %10012 = vst [vmem:[#allocation49_spill] sm:$0xff] %v7587_v39  ;;  %v6626_v54 = vld [vmem:[#allocation3 + $0x124] sm:$0xf0]  ;;  %v7595_v57 = vor.u32 %v6694_v37, %v5913_v38  ;;  %v6622_v1 = vld [vmem:[#allocation3 + $0x10c] sm:$0xf] }
  0x50   :  { %5464 = vmatmul.msk.bf16.gmra.mxu2 %vm275_vm0, %v7481_v17  ;;  %v5879_v56 = vld [vmem:[#allocation3 + $0x308] sm:$0xf]  ;;  %v5625_v3 = vld [vmem:[#allocation3 + $0x128] sm:$0xf0]  ;;  %v7604_v8 = vor.u32 %v6626_v54, %v5623_v47 }
  0x51   :  { %5468 = vmatmul.msk.bf16.gmra.mxu3 %vm275_vm0, %v7481_v17  ;;  %10015 = vst [vmem:[#allocation52_spill] sm:$0xff] %v7595_v57  ;;  %v6690_v0 = vld [vmem:[#allocation3 + $0x324] sm:$0xf0]  ;;  %v6686_v5 = vld [vmem:[#allocation3 + $0x30c] sm:$0xf]  ;;  %v7610_v24 = vor.u32 %v6622_v1, %v5625_v3 }
  0x52   :  { %v5881_v7 = vld [vmem:[#allocation3 + $0x328] sm:$0xf0]  ;;  %10016 = vst [vmem:[#allocation53_spill] sm:$0xff] %v7604_v8  ;;  %v7608_v23 = vor.u32 %v6690_v0, %v5879_v56  ;;  %v5559_v1 = vld [vmem:[#allocation3 + $0x88] sm:$0xf] }
  0x53   :  { %10018 = vst [vmem:[#allocation55_spill] sm:$0xff] %v7610_v24  ;;  %v6614_v37 = vld [vmem:[#allocation3 + $0xcc] sm:$0xf]  ;;  %v6610_v3 = vld [vmem:[#allocation3 + $0xa4] sm:$0xf0] }
  0x54   :  { %10017 = vst [vmem:[#allocation54_spill] sm:$0xff] %v7608_v23  ;;  %v5593_v38 = vld [vmem:[#allocation3 + $0xe8] sm:$0xf0] }
  0x55   :  { %v6678_v47 = vld [vmem:[#allocation3 + $0x2cc] sm:$0xf]  ;;  %v7622_v0 = vor.u32 %v6614_v37, %v5593_v38  ;;  %v5527_v37 = vld [vmem:[#allocation3 + $0x48] sm:$0xf] }
  0x56   :  { %v5849_v54 = vld [vmem:[#allocation3 + $0x2e8] sm:$0xf0]  ;;  %v6602_v38 = vld [vmem:[#allocation3 + $0x64] sm:$0xf0] }
  0x57   :  { %10022 = vst [vmem:[#allocation59_spill] sm:$0xff] %v7622_v0 }
  0x5f   :  { %5469 = vmatmul.msk.bf16.vlgmr.msrb.gmra.mxu0 %vm275_vm0, %v7305_v50  ;;  %5473 = vmatmul.msk.bf16.vlgmr.msrb.gmra.mxu1 %vm275_vm0, %v7305_v50 }
  0x60   :  { %5477 = vmatmul.msk.bf16.vlgmr.msrb.gmra.mxu2 %vm275_vm0, %v7305_v50  ;;  %1340 = vmatpush.bf16.msrb.mxu0 %v7559_v41 }
  0x61   :  { %5481 = vmatmul.msk.bf16.vlgmr.msrb.gmra.mxu3 %vm275_vm0, %v7305_v50  ;;  %v7557_v50 = vor.u32 %v6653_v31, %v5745_v32  ;;  %1353 = vmatpush.bf16.msrb.mxu1 %v7561_v42  ;;  %v6698_v31 = vld [vmem:[#allocation3 + $0x364] sm:$0xf0]  ;;  %v6630_v32 = vld [vmem:[#allocation3 + $0x14c] sm:$0xf]  ;;  %v5991_v42 = vld [vmem:[#allocation3 + $0x3d8] sm:$0xf] }
  0x62   :  { %1366 = vmatpush.bf16.msrb.mxu2 %v7564_v51  ;;  %v7589_v43 = vor.u32 %v6698_v31, %v5911_v27  ;;  %v7591_v46 = vor.u32 %v6630_v32, %v5657_v33  ;;  %v5591_v27 = vld [vmem:[#allocation3 + $0xc8] sm:$0xf]  ;;  %v7613_v33 = vor.u32 %v6686_v5, %v5881_v7  ;;  %v7625_v7 = vor.u32 %v6678_v47, %v5849_v54 }
  0x63   :  { %10003 = vst [vmem:[#allocation40_spill] sm:$0xff] %v7557_v50  ;;  %1334 = vmatpush.bf16.msra.mxu3 %v7557_v50  ;;  %v6618_v31 = vld [vmem:[#allocation3 + $0xe4] sm:$0xf0] }
  0x64   :  { %1341 = vmatpush.bf16.msrb.mxu0 %v7572_v4  ;;  %10013 = vst [vmem:[#allocation50_spill] sm:$0xff] %v7589_v43  ;;  %v5847_v32 = vld [vmem:[#allocation3 + $0x2c8] sm:$0xf]  ;;  %v6652_v4 = vld [vmem:[#allocation3 + $0x1f4] sm:$0xf0] }
  0x65   :  { %1354 = vmatpush.bf16.msrb.mxu1 %v7576_v18  ;;  %10014 = vst [vmem:[#allocation51_spill] sm:$0xff] %v7591_v46  ;;  %v5815_v5 = vld [vmem:[#allocation3 + $0x288] sm:$0xf] }
  0x66   :  { %1367 = vmatpush.bf16.msrb.mxu2 %v7578_v19  ;;  %10019 = vst [vmem:[#allocation56_spill] sm:$0xff] %v7613_v33  ;;  %v5783_v47 = vld [vmem:[#allocation3 + $0x248] sm:$0xf]  ;;  %v6667_v19 = vld [vmem:[#allocation3 + $0x26c] sm:$0xf0] }
  0x67   :  { %1379 = vmatpush.bf16.msrb.mxu3 %v7568_v63  ;;  %10023 = vst [vmem:[#allocation60_spill] sm:$0xff] %v7625_v7  ;;  %v6659_v63 = vld [vmem:[#allocation3 + $0x22c] sm:$0xf0] }
  0x68   :  { %1342 = vmatpush.bf16.msrb.mxu0 %v7587_v39 }
  0x69   :  { %1355 = vmatpush.bf16.msrb.mxu1 %v7589_v43  ;;  %v7616_v43 = vor.u32 %v6618_v31, %v5591_v27  ;;  %v6670_v27 = vld [vmem:[#allocation3 + $0x28c] sm:$0xf] }
  0x6a   :  { %1368 = vmatpush.bf16.msrb.mxu2 %v7591_v46  ;;  %v6606_v46 = vld [vmem:[#allocation3 + $0x8c] sm:$0xf] }
  0x6b   :  { %1380 = vmatpush.bf16.msrb.mxu3 %v7581_v20  ;;  %10020 = vst [vmem:[#allocation57_spill] sm:$0xff] %v7616_v43  ;;  %v5817_v31 = vld [vmem:[#allocation3 + $0x2a8] sm:$0xf0]  ;;  %v6611_v20 = vld [vmem:[#allocation3 + $0xac] sm:$0xf0] }
  0x6c   :  { %1343 = vmatpush.bf16.msrb.mxu0 %v7604_v8  ;;  %v5561_v8 = vld [vmem:[#allocation3 + $0xa8] sm:$0xf0]  ;;  %v7637_v54 = vor.u32 %v6670_v27, %v5817_v31  ;;  %v5751_v27 = vld [vmem:[#allocation3 + $0x208] sm:$0xf] }
  0x6d   :  { %1356 = vmatpush.bf16.msrb.mxu1 %v7608_v23  ;;  %v7628_v23 = vor.u32 %v6610_v3, %v5559_v1  ;;  %v6662_v1 = vld [vmem:[#allocation3 + $0x24c] sm:$0xf] }
  0x6e   :  { %1369 = vmatpush.bf16.msrb.mxu2 %v7610_v24  ;;  %10027 = vst [vmem:[#allocation64_spill] sm:$0xff] %v7637_v54  ;;  %v6598_v24 = vld [vmem:[#allocation3 + $0x4c] sm:$0xf] }
  0x6f   :  { %5470 = vmatmul.msk.bf16.gmra.mxu0 %vm275_vm0, %v7321_v53  ;;  %5474 = vmatmul.msk.bf16.gmra.mxu1 %vm275_vm0, %v7321_v53  ;;  %10024 = vst [vmem:[#allocation61_spill] sm:$0xff] %v7628_v23  ;;  %v5785_v3 = vld [vmem:[#allocation3 + $0x268] sm:$0xf0] }
  0x70   :  { %5478 = vmatmul.msk.bf16.gmra.mxu2 %vm275_vm0, %v7321_v53  ;;  %1381 = vmatpush.bf16.msrb.mxu3 %v7595_v57  ;;  %v6674_v57 = vld [vmem:[#allocation3 + $0x2a4] sm:$0xf0]  ;;  %v7651_v31 = vor.u32 %v6662_v1, %v5785_v3 }
  0x71   :  { %5482 = vmatmul.msk.bf16.gmra.mxu3 %vm275_vm0, %v7321_v53  ;;  %v6682_v53 = vld [vmem:[#allocation3 + $0x2e4] sm:$0xf0]  ;;  %1344 = vmatpush.bf16.msrb.mxu0 %v7616_v43  ;;  %v5529_v43 = vld [vmem:[#allocation3 + $0x68] sm:$0xf0] }
  0x72   :  { %v7620_v56 = vor.u32 %v6682_v53, %v5847_v32  ;;  %1370 = vmatpush.bf16.msrb.mxu2 %v7622_v0  ;;  %v7632_v32 = vor.u32 %v6674_v57, %v5815_v5  ;;  %v7634_v53 = vor.u32 %v6606_v46, %v5561_v8  ;;  %v7646_v57 = vor.u32 %v6598_v24, %v5529_v43  ;;  %v5495_v8 = vld [vmem:[#allocation3 + $0x8] sm:$0xf]  ;;  %v6654_v43 = vld [vmem:[#allocation3 + $0x20c] sm:$0xf]  ;;  %v5567_v0 = vld [vmem:[#allocation3 + $0x90] sm:$0xf] }
  0x73   :  { %v6594_v5 = vld [vmem:[#allocation3 + $0x24] sm:$0xf0]  ;;  %10031 = vst [vmem:[#allocation68_spill] sm:$0xff] %v7651_v31  ;;  %v5753_v24 = vld [vmem:[#allocation3 + $0x228] sm:$0xf0] }
  0x74   :  { %10021 = vst [vmem:[#allocation58_spill] sm:$0xff] %v7620_v56  ;;  %1382 = vmatpush.bf16.msrb.mxu3 %v7613_v33  ;;  %1357 = vmatpush.bf16.msrb.mxu1 %v7620_v56  ;;  %v6666_v33 = vld [vmem:[#allocation3 + $0x264] sm:$0xf0]  ;;  %v7640_v56 = vor.u32 %v6602_v38, %v5527_v37  ;;  %v6590_v38 = vld [vmem:[#allocation3 + $0xc] sm:$0xf]  ;;  %v7669_v3 = vor.u32 %v6654_v43, %v5753_v24 }
  0x75   :  { %10025 = vst [vmem:[#allocation62_spill] sm:$0xff] %v7632_v32  ;;  %1345 = vmatpush.bf16.msrb.mxu0 %v7628_v23  ;;  %v7644_v46 = vor.u32 %v6666_v33, %v5783_v47  ;;  %v6658_v37 = vld [vmem:[#allocation3 + $0x224] sm:$0xf0]  ;;  %v7660_v33 = vor.u32 %v6594_v5, %v5495_v8  ;;  %v5983_v8 = vld [vmem:[#allocation3 + $0x3d0] sm:$0xf] }
  0x76   :  { %10026 = vst [vmem:[#allocation63_spill] sm:$0xff] %v7634_v53  ;;  %1371 = vmatpush.bf16.msrb.mxu2 %v7634_v53  ;;  %v7664_v47 = vor.u32 %v6658_v37, %v5751_v27  ;;  %v6715_v5 = vld [vmem:[#allocation3 + $0x3ec] sm:$0xf0]  ;;  %v6647_v27 = vld [vmem:[#allocation3 + $0x1d4] sm:$0xf] }
  0x77   :  { %10028 = vst [vmem:[#allocation65_spill] sm:$0xff] %v7640_v56  ;;  %v5729_v37 = vld [vmem:[#allocation3 + $0x1f0] sm:$0xf0] }
  0x78   :  { %1383 = vmatpush.bf16.msrb.mxu3 %v7625_v7  ;;  %1358 = vmatpush.bf16.msrb.mxu1 %v7632_v32  ;;  %10029 = vst [vmem:[#allocation66_spill] sm:$0xff] %v7644_v46  ;;  %v5497_v7 = vld [vmem:[#allocation3 + $0x28] sm:$0xf0]  ;;  %v6711_v43 = vld [vmem:[#allocation3 + $0x3d4] sm:$0xf] }
  0x79   :  { %10030 = vst [vmem:[#allocation67_spill] sm:$0xff] %v7646_v57  ;;  %1346 = vmatpush.bf16.msrb.mxu0 %v7640_v56  ;;  %v7666_v1 = vor.u32 %v6590_v38, %v5497_v7  ;;  %v6651_v7 = vld [vmem:[#allocation3 + $0x1ec] sm:$0xf0]  ;;  %v5985_v24 = vld [vmem:[#allocation3 + $0x3f0] sm:$0xf0] }
  0x7a   :  { %10032 = vst [vmem:[#allocation69_spill] sm:$0xff] %v7660_v33  ;;  %1372 = vmatpush.bf16.msrb.mxu2 %v7646_v57  ;;  %v9713_v57 = vmov 0   ;;  %v6707_v56 = vld [vmem:[#allocation3 + $0x3ac] sm:$0xf0]  ;;  %v5697_v32 = vld [vmem:[#allocation3 + $0x1b0] sm:$0xf0] }
  0x7b   :  { %10033 = vst [vmem:[#allocation70_spill] sm:$0xff] %v7664_v47  ;;  %v6623_v23 = vld [vmem:[#allocation3 + $0x114] sm:$0xf] }
  0x7c   :  { %1384 = vmatpush.bf16.msrb.mxu3 %v7637_v54  ;;  %1359 = vmatpush.bf16.msrb.mxu1 %v7644_v46  ;;  %10034 = vst [vmem:[#allocation71_spill] sm:$0xff] %v7666_v1  ;;  %v5951_v46 = vld [vmem:[#allocation3 + $0x390] sm:$0xf]  ;;  %v7694_v54 = vor.u32 %v6711_v43, %v5985_v24 }
  0x7d   :  { %10035 = vst [vmem:[#allocation72_spill] sm:$0xff] %v7669_v3  ;;  %1347 = vmatpush.bf16.msrb.mxu0 %v7660_v33  ;;  %v5695_v33 = vld [vmem:[#allocation3 + $0x190] sm:$0xf] }
  0x7e   :  { %1373 = vmatpush.bf16.msrb.mxu2 %v7666_v1  ;;  %v7689_v1 = vor.u32 %v6715_v5, %v5983_v8  ;;  %10041 = vst [vmem:[#allocation78_spill] sm:$0xff] %v7694_v54  ;;  %v7704_v5 = vor.u32 %v6707_v56, %v5951_v46  ;;  %v6635_v43 = vld [vmem:[#allocation3 + $0x16c] sm:$0xf0]  ;;  %v6695_v56 = vld [vmem:[#allocation3 + $0x354] sm:$0xf] }
  0x7f   :  { %5471 = vmatmul.msk.bf16.gmra.mxu0 %vm275_vm0, %v7427_v35  ;;  %5475 = vmatmul.msk.bf16.gmra.mxu1 %vm275_vm0, %v7427_v35  ;;  %v5919_v24 = vld [vmem:[#allocation3 + $0x350] sm:$0xf]  ;;  %v5921_v46 = vld [vmem:[#allocation3 + $0x370] sm:$0xf0] }
  0x80   :  { %5479 = vmatmul.msk.bf16.gmra.mxu2 %vm275_vm0, %v7427_v35  ;;  %1385 = vmatpush.bf16.msrb.mxu3 %v7651_v31  ;;  %10039 = vst [vmem:[#allocation76_spill] sm:$0xff] %v7689_v1  ;;  %v7691_v31 = vor.u32 %v6647_v27, %v5729_v37  ;;  %v5663_v37 = vld [vmem:[#allocation3 + $0x150] sm:$0xf] }
  0x81   :  { %5483 = vmatmul.msk.bf16.gmra.mxu3 %vm275_vm0, %v7427_v35  ;;  %1360 = vmatpush.bf16.msrb.mxu1 %v7664_v47  ;;  %v5727_v35 = vld [vmem:[#allocation3 + $0x1d0] sm:$0xf]  ;;  %10043 = vst [vmem:[#allocation80_spill] sm:$0xff] %v7704_v5 }
  0x82   :  { %v7687_v47 = vor.u32 %v6651_v7, %v5727_v35  ;;  %10040 = vst [vmem:[#allocation77_spill] sm:$0xff] %v7691_v31  ;;  %v6703_v35 = vld [vmem:[#allocation3 + $0x394] sm:$0xf] }
  0x83   :  { %v5953_v7 = vld [vmem:[#allocation3 + $0x3b0] sm:$0xf0] }
  0x84   :  { %1386 = vmatpush.bf16.msrb.mxu3 %v7669_v3  ;;  %10038 = vst [vmem:[#allocation75_spill] sm:$0xff] %v7687_v47 }
  0x8f   :  { %5472 = vmatmul.msk.bf16.gmra.mxu0 %vm275_vm0, %v7481_v17  ;;  %5476 = vmatmul.msk.bf16.gmra.mxu1 %vm275_vm0, %v7481_v17 }
  0x90   :  { %5480 = vmatmul.msk.bf16.gmra.mxu2 %vm275_vm0, %v7481_v17 }
  0x91   :  { %5484 = vmatmul.msk.bf16.gmra.mxu3 %vm275_vm0, %v7481_v17  ;;  %v6643_v17 = vld [vmem:[#allocation3 + $0x1ac] sm:$0xf0] }
  0x92   :  { %v7700_v8 = vor.u32 %v6643_v17, %v5695_v33  ;;  %v6631_v33 = vld [vmem:[#allocation3 + $0x154] sm:$0xf] }
  0x93   :  { %v5665_v17 = vld [vmem:[#allocation3 + $0x170] sm:$0xf0] }
  0x94   :  { %10042 = vst [vmem:[#allocation79_spill] sm:$0xff] %v7700_v8 }
  0x9c   :  { %v7683_v38 = vpop.f32.mrf.mxu0  ;;  %v7685_v3 = vpop.f32.mrf.mxu1 }
  0x9d   :  { %10036 = vst [vmem:[#allocation73_spill] sm:$0xff] %v7683_v38  ;;  %v6639_v38 = vld [vmem:[#allocation3 + $0x194] sm:$0xf] }
  0x9e   :  { %10037 = vst [vmem:[#allocation74_spill] sm:$0xff] %v7685_v3  ;;  %v7706_v27 = vor.u32 %v6639_v38, %v5697_v32  ;;  %v7720_v32 = vld [vmem:[%s9670_s3] sm:$0xff] }
  0x9f   :  { %1296 = vmatmul.bf16.vlgmr.msra.gmra.mxu0 %v9713_v57  ;;  %1309 = vmatmul.bf16.vlgmr.msra.gmra.mxu1 %v9713_v57 }
  0xa0   :  { %1322 = vmatmul.bf16.vlgmr.msra.gmra.mxu2 %v9713_v57  ;;  %1392 = vmatpush.bf16.msra.mxu0 %v7687_v47  ;;  %10044 = vst [vmem:[#allocation81_spill] sm:$0xff] %v7706_v27  ;;  %v6699_v47 = vld [vmem:[#allocation3 + $0x36c] sm:$0xf0] }
  0xa1   :  { %1335 = vmatmul.bf16.vlgmr.msra.gmra.mxu3 %v9713_v57  ;;  %1405 = vmatpush.bf16.msra.mxu1 %v7689_v1  ;;  %v7711_v57 = vor.u32 %v6703_v35, %v5953_v7  ;;  %v7725_v35 = vor.u32 %v6635_v43, %v5663_v37  ;;  %v7729_v7 = vor.u32 %v6699_v47, %v5919_v24  ;;  %v6687_v37 = vld [vmem:[#allocation3 + $0x314] sm:$0xf] }
  0xa2   :  { %1418 = vmatpush.bf16.msra.mxu2 %v7691_v31  ;;  %1431 = vmatpush.bf16.msra.mxu3 %v7694_v54  ;;  %v5631_v54 = vld [vmem:[#allocation3 + $0x110] sm:$0xf]  ;;  %v5889_v43 = vld [vmem:[#allocation3 + $0x330] sm:$0xf0] }
  0xa3   :  { %v7709_v3 = vpop.f32.mrf.mxu2  ;;  %10046 = vst [vmem:[#allocation83_spill] sm:$0xff] %v7711_v57  ;;  %v6627_v31 = vld [vmem:[#allocation3 + $0x12c] sm:$0xf0] }
  0xa4   :  { %10045 = vst [vmem:[#allocation82_spill] sm:$0xff] %v7709_v3  ;;  %v7713_v53 = vpop.f32.mrf.mxu3  ;;  %v7715_v1 = vpop.f32.mrf.mxu0  ;;  %1393 = vmatpush.bf16.msra.mxu0 %v7700_v8  ;;  %v7734_v3 = vor.u32 %v6695_v56, %v5921_v46  ;;  %v6691_v8 = vld [vmem:[#allocation3 + $0x32c] sm:$0xf0]  ;;  %v7740_v47 = vor.u32 %v6627_v31, %v5631_v54  ;;  %v6615_v54 = vld [vmem:[#allocation3 + $0xd4] sm:$0xf] }
  0xa5   :  { %10047 = vst [vmem:[#allocation84_spill] sm:$0xff] %v7713_v53  ;;  %v7723_v38 = vpop.f32.mrf.mxu1  ;;  %1406 = vmatpush.bf16.msra.mxu1 %v7704_v5  ;;  %v5887_v53 = vld [vmem:[#allocation3 + $0x310] sm:$0xf]  ;;  %v7737_v5 = vperm.slane %v7720_v32, 0  ;;  %v5601_v31 = vld [vmem:[#allocation3 + $0xf0] sm:$0xf0] }
  0xa6   :  { %10048 = vst [vmem:[#allocation85_spill] sm:$0xff] %v7715_v1  ;;  %1419 = vmatpush.bf16.msra.mxu2 %v7706_v27  ;;  %v7731_v1 = vor.u32 %v6631_v33, %v5665_v17  ;;  %1432 = vmatpush.bf16.msra.mxu3 %v7711_v57  ;;  %v7744_v24 = vor.u32 %v6691_v8, %v5887_v53  ;;  %v5599_v17 = vld [vmem:[#allocation3 + $0xd0] sm:$0xf]  ;;  %v5857_v8 = vld [vmem:[#allocation3 + $0x2f0] sm:$0xf0] }
  0xa7   :  { %10049 = vst [vmem:[#allocation86_spill] sm:$0xff] %v7723_v38  ;;  %v5633_v38 = vld [vmem:[#allocation3 + $0x130] sm:$0xf0]  ;;  %v6619_v56 = vld [vmem:[#allocation3 + $0xec] sm:$0xf0]  ;;  %v7751_v27 = vor.u32 %v6687_v37, %v5889_v43 }
  0xa8   :  { %10050 = vst [vmem:[#allocation87_spill] sm:$0xff] %v7725_v35  ;;  %1394 = vmatpush.bf16.msra.mxu0 %v7725_v35  ;;  %v7746_v33 = vor.u32 %v6623_v23, %v5633_v38  ;;  %v5855_v46 = vld [vmem:[#allocation3 + $0x2d0] sm:$0xf]  ;;  %v6679_v23 = vld [vmem:[#allocation3 + $0x2d4] sm:$0xf] }
  0xa9   :  { %10051 = vst [vmem:[#allocation88_spill] sm:$0xff] %v7729_v7  ;;  %1407 = vmatpush.bf16.msra.mxu1 %v7729_v7  ;;  %v6683_v35 = vld [vmem:[#allocation3 + $0x2ec] sm:$0xf0]  ;;  %v7754_v7 = vperm.slane %v7720_v32, 1 }
  0xaa   :  { %10052 = vst [vmem:[#allocation89_spill] sm:$0xff] %v7731_v1  ;;  %1420 = vmatpush.bf16.msra.mxu2 %v7731_v1  ;;  %1433 = vmatpush.bf16.msra.mxu3 %v7734_v3  ;;  %v7769_v43 = vor.u32 %v6683_v35, %v5855_v46  ;;  %v5825_v35 = vld [vmem:[#allocation3 + $0x2b0] sm:$0xf0]  ;;  %v7780_v46 = vperm.slane %v7720_v32, 2 }
  0xab   :  { %10053 = vst [vmem:[#allocation90_spill] sm:$0xff] %v7734_v3  ;;  %v7749_v57 = vpop.f32.mrf.mxu2 }
  0xac   :  { %10054 = vst [vmem:[#allocation91_spill] sm:$0xff] %v7737_v5  ;;  %v7756_v1 = vpop.f32.mrf.mxu3  ;;  %v302_v53 = vpop.f32.mrf.mxu0  ;;  %1395 = vmatpush.bf16.msra.mxu0 %v7740_v47 }
  0xad   :  { %10055 = vst [vmem:[#allocation92_spill] sm:$0xff] %v7740_v47  ;;  %v7760_v38 = vadd.f32 %v302_v53, %v7737_v5  ;;  %v331_v3 = vpop.f32.mrf.mxu1  ;;  %1408 = vmatpush.bf16.msra.mxu1 %v7744_v24  ;;  %v5823_v47 = vld [vmem:[#allocation3 + $0x290] sm:$0xf]  ;;  %v10067_v53 = vmov 0  }
  0xae   :  { %10056 = vst [vmem:[#allocation93_spill] sm:$0xff] %v7744_v24  ;;  %1421 = vmatpush.bf16.msra.mxu2 %v7746_v33  ;;  %v7767_v37 = vadd.f32 %v331_v3, %v7754_v7  ;;  %1434 = vmatpush.bf16.msra.mxu3 %v7751_v27  ;;  %v5569_v24 = vld [vmem:[#allocation3 + $0xb0] sm:$0xf0] }
  0xaf   :  { %10057 = vst [vmem:[#allocation94_spill] sm:$0xff] %v7746_v33  ;;  %1348 = vmatmul.bf16.vlgmr.msrb.gmra.mxu0 %v10067_v53  ;;  %1361 = vmatmul.bf16.vlgmr.msrb.gmra.mxu1 %v10067_v53  ;;  %v6671_v3 = vld [vmem:[#allocation3 + $0x294] sm:$0xf]  ;;  %v5791_v33 = vld [vmem:[#allocation3 + $0x250] sm:$0xf] }
  0xb0   :  { %10058 = vst [vmem:[#allocation95_spill] sm:$0xff] %v7749_v57  ;;  %v7762_v57 = vor.u32 %v6619_v56, %v5599_v17  ;;  %v7775_v17 = vor.u32 %v6679_v23, %v5857_v8  ;;  %v6675_v56 = vld [vmem:[#allocation3 + $0x2ac] sm:$0xf0]  ;;  %1374 = vmatmul.bf16.vlgmr.msrb.gmra.mxu2 %v10067_v53  ;;  %v7796_v18 = vor.u32 %v6671_v3, %v5825_v35 }
  0xb1   :  { %10059 = vst [vmem:[#allocation96_spill] sm:$0xff] %v7751_v27  ;;  %1387 = vmatmul.bf16.vlgmr.msrb.gmra.mxu3 %v10067_v53  ;;  %1409 = vmatpush.bf16.msra.mxu1 %v7769_v43  ;;  %v7791_v23 = vor.u32 %v6675_v56, %v5823_v47  ;;  %v6603_v27 = vld [vmem:[#allocation3 + $0x6c] sm:$0xf0]  ;;  %v6663_v47 = vld [vmem:[#allocation3 + $0x254] sm:$0xf] }
  0xb2   :  { %10060 = vst [vmem:[#allocation97_spill] sm:$0xff] %v7754_v7  ;;  %1396 = vmatpush.bf16.msra.mxu0 %v7762_v57  ;;  %1435 = vmatpush.bf16.msra.mxu3 %v7775_v17  ;;  %v5503_v35 = vld [vmem:[#allocation3 + $0x10] sm:$0xf] }
  0xb3   :  { %10061 = vst [vmem:[#allocation98_spill] sm:$0xff] %v7756_v1  ;;  %v7771_v1 = vor.u32 %v6615_v54, %v5601_v31  ;;  %v7783_v54 = vperm.slane %v7720_v32, 3  ;;  %v7787_v31 = vor.u32 %v6611_v20, %v5567_v0  ;;  %v360_v39 = vpop.f32.mrf.mxu2  ;;  %v5537_v20 = vld [vmem:[#allocation3 + $0x70] sm:$0xf0] }
  0xb4   :  { %10062 = vst [vmem:[#allocation99_spill] sm:$0xff] %v7760_v38  ;;  %v6607_v38 = vld [vmem:[#allocation3 + $0x94] sm:$0xf]  ;;  %v7799_v0 = vadd.f32 %v360_v39, %v7780_v46  ;;  %v7813_v39 = vor.u32 %v6667_v19, %v5791_v33  ;;  %v6716_v19 = vld [vmem:[#allocation3 + $0x3f4] sm:$0xf0] }
  0xb5   :  { %10063 = vst [vmem:[#allocation100_spill] sm:$0xff] %v7762_v57  ;;  %1422 = vmatpush.bf16.msra.mxu2 %v7771_v1  ;;  %v7793_v8 = vor.u32 %v6607_v38, %v5569_v24  ;;  %v6599_v57 = vld [vmem:[#allocation3 + $0x54] sm:$0xf]  ;;  %v7807_v56 = vpop.f32.mrf.mxu1  ;;  %1410 = vmatpush.bf16.msra.mxu1 %v7791_v23  ;;  %v5737_v33 = vld [vmem:[#allocation3 + $0x1f8] sm:$0xf0] }
  0xb6   :  { %10064 = vst [vmem:[#allocation101_spill] sm:$0xff] %v7767_v37  ;;  %v5535_v37 = vld [vmem:[#allocation3 + $0x50] sm:$0xf]  ;;  %v5793_v24 = vld [vmem:[#allocation3 + $0x270] sm:$0xf0]  ;;  %1397 = vmatpush.bf16.msra.mxu0 %v7787_v31  ;;  %1436 = vmatpush.bf16.msra.mxu3 %v7796_v18 }
  0xb7   :  { %10065 = vst [vmem:[#allocation102_spill] sm:$0xff] %v7769_v43  ;;  %v389_v43 = vpop.f32.mrf.mxu3  ;;  %v7809_v3 = vor.u32 %v6603_v27, %v5535_v37  ;;  %v6655_v27 = vld [vmem:[#allocation3 + $0x214] sm:$0xf] }
  0xb8   :  { %10066 = vst [vmem:[#allocation103_spill] sm:$0xff] %v7771_v1  ;;  %v7801_v1 = vpop.f32.mrf.mxu0  ;;  %v7804_v38 = vadd.f32 %v389_v43, %v7783_v54  ;;  %v6591_v43 = vld [vmem:[#allocation3 + $0x14] sm:$0xf] }
  0xb9   :  { %10068 = vst [vmem:[#allocation104_spill] sm:$0xff] %v7775_v17  ;;  %v6595_v17 = vld [vmem:[#allocation3 + $0x2c] sm:$0xf0]  ;;  %1423 = vmatpush.bf16.msra.mxu2 %v7793_v8  ;;  %v5761_v37 = vld [vmem:[#allocation3 + $0x230] sm:$0xf0]  ;;  %1411 = vmatpush.bf16.msra.mxu1 %v7813_v39 }
  0xba   :  { %10069 = vst [vmem:[#allocation105_spill] sm:$0xff] %v7780_v46  ;;  %1398 = vmatpush.bf16.msra.mxu0 %v7809_v3 }
  0xbb   :  { %10070 = vst [vmem:[#allocation106_spill] sm:$0xff] %v7783_v54 }
  0xbc   :  { %10071 = vst [vmem:[#allocation107_spill] sm:$0xff] %v7787_v31  ;;  %v5735_v31 = vld [vmem:[#allocation3 + $0x1d8] sm:$0xf] }
  0xbd   :  { %10072 = vst [vmem:[#allocation108_spill] sm:$0xff] %v7791_v23  ;;  %v7821_v23 = vor.u32 %v6595_v17, %v5503_v35  ;;  %v7834_v17 = vor.u32 %v6652_v4, %v5735_v31  ;;  %v6708_v4 = vld [vmem:[#allocation3 + $0x3b4] sm:$0xf0]  ;;  %v6640_v31 = vld [vmem:[#allocation3 + $0x19c] sm:$0xf] }
  0xbe   :  { %10073 = vst [vmem:[#allocation109_spill] sm:$0xff] %v7793_v8  ;;  %v7830_v8 = vpop.f32.mrf.mxu2 }
  0xbf   :  { %10074 = vst [vmem:[#allocation110_spill] sm:$0xff] %v7796_v18  ;;  %v5993_v18 = vld [vmem:[#allocation3 + $0x3f8] sm:$0xf0]  ;;  %v7836_v35 = vpop.f32.mrf.mxu3  ;;  %1399 = vmatpush.bf16.msra.mxu0 %v7821_v23 }
  0xc0   :  { %10075 = vst [vmem:[#allocation111_spill] sm:$0xff] %v7799_v0  ;;  %v5759_v0 = vld [vmem:[#allocation3 + $0x210] sm:$0xf]  ;;  %v307_v50 = vpop.f32.mrf.mxu0 }
  0xc1   :  { %10076 = vst [vmem:[#allocation112_spill] sm:$0xff] %v7801_v1  ;;  %v7815_v1 = vor.u32 %v6599_v57, %v5537_v20  ;;  %v6648_v57 = vld [vmem:[#allocation3 + $0x1dc] sm:$0xf]  ;;  %v7825_v20 = vor.u32 %v6659_v63, %v5759_v0  ;;  %v5703_v63 = vld [vmem:[#allocation3 + $0x198] sm:$0xf] }
  0xc2   :  { %10077 = vst [vmem:[#allocation113_spill] sm:$0xff] %v7804_v38  ;;  %v7818_v38 = vor.u32 %v6663_v47, %v5793_v24  ;;  %v6712_v24 = vld [vmem:[#allocation3 + $0x3dc] sm:$0xf]  ;;  %v6644_v0 = vld [vmem:[#allocation3 + $0x1b4] sm:$0xf0]  ;;  %1400 = vmatmul.bf16.vlgmr.msra.gmra.mxu0 %v10067_v53 }
  0xc3   :  { %10078 = vst [vmem:[#allocation114_spill] sm:$0xff] %v7807_v56  ;;  %v5505_v56 = vld [vmem:[#allocation3 + $0x30] sm:$0xf0]  ;;  %1424 = vmatpush.bf16.msra.mxu2 %v7815_v1  ;;  %1412 = vmatpush.bf16.msra.mxu1 %v7825_v20 }
  0xc4   :  { %10079 = vst [vmem:[#allocation115_spill] sm:$0xff] %v7809_v3  ;;  %v7827_v47 = vor.u32 %v6591_v43, %v5505_v56  ;;  %1437 = vmatpush.bf16.msra.mxu3 %v7818_v38  ;;  %v7832_v3 = vor.u32 %v6655_v27, %v5761_v37  ;;  %v5959_v56 = vld [vmem:[#allocation3 + $0x398] sm:$0xf]  ;;  %v7844_v43 = vadd.f32 %v307_v50, %v7737_v5  ;;  %v5705_v37 = vld [vmem:[#allocation3 + $0x1b8] sm:$0xf0] }
  0xc5   :  { %10080 = vst [vmem:[#allocation116_spill] sm:$0xff] %v7813_v39  ;;  %v7838_v39 = vor.u32 %v6716_v19, %v5991_v42  ;;  %v7846_v27 = vor.u32 %v6712_v24, %v5993_v18  ;;  %v6704_v19 = vld [vmem:[#allocation3 + $0x39c] sm:$0xf]  ;;  %1444 = vmatpush.bf16.msrb.mxu0 %v7834_v17  ;;  %v7855_v50 = vor.u32 %v6644_v0, %v5703_v63  ;;  %v5671_v24 = vld [vmem:[#allocation3 + $0x158] sm:$0xf] }
  0xc6   :  { %10081 = vst [vmem:[#allocation117_spill] sm:$0xff] %v7815_v1  ;;  %v7840_v1 = vor.u32 %v6648_v57, %v5737_v33  ;;  %v5961_v57 = vld [vmem:[#allocation3 + $0x3b8] sm:$0xf0]  ;;  %v7859_v18 = vor.u32 %v6708_v4, %v5959_v56  ;;  %v7861_v33 = vor.u32 %v6640_v31, %v5705_v37  ;;  %1413 = vmatmul.bf16.vlgmr.msra.gmra.mxu1 %v10067_v53  ;;  %v365_v31 = vpop.f32.mrf.mxu2 }
  0xc7   :  { %10082 = vst [vmem:[#allocation118_spill] sm:$0xff] %v7818_v38  ;;  %1425 = vmatpush.bf16.msra.mxu2 %v7827_v47  ;;  %1457 = vmatpush.bf16.msrb.mxu1 %v7838_v39  ;;  %v6632_v63 = vld [vmem:[#allocation3 + $0x15c] sm:$0xf]  ;;  %v6628_v38 = vld [vmem:[#allocation3 + $0x134] sm:$0xf0] }
  0xc8   :  { %10083 = vst [vmem:[#allocation119_spill] sm:$0xff] %v7821_v23  ;;  %1438 = vmatpush.bf16.msra.mxu3 %v7832_v3  ;;  %v5673_v0 = vld [vmem:[#allocation3 + $0x178] sm:$0xf0] }
  0xc9   :  { %10084 = vst [vmem:[#allocation120_spill] sm:$0xff] %v7825_v20  ;;  %v6696_v56 = vld [vmem:[#allocation3 + $0x35c] sm:$0xf]  ;;  %1445 = vmatpush.bf16.msrb.mxu0 %v7855_v50  ;;  %v5639_v20 = vld [vmem:[#allocation3 + $0x118] sm:$0xf] }
  0xca   :  { %10085 = vst [vmem:[#allocation121_spill] sm:$0xff] %v7827_v47  ;;  %1426 = vmatmul.bf16.vlgmr.msra.gmra.mxu2 %v10067_v53  ;;  %v5929_v4 = vld [vmem:[#allocation3 + $0x378] sm:$0xf0] }
  0xcb   :  { %10086 = vst [vmem:[#allocation122_spill] sm:$0xff] %v7830_v8  ;;  %v336_v8 = vpop.f32.mrf.mxu1  ;;  %1470 = vmatpush.bf16.msrb.mxu2 %v7840_v1  ;;  %1439 = vmatmul.bf16.vlgmr.msra.gmra.mxu3 %v10067_v53 }
  0xcc   :  { %10087 = vst [vmem:[#allocation123_spill] sm:$0xff] %v7832_v3  ;;  %v7851_v42 = vadd.f32 %v336_v8, %v7754_v7  ;;  %v5927_v8 = vld [vmem:[#allocation3 + $0x358] sm:$0xf]  ;;  %1483 = vmatpush.bf16.msrb.mxu3 %v7846_v27  ;;  %1458 = vmatpush.bf16.msrb.mxu1 %v7859_v18  ;;  %v7882_v3 = vor.u32 %v6632_v63, %v5673_v0 }
  0xcd   :  { %10088 = vst [vmem:[#allocation124_spill] sm:$0xff] %v7834_v17 }
  0xce   :  { %10089 = vst [vmem:[#allocation125_spill] sm:$0xff] %v7836_v35  ;;  %v6700_v35 = vld [vmem:[#allocation3 + $0x374] sm:$0xf0] }
  0xcf   :  { %10090 = vst [vmem:[#allocation126_spill] sm:$0xff] %v7838_v39  ;;  %1471 = vmatpush.bf16.msrb.mxu2 %v7861_v33  ;;  %v7880_v39 = vor.u32 %v6700_v35, %v5927_v8  ;;  %v5897_v35 = vld [vmem:[#allocation3 + $0x338] sm:$0xf0]  ;;  %v7893_v8 = vor.u32 %v6628_v38, %v5639_v20 }
  0xd0   :  { %10091 = vst [vmem:[#allocation127_spill] sm:$0xff] %v7840_v1  ;;  %v6680_v38 = vld [vmem:[#allocation3 + $0x2dc] sm:$0xf] }
  0xd1   :  { %10092 = vst [vmem:[#allocation128_spill] sm:$0xff] %v7844_v43  ;;  %v6636_v43 = vld [vmem:[#allocation3 + $0x174] sm:$0xf0]  ;;  %1459 = vmatpush.bf16.msrb.mxu1 %v7880_v39  ;;  %v5865_v20 = vld [vmem:[#allocation3 + $0x2f8] sm:$0xf0] }
  0xd2   :  { %10093 = vst [vmem:[#allocation129_spill] sm:$0xff] %v7846_v27  ;;  %v7871_v37 = vor.u32 %v6636_v43, %v5671_v24  ;;  %v7878_v27 = vpop.f32.mrf.mxu0 }
  0xd3   :  { %10094 = vst [vmem:[#allocation130_spill] sm:$0xff] %v7851_v42  ;;  %v7865_v42 = vor.u32 %v6704_v19, %v5961_v57  ;;  %v7876_v19 = vadd.f32 %v365_v31, %v7780_v46  ;;  %v394_v57 = vpop.f32.mrf.mxu3  ;;  %v7888_v24 = vpop.f32.mrf.mxu1  ;;  %v6692_v31 = vld [vmem:[#allocation3 + $0x334] sm:$0xf0]  ;;  %1472 = vmatpush.bf16.msrb.mxu2 %v7882_v3 }
  0xd4   :  { %10095 = vst [vmem:[#allocation131_spill] sm:$0xff] %v7855_v50  ;;  %v5895_v50 = vld [vmem:[#allocation3 + $0x318] sm:$0xf]  ;;  %v7886_v43 = vadd.f32 %v394_v57, %v7783_v54  ;;  %1446 = vmatpush.bf16.msrb.mxu0 %v7871_v37 }
  0xd5   :  { %10096 = vst [vmem:[#allocation132_spill] sm:$0xff] %v7859_v18  ;;  %1484 = vmatpush.bf16.msrb.mxu3 %v7865_v42  ;;  %v7890_v18 = vor.u32 %v6696_v56, %v5929_v4  ;;  %v7897_v63 = vor.u32 %v6692_v31, %v5895_v50  ;;  %v5607_v57 = vld [vmem:[#allocation3 + $0xd8] sm:$0xf] }
  0xd6   :  { %10097 = vst [vmem:[#allocation133_spill] sm:$0xff] %v7861_v33  ;;  %v5641_v33 = vld [vmem:[#allocation3 + $0x138] sm:$0xf0]  ;;  %v6620_v56 = vld [vmem:[#allocation3 + $0xf4] sm:$0xf0] }
  0xd7   :  { %10098 = vst [vmem:[#allocation134_spill] sm:$0xff] %v7865_v42  ;;  %v5863_v4 = vld [vmem:[#allocation3 + $0x2d8] sm:$0xf]  ;;  %v6616_v42 = vld [vmem:[#allocation3 + $0xdc] sm:$0xf]  ;;  %v7907_v50 = vor.u32 %v6620_v56, %v5607_v57  ;;  %1460 = vmatpush.bf16.msrb.mxu1 %v7897_v63  ;;  %v7921_v56 = vor.u32 %v6680_v38, %v5865_v20 }
  0xd8   :  { %10099 = vst [vmem:[#allocation135_spill] sm:$0xff] %v7871_v37  ;;  %v5609_v37 = vld [vmem:[#allocation3 + $0xf8] sm:$0xf0]  ;;  %1447 = vmatpush.bf16.msrb.mxu0 %v7893_v8  ;;  %v5543_v20 = vld [vmem:[#allocation3 + $0x58] sm:$0xf] }
  0xd9   :  { %10100 = vst [vmem:[#allocation136_spill] sm:$0xff] %v7876_v19  ;;  %v6624_v19 = vld [vmem:[#allocation3 + $0x11c] sm:$0xf]  ;;  %1485 = vmatpush.bf16.msrb.mxu3 %v7890_v18  ;;  %v7915_v31 = vor.u32 %v6616_v42, %v5609_v37 }
  0xda   :  { %10101 = vst [vmem:[#allocation137_spill] sm:$0xff] %v7878_v27  ;;  %v6688_v27 = vld [vmem:[#allocation3 + $0x31c] sm:$0xf]  ;;  %v7899_v0 = vor.u32 %v6624_v19, %v5641_v33  ;;  %v312_v19 = vpop.f32.mrf.mxu0 }
  0xdb   :  { %10102 = vst [vmem:[#allocation138_spill] sm:$0xff] %v7880_v39  ;;  %v7905_v39 = vpop.f32.mrf.mxu2  ;;  %v7911_v33 = vpop.f32.mrf.mxu3  ;;  %v5833_v42 = vld [vmem:[#allocation3 + $0x2b8] sm:$0xf0] }
  0xdc   :  { %10103 = vst [vmem:[#allocation139_spill] sm:$0xff] %v7882_v3  ;;  %1473 = vmatpush.bf16.msrb.mxu2 %v7899_v0  ;;  %v5831_v3 = vld [vmem:[#allocation3 + $0x298] sm:$0xf]  ;;  %v341_v57 = vpop.f32.mrf.mxu1  ;;  %1448 = vmatpush.bf16.msrb.mxu0 %v7907_v50 }
  0xdd   :  { %10104 = vst [vmem:[#allocation140_spill] sm:$0xff] %v7886_v43  ;;  %v6684_v43 = vld [vmem:[#allocation3 + $0x2f4] sm:$0xf0] }
  0xde   :  { %10105 = vst [vmem:[#allocation141_spill] sm:$0xff] %v7888_v24  ;;  %v7902_v24 = vor.u32 %v6688_v27, %v5897_v35  ;;  %v7913_v27 = vor.u32 %v6684_v43, %v5863_v4  ;;  %v5575_v35 = vld [vmem:[#allocation3 + $0x98] sm:$0xf]  ;;  %v6672_v43 = vld [vmem:[#allocation3 + $0x29c] sm:$0xf] }
  0xdf   :  { %10106 = vst [vmem:[#allocation142_spill] sm:$0xff] %v7890_v18  ;;  %v6612_v18 = vld [vmem:[#allocation3 + $0xb4] sm:$0xf0] }
  0xe0   :  { %10107 = vst [vmem:[#allocation143_spill] sm:$0xff] %v7893_v8  ;;  %1486 = vmatpush.bf16.msrb.mxu3 %v7902_v24  ;;  %v5577_v8 = vld [vmem:[#allocation3 + $0xb8] sm:$0xf0]  ;;  %v7927_v37 = vor.u32 %v6612_v18, %v5575_v35  ;;  %1461 = vmatpush.bf16.msrb.mxu1 %v7913_v27 }
  0xe1   :  { %10108 = vst [vmem:[#allocation144_spill] sm:$0xff] %v7897_v63  ;;  %v6676_v63 = vld [vmem:[#allocation3 + $0x2b4] sm:$0xf0]  ;;  %1474 = vmatpush.bf16.msrb.mxu2 %v7915_v31  ;;  %v6664_v18 = vld [vmem:[#allocation3 + $0x25c] sm:$0xf] }
  0xe2   :  { %10109 = vst [vmem:[#allocation145_spill] sm:$0xff] %v7899_v0  ;;  %v6608_v0 = vld [vmem:[#allocation3 + $0x9c] sm:$0xf]  ;;  %v7931_v4 = vor.u32 %v6676_v63, %v5831_v3  ;;  %1449 = vmatpush.bf16.msrb.mxu0 %v7927_v37  ;;  %v7946_v63 = vpop.f32.mrf.mxu0 }
  0xe3   :  { %10110 = vst [vmem:[#allocation146_spill] sm:$0xff] %v7902_v24  ;;  %v7933_v38 = vor.u32 %v6608_v0, %v5577_v8  ;;  %v6600_v24 = vld [vmem:[#allocation3 + $0x5c] sm:$0xf]  ;;  %v399_v8 = vpop.f32.mrf.mxu3 }
  0xe4   :  { %10111 = vst [vmem:[#allocation147_spill] sm:$0xff] %v7905_v39  ;;  %v7919_v39 = vadd.f32 %v312_v19, %v7737_v5  ;;  %v6604_v19 = vld [vmem:[#allocation3 + $0x74] sm:$0xf0]  ;;  %1487 = vmatpush.bf16.msrb.mxu3 %v7921_v56  ;;  %v5801_v35 = vld [vmem:[#allocation3 + $0x278] sm:$0xf0]  ;;  %1462 = vmatpush.bf16.msrb.mxu1 %v7931_v4 }
  0xe5   :  { %10112 = vst [vmem:[#allocation148_spill] sm:$0xff] %v7907_v50  ;;  %v5545_v50 = vld [vmem:[#allocation3 + $0x78] sm:$0xf0]  ;;  %1475 = vmatpush.bf16.msrb.mxu2 %v7933_v38 }
  0xe6   :  { %10113 = vst [vmem:[#allocation149_spill] sm:$0xff] %v7911_v33  ;;  %v7924_v33 = vadd.f32 %v341_v57, %v7754_v7  ;;  %v7936_v57 = vor.u32 %v6672_v43, %v5833_v42  ;;  %v7950_v43 = vor.u32 %v6600_v24, %v5545_v50  ;;  %v5511_v42 = vld [vmem:[#allocation3 + $0x18] sm:$0xf] }
  0xe7   :  { %10114 = vst [vmem:[#allocation150_spill] sm:$0xff] %v7913_v27  ;;  %v370_v27 = vpop.f32.mrf.mxu2 }
  0xe8   :  { %10115 = vst [vmem:[#allocation151_spill] sm:$0xff] %v7915_v31  ;;  %v7939_v31 = vor.u32 %v6604_v19, %v5543_v20  ;;  %v7944_v3 = vadd.f32 %v370_v27, %v7780_v46  ;;  %1488 = vmatpush.bf16.msrb.mxu3 %v7936_v57  ;;  %v7954_v20 = vadd.f32 %v399_v8, %v7783_v54  ;;  %v7956_v19 = vpop.f32.mrf.mxu1  ;;  %v6660_v27 = vld [vmem:[#allocation3 + $0x234] sm:$0xf0] }
  0xe9   :  { %10116 = vst [vmem:[#allocation152_spill] sm:$0xff] %v7919_v39  ;;  %v5799_v39 = vld [vmem:[#allocation3 + $0x258] sm:$0xf]  ;;  %1476 = vmatpush.bf16.msrb.mxu2 %v7950_v43 }
  0xea   :  { %10117 = vst [vmem:[#allocation153_spill] sm:$0xff] %v7921_v56  ;;  %v6596_v56 = vld [vmem:[#allocation3 + $0x34] sm:$0xf0]  ;;  %1450 = vmatpush.bf16.msrb.mxu0 %v7939_v31  ;;  %v7979_v8 = vpop.f32.mrf.mxu0 }
  0xeb   :  { %10118 = vst [vmem:[#allocation154_spill] sm:$0xff] %v7924_v33  ;;  %v6668_v33 = vld [vmem:[#allocation3 + $0x274] sm:$0xf0]  ;;  %v7961_v24 = vor.u32 %v6596_v56, %v5511_v42  ;;  %v7977_v56 = vpop.f32.mrf.mxu3 }
  0xec   :  { %10119 = vst [vmem:[#allocation155_spill] sm:$0xff] %v7927_v37  ;;  %v7948_v0 = vor.u32 %v6668_v33, %v5799_v39  ;;  %v5767_v37 = vld [vmem:[#allocation3 + $0x218] sm:$0xf]  ;;  %v5769_v39 = vld [vmem:[#allocation3 + $0x238] sm:$0xf0] }
  0xed   :  { %10120 = vst [vmem:[#allocation156_spill] sm:$0xff] %v7931_v4  ;;  %v7958_v4 = vor.u32 %v6664_v18, %v5801_v35  ;;  %v7965_v50 = vor.u32 %v6660_v27, %v5767_v37 }
  0xee   :  { %10121 = vst [vmem:[#allocation157_spill] sm:$0xff] %v7933_v38  ;;  %v5513_v38 = vld [vmem:[#allocation3 + $0x38] sm:$0xf0]  ;;  %1463 = vmatpush.bf16.msrb.mxu1 %v7948_v0  ;;  %1451 = vmatpush.bf16.msrb.mxu0 %v7961_v24 }
  0xef   :  { %10122 = vst [vmem:[#allocation158_spill] sm:$0xff] %v7936_v57  ;;  %1489 = vmatpush.bf16.msrb.mxu3 %v7958_v4  ;;  %v7973_v35 = vpop.f32.mrf.mxu2 }
  0xf0   :  { %10123 = vst [vmem:[#allocation159_spill] sm:$0xff] %v7939_v31  ;;  %v7982_v37 = vpop.f32.mrf.mxu1 }
  0xf1   :  { %10124 = vst [vmem:[#allocation160_spill] sm:$0xff] %v7944_v3  ;;  %v6592_v3 = vld [vmem:[#allocation3 + $0x1c] sm:$0xf]  ;;  %1452 = vmatmul.bf16.vlgmr.msrb.gmra.mxu0 %v10067_v53 }
  0xf2   :  { %10125 = vst [vmem:[#allocation161_spill] sm:$0xff] %v7946_v63  ;;  %v6656_v63 = vld [vmem:[#allocation3 + $0x21c] sm:$0xf]  ;;  %v7967_v33 = vor.u32 %v6592_v3, %v5513_v38  ;;  %1464 = vmatpush.bf16.msrb.mxu1 %v7965_v50  ;;  %1634 = vmatpush.bf16.msra.mxu0 %v7443_v44 }
  0xf3   :  { %10126 = vst [vmem:[#allocation162_spill] sm:$0xff] %v7948_v0  ;;  %v7970_v18 = vor.u32 %v6656_v63, %v5769_v39  ;;  %v7996_v3 = vpop.f32.mrf.mxu3  ;;  %v7998_v63 = vpop.f32.mrf.mxu0  ;;  %v8016_v39 = vperm.slane %v7720_v32, 5 }
  0xf4   :  { %10127 = vst [vmem:[#allocation163_spill] sm:$0xff] %v7950_v43  ;;  %1477 = vmatpush.bf16.msrb.mxu2 %v7967_v33 }
  0xf5   :  { %10128 = vst [vmem:[#allocation164_spill] sm:$0xff] %v7954_v20  ;;  %1490 = vmatpush.bf16.msrb.mxu3 %v7970_v18  ;;  %1465 = vmatmul.bf16.vlgmr.msrb.gmra.mxu1 %v10067_v53 }
  0xf6   :  { %10129 = vst [vmem:[#allocation165_spill] sm:$0xff] %v7956_v19  ;;  %1647 = vmatpush.bf16.msra.mxu1 %v7445_v48  ;;  %1635 = vmatpush.bf16.msra.mxu0 %v7454_v59 }
  0xf7   :  { %10130 = vst [vmem:[#allocation166_spill] sm:$0xff] %v7958_v4  ;;  %1478 = vmatmul.bf16.vlgmr.msrb.gmra.mxu2 %v10067_v53  ;;  %v7994_v38 = vpop.f32.mrf.mxu2 }
  0xf8   :  { %10131 = vst [vmem:[#allocation167_spill] sm:$0xff] %v7961_v24  ;;  %1660 = vmatpush.bf16.msra.mxu2 %v7447_v49  ;;  %1491 = vmatmul.bf16.vlgmr.msrb.gmra.mxu3 %v10067_v53  ;;  %v8001_v42 = vpop.f32.mrf.mxu1  ;;  %v8011_v53 = vperm.slane %v7720_v32, 4 }
  0xf9   :  { %10132 = vst [vmem:[#allocation168_spill] sm:$0xff] %v7965_v50  ;;  %1673 = vmatpush.bf16.msra.mxu3 %v7450_v55 }
  0xfa   :  { %10133 = vst [vmem:[#allocation169_spill] sm:$0xff] %v7967_v33  ;;  %1648 = vmatpush.bf16.msra.mxu1 %v7456_v60  ;;  %1636 = vmatpush.bf16.msra.mxu0 %v7470_v10 }
  0xfb   :  { %10134 = vst [vmem:[#allocation170_spill] sm:$0xff] %v7970_v18 }
  0xfc   :  { %10135 = vst [vmem:[#allocation171_spill] sm:$0xff] %v7973_v35  ;;  %1661 = vmatpush.bf16.msra.mxu2 %v7465_v2  ;;  %v418_v35 = vpop.f32.mrf.mxu0 }
  0xfd   :  { %10136 = vst [vmem:[#allocation172_spill] sm:$0xff] %v7977_v56  ;;  %1674 = vmatpush.bf16.msra.mxu3 %v7467_v6  ;;  %v8018_v56 = vpop.f32.mrf.mxu3  ;;  %v8022_v19 = vadd.f32 %v418_v35, %v8011_v53  ;;  %v8038_v35 = vperm.slane %v7720_v32, 7 }
  0xfe   :  { %10137 = vst [vmem:[#allocation173_spill] sm:$0xff] %v7998_v63  ;;  %1649 = vmatpush.bf16.msra.mxu1 %v7474_v14  ;;  %1637 = vmatpush.bf16.msra.mxu0 %v7495_v21 }
  0xff   :  { %10138 = vst [vmem:[#allocation174_spill] sm:$0xff] %v8001_v42  ;;  %v8013_v27 = vpop.f32.mrf.mxu2 }
 0x100   :  { %1662 = vmatpush.bf16.msra.mxu2 %v7476_v15  ;;  %10139 = vst [vmem:[#allocation175_spill] sm:$0xff] %v8011_v53  ;;  %v447_v20 = vpop.f32.mrf.mxu1 }
 0x101   :  { %1675 = vmatpush.bf16.msra.mxu3 %v7479_v16  ;;  %10140 = vst [vmem:[#allocation176_spill] sm:$0xff] %v8013_v27  ;;  %v8027_v42 = vadd.f32 %v447_v20, %v8016_v39 }
 0x102   :  { %10141 = vst [vmem:[#allocation177_spill] sm:$0xff] %v8016_v39  ;;  %1650 = vmatpush.bf16.msra.mxu1 %v7497_v25  ;;  %1638 = vmatpush.bf16.msra.mxu0 %v7506_v34 }
 0x103   :  { %10142 = vst [vmem:[#allocation178_spill] sm:$0xff] %v8018_v56  ;;  %v8034_v56 = vperm.slane %v7720_v32, 6 }
 0x104   :  { %1663 = vmatpush.bf16.msra.mxu2 %v7499_v26  ;;  %10143 = vst [vmem:[#allocation179_spill] sm:$0xff] %v8022_v19  ;;  %v8043_v27 = vpop.f32.mrf.mxu0 }
 0x105   :  { %1676 = vmatpush.bf16.msra.mxu3 %v7502_v30  ;;  %10144 = vst [vmem:[#allocation180_spill] sm:$0xff] %v8027_v42  ;;  %v505_v42 = vpop.f32.mrf.mxu3 }
 0x106   :  { %1651 = vmatpush.bf16.msra.mxu1 %v7508_v36  ;;  %1639 = vmatpush.bf16.msra.mxu0 %v7516_v52  ;;  %10145 = vst [vmem:[#allocation181_spill] sm:$0xff] %v8034_v56  ;;  %v8047_v63 = vadd.f32 %v505_v42, %v8038_v35 }
 0x107   :  { %10146 = vst [vmem:[#allocation182_spill] sm:$0xff] %v8038_v35  ;;  %v476_v19 = vpop.f32.mrf.mxu2 }
 0x108   :  { %1664 = vmatpush.bf16.msra.mxu2 %v7511_v40  ;;  %v8041_v20 = vadd.f32 %v476_v19, %v8034_v56  ;;  %10148 = vst [vmem:[#allocation184_spill] sm:$0xff] %v8043_v27 }
 0x109   :  { %1677 = vmatpush.bf16.msra.mxu3 %v7513_v45  ;;  %10149 = vst [vmem:[#allocation185_spill] sm:$0xff] %v8047_v63  ;;  %v8049_v45 = vpop.f32.mrf.mxu1  ;;  %v10154_v63 = vld [vmem:[#allocation40_spill] sm:$0xff] }
 0x10a   :  { %10147 = vst [vmem:[#allocation183_spill] sm:$0xff] %v8041_v20  ;;  %1652 = vmatpush.bf16.msra.mxu1 %v7520_v58  ;;  %1640 = vmatpush.bf16.msra.mxu0 %v7531_v9  ;;  %v10155_v20 = vld [vmem:[#allocation42_spill] sm:$0xff] }
 0x10b   :  { %10150 = vst [vmem:[#allocation186_spill] sm:$0xff] %v8049_v45 }
 0x10c   :  { %1665 = vmatpush.bf16.msra.mxu2 %v7522_v61  ;;  %v423_v42 = vpop.f32.mrf.mxu0 }
 0x10d   :  { %1678 = vmatpush.bf16.msra.mxu3 %v7525_v62  ;;  %v8062_v19 = vpop.f32.mrf.mxu3  ;;  %v8066_v45 = vadd.f32 %v423_v42, %v8011_v53  ;;  %v10162_v42 = vld [vmem:[#allocation48_spill] sm:$0xff] }
 0x10e   :  { %1653 = vmatpush.bf16.msra.mxu1 %v7533_v11  ;;  %1641 = vmatpush.bf16.msra.mxu0 %v7548_v22  ;;  %10152 = vst [vmem:[#allocation188_spill] sm:$0xff] %v8062_v19  ;;  %v10157_v11 = vld [vmem:[#allocation45_spill] sm:$0xff]  ;;  %v10160_v19 = vld [vmem:[#allocation46_spill] sm:$0xff] }
 0x10f   :  { %v8059_v32 = vpop.f32.mrf.mxu2  ;;  %10153 = vst [vmem:[#allocation189_spill] sm:$0xff] %v8066_v45 }
 0x110   :  { %1666 = vmatpush.bf16.msra.mxu2 %v7535_v12  ;;  %10151 = vst [vmem:[#allocation187_spill] sm:$0xff] %v8059_v32  ;;  %v10158_v32 = vld [vmem:[#allocation44_spill] sm:$0xff] }
 0x111   :  { %1679 = vmatpush.bf16.msra.mxu3 %v7539_v13  ;;  %v452_v27 = vpop.f32.mrf.mxu1 }
 0x112   :  { %1686 = vmatpush.bf16.msrb.mxu0 %v7559_v41  ;;  %1654 = vmatpush.bf16.msra.mxu1 %v7552_v28  ;;  %v8071_v13 = vadd.f32 %v452_v27, %v8016_v39  ;;  %v10161_v28 = vld [vmem:[#allocation49_spill] sm:$0xff]  ;;  %v10163_v41 = vld [vmem:[#allocation51_spill] sm:$0xff] }
 0x114   :  { %1667 = vmatpush.bf16.msra.mxu2 %v7554_v29  ;;  %10156 = vst [vmem:[#allocation190_spill] sm:$0xff] %v8071_v13  ;;  %v8083_v13 = vpop.f32.mrf.mxu0 }
 0x115   :  { %1680 = vmatpush.bf16.msra.mxu3 %v10154_v63  ;;  %v510_v27 = vpop.f32.mrf.mxu3  ;;  %10165 = vst [vmem:[#allocation192_spill] sm:$0xff] %v8083_v13 }
 0x116   :  { %1699 = vmatpush.bf16.msrb.mxu1 %v10155_v20  ;;  %1687 = vmatpush.bf16.msrb.mxu0 %v10157_v11  ;;  %v8086_v63 = vadd.f32 %v510_v27, %v8038_v35  ;;  %v10176_v27 = vld [vmem:[#allocation59_spill] sm:$0xff] }
 0x117   :  { %v481_v45 = vpop.f32.mrf.mxu2 }
 0x118   :  { %1712 = vmatpush.bf16.msrb.mxu2 %v7564_v51  ;;  %v10159_v51 = vld [vmem:[#allocation47_spill] sm:$0xff]  ;;  %v8081_v20 = vadd.f32 %v481_v45, %v8034_v56  ;;  %10166 = vst [vmem:[#allocation193_spill] sm:$0xff] %v8086_v63  ;;  %v10173_v45 = vld [vmem:[#allocation57_spill] sm:$0xff] }
 0x119   :  { %1725 = vmatpush.bf16.msrb.mxu3 %v10158_v32  ;;  %v8088_v32 = vpop.f32.mrf.mxu1 }
 0x11a   :  { %1700 = vmatpush.bf16.msrb.mxu1 %v10160_v19  ;;  %1688 = vmatpush.bf16.msrb.mxu0 %v10161_v28  ;;  %10164 = vst [vmem:[#allocation191_spill] sm:$0xff] %v8081_v20  ;;  %v10169_v19 = vld [vmem:[#allocation53_spill] sm:$0xff]  ;;  %v10170_v28 = vld [vmem:[#allocation52_spill] sm:$0xff] }
 0x11b   :  { %10167 = vst [vmem:[#allocation194_spill] sm:$0xff] %v8088_v32  ;;  %v10174_v20 = vld [vmem:[#allocation56_spill] sm:$0xff] }
 0x11c   :  { %1713 = vmatpush.bf16.msrb.mxu2 %v10159_v51  ;;  %v10168_v51 = vld [vmem:[#allocation50_spill] sm:$0xff]  ;;  %v428_v32 = vpop.f32.mrf.mxu0 }
 0x11d   :  { %1726 = vmatpush.bf16.msrb.mxu3 %v10162_v42  ;;  %v10171_v42 = vld [vmem:[#allocation55_spill] sm:$0xff]  ;;  %v8100_v63 = vpop.f32.mrf.mxu3 }
 0x11e   :  { %1701 = vmatpush.bf16.msrb.mxu1 %v10168_v51  ;;  %1689 = vmatpush.bf16.msrb.mxu0 %v10169_v19  ;;  %10177 = vst [vmem:[#allocation196_spill] sm:$0xff] %v8100_v63  ;;  %v8103_v51 = vadd.f32 %v428_v32, %v8011_v53  ;;  %v10186_v63 = vld [vmem:[#allocation64_spill] sm:$0xff] }
 0x11f   :  { %v8097_v13 = vpop.f32.mrf.mxu2 }
 0x120   :  { %1714 = vmatpush.bf16.msrb.mxu2 %v10163_v41  ;;  %v10172_v41 = vld [vmem:[#allocation54_spill] sm:$0xff]  ;;  %10175 = vst [vmem:[#allocation195_spill] sm:$0xff] %v8097_v13 }
 0x121   :  { %1727 = vmatpush.bf16.msrb.mxu3 %v10170_v28  ;;  %10178 = vst [vmem:[#allocation197_spill] sm:$0xff] %v8103_v51  ;;  %v457_v19 = vpop.f32.mrf.mxu1  ;;  %v10179_v28 = vld [vmem:[#allocation58_spill] sm:$0xff]  ;;  %v10187_v51 = vld [vmem:[#allocation67_spill] sm:$0xff] }
 0x122   :  { %1702 = vmatpush.bf16.msrb.mxu1 %v10172_v41  ;;  %1690 = vmatpush.bf16.msrb.mxu0 %v10173_v45  ;;  %v10181_v41 = vld [vmem:[#allocation61_spill] sm:$0xff]  ;;  %v10182_v45 = vld [vmem:[#allocation60_spill] sm:$0xff]  ;;  %v10184_v13 = vld [vmem:[#allocation62_spill] sm:$0xff] }
 0x124   :  { %1715 = vmatpush.bf16.msrb.mxu2 %v10171_v42  ;;  %v8107_v42 = vadd.f32 %v457_v19, %v8016_v39 }
 0x125   :  { %1728 = vmatpush.bf16.msrb.mxu3 %v10174_v20  ;;  %v10183_v20 = vld [vmem:[#allocation63_spill] sm:$0xff]  ;;  %v515_v19 = vpop.f32.mrf.mxu3 }
 0x126   :  { %1703 = vmatpush.bf16.msrb.mxu1 %v10179_v28  ;;  %10180 = vst [vmem:[#allocation198_spill] sm:$0xff] %v8107_v42  ;;  %1691 = vmatpush.bf16.msrb.mxu0 %v10181_v41  ;;  %v8119_v42 = vpop.f32.mrf.mxu0  ;;  %v8122_v41 = vadd.f32 %v515_v19, %v8038_v35 }
 0x127   :  { %v486_v32 = vpop.f32.mrf.mxu2  ;;  %10189 = vst [vmem:[#allocation200_spill] sm:$0xff] %v8119_v42 }
 0x128   :  { %1716 = vmatpush.bf16.msrb.mxu2 %v10176_v27  ;;  %v10185_v27 = vld [vmem:[#allocation65_spill] sm:$0xff]  ;;  %v8117_v28 = vadd.f32 %v486_v32, %v8034_v56  ;;  %10190 = vst [vmem:[#allocation201_spill] sm:$0xff] %v8122_v41  ;;  %v10197_v32 = vld [vmem:[#allocation72_spill] sm:$0xff] }
 0x129   :  { %1729 = vmatpush.bf16.msrb.mxu3 %v10182_v45  ;;  %v8124_v45 = vpop.f32.mrf.mxu1 }
 0x12a   :  { %1704 = vmatpush.bf16.msrb.mxu1 %v10184_v13  ;;  %1692 = vmatpush.bf16.msrb.mxu0 %v10185_v27  ;;  %10188 = vst [vmem:[#allocation199_spill] sm:$0xff] %v8117_v28  ;;  %v10193_v13 = vld [vmem:[#allocation69_spill] sm:$0xff]  ;;  %v10194_v27 = vld [vmem:[#allocation68_spill] sm:$0xff] }
 0x12b   :  { %10191 = vst [vmem:[#allocation202_spill] sm:$0xff] %v8124_v45  ;;  %v10200_v45 = vld [vmem:[#allocation73_spill] sm:$0xff] }
 0x12c   :  { %1717 = vmatpush.bf16.msrb.mxu2 %v10183_v20  ;;  %v10192_v20 = vld [vmem:[#allocation66_spill] sm:$0xff]  ;;  %v298_v11 = vadd.f32 %v10200_v45, %v7737_v5 }
 0x12d   :  { %1730 = vmatpush.bf16.msrb.mxu3 %v10186_v63  ;;  %v10195_v63 = vld [vmem:[#allocation71_spill] sm:$0xff]  ;;  %v8134_v42 = vpop.f32.mrf.mxu3 }
 0x12e   :  { %1705 = vmatpush.bf16.msrb.mxu1 %v10192_v20  ;;  %1693 = vmatpush.bf16.msrb.mxu0 %v10193_v13  ;;  %10199 = vst [vmem:[#allocation204_spill] sm:$0xff] %v8134_v42  ;;  %v1297_v19 = vpop.f32.mrf.mxu0 }
 0x12f   :  { %v8132_v28 = vpop.f32.mrf.mxu2 }
 0x130   :  { %1718 = vmatpush.bf16.msrb.mxu2 %v10187_v51  ;;  %v10196_v51 = vld [vmem:[#allocation70_spill] sm:$0xff]  ;;  %10198 = vst [vmem:[#allocation203_spill] sm:$0xff] %v8132_v28 }
 0x131   :  { %1731 = vmatpush.bf16.msrb.mxu3 %v10194_v27  ;;  %v1310_v41 = vpop.f32.mrf.mxu1 }
 0x132   :  { %1706 = vmatpush.bf16.msrb.mxu1 %v10196_v51  ;;  %v1311_v20 = vadd.f32 %v1310_v41, %v1297_v19  ;;  %v10201_v51 = vld [vmem:[#allocation74_spill] sm:$0xff] }
 0x133   :  { %v327_v62 = vadd.f32 %v10201_v51, %v7754_v7 }
 0x134   :  { %1719 = vmatpush.bf16.msrb.mxu2 %v10195_v63  ;;  %v1496_v29 = vadd.f32 %v1311_v20, %v298_v11 }
 0x135   :  { %1732 = vmatpush.bf16.msrb.mxu3 %v10197_v32  ;;  %v1336_v27 = vpop.f32.mrf.mxu3 }
 0x136   :  { %v5997_v13 = vmul.f32 -1.442695, %v1496_v29  ;;  %v1299_v63 = vpop.f32.mrf.mxu0  ;;  %v10202_v29 = vld [vmem:[#allocation82_spill] sm:$0xff] }
 0x137   :  { %v1323_v22 = vpop.f32.mrf.mxu2 }
 0x138   :  { %6852 = vpow2.f32 %v5997_v13  ;;  %v1337_v32 = vadd.f32 %v1336_v27, %v1323_v22  ;;  %v356_v13 = vadd.f32 %v10202_v29, %v7780_v46 }
 0x139   :  { %v1312_v58 = vpop.f32.mrf.mxu1 }
 0x13a   :  { %v1497_v28 = vadd.f32 %v1337_v32, %v327_v62 }
 0x13c   :  { %v5998_v12 = vmul.f32 -1.442695, %v1497_v28 }
 0x13d   :  { %v1338_v45 = vpop.f32.mrf.mxu3 }
 0x13e   :  { %v6853_v42 = vpop.eup %6852  ;;  %6854 = vpow2.f32 %v5998_v12  ;;  %v1349_v41 = vpop.f32.mrf.mxu0 }
 0x13f   :  { %v8140_v9 = vadd.f32 1.0, %v6853_v42  ;;  %v1325_v36 = vpop.f32.mrf.mxu2  ;;  %v10203_v42 = vld [vmem:[#allocation84_spill] sm:$0xff] }
 0x140   :  { %v385_v27 = vadd.f32 %v10203_v42, %v7783_v54 }
 0x141   :  { %v1362_v11 = vpop.f32.mrf.mxu1  ;;  %6856 = vrcp.f32 %v8140_v9  ;;  %vm1517_vm2 = vweird.f32 %v8140_v9 }
 0x142   :  { %v1363_v63 = vadd.f32 %v1362_v11, %v1349_v41 }
 0x144   :  { %v1498_v20 = vadd.f32 %v1363_v63, %v356_v13  ;;  %v6855_v51 = vpop.eup %6854 }
 0x145   :  { %v8145_v22 = vadd.f32 1.0, %v6855_v51  ;;  %v1388_v12 = vpop.f32.mrf.mxu3 }
 0x146   :  { %v5999_v58 = vmul.f32 -1.442695, %v1498_v20  ;;  %v1351_v36 = vpop.f32.mrf.mxu0 }
 0x147   :  { %v1375_v62 = vpop.f32.mrf.mxu2  ;;  %v6857_v28 = vpop.eup %6856  ;;  %6858 = vrcp.f32 %v8145_v22  ;;  %vm1532_vm9 = vweird.f32 %v8145_v22 }
 0x148   :  { %6860 = vpow2.f32 %v5999_v58  ;;  %v1389_v32 = vadd.f32 %v1388_v12, %v1375_v62  ;;  %v1513_v45 = vmul.f32 %v6857_v28, %v8140_v9  ;;  %v414_v12 = vadd.f32 %v7979_v8, %v8011_v53 }
 0x149   :  { %v1364_v19 = vpop.f32.mrf.mxu1  ;;  %vm1518_vm1 = vweird.f32 %v6857_v28 }
 0x14a   :  { %v1499_v41 = vadd.f32 %v1389_v32, %v385_v27  ;;  %v1514_v63 = vsub.f32 1.0, %v1513_v45  ;;  %vm8163_vm3 = vmor %vm1517_vm2, %vm1518_vm1 }
 0x14c   :  { %v6000_v11 = vmul.f32 -1.442695, %v1499_v41  ;;  %v1515_v62 = vmul.f32 %v6857_v28, %v1514_v63 }
 0x14d   :  { %v8151_v29 = vpop.eup %6858  ;;  %v1390_v46 = vpop.f32.mrf.mxu3 }
 0x14e   :  { %v6861_v13 = vpop.eup %6860  ;;  %6862 = vpow2.f32 %v6000_v11  ;;  %v1528_v36 = vmul.f32 %v8151_v29, %v8145_v22  ;;  %v1401_v42 = vpop.f32.mrf.mxu0  ;;  %v1516_v11 = vadd.f32 %v6857_v28, %v1515_v62  ;;  %v1521_v46 = vand.u32 2147483647, %v8140_v9 }
 0x14f   :  { %v1377_v20 = vpop.f32.mrf.mxu2  ;;  %v1548_v51 = vadd.f32 1.0, %v6861_v13  ;;  %v443_v62 = vadd.f32 %v7982_v37, %v8016_v39  ;;  %vm1533_vm6 = vweird.f32 %v8151_v29 }
 0x150   :  { %v1529_v19 = vsub.f32 1.0, %v1528_v36  ;;  %v1523_v20 = vand.u32 2147483648, %v8140_v9  ;;  %vm1522_vm4 = vcmp.eq.f32.partialorder %v1521_v46, 8.507059e+37  ;;  %vm8180_vm11 = vmor %vm1532_vm9, %vm1533_vm6 }
 0x151   :  { %6864 = vrcp.f32 %v1548_v51  ;;  %v1414_v58 = vpop.f32.mrf.mxu1  ;;  %v1561_v9 = vand.u32 2147483648, %v1548_v51  ;;  %v1559_v5 = vand.u32 2147483647, %v1548_v51  ;;  %vm1555_vm7 = vweird.f32 %v1548_v51 }
 0x152   :  { %v1415_v27 = vadd.f32 %v1414_v58, %v1401_v42  ;;  %v1530_v42 = vmul.f32 %v8151_v29, %v1529_v19 }
 0x153   :  { %vm1560_vm10 = vcmp.eq.f32.partialorder %v1559_v5, 8.507059e+37 }
 0x154   :  { %v6863_v32 = vpop.eup %6862  ;;  %v1500_v45 = vadd.f32 %v1415_v27, %v414_v12  ;;  %v1520_v27 = vsel %vm8163_vm3, %v6857_v28, %v1516_v11  ;;  %v1531_v19 = vadd.f32 %v8151_v29, %v1530_v42  ;;  %v1562_v11 = vor.u32 1.1754944e-38, %v1561_v9 }
 0x155   :  { %v8157_v41 = vadd.f32 1.0, %v6863_v32  ;;  %v1440_v36 = vpop.f32.mrf.mxu3 }
 0x156   :  { %v1403_v58 = vpop.f32.mrf.mxu0 }
 0x157   :  { %v6865_v13 = vpop.eup %6864  ;;  %6866 = vrcp.f32 %v8157_v41  ;;  %v1427_v8 = vpop.f32.mrf.mxu2  ;;  %v1574_v5 = vand.u32 2147483647, %v8157_v41  ;;  %vm1570_vm14 = vweird.f32 %v8157_v41 }
 0x158   :  { %v1551_v54 = vmul.f32 %v6865_v13, %v1548_v51  ;;  %6868 = vtanh.f32 %v1500_v45  ;;  %v1441_v32 = vadd.f32 %v1440_v36, %v1427_v8  ;;  %v1524_v45 = vor.u32 1.1754944e-38, %v1523_v20 }
 0x159   :  { %v1416_v53 = vpop.f32.mrf.mxu1  ;;  %vm1556_vm5 = vweird.f32 %v6865_v13  ;;  %v1536_v20 = vand.u32 2147483647, %v8145_v22  ;;  %vm1575_vm0 = vcmp.eq.f32.partialorder %v1574_v5, 8.507059e+37 }
 0x15a   :  { %v1552_v12 = vsub.f32 1.0, %v1551_v54  ;;  %v1501_v61 = vadd.f32 %v1441_v32, %v443_v62  ;;  %v1525_v30 = vsel %vm1522_vm4, %v1524_v45, %v1520_v27  ;;  %v1538_v54 = vand.u32 2147483648, %v8145_v22  ;;  %vm1557_vm8 = vmor %vm1555_vm7, %vm1556_vm5 }
 0x15b   :  { %vm1537_vm13 = vcmp.eq.f32.partialorder %v1536_v20, 8.507059e+37 }
 0x15c   :  { %v1553_v7 = vmul.f32 %v6865_v13, %v1552_v12  ;;  %6870 = vtanh.f32 %v1501_v61  ;;  %v1539_v42 = vor.u32 1.1754944e-38, %v1538_v54 }
 0x15d   :  { %v6867_v52 = vpop.eup %6866  ;;  %v1442_v58 = vpop.f32.mrf.mxu3 }
 0x15e   :  { %v6869_v37 = vpop.eup %6868  ;;  %v1566_v28 = vmul.f32 %v6867_v52, %v8157_v41  ;;  %v1554_v53 = vadd.f32 %v6865_v13, %v1553_v7  ;;  %v1576_v7 = vand.u32 2147483648, %v8157_v41  ;;  %vm1571_vm12 = vweird.f32 %v6867_v52 }
 0x15f   :  { %v1622_v46 = vmul.f32 %v6869_v37, %v1525_v30  ;;  %v1429_v51 = vpop.f32.mrf.mxu2  ;;  %v1535_v30 = vsel %vm8180_vm11, %v8151_v29, %v1531_v19  ;;  %vm1572_vm15 = vmor %vm1570_vm14, %vm1571_vm12 }
 0x160   :  { %v1567_v8 = vsub.f32 1.0, %v1566_v28  ;;  %v1558_v63 = vsel %vm1557_vm8, %v6865_v13, %v1554_v53  ;;  %v1540_v27 = vsel %vm1537_vm13, %v1539_v42, %v1535_v30  ;;  %v1577_v9 = vor.u32 1.1754944e-38, %v1576_v7 }
 0x161   :  { %v1563_v61 = vsel %vm1560_vm10, %v1562_v11, %v1558_v63  ;;  %v472_v11 = vadd.f32 %v7994_v38, %v8034_v56 }
 0x162   :  { %v1568_v22 = vmul.f32 %v6867_v52, %v1567_v8  ;;  %v1620_v62 = vmul.f32 0.0, %v1563_v61  ;;  %v6871_v13 = vpop.eup %6870 }
 0x163   :  { %v1623_v45 = vmul.f32 %v6871_v13, %v1540_v27 }
 0x164   :  { %v8190_v12 = vadd.f32 %v1622_v46, %v1620_v62  ;;  %v1569_v32 = vadd.f32 %v6867_v52, %v1568_v22 }
 0x166   :  { %v1573_v37 = vsel %vm1572_vm15, %v6867_v52, %v1569_v32  ;;  %v501_v52 = vadd.f32 %v7996_v3, %v8038_v35 }
 0x167   :  { %v1578_v29 = vsel %vm1575_vm0, %v1577_v9, %v1573_v37 }
 0x168   :  { %v1621_v19 = vmul.f32 0.0, %v1578_v29 }
 0x16a   :  { %v8192_v54 = vadd.f32 %v1623_v45, %v1621_v19 }
 0x16e   :  { %v1453_v28 = vpop.f32.mrf.mxu0 }
 0x172   :  { %v1466_v53 = vpop.f32.mrf.mxu1 }
 0x173   :  { %v1467_v20 = vadd.f32 %v1466_v53, %v1453_v28 }
 0x175   :  { %v1502_v41 = vadd.f32 %v1467_v20, %v472_v11 }
 0x176   :  { %v1455_v36 = vpop.f32.mrf.mxu0 }
 0x177   :  { %v6001_v46 = vmul.f32 -1.442695, %v1502_v41 }
 0x179   :  { %6872 = vpow2.f32 %v6001_v46 }
 0x17a   :  { %v1479_v8 = vpop.f32.mrf.mxu2  ;;  %v1468_v7 = vpop.f32.mrf.mxu1 }
 0x17b   :  { %v1492_v63 = vpop.f32.mrf.mxu3 }
 0x17c   :  { %v1493_v51 = vadd.f32 %v1492_v63, %v1479_v8 }
 0x17e   :  { %v1503_v61 = vadd.f32 %v1493_v51, %v501_v52 }
 0x17f   :  { %v6873_v42 = vpop.eup %6872 }
 0x180   :  { %v6002_v30 = vmul.f32 -1.442695, %v1503_v61  ;;  %v1588_v58 = vadd.f32 1.0, %v6873_v42  ;;  %v10210_v42 = vld [vmem:[#allocation77_spill] sm:$0xff] }
 0x182   :  { %6874 = vpow2.f32 %v6002_v30  ;;  %v1481_v22 = vpop.f32.mrf.mxu2  ;;  %v1601_v9 = vand.u32 2147483648, %v1588_v58  ;;  %v1599_v45 = vand.u32 2147483647, %v1588_v58  ;;  %vm1595_vm2 = vweird.f32 %v1588_v58  ;;  %v10209_v30 = vld [vmem:[#allocation75_spill] sm:$0xff] }
 0x183   :  { %v1494_v62 = vpop.f32.mrf.mxu3  ;;  %6876 = vrcp.f32 %v1588_v58 }
 0x184   :  { %v1602_v19 = vor.u32 1.1754944e-38, %v1601_v9  ;;  %vm1600_vm4 = vcmp.eq.f32.partialorder %v1599_v45, 8.507059e+37  ;;  %v10216_v9 = vld [vmem:[#allocation87_spill] sm:$0xff]  ;;  %v10218_v45 = vld [vmem:[#allocation80_spill] sm:$0xff] }
 0x188   :  { %v6875_v38 = vpop.eup %6874 }
 0x189   :  { %v1589_v5 = vadd.f32 1.0, %v6875_v38  ;;  %v6877_v13 = vpop.eup %6876 }
 0x18a   :  { %v1591_v27 = vmul.f32 %v6877_v13, %v1588_v58  ;;  %vm1596_vm1 = vweird.f32 %v6877_v13 }
 0x18b   :  { %6878 = vrcp.f32 %v1589_v5  ;;  %vm1597_vm3 = vmor %vm1595_vm2, %vm1596_vm1  ;;  %v1616_v8 = vand.u32 2147483648, %v1589_v5  ;;  %v1614_v36 = vand.u32 2147483647, %v1589_v5  ;;  %vm1610_vm6 = vweird.f32 %v1589_v5 }
 0x18c   :  { %v1592_v32 = vsub.f32 1.0, %v1591_v27  ;;  %6880 = vtanh.f32 %v8190_v12  ;;  %v10214_v27 = vld [vmem:[#allocation76_spill] sm:$0xff] }
 0x18d   :  { %6882 = vtanh.f32 %v8192_v54  ;;  %v1617_v7 = vor.u32 1.1754944e-38, %v1616_v8  ;;  %vm1615_vm8 = vcmp.eq.f32.partialorder %v1614_v36, 8.507059e+37  ;;  %v10228_v8 = vld [vmem:[#allocation107_spill] sm:$0xff]  ;;  %v10230_v36 = vld [vmem:[#allocation102_spill] sm:$0xff] }
 0x18e   :  { %v1593_v3 = vmul.f32 %v6877_v13, %v1592_v32  ;;  %v10215_v32 = vld [vmem:[#allocation78_spill] sm:$0xff] }
 0x190   :  { %v1594_v29 = vadd.f32 %v6877_v13, %v1593_v3  ;;  %v10217_v3 = vld [vmem:[#allocation89_spill] sm:$0xff] }
 0x191   :  { %v6879_v37 = vpop.eup %6878 }
 0x192   :  { %v1606_v28 = vmul.f32 %v6879_v37, %v1589_v5  ;;  %v1598_v53 = vsel %vm1597_vm3, %v6877_v13, %v1594_v29  ;;  %v6881_v11 = vpop.eup %6880  ;;  %vm1611_vm5 = vweird.f32 %v6879_v37  ;;  %v10212_v13 = vld [vmem:[#allocation79_spill] sm:$0xff]  ;;  %v10213_v5 = vld [vmem:[#allocation81_spill] sm:$0xff]  ;;  %v10220_v29 = vld [vmem:[#allocation92_spill] sm:$0xff] }
 0x193   :  { %v1603_v20 = vsel %vm1600_vm4, %v1602_v19, %v1598_v53  ;;  %vm1612_vm7 = vmor %vm1610_vm6, %vm1611_vm5  ;;  %v6883_v58 = vpop.eup %6882  ;;  %v10221_v19 = vld [vmem:[#allocation94_spill] sm:$0xff] }
 0x194   :  { %v1607_v41 = vsub.f32 1.0, %v1606_v28  ;;  %v1628_v46 = vmul.f32 %v6881_v11, %v1603_v20  ;;  %v10222_v28 = vld [vmem:[#allocation88_spill] sm:$0xff]  ;;  %v10223_v53 = vld [vmem:[#allocation90_spill] sm:$0xff]  ;;  %v10225_v20 = vld [vmem:[#allocation103_spill] sm:$0xff] }
 0x195   :  { %v10224_v11 = vld [vmem:[#allocation100_spill] sm:$0xff] }
 0x196   :  { %v1608_v63 = vmul.f32 %v6879_v37, %v1607_v41  ;;  %v8200_v52 = vpack.c.bf16 %v1628_v46, %v1628_v46  ;;  %v10226_v41 = vld [vmem:[#allocation93_spill] sm:$0xff]  ;;  %v10227_v46 = vld [vmem:[#allocation96_spill] sm:$0xff] }
 0x198   :  { %10208 = vst [vmem:[#allocation73_spill] sm:$0xff] %v8200_v52  ;;  %v1609_v51 = vadd.f32 %v6879_v37, %v1608_v63  ;;  %1642 = vmatmul.bf16.vlgmr.msra.gmra.mxu0 %v8200_v52  ;;  %1668 = vmatmul.bf16.vlgmr.msra.gmra.mxu2 %v8200_v52  ;;  %v10229_v63 = vld [vmem:[#allocation109_spill] sm:$0xff] }
 0x199   :  { %1738 = vmatpush.bf16.msra.mxu0 %v10209_v30  ;;  %1764 = vmatpush.bf16.msra.mxu2 %v10210_v42 }
 0x19a   :  { %v1613_v61 = vsel %vm1612_vm7, %v6879_v37, %v1609_v51  ;;  %v10219_v37 = vld [vmem:[#allocation83_spill] sm:$0xff]  ;;  %v10231_v51 = vld [vmem:[#allocation104_spill] sm:$0xff] }
 0x19b   :  { %v1618_v22 = vsel %vm1615_vm8, %v1617_v7, %v1613_v61  ;;  %v10232_v7 = vld [vmem:[#allocation115_spill] sm:$0xff]  ;;  %v10233_v61 = vld [vmem:[#allocation117_spill] sm:$0xff] }
 0x19c   :  { %v1629_v62 = vmul.f32 %v6883_v58, %v1618_v22  ;;  %v10234_v58 = vld [vmem:[#allocation108_spill] sm:$0xff]  ;;  %v10235_v22 = vld [vmem:[#allocation110_spill] sm:$0xff] }
 0x19d   :  { %1739 = vmatpush.bf16.msra.mxu0 %v10212_v13  ;;  %1765 = vmatpush.bf16.msra.mxu2 %v10213_v5 }
 0x19e   :  { %v8206_v38 = vpack.c.bf16 %v1629_v62, %v1629_v62  ;;  %v10236_v62 = vld [vmem:[#allocation116_spill] sm:$0xff] }
 0x1a0   :  { %10211 = vst [vmem:[#allocation74_spill] sm:$0xff] %v8206_v38  ;;  %1655 = vmatmul.bf16.vlgmr.msra.gmra.mxu1 %v8206_v38  ;;  %1681 = vmatmul.bf16.vlgmr.msra.gmra.mxu3 %v8206_v38 }
 0x1a1   :  { %1751 = vmatpush.bf16.msra.mxu1 %v10214_v27  ;;  %1777 = vmatpush.bf16.msra.mxu3 %v10215_v32 }
 0x1a2   :  { %1740 = vmatpush.bf16.msra.mxu0 %v10216_v9  ;;  %1766 = vmatpush.bf16.msra.mxu2 %v10217_v3 }
 0x1a5   :  { %1752 = vmatpush.bf16.msra.mxu1 %v10218_v45  ;;  %1778 = vmatpush.bf16.msra.mxu3 %v10219_v37 }
 0x1a6   :  { %1741 = vmatpush.bf16.msra.mxu0 %v10220_v29  ;;  %1767 = vmatpush.bf16.msra.mxu2 %v10221_v19 }
 0x1a8   :  { %1694 = vmatmul.bf16.vlgmr.msrb.gmra.mxu0 %v8200_v52  ;;  %1720 = vmatmul.bf16.vlgmr.msrb.gmra.mxu2 %v8200_v52 }
 0x1a9   :  { %1753 = vmatpush.bf16.msra.mxu1 %v10222_v28  ;;  %1779 = vmatpush.bf16.msra.mxu3 %v10223_v53 }
 0x1aa   :  { %1742 = vmatpush.bf16.msra.mxu0 %v10224_v11  ;;  %1768 = vmatpush.bf16.msra.mxu2 %v10225_v20 }
 0x1ad   :  { %1754 = vmatpush.bf16.msra.mxu1 %v10226_v41  ;;  %1780 = vmatpush.bf16.msra.mxu3 %v10227_v46 }
 0x1ae   :  { %1743 = vmatpush.bf16.msra.mxu0 %v10228_v8  ;;  %1769 = vmatpush.bf16.msra.mxu2 %v10229_v63 }
 0x1b0   :  { %1707 = vmatmul.bf16.vlgmr.msrb.gmra.mxu1 %v8206_v38  ;;  %1733 = vmatmul.bf16.vlgmr.msrb.gmra.mxu3 %v8206_v38 }
 0x1b1   :  { %1755 = vmatpush.bf16.msra.mxu1 %v10230_v36  ;;  %1781 = vmatpush.bf16.msra.mxu3 %v10231_v51  ;;  %v10237_v36 = vld [vmem:[#allocation118_spill] sm:$0xff]  ;;  %v10256_v51 = vld [vmem:[#allocation155_spill] sm:$0xff] }
 0x1b2   :  { %1744 = vmatpush.bf16.msra.mxu0 %v10232_v7  ;;  %1770 = vmatpush.bf16.msra.mxu2 %v10233_v61  ;;  %v10238_v61 = vld [vmem:[#allocation131_spill] sm:$0xff]  ;;  %v10255_v7 = vld [vmem:[#allocation146_spill] sm:$0xff] }
 0x1b5   :  { %1756 = vmatpush.bf16.msra.mxu1 %v10234_v58  ;;  %1782 = vmatpush.bf16.msra.mxu3 %v10235_v22  ;;  %v10239_v58 = vld [vmem:[#allocation133_spill] sm:$0xff]  ;;  %v10240_v22 = vld [vmem:[#allocation120_spill] sm:$0xff] }
 0x1b6   :  { %1745 = vmatpush.bf16.msra.mxu0 %v7821_v23  ;;  %1771 = vmatpush.bf16.msra.mxu2 %v7827_v47  ;;  %v10241_v23 = vld [vmem:[#allocation123_spill] sm:$0xff]  ;;  %v10242_v47 = vld [vmem:[#allocation126_spill] sm:$0xff] }
 0x1b9   :  { %1757 = vmatpush.bf16.msra.mxu1 %v10236_v62  ;;  %1783 = vmatpush.bf16.msra.mxu3 %v10237_v36  ;;  %v10245_v62 = vld [vmem:[#allocation139_spill] sm:$0xff]  ;;  %v10246_v36 = vld [vmem:[#allocation132_spill] sm:$0xff] }
 0x1ba   :  { %1790 = vmatpush.bf16.msrb.mxu0 %v7834_v17  ;;  %1816 = vmatpush.bf16.msrb.mxu2 %v7840_v1  ;;  %v10243_v17 = vld [vmem:[#allocation129_spill] sm:$0xff]  ;;  %v10244_v1 = vld [vmem:[#allocation135_spill] sm:$0xff] }
 0x1bb   :  { %1746 = vmatmul.bf16.vlgmr.msra.gmra.mxu0 %v8200_v52  ;;  %1772 = vmatmul.bf16.vlgmr.msra.gmra.mxu2 %v8200_v52 }
 0x1bd   :  { %1758 = vmatpush.bf16.msra.mxu1 %v10240_v22  ;;  %1784 = vmatpush.bf16.msra.mxu3 %v10241_v23  ;;  %v10249_v22 = vld [vmem:[#allocation145_spill] sm:$0xff]  ;;  %v10250_v23 = vld [vmem:[#allocation138_spill] sm:$0xff] }
 0x1be   :  { %1791 = vmatpush.bf16.msrb.mxu0 %v10238_v61  ;;  %1817 = vmatpush.bf16.msrb.mxu2 %v10239_v58  ;;  %v10247_v61 = vld [vmem:[#allocation134_spill] sm:$0xff]  ;;  %v10248_v58 = vld [vmem:[#allocation143_spill] sm:$0xff] }
 0x1c0   :  { %1759 = vmatmul.bf16.vlgmr.msra.gmra.mxu1 %v8206_v38  ;;  %1785 = vmatmul.bf16.vlgmr.msra.gmra.mxu3 %v8206_v38 }
 0x1c1   :  { %1803 = vmatpush.bf16.msrb.mxu1 %v10242_v47  ;;  %1829 = vmatpush.bf16.msrb.mxu3 %v10243_v17  ;;  %v10251_v47 = vld [vmem:[#allocation142_spill] sm:$0xff]  ;;  %v10252_v17 = vld [vmem:[#allocation148_spill] sm:$0xff] }
 0x1c2   :  { %1792 = vmatpush.bf16.msrb.mxu0 %v10244_v1  ;;  %1818 = vmatpush.bf16.msrb.mxu2 %v10245_v62  ;;  %v10253_v1 = vld [vmem:[#allocation151_spill] sm:$0xff]  ;;  %v10254_v62 = vld [vmem:[#allocation144_spill] sm:$0xff] }
 0x1c5   :  { %1804 = vmatpush.bf16.msrb.mxu1 %v10246_v36  ;;  %1830 = vmatpush.bf16.msrb.mxu3 %v10247_v61  ;;  %v10257_v36 = vld [vmem:[#allocation157_spill] sm:$0xff]  ;;  %v10258_v61 = vld [vmem:[#allocation150_spill] sm:$0xff] }
 0x1c6   :  { %1793 = vmatpush.bf16.msrb.mxu0 %v10248_v58  ;;  %1819 = vmatpush.bf16.msrb.mxu2 %v10249_v22  ;;  %v10259_v58 = vld [vmem:[#allocation153_spill] sm:$0xff] }
 0x1c9   :  { %1805 = vmatpush.bf16.msrb.mxu1 %v10250_v23  ;;  %1831 = vmatpush.bf16.msrb.mxu3 %v10251_v47  ;;  %v10260_v47 = vld [vmem:[#allocation156_spill] sm:$0xff] }
 0x1ca   :  { %1794 = vmatpush.bf16.msrb.mxu0 %v10252_v17  ;;  %1820 = vmatpush.bf16.msrb.mxu2 %v10253_v1 }
 0x1cd   :  { %1806 = vmatpush.bf16.msrb.mxu1 %v10254_v62  ;;  %1832 = vmatpush.bf16.msrb.mxu3 %v10255_v7 }
 0x1ce   :  { %1795 = vmatpush.bf16.msrb.mxu0 %v10256_v51  ;;  %1821 = vmatpush.bf16.msrb.mxu2 %v10257_v36 }
 0x1d1   :  { %1807 = vmatpush.bf16.msrb.mxu1 %v10258_v61  ;;  %1833 = vmatpush.bf16.msrb.mxu3 %v10259_v58 }
 0x1d2   :  { %1796 = vmatpush.bf16.msrb.mxu0 %v7939_v31  ;;  %1822 = vmatpush.bf16.msrb.mxu2 %v7950_v43 }
 0x1d5   :  { %1808 = vmatpush.bf16.msrb.mxu1 %v10260_v47  ;;  %1834 = vmatpush.bf16.msrb.mxu3 %v7936_v57 }
 0x1d6   :  { %1797 = vmatpush.bf16.msrb.mxu0 %v7961_v24  ;;  %1823 = vmatpush.bf16.msrb.mxu2 %v7967_v33 }
 0x1d9   :  { %1809 = vmatpush.bf16.msrb.mxu1 %v7948_v0  ;;  %1835 = vmatpush.bf16.msrb.mxu3 %v7958_v4 }
 0x1da   :  { %1980 = vmatpush.bf16.msra.mxu0 %v7443_v44  ;;  %2006 = vmatpush.bf16.msra.mxu2 %v7447_v49 }
 0x1db   :  { %1798 = vmatmul.bf16.vlgmr.msrb.gmra.mxu0 %v8200_v52  ;;  %1824 = vmatmul.bf16.vlgmr.msrb.gmra.mxu2 %v8200_v52  ;;  %v10262_v52 = vld [vmem:[#allocation29_spill] sm:$0xff] }
 0x1dd   :  { %1810 = vmatpush.bf16.msrb.mxu1 %v7965_v50  ;;  %1836 = vmatpush.bf16.msrb.mxu3 %v7970_v18  ;;  %v10311_v50 = vld [vmem:[#allocation86_spill] sm:$0xff] }
 0x1de   :  { %1981 = vmatpush.bf16.msra.mxu0 %v7454_v59  ;;  %2007 = vmatpush.bf16.msra.mxu2 %v7465_v2 }
 0x1e0   :  { %1811 = vmatmul.bf16.vlgmr.msrb.gmra.mxu1 %v8206_v38  ;;  %1837 = vmatmul.bf16.vlgmr.msrb.gmra.mxu3 %v8206_v38  ;;  %v10261_v38 = vld [vmem:[#allocation24_spill] sm:$0xff] }
 0x1e1   :  { %1993 = vmatpush.bf16.msra.mxu1 %v7445_v48  ;;  %2019 = vmatpush.bf16.msra.mxu3 %v7450_v55 }
 0x1e2   :  { %1982 = vmatpush.bf16.msra.mxu0 %v7470_v10  ;;  %2008 = vmatpush.bf16.msra.mxu2 %v7476_v15  ;;  %v10309_v10 = vld [vmem:[#allocation85_spill] sm:$0xff] }
 0x1e5   :  { %1994 = vmatpush.bf16.msra.mxu1 %v7456_v60  ;;  %2020 = vmatpush.bf16.msra.mxu3 %v7467_v6  ;;  %v10263_v60 = vld [vmem:[#allocation31_spill] sm:$0xff]  ;;  %v10264_v6 = vld [vmem:[#allocation26_spill] sm:$0xff] }
 0x1e6   :  { %1983 = vmatpush.bf16.msra.mxu0 %v7495_v21  ;;  %2009 = vmatpush.bf16.msra.mxu2 %v7499_v26  ;;  %v10265_v21 = vld [vmem:[#allocation28_spill] sm:$0xff]  ;;  %v10266_v26 = vld [vmem:[#allocation33_spill] sm:$0xff] }
 0x1e9   :  { %1995 = vmatpush.bf16.msra.mxu1 %v7474_v14  ;;  %2021 = vmatpush.bf16.msra.mxu3 %v7479_v16  ;;  %v10267_v14 = vld [vmem:[#allocation35_spill] sm:$0xff]  ;;  %v10268_v16 = vld [vmem:[#allocation30_spill] sm:$0xff] }
 0x1ea   :  { %1984 = vmatpush.bf16.msra.mxu0 %v7506_v34  ;;  %2010 = vmatpush.bf16.msra.mxu2 %v7511_v40  ;;  %v10269_v34 = vld [vmem:[#allocation32_spill] sm:$0xff]  ;;  %v10270_v40 = vld [vmem:[#allocation37_spill] sm:$0xff] }
 0x1ed   :  { %1996 = vmatpush.bf16.msra.mxu1 %v7497_v25  ;;  %2022 = vmatpush.bf16.msra.mxu3 %v10261_v38  ;;  %v10271_v25 = vld [vmem:[#allocation39_spill] sm:$0xff]  ;;  %v10272_v38 = vld [vmem:[#allocation41_spill] sm:$0xff] }
 0x1ee   :  { %1985 = vmatpush.bf16.msra.mxu0 %v10262_v52  ;;  %2011 = vmatpush.bf16.msra.mxu2 %v10263_v60  ;;  %v10273_v52 = vld [vmem:[#allocation43_spill] sm:$0xff]  ;;  %v10274_v60 = vld [vmem:[#allocation34_spill] sm:$0xff] }
 0x1f1   :  { %1997 = vmatpush.bf16.msra.mxu1 %v10264_v6  ;;  %2023 = vmatpush.bf16.msra.mxu3 %v10265_v21  ;;  %v10275_v6 = vld [vmem:[#allocation36_spill] sm:$0xff]  ;;  %v10276_v21 = vld [vmem:[#allocation45_spill] sm:$0xff] }
 0x1f2   :  { %1986 = vmatpush.bf16.msra.mxu0 %v10266_v26  ;;  %2012 = vmatpush.bf16.msra.mxu2 %v10267_v14  ;;  %v10277_v26 = vld [vmem:[#allocation47_spill] sm:$0xff]  ;;  %v10278_v14 = vld [vmem:[#allocation38_spill] sm:$0xff] }
 0x1f5   :  { %1998 = vmatpush.bf16.msra.mxu1 %v10268_v16  ;;  %2024 = vmatpush.bf16.msra.mxu3 %v10269_v34  ;;  %v10279_v16 = vld [vmem:[#allocation40_spill] sm:$0xff]  ;;  %v10280_v34 = vld [vmem:[#allocation42_spill] sm:$0xff] }
 0x1f6   :  { %1987 = vmatpush.bf16.msra.mxu0 %v10270_v40  ;;  %2013 = vmatpush.bf16.msra.mxu2 %v10271_v25  ;;  %v10281_v40 = vld [vmem:[#allocation44_spill] sm:$0xff]  ;;  %v10282_v25 = vld [vmem:[#allocation49_spill] sm:$0xff] }
 0x1f9   :  { %1999 = vmatpush.bf16.msra.mxu1 %v10274_v60  ;;  %2025 = vmatpush.bf16.msra.mxu3 %v10275_v6  ;;  %v10285_v60 = vld [vmem:[#allocation48_spill] sm:$0xff]  ;;  %v10286_v6 = vld [vmem:[#allocation53_spill] sm:$0xff] }
 0x1fa   :  { %2032 = vmatpush.bf16.msrb.mxu0 %v10272_v38  ;;  %2058 = vmatpush.bf16.msrb.mxu2 %v10273_v52  ;;  %v10283_v38 = vld [vmem:[#allocation51_spill] sm:$0xff]  ;;  %v10284_v52 = vld [vmem:[#allocation46_spill] sm:$0xff] }
 0x1fd   :  { %2000 = vmatpush.bf16.msra.mxu1 %v10278_v14  ;;  %2026 = vmatpush.bf16.msra.mxu3 %v10279_v16  ;;  %v10289_v14 = vld [vmem:[#allocation52_spill] sm:$0xff]  ;;  %v10290_v16 = vld [vmem:[#allocation57_spill] sm:$0xff] }
 0x1fe   :  { %2033 = vmatpush.bf16.msrb.mxu0 %v10276_v21  ;;  %2059 = vmatpush.bf16.msrb.mxu2 %v10277_v26  ;;  %v10287_v21 = vld [vmem:[#allocation55_spill] sm:$0xff]  ;;  %v10288_v26 = vld [vmem:[#allocation50_spill] sm:$0xff] }
 0x201   :  { %2045 = vmatpush.bf16.msrb.mxu1 %v10280_v34  ;;  %2071 = vmatpush.bf16.msrb.mxu3 %v10281_v40  ;;  %v10291_v34 = vld [vmem:[#allocation59_spill] sm:$0xff]  ;;  %v10292_v40 = vld [vmem:[#allocation54_spill] sm:$0xff] }
 0x202   :  { %2034 = vmatpush.bf16.msrb.mxu0 %v10282_v25  ;;  %2060 = vmatpush.bf16.msrb.mxu2 %v10283_v38  ;;  %v10293_v25 = vld [vmem:[#allocation56_spill] sm:$0xff]  ;;  %v10294_v38 = vld [vmem:[#allocation61_spill] sm:$0xff] }
 0x205   :  { %2046 = vmatpush.bf16.msrb.mxu1 %v10284_v52  ;;  %2072 = vmatpush.bf16.msrb.mxu3 %v10285_v60  ;;  %v10295_v52 = vld [vmem:[#allocation63_spill] sm:$0xff]  ;;  %v10296_v60 = vld [vmem:[#allocation58_spill] sm:$0xff] }
 0x206   :  { %2035 = vmatpush.bf16.msrb.mxu0 %v10286_v6  ;;  %2061 = vmatpush.bf16.msrb.mxu2 %v10287_v21  ;;  %v10297_v6 = vld [vmem:[#allocation60_spill] sm:$0xff]  ;;  %v10298_v21 = vld [vmem:[#allocation65_spill] sm:$0xff] }
 0x209   :  { %2047 = vmatpush.bf16.msrb.mxu1 %v10288_v26  ;;  %2073 = vmatpush.bf16.msrb.mxu3 %v10289_v14  ;;  %v10299_v26 = vld [vmem:[#allocation67_spill] sm:$0xff]  ;;  %v10300_v14 = vld [vmem:[#allocation62_spill] sm:$0xff] }
 0x20a   :  { %2036 = vmatpush.bf16.msrb.mxu0 %v10290_v16  ;;  %2062 = vmatpush.bf16.msrb.mxu2 %v10291_v34  ;;  %v10301_v16 = vld [vmem:[#allocation64_spill] sm:$0xff]  ;;  %v10302_v34 = vld [vmem:[#allocation69_spill] sm:$0xff] }
 0x20d   :  { %2048 = vmatpush.bf16.msrb.mxu1 %v10292_v40  ;;  %2074 = vmatpush.bf16.msrb.mxu3 %v10293_v25  ;;  %v10303_v40 = vld [vmem:[#allocation71_spill] sm:$0xff]  ;;  %v10304_v25 = vld [vmem:[#allocation66_spill] sm:$0xff] }
 0x20e   :  { %2037 = vmatpush.bf16.msrb.mxu0 %v10294_v38  ;;  %2063 = vmatpush.bf16.msrb.mxu2 %v10295_v52  ;;  %v10305_v38 = vld [vmem:[#allocation68_spill] sm:$0xff]  ;;  %v10306_v52 = vld [vmem:[#allocation70_spill] sm:$0xff] }
 0x211   :  { %2049 = vmatpush.bf16.msrb.mxu1 %v10296_v60  ;;  %2075 = vmatpush.bf16.msrb.mxu3 %v10297_v6  ;;  %v10307_v60 = vld [vmem:[#allocation72_spill] sm:$0xff] }
 0x212   :  { %2038 = vmatpush.bf16.msrb.mxu0 %v10298_v21  ;;  %2064 = vmatpush.bf16.msrb.mxu2 %v10299_v26  ;;  %v10308_v26 = vld [vmem:[#allocation91_spill] sm:$0xff] }
 0x215   :  { %2050 = vmatpush.bf16.msrb.mxu1 %v10300_v14  ;;  %2076 = vmatpush.bf16.msrb.mxu3 %v10301_v16  ;;  %v1643_v6 = vpop.f32.mrf.mxu0  ;;  %v300_v14 = vadd.f32 %v10309_v10, %v10308_v26 }
 0x216   :  { %2039 = vmatpush.bf16.msrb.mxu0 %v10302_v34  ;;  %2065 = vmatpush.bf16.msrb.mxu2 %v10303_v40  ;;  %v10310_v40 = vld [vmem:[#allocation97_spill] sm:$0xff] }
 0x219   :  { %2051 = vmatpush.bf16.msrb.mxu1 %v10304_v25  ;;  %2077 = vmatpush.bf16.msrb.mxu3 %v10305_v38  ;;  %v329_v25 = vadd.f32 %v10311_v50, %v10310_v40 }
 0x21b   :  { %v1669_v21 = vpop.f32.mrf.mxu2 }
 0x21d   :  { %2052 = vmatpush.bf16.msrb.mxu1 %v10306_v52  ;;  %2078 = vmatpush.bf16.msrb.mxu3 %v10307_v60  ;;  %v1656_v15 = vpop.f32.mrf.mxu1  ;;  %v1645_v16 = vpop.f32.mrf.mxu0 }
 0x21e   :  { %v1657_v55 = vadd.f32 %v1656_v15, %v1643_v6  ;;  %v10312_v15 = vld [vmem:[#allocation105_spill] sm:$0xff] }
 0x220   :  { %v1842_v48 = vadd.f32 %v1657_v55, %v300_v14  ;;  %v10313_v55 = vld [vmem:[#allocation95_spill] sm:$0xff] }
 0x222   :  { %v6003_v34 = vmul.f32 -1.442695, %v1842_v48  ;;  %v358_v48 = vadd.f32 %v10313_v55, %v10312_v15 }
 0x223   :  { %v1682_v18 = vpop.f32.mrf.mxu3  ;;  %v1671_v2 = vpop.f32.mrf.mxu2 }
 0x224   :  { %6884 = vpow2.f32 %v6003_v34  ;;  %v1683_v38 = vadd.f32 %v1682_v18, %v1669_v21 }
 0x225   :  { %v1658_v52 = vpop.f32.mrf.mxu1  ;;  %v1695_v60 = vpop.f32.mrf.mxu0 }
 0x226   :  { %v1843_v59 = vadd.f32 %v1683_v38, %v329_v25 }
 0x228   :  { %v6004_v4 = vmul.f32 -1.442695, %v1843_v59 }
 0x22a   :  { %v6885_v0 = vpop.eup %6884  ;;  %6886 = vpow2.f32 %v6004_v4  ;;  %v10314_v4 = vld [vmem:[#allocation106_spill] sm:$0xff] }
 0x22b   :  { %v1856_v49 = vadd.f32 1.0, %v6885_v0  ;;  %v1684_v44 = vpop.f32.mrf.mxu3  ;;  %v1721_v6 = vpop.f32.mrf.mxu2 }
 0x22c   :  { %v10315_v44 = vld [vmem:[#allocation98_spill] sm:$0xff] }
 0x22d   :  { %v1708_v10 = vpop.f32.mrf.mxu1  ;;  %6888 = vrcp.f32 %v1856_v49  ;;  %v1697_v16 = vpop.f32.mrf.mxu0  ;;  %v387_v0 = vadd.f32 %v10315_v44, %v10314_v4  ;;  %v10317_v44 = vld [vmem:[#allocation173_spill] sm:$0xff]  ;;  %vm1863_vm10 = vweird.f32 %v1856_v49 }
 0x22e   :  { %v1709_v14 = vadd.f32 %v1708_v10, %v1695_v60 }
 0x230   :  { %v6887_v50 = vpop.eup %6886  ;;  %v1844_v34 = vadd.f32 %v1709_v14, %v358_v48 }
 0x231   :  { %v8354_v21 = vadd.f32 1.0, %v6887_v50 }
 0x232   :  { %v6005_v2 = vmul.f32 -1.442695, %v1844_v34 }
 0x233   :  { %6890 = vrcp.f32 %v8354_v21  ;;  %v1734_v59 = vpop.f32.mrf.mxu3  ;;  %v8357_v25 = vpop.eup %6888  ;;  %vm1878_vm15 = vweird.f32 %v8354_v21 }
 0x234   :  { %6892 = vpow2.f32 %v6005_v2  ;;  %v1735_v18 = vadd.f32 %v1734_v59, %v1721_v6  ;;  %v1723_v38 = vpop.f32.mrf.mxu2  ;;  %v1859_v60 = vmul.f32 %v8357_v25, %v1856_v49  ;;  %v10316_v59 = vld [vmem:[#allocation175_spill] sm:$0xff]  ;;  %vm1864_vm9 = vweird.f32 %v8357_v25 }
 0x235   :  { %v1710_v52 = vpop.f32.mrf.mxu1  ;;  %vm8377_vm11 = vmor %vm1863_vm10, %vm1864_vm9 }
 0x236   :  { %v1845_v55 = vadd.f32 %v1735_v18, %v387_v0  ;;  %v1860_v50 = vsub.f32 1.0, %v1859_v60  ;;  %v416_v0 = vadd.f32 %v10317_v44, %v10316_v59 }
 0x238   :  { %v1747_v10 = vpop.f32.mrf.mxu0  ;;  %v6006_v48 = vmul.f32 -1.442695, %v1845_v55  ;;  %v1861_v52 = vmul.f32 %v8357_v25, %v1860_v50 }
 0x239   :  { %v8362_v14 = vpop.eup %6890 }
 0x23a   :  { %v6893_v16 = vpop.eup %6892  ;;  %6894 = vpow2.f32 %v6006_v48  ;;  %v1874_v40 = vmul.f32 %v8362_v14, %v8354_v21  ;;  %v1867_v48 = vand.u32 2147483647, %v1856_v49  ;;  %v1862_v33 = vadd.f32 %v8357_v25, %v1861_v52 }
 0x23b   :  { %v1894_v34 = vadd.f32 1.0, %v6893_v16  ;;  %v1736_v15 = vpop.f32.mrf.mxu3  ;;  %vm1879_vm13 = vweird.f32 %v8362_v14 }
 0x23c   :  { %v1875_v4 = vsub.f32 1.0, %v1874_v40  ;;  %v1869_v15 = vand.u32 2147483648, %v1856_v49  ;;  %vm8381_vm12 = vcmp.eq.f32.partialorder %v1867_v48, 8.507059e+37  ;;  %v1882_v48 = vand.u32 2147483647, %v8354_v21  ;;  %vm8398_vm1 = vmor %vm1878_vm15, %vm1879_vm13 }
 0x23d   :  { %6896 = vrcp.f32 %v1894_v34  ;;  %v1760_v6 = vpop.f32.mrf.mxu1  ;;  %v1907_v59 = vand.u32 2147483648, %v1894_v34  ;;  %vm1901_vm0 = vweird.f32 %v1894_v34 }
 0x23e   :  { %v1773_v2 = vpop.f32.mrf.mxu2  ;;  %v1761_v18 = vadd.f32 %v1760_v6, %v1747_v10  ;;  %v1876_v50 = vmul.f32 %v8362_v14, %v1875_v4  ;;  %v10318_v6 = vld [vmem:[#allocation174_spill] sm:$0xff]  ;;  %v1866_v4 = vsel %vm8377_vm11, %v8357_v25, %v1862_v33  ;;  %vm1883_vm4 = vcmp.eq.f32.partialorder %v1882_v48, 8.507059e+37 }
 0x23f   :  { %v445_v40 = vadd.f32 %v10318_v6, %v8016_v39  ;;  %v10354_v39 = vld [vmem:[#allocation169_spill] sm:$0xff] }
 0x240   :  { %v1749_v38 = vpop.f32.mrf.mxu0  ;;  %v6895_v55 = vpop.eup %6894  ;;  %v1846_v60 = vadd.f32 %v1761_v18, %v416_v0 }
 0x241   :  { %v8369_v26 = vadd.f32 1.0, %v6895_v55  ;;  %v1870_v55 = vor.u32 1.1754944e-38, %v1869_v15  ;;  %v1884_v15 = vand.u32 2147483648, %v8354_v21 }
 0x243   :  { %v6897_v16 = vpop.eup %6896  ;;  %6898 = vrcp.f32 %v8369_v26  ;;  %v1786_v10 = vpop.f32.mrf.mxu3  ;;  %v1871_v25 = vsel %vm8381_vm12, %v1870_v55, %v1866_v4  ;;  %v1922_v52 = vand.u32 2147483648, %v8369_v26  ;;  %v1885_v4 = vor.u32 1.1754944e-38, %v1884_v15 }
 0x244   :  { %v1897_v24 = vmul.f32 %v6897_v16, %v1894_v34  ;;  %6900 = vtanh.f32 %v1846_v60  ;;  %v1787_v44 = vadd.f32 %v1786_v10, %v1773_v2  ;;  %vm1902_vm14 = vweird.f32 %v6897_v16 }
 0x245   :  { %v1762_v60 = vpop.f32.mrf.mxu1  ;;  %v1877_v2 = vadd.f32 %v8362_v14, %v1876_v50  ;;  %vm1903_vm2 = vmor %vm1901_vm0, %vm1902_vm14  ;;  %vm1916_vm6 = vweird.f32 %v8369_v26 }
 0x246   :  { %v1775_v0 = vpop.f32.mrf.mxu2  ;;  %v1898_v18 = vsub.f32 1.0, %v1897_v24  ;;  %v1847_v6 = vadd.f32 %v1787_v44, %v445_v40  ;;  %v1905_v24 = vand.u32 2147483647, %v1894_v34  ;;  %v1908_v44 = vor.u32 1.1754944e-38, %v1907_v59 }
 0x247   :  { %v1881_v34 = vsel %vm8398_vm1, %v8362_v14, %v1877_v2  ;;  %v1920_v59 = vand.u32 2147483647, %v8369_v26  ;;  %v1923_v2 = vor.u32 1.1754944e-38, %v1922_v52  ;;  %v10326_v52 = vld [vmem:[#allocation178_spill] sm:$0xff] }
 0x248   :  { %v1899_v49 = vmul.f32 %v6897_v16, %v1898_v18  ;;  %6902 = vtanh.f32 %v1847_v6  ;;  %vm1906_vm3 = vcmp.eq.f32.partialorder %v1905_v24, 8.507059e+37 }
 0x249   :  { %v6899_v10 = vpop.eup %6898  ;;  %vm1921_vm8 = vcmp.eq.f32.partialorder %v1920_v59, 8.507059e+37 }
 0x24a   :  { %v6901_v0 = vpop.eup %6900  ;;  %v1912_v33 = vmul.f32 %v6899_v10, %v8369_v26  ;;  %v1900_v40 = vadd.f32 %v6897_v16, %v1899_v49  ;;  %vm1917_vm5 = vweird.f32 %v6899_v10 }
 0x24b   :  { %v1968_v18 = vmul.f32 %v6901_v0, %v1871_v25  ;;  %v1788_v60 = vpop.f32.mrf.mxu3  ;;  %vm1918_vm7 = vmor %vm1916_vm6, %vm1917_vm5 }
 0x24c   :  { %v1913_v38 = vsub.f32 1.0, %v1912_v33  ;;  %v1904_v21 = vsel %vm1903_vm2, %v6897_v16, %v1900_v40  ;;  %v1886_v33 = vsel %vm1883_vm4, %v1885_v4, %v1881_v34 }
 0x24d   :  { %v1909_v55 = vsel %vm1906_vm3, %v1908_v44, %v1904_v21 }
 0x24e   :  { %v1914_v6 = vmul.f32 %v6899_v10, %v1913_v38  ;;  %v1966_v49 = vmul.f32 %v1909_v55, %v8190_v12  ;;  %v6903_v0 = vpop.eup %6902  ;;  %v10325_v38 = vld [vmem:[#allocation176_spill] sm:$0xff] }
 0x24f   :  { %v1969_v14 = vmul.f32 %v6903_v0, %v1886_v33  ;;  %v474_v21 = vadd.f32 %v10325_v38, %v8034_v56  ;;  %v10353_v56 = vld [vmem:[#allocation167_spill] sm:$0xff] }
 0x250   :  { %v8409_v16 = vadd.f32 %v1968_v18, %v1966_v49  ;;  %v1915_v24 = vadd.f32 %v6899_v10, %v1914_v6 }
 0x252   :  { %v1919_v25 = vsel %vm1918_vm7, %v6899_v10, %v1915_v24  ;;  %v503_v10 = vadd.f32 %v10326_v52, %v8038_v35  ;;  %v10352_v35 = vld [vmem:[#allocation142_spill] sm:$0xff] }
 0x253   :  { %v1924_v48 = vsel %vm1921_vm8, %v1923_v2, %v1919_v25 }
 0x254   :  { %v1967_v15 = vmul.f32 %v1924_v48, %v8192_v54 }
 0x256   :  { %v8412_v50 = vadd.f32 %v1969_v14, %v1967_v15 }
 0x258   :  { %v1799_v40 = vpop.f32.mrf.mxu0 }
 0x25d   :  { %v1812_v12 = vpop.f32.mrf.mxu1 }
 0x25e   :  { %v1825_v44 = vpop.f32.mrf.mxu2  ;;  %v1813_v26 = vadd.f32 %v1812_v12, %v1799_v40 }
 0x260   :  { %v1801_v18 = vpop.f32.mrf.mxu0  ;;  %v1848_v34 = vadd.f32 %v1813_v26, %v474_v21 }
 0x262   :  { %v6007_v60 = vmul.f32 -1.442695, %v1848_v34 }
 0x263   :  { %v1838_v55 = vpop.f32.mrf.mxu3 }
 0x264   :  { %6904 = vpow2.f32 %v6007_v60  ;;  %v1839_v4 = vadd.f32 %v1838_v55, %v1825_v44 }
 0x265   :  { %v1814_v6 = vpop.f32.mrf.mxu1 }
 0x266   :  { %v1827_v54 = vpop.f32.mrf.mxu2  ;;  %v1849_v49 = vadd.f32 %v1839_v4, %v503_v10 }
 0x268   :  { %v6008_v59 = vmul.f32 -1.442695, %v1849_v49 }
 0x26a   :  { %v6905_v0 = vpop.eup %6904  ;;  %6906 = vpow2.f32 %v6008_v59 }
 0x26b   :  { %v1934_v33 = vadd.f32 1.0, %v6905_v0  ;;  %v1840_v24 = vpop.f32.mrf.mxu3 }
 0x26d   :  { %6908 = vrcp.f32 %v1934_v33  ;;  %v1947_v40 = vand.u32 2147483648, %v1934_v33  ;;  %v1945_v44 = vand.u32 2147483647, %v1934_v33  ;;  %vm1941_vm10 = vweird.f32 %v1934_v33 }
 0x26f   :  { %v1948_v18 = vor.u32 1.1754944e-38, %v1947_v40  ;;  %vm1946_vm12 = vcmp.eq.f32.partialorder %v1945_v44, 8.507059e+37  ;;  %v10331_v40 = vld [vmem:[#allocation115_spill] sm:$0xff]  ;;  %v10333_v44 = vld [vmem:[#allocation108_spill] sm:$0xff] }
 0x270   :  { %v6907_v14 = vpop.eup %6906 }
 0x271   :  { %v1935_v2 = vadd.f32 1.0, %v6907_v14 }
 0x273   :  { %v6909_v25 = vpop.eup %6908  ;;  %6910 = vrcp.f32 %v1935_v2  ;;  %v1962_v10 = vand.u32 2147483648, %v1935_v2  ;;  %v1960_v54 = vand.u32 2147483647, %v1935_v2  ;;  %vm1956_vm14 = vweird.f32 %v1935_v2 }
 0x274   :  { %v1937_v48 = vmul.f32 %v6909_v25, %v1934_v33  ;;  %6912 = vtanh.f32 %v8409_v16  ;;  %vm1942_vm9 = vweird.f32 %v6909_v25 }
 0x275   :  { %vm1943_vm11 = vmor %vm1941_vm10, %vm1942_vm9  ;;  %6914 = vtanh.f32 %v8412_v50  ;;  %v1963_v0 = vor.u32 1.1754944e-38, %v1962_v10  ;;  %vm1961_vm0 = vcmp.eq.f32.partialorder %v1960_v54, 8.507059e+37  ;;  %v10342_v10 = vld [vmem:[#allocation133_spill] sm:$0xff]  ;;  %v10345_v54 = vld [vmem:[#allocation126_spill] sm:$0xff] }
 0x276   :  { %v1938_v15 = vsub.f32 1.0, %v1937_v48 }
 0x278   :  { %v1939_v12 = vmul.f32 %v6909_v25, %v1938_v15  ;;  %v10330_v15 = vld [vmem:[#allocation104_spill] sm:$0xff] }
 0x279   :  { %v6911_v38 = vpop.eup %6910 }
 0x27a   :  { %v1940_v21 = vadd.f32 %v6909_v25, %v1939_v12  ;;  %v1952_v26 = vmul.f32 %v6911_v38, %v1935_v2  ;;  %v6913_v55 = vpop.eup %6912  ;;  %vm1957_vm13 = vweird.f32 %v6911_v38  ;;  %v10329_v2 = vld [vmem:[#allocation102_spill] sm:$0xff]  ;;  %v10332_v12 = vld [vmem:[#allocation117_spill] sm:$0xff] }
 0x27b   :  { %vm1958_vm15 = vmor %vm1956_vm14, %vm1957_vm13  ;;  %v6915_v24 = vpop.eup %6914 }
 0x27c   :  { %v1944_v34 = vsel %vm1943_vm11, %v6909_v25, %v1940_v21  ;;  %v1953_v60 = vsub.f32 1.0, %v1952_v26  ;;  %v10335_v21 = vld [vmem:[#allocation119_spill] sm:$0xff]  ;;  %v10336_v26 = vld [vmem:[#allocation121_spill] sm:$0xff] }
 0x27d   :  { %v1949_v52 = vsel %vm1946_vm12, %v1948_v18, %v1944_v34  ;;  %v10337_v18 = vld [vmem:[#allocation124_spill] sm:$0xff]  ;;  %v10338_v34 = vld [vmem:[#allocation127_spill] sm:$0xff] }
 0x27e   :  { %v1974_v4 = vmul.f32 %v6913_v55, %v1949_v52  ;;  %v1954_v6 = vmul.f32 %v6911_v38, %v1953_v60  ;;  %v10339_v60 = vld [vmem:[#allocation116_spill] sm:$0xff]  ;;  %v10340_v55 = vld [vmem:[#allocation118_spill] sm:$0xff]  ;;  %v10341_v52 = vld [vmem:[#allocation131_spill] sm:$0xff] }
 0x280   :  { %v8420_v49 = vpack.c.bf16 %v1974_v4, %v1974_v4  ;;  %v1955_v59 = vadd.f32 %v6911_v38, %v1954_v6  ;;  %v10343_v4 = vld [vmem:[#allocation120_spill] sm:$0xff]  ;;  %v10344_v6 = vld [vmem:[#allocation123_spill] sm:$0xff] }
 0x282   :  { %10327 = vst [vmem:[#allocation82_spill] sm:$0xff] %v8420_v49  ;;  %v1959_v33 = vsel %vm1958_vm15, %v6911_v38, %v1955_v59  ;;  %1988 = vmatmul.bf16.vlgmr.msra.gmra.mxu0 %v8420_v49  ;;  %2014 = vmatmul.bf16.vlgmr.msra.gmra.mxu2 %v8420_v49  ;;  %v10334_v38 = vld [vmem:[#allocation110_spill] sm:$0xff]  ;;  %v10346_v59 = vld [vmem:[#allocation129_spill] sm:$0xff] }
 0x283   :  { %v1964_v14 = vsel %vm1961_vm0, %v1963_v0, %v1959_v33  ;;  %2084 = vmatpush.bf16.msra.mxu0 %v10209_v30  ;;  %2110 = vmatpush.bf16.msra.mxu2 %v10210_v42  ;;  %v10347_v0 = vld [vmem:[#allocation135_spill] sm:$0xff] }
 0x284   :  { %v1975_v25 = vmul.f32 %v6915_v24, %v1964_v14  ;;  %v10348_v33 = vld [vmem:[#allocation139_spill] sm:$0xff]  ;;  %v10349_v24 = vld [vmem:[#allocation132_spill] sm:$0xff]  ;;  %v10350_v14 = vld [vmem:[#allocation134_spill] sm:$0xff] }
 0x286   :  { %v8426_v48 = vpack.c.bf16 %v1975_v25, %v1975_v25  ;;  %v10351_v25 = vld [vmem:[#allocation143_spill] sm:$0xff] }
 0x287   :  { %2085 = vmatpush.bf16.msra.mxu0 %v10212_v13  ;;  %2111 = vmatpush.bf16.msra.mxu2 %v10213_v5 }
 0x288   :  { %10328 = vst [vmem:[#allocation84_spill] sm:$0xff] %v8426_v48  ;;  %2001 = vmatmul.bf16.vlgmr.msra.gmra.mxu1 %v8426_v48  ;;  %2027 = vmatmul.bf16.vlgmr.msra.gmra.mxu3 %v8426_v48 }
 0x289   :  { %2097 = vmatpush.bf16.msra.mxu1 %v10214_v27  ;;  %2123 = vmatpush.bf16.msra.mxu3 %v10215_v32 }
 0x28b   :  { %2086 = vmatpush.bf16.msra.mxu0 %v10216_v9  ;;  %2112 = vmatpush.bf16.msra.mxu2 %v10217_v3 }
 0x28d   :  { %2098 = vmatpush.bf16.msra.mxu1 %v10218_v45  ;;  %2124 = vmatpush.bf16.msra.mxu3 %v10219_v37 }
 0x28f   :  { %2087 = vmatpush.bf16.msra.mxu0 %v10220_v29  ;;  %2113 = vmatpush.bf16.msra.mxu2 %v10221_v19 }
 0x291   :  { %2099 = vmatpush.bf16.msra.mxu1 %v10222_v28  ;;  %2125 = vmatpush.bf16.msra.mxu3 %v10223_v53 }
 0x292   :  { %2040 = vmatmul.bf16.vlgmr.msrb.gmra.mxu0 %v8420_v49  ;;  %2066 = vmatmul.bf16.vlgmr.msrb.gmra.mxu2 %v8420_v49 }
 0x293   :  { %2088 = vmatpush.bf16.msra.mxu0 %v10224_v11  ;;  %2114 = vmatpush.bf16.msra.mxu2 %v10225_v20 }
 0x295   :  { %2100 = vmatpush.bf16.msra.mxu1 %v10226_v41  ;;  %2126 = vmatpush.bf16.msra.mxu3 %v10227_v46 }
 0x297   :  { %2089 = vmatpush.bf16.msra.mxu0 %v10228_v8  ;;  %2115 = vmatpush.bf16.msra.mxu2 %v10229_v63 }
 0x298   :  { %2053 = vmatmul.bf16.vlgmr.msrb.gmra.mxu1 %v8426_v48  ;;  %2079 = vmatmul.bf16.vlgmr.msrb.gmra.mxu3 %v8426_v48 }
 0x299   :  { %2101 = vmatpush.bf16.msra.mxu1 %v10329_v2  ;;  %2127 = vmatpush.bf16.msra.mxu3 %v10330_v15 }
 0x29b   :  { %2090 = vmatpush.bf16.msra.mxu0 %v10331_v40  ;;  %2116 = vmatpush.bf16.msra.mxu2 %v10332_v12 }
 0x29d   :  { %2102 = vmatpush.bf16.msra.mxu1 %v10333_v44  ;;  %2128 = vmatpush.bf16.msra.mxu3 %v10334_v38 }
 0x29f   :  { %2091 = vmatpush.bf16.msra.mxu0 %v10335_v21  ;;  %2117 = vmatpush.bf16.msra.mxu2 %v10336_v26 }
 0x2a1   :  { %2103 = vmatpush.bf16.msra.mxu1 %v10339_v60  ;;  %2129 = vmatpush.bf16.msra.mxu3 %v10340_v55 }
 0x2a2   :  { %2092 = vmatmul.bf16.vlgmr.msra.gmra.mxu0 %v8420_v49  ;;  %2118 = vmatmul.bf16.vlgmr.msra.gmra.mxu2 %v8420_v49 }
 0x2a3   :  { %2136 = vmatpush.bf16.msrb.mxu0 %v10337_v18  ;;  %2162 = vmatpush.bf16.msrb.mxu2 %v10338_v34 }
 0x2a5   :  { %2104 = vmatpush.bf16.msra.mxu1 %v10343_v4  ;;  %2130 = vmatpush.bf16.msra.mxu3 %v10344_v6 }
 0x2a7   :  { %2137 = vmatpush.bf16.msrb.mxu0 %v10341_v52  ;;  %2163 = vmatpush.bf16.msrb.mxu2 %v10342_v10 }
 0x2a8   :  { %2105 = vmatmul.bf16.vlgmr.msra.gmra.mxu1 %v8426_v48  ;;  %2131 = vmatmul.bf16.vlgmr.msra.gmra.mxu3 %v8426_v48 }
 0x2a9   :  { %2149 = vmatpush.bf16.msrb.mxu1 %v10345_v54  ;;  %2175 = vmatpush.bf16.msrb.mxu3 %v10346_v59  ;;  %v10432_v59 = vld [vmem:[#allocation180_spill] sm:$0xff] }
 0x2ab   :  { %2138 = vmatpush.bf16.msrb.mxu0 %v10347_v0  ;;  %2164 = vmatpush.bf16.msrb.mxu2 %v10348_v33 }
 0x2ad   :  { %2150 = vmatpush.bf16.msrb.mxu1 %v10349_v24  ;;  %2176 = vmatpush.bf16.msrb.mxu3 %v10350_v14 }
 0x2af   :  { %2139 = vmatpush.bf16.msrb.mxu0 %v10351_v25  ;;  %2165 = vmatpush.bf16.msrb.mxu2 %v10249_v22 }
 0x2b1   :  { %2151 = vmatpush.bf16.msrb.mxu1 %v10250_v23  ;;  %2177 = vmatpush.bf16.msrb.mxu3 %v10352_v35 }
 0x2b3   :  { %2140 = vmatpush.bf16.msrb.mxu0 %v10252_v17  ;;  %2166 = vmatpush.bf16.msrb.mxu2 %v10253_v1 }
 0x2b5   :  { %2152 = vmatpush.bf16.msrb.mxu1 %v10254_v62  ;;  %2178 = vmatpush.bf16.msrb.mxu3 %v10255_v7  ;;  %v10355_v7 = vld [vmem:[#allocation9_spill] sm:$0xff] }
 0x2b7   :  { %2141 = vmatpush.bf16.msrb.mxu0 %v10256_v51  ;;  %2167 = vmatpush.bf16.msrb.mxu2 %v10257_v36  ;;  %v10356_v51 = vld [vmem:[#allocation11_spill] sm:$0xff]  ;;  %v10357_v36 = vld [vmem:[#allocation162_spill] sm:$0xff] }
 0x2b9   :  { %2153 = vmatpush.bf16.msrb.mxu1 %v10258_v61  ;;  %2179 = vmatpush.bf16.msrb.mxu3 %v10259_v58  ;;  %v10358_v61 = vld [vmem:[#allocation166_spill] sm:$0xff] }
 0x2bb   :  { %2142 = vmatpush.bf16.msrb.mxu0 %v7939_v31  ;;  %2168 = vmatpush.bf16.msrb.mxu2 %v7950_v43  ;;  %v10359_v43 = vld [vmem:[#allocation13_spill] sm:$0xff] }
 0x2bd   :  { %2154 = vmatpush.bf16.msrb.mxu1 %v10260_v47  ;;  %2180 = vmatpush.bf16.msrb.mxu3 %v7936_v57  ;;  %v10360_v47 = vld [vmem:[#allocation15_spill] sm:$0xff]  ;;  %v10361_v57 = vld [vmem:[#allocation168_spill] sm:$0xff] }
 0x2bf   :  { %2143 = vmatpush.bf16.msrb.mxu0 %v10353_v56  ;;  %2169 = vmatpush.bf16.msrb.mxu2 %v10354_v39  ;;  %v10362_v56 = vld [vmem:[#allocation170_spill] sm:$0xff] }
 0x2c0   :  { %v10363_v39 = vld [vmem:[#allocation10_spill] sm:$0xff] }
 0x2c1   :  { %2155 = vmatpush.bf16.msrb.mxu1 %v10357_v36  ;;  %2181 = vmatpush.bf16.msrb.mxu3 %v10358_v61  ;;  %v10365_v61 = vld [vmem:[#allocation17_spill] sm:$0xff]  ;;  %v10366_v36 = vld [vmem:[#allocation19_spill] sm:$0xff] }
 0x2c2   :  { %2144 = vmatmul.bf16.vlgmr.msrb.gmra.mxu0 %v8420_v49  ;;  %2170 = vmatmul.bf16.vlgmr.msrb.gmra.mxu2 %v8420_v49  ;;  %v10367_v49 = vld [vmem:[#allocation14_spill] sm:$0xff] }
 0x2c3   :  { %2326 = vmatpush.bf16.msra.mxu0 %v10355_v7  ;;  %2352 = vmatpush.bf16.msra.mxu2 %v10356_v51  ;;  %v10364_v7 = vld [vmem:[#allocation12_spill] sm:$0xff]  ;;  %v10374_v51 = vld [vmem:[#allocation27_spill] sm:$0xff] }
 0x2c5   :  { %2156 = vmatpush.bf16.msrb.mxu1 %v10361_v57  ;;  %2182 = vmatpush.bf16.msrb.mxu3 %v10362_v56  ;;  %v10370_v57 = vld [vmem:[#allocation23_spill] sm:$0xff]  ;;  %v10371_v56 = vld [vmem:[#allocation18_spill] sm:$0xff] }
 0x2c7   :  { %2327 = vmatpush.bf16.msra.mxu0 %v10359_v43  ;;  %2353 = vmatpush.bf16.msra.mxu2 %v10360_v47  ;;  %v10368_v43 = vld [vmem:[#allocation16_spill] sm:$0xff]  ;;  %v10369_v47 = vld [vmem:[#allocation21_spill] sm:$0xff] }
 0x2c8   :  { %2157 = vmatmul.bf16.vlgmr.msrb.gmra.mxu1 %v8426_v48  ;;  %2183 = vmatmul.bf16.vlgmr.msrb.gmra.mxu3 %v8426_v48  ;;  %v10375_v48 = vld [vmem:[#allocation22_spill] sm:$0xff] }
 0x2c9   :  { %2339 = vmatpush.bf16.msra.mxu1 %v10363_v39  ;;  %2365 = vmatpush.bf16.msra.mxu3 %v10364_v7  ;;  %v10372_v39 = vld [vmem:[#allocation20_spill] sm:$0xff]  ;;  %v10373_v7 = vld [vmem:[#allocation25_spill] sm:$0xff] }
 0x2cb   :  { %2328 = vmatpush.bf16.msra.mxu0 %v10365_v61  ;;  %2354 = vmatpush.bf16.msra.mxu2 %v10366_v36  ;;  %v10376_v61 = vld [vmem:[#allocation24_spill] sm:$0xff]  ;;  %v10377_v36 = vld [vmem:[#allocation29_spill] sm:$0xff] }
 0x2cd   :  { %2340 = vmatpush.bf16.msra.mxu1 %v10367_v49  ;;  %2366 = vmatpush.bf16.msra.mxu3 %v10368_v43  ;;  %v10378_v49 = vld [vmem:[#allocation31_spill] sm:$0xff]  ;;  %v10379_v43 = vld [vmem:[#allocation26_spill] sm:$0xff] }
 0x2cf   :  { %2329 = vmatpush.bf16.msra.mxu0 %v10369_v47  ;;  %2355 = vmatpush.bf16.msra.mxu2 %v10370_v57  ;;  %v10380_v47 = vld [vmem:[#allocation28_spill] sm:$0xff]  ;;  %v10381_v57 = vld [vmem:[#allocation33_spill] sm:$0xff] }
 0x2d1   :  { %2341 = vmatpush.bf16.msra.mxu1 %v10371_v56  ;;  %2367 = vmatpush.bf16.msra.mxu3 %v10372_v39  ;;  %v10382_v56 = vld [vmem:[#allocation35_spill] sm:$0xff]  ;;  %v10383_v39 = vld [vmem:[#allocation30_spill] sm:$0xff] }
 0x2d3   :  { %2330 = vmatpush.bf16.msra.mxu0 %v10373_v7  ;;  %2356 = vmatpush.bf16.msra.mxu2 %v10374_v51  ;;  %v10384_v7 = vld [vmem:[#allocation32_spill] sm:$0xff]  ;;  %v10385_v51 = vld [vmem:[#allocation37_spill] sm:$0xff] }
 0x2d5   :  { %2342 = vmatpush.bf16.msra.mxu1 %v10375_v48  ;;  %2368 = vmatpush.bf16.msra.mxu3 %v10376_v61  ;;  %v10386_v48 = vld [vmem:[#allocation39_spill] sm:$0xff]  ;;  %v10387_v61 = vld [vmem:[#allocation41_spill] sm:$0xff] }
 0x2d7   :  { %2331 = vmatpush.bf16.msra.mxu0 %v10377_v36  ;;  %2357 = vmatpush.bf16.msra.mxu2 %v10378_v49  ;;  %v10388_v36 = vld [vmem:[#allocation43_spill] sm:$0xff]  ;;  %v10389_v49 = vld [vmem:[#allocation34_spill] sm:$0xff] }
 0x2d9   :  { %2343 = vmatpush.bf16.msra.mxu1 %v10379_v43  ;;  %2369 = vmatpush.bf16.msra.mxu3 %v10380_v47  ;;  %v10390_v43 = vld [vmem:[#allocation36_spill] sm:$0xff]  ;;  %v10391_v47 = vld [vmem:[#allocation45_spill] sm:$0xff] }
 0x2db   :  { %2332 = vmatpush.bf16.msra.mxu0 %v10381_v57  ;;  %2358 = vmatpush.bf16.msra.mxu2 %v10382_v56  ;;  %v10392_v57 = vld [vmem:[#allocation47_spill] sm:$0xff]  ;;  %v10393_v56 = vld [vmem:[#allocation38_spill] sm:$0xff] }
 0x2dd   :  { %2344 = vmatpush.bf16.msra.mxu1 %v10383_v39  ;;  %2370 = vmatpush.bf16.msra.mxu3 %v10384_v7  ;;  %v10394_v39 = vld [vmem:[#allocation40_spill] sm:$0xff]  ;;  %v10395_v7 = vld [vmem:[#allocation42_spill] sm:$0xff] }
 0x2df   :  { %2333 = vmatpush.bf16.msra.mxu0 %v10385_v51  ;;  %2359 = vmatpush.bf16.msra.mxu2 %v10386_v48  ;;  %v10396_v51 = vld [vmem:[#allocation44_spill] sm:$0xff]  ;;  %v10397_v48 = vld [vmem:[#allocation49_spill] sm:$0xff] }
 0x2e1   :  { %2345 = vmatpush.bf16.msra.mxu1 %v10389_v49  ;;  %2371 = vmatpush.bf16.msra.mxu3 %v10390_v43  ;;  %v10400_v49 = vld [vmem:[#allocation48_spill] sm:$0xff]  ;;  %v10401_v43 = vld [vmem:[#allocation53_spill] sm:$0xff] }
 0x2e3   :  { %2378 = vmatpush.bf16.msrb.mxu0 %v10387_v61  ;;  %2404 = vmatpush.bf16.msrb.mxu2 %v10388_v36  ;;  %v10398_v61 = vld [vmem:[#allocation51_spill] sm:$0xff]  ;;  %v10399_v36 = vld [vmem:[#allocation46_spill] sm:$0xff] }
 0x2e5   :  { %2346 = vmatpush.bf16.msra.mxu1 %v10393_v56  ;;  %2372 = vmatpush.bf16.msra.mxu3 %v10394_v39  ;;  %v10404_v56 = vld [vmem:[#allocation52_spill] sm:$0xff]  ;;  %v10405_v39 = vld [vmem:[#allocation57_spill] sm:$0xff] }
 0x2e7   :  { %2379 = vmatpush.bf16.msrb.mxu0 %v10391_v47  ;;  %2405 = vmatpush.bf16.msrb.mxu2 %v10392_v57  ;;  %v10402_v47 = vld [vmem:[#allocation55_spill] sm:$0xff]  ;;  %v10403_v57 = vld [vmem:[#allocation50_spill] sm:$0xff] }
 0x2e9   :  { %2391 = vmatpush.bf16.msrb.mxu1 %v10395_v7  ;;  %2417 = vmatpush.bf16.msrb.mxu3 %v10396_v51  ;;  %v10406_v7 = vld [vmem:[#allocation59_spill] sm:$0xff]  ;;  %v10407_v51 = vld [vmem:[#allocation54_spill] sm:$0xff] }
 0x2eb   :  { %2380 = vmatpush.bf16.msrb.mxu0 %v10397_v48  ;;  %2406 = vmatpush.bf16.msrb.mxu2 %v10398_v61  ;;  %v10408_v48 = vld [vmem:[#allocation56_spill] sm:$0xff]  ;;  %v10409_v61 = vld [vmem:[#allocation61_spill] sm:$0xff] }
 0x2ed   :  { %2392 = vmatpush.bf16.msrb.mxu1 %v10399_v36  ;;  %2418 = vmatpush.bf16.msrb.mxu3 %v10400_v49  ;;  %v10410_v36 = vld [vmem:[#allocation63_spill] sm:$0xff]  ;;  %v10411_v49 = vld [vmem:[#allocation58_spill] sm:$0xff] }
 0x2ef   :  { %2381 = vmatpush.bf16.msrb.mxu0 %v10401_v43  ;;  %2407 = vmatpush.bf16.msrb.mxu2 %v10402_v47  ;;  %v10412_v43 = vld [vmem:[#allocation60_spill] sm:$0xff]  ;;  %v10413_v47 = vld [vmem:[#allocation65_spill] sm:$0xff] }
 0x2f1   :  { %2393 = vmatpush.bf16.msrb.mxu1 %v10403_v57  ;;  %2419 = vmatpush.bf16.msrb.mxu3 %v10404_v56  ;;  %v10414_v57 = vld [vmem:[#allocation67_spill] sm:$0xff]  ;;  %v10415_v56 = vld [vmem:[#allocation62_spill] sm:$0xff] }
 0x2f3   :  { %2382 = vmatpush.bf16.msrb.mxu0 %v10405_v39  ;;  %2408 = vmatpush.bf16.msrb.mxu2 %v10406_v7  ;;  %v10416_v39 = vld [vmem:[#allocation64_spill] sm:$0xff]  ;;  %v10417_v7 = vld [vmem:[#allocation69_spill] sm:$0xff] }
 0x2f5   :  { %2394 = vmatpush.bf16.msrb.mxu1 %v10407_v51  ;;  %2420 = vmatpush.bf16.msrb.mxu3 %v10408_v48  ;;  %v10418_v51 = vld [vmem:[#allocation71_spill] sm:$0xff]  ;;  %v10419_v48 = vld [vmem:[#allocation66_spill] sm:$0xff] }
 0x2f7   :  { %2383 = vmatpush.bf16.msrb.mxu0 %v10409_v61  ;;  %2409 = vmatpush.bf16.msrb.mxu2 %v10410_v36  ;;  %v10420_v61 = vld [vmem:[#allocation68_spill] sm:$0xff]  ;;  %v10421_v36 = vld [vmem:[#allocation70_spill] sm:$0xff] }
 0x2f9   :  { %2395 = vmatpush.bf16.msrb.mxu1 %v10411_v49  ;;  %2421 = vmatpush.bf16.msrb.mxu3 %v10412_v43  ;;  %v10422_v49 = vld [vmem:[#allocation72_spill] sm:$0xff] }
 0x2fb   :  { %2384 = vmatpush.bf16.msrb.mxu0 %v10413_v47  ;;  %2410 = vmatpush.bf16.msrb.mxu2 %v10414_v57 }
 0x2fd   :  { %2396 = vmatpush.bf16.msrb.mxu1 %v10415_v56  ;;  %2422 = vmatpush.bf16.msrb.mxu3 %v10416_v39  ;;  %v10423_v56 = vld [vmem:[#allocation99_spill] sm:$0xff] }
 0x2ff   :  { %2385 = vmatpush.bf16.msrb.mxu0 %v10417_v7  ;;  %2411 = vmatpush.bf16.msrb.mxu2 %v10418_v51  ;;  %v1989_v43 = vpop.f32.mrf.mxu0 }
 0x301   :  { %2397 = vmatpush.bf16.msrb.mxu1 %v10419_v48  ;;  %2423 = vmatpush.bf16.msrb.mxu3 %v10420_v61  ;;  %v10424_v48 = vld [vmem:[#allocation101_spill] sm:$0xff] }
 0x305   :  { %2398 = vmatpush.bf16.msrb.mxu1 %v10421_v36  ;;  %2424 = vmatpush.bf16.msrb.mxu3 %v10422_v49  ;;  %v2002_v47 = vpop.f32.mrf.mxu1  ;;  %v2015_v31 = vpop.f32.mrf.mxu2 }
 0x306   :  { %v2003_v57 = vadd.f32 %v2002_v47, %v1989_v43 }
 0x307   :  { %v1991_v58 = vpop.f32.mrf.mxu0 }
 0x308   :  { %v2188_v62 = vadd.f32 %v2003_v57, %v10423_v56  ;;  %v10425_v56 = vld [vmem:[#allocation111_spill] sm:$0xff] }
 0x30a   :  { %v6009_v39 = vmul.f32 -1.442695, %v2188_v62 }
 0x30b   :  { %v2028_v1 = vpop.f32.mrf.mxu3 }
 0x30c   :  { %6916 = vpow2.f32 %v6009_v39  ;;  %v2029_v7 = vadd.f32 %v2028_v1, %v2015_v31 }
 0x30d   :  { %v2004_v51 = vpop.f32.mrf.mxu1  ;;  %v2017_v17 = vpop.f32.mrf.mxu2 }
 0x30e   :  { %v2189_v35 = vadd.f32 %v2029_v7, %v10424_v48  ;;  %v10426_v51 = vld [vmem:[#allocation113_spill] sm:$0xff] }
 0x30f   :  { %v2041_v61 = vpop.f32.mrf.mxu0 }
 0x310   :  { %v6010_v23 = vmul.f32 -1.442695, %v2189_v35 }
 0x312   :  { %v6917_v36 = vpop.eup %6916  ;;  %6918 = vpow2.f32 %v6010_v23 }
 0x313   :  { %v2202_v49 = vadd.f32 1.0, %v6917_v36  ;;  %v2030_v22 = vpop.f32.mrf.mxu3 }
 0x315   :  { %v2054_v25 = vpop.f32.mrf.mxu1  ;;  %v2067_v14 = vpop.f32.mrf.mxu2  ;;  %6920 = vrcp.f32 %v2202_v49  ;;  %v2213_v33 = vand.u32 2147483647, %v2202_v49  ;;  %vm2209_vm2 = vweird.f32 %v2202_v49 }
 0x316   :  { %v2055_v47 = vadd.f32 %v2054_v25, %v2041_v61 }
 0x317   :  { %v2043_v43 = vpop.f32.mrf.mxu0  ;;  %vm8588_vm4 = vcmp.eq.f32.partialorder %v2213_v33, 8.507059e+37 }
 0x318   :  { %v6919_v57 = vpop.eup %6918  ;;  %v2190_v58 = vadd.f32 %v2055_v47, %v10425_v56 }
 0x319   :  { %v8571_v39 = vadd.f32 1.0, %v6919_v57 }
 0x31a   :  { %v6011_v1 = vmul.f32 -1.442695, %v2190_v58 }
 0x31b   :  { %6922 = vrcp.f32 %v8571_v39  ;;  %v2080_v17 = vpop.f32.mrf.mxu3  ;;  %v6921_v31 = vpop.eup %6920  ;;  %vm2224_vm7 = vweird.f32 %v8571_v39  ;;  %v2228_v33 = vand.u32 2147483647, %v8571_v39 }
 0x31c   :  { %6924 = vpow2.f32 %v6011_v1  ;;  %v2081_v35 = vadd.f32 %v2080_v17, %v2067_v14  ;;  %v2205_v22 = vmul.f32 %v6921_v31, %v2202_v49  ;;  %vm2210_vm1 = vweird.f32 %v6921_v31 }
 0x31d   :  { %v2056_v23 = vpop.f32.mrf.mxu1  ;;  %v2069_v36 = vpop.f32.mrf.mxu2  ;;  %vm8584_vm3 = vmor %vm2209_vm2, %vm2210_vm1  ;;  %vm2229_vm12 = vcmp.eq.f32.partialorder %v2228_v33, 8.507059e+37 }
 0x31e   :  { %v2191_v7 = vadd.f32 %v2081_v35, %v10426_v51  ;;  %v2206_v47 = vsub.f32 1.0, %v2205_v22 }
 0x31f   :  { %v2093_v62 = vpop.f32.mrf.mxu0 }
 0x320   :  { %v6012_v61 = vmul.f32 -1.442695, %v2191_v7  ;;  %v2207_v17 = vmul.f32 %v6921_v31, %v2206_v47  ;;  %v10427_v7 = vld [vmem:[#allocation179_spill] sm:$0xff] }
 0x321   :  { %v8575_v48 = vpop.eup %6922 }
 0x322   :  { %v6925_v25 = vpop.eup %6924  ;;  %6926 = vpow2.f32 %v6012_v61  ;;  %v2220_v56 = vmul.f32 %v8575_v48, %v8571_v39  ;;  %v2215_v61 = vand.u32 2147483648, %v2202_v49  ;;  %vm2225_vm5 = vweird.f32 %v8575_v48 }
 0x323   :  { %v2240_v43 = vadd.f32 1.0, %v6925_v25  ;;  %v2082_v57 = vpop.f32.mrf.mxu3  ;;  %v2208_v25 = vadd.f32 %v6921_v31, %v2207_v17  ;;  %vm8605_vm9 = vmor %vm2224_vm7, %vm2225_vm5 }
 0x324   :  { %v2221_v36 = vsub.f32 1.0, %v2220_v56 }
 0x325   :  { %6928 = vrcp.f32 %v2240_v43  ;;  %v2119_v58 = vpop.f32.mrf.mxu2  ;;  %v2106_v14 = vpop.f32.mrf.mxu1  ;;  %vm2247_vm8 = vweird.f32 %v2240_v43 }
 0x326   :  { %v2107_v1 = vadd.f32 %v2106_v14, %v2093_v62  ;;  %v2222_v62 = vmul.f32 %v8575_v48, %v2221_v36 }
 0x327   :  { %v2095_v23 = vpop.f32.mrf.mxu0 }
 0x328   :  { %v6927_v35 = vpop.eup %6926  ;;  %v2192_v24 = vadd.f32 %v2107_v1, %v10427_v7  ;;  %v2253_v7 = vand.u32 2147483648, %v2240_v43 }
 0x329   :  { %v8579_v51 = vadd.f32 1.0, %v6927_v35  ;;  %v2216_v35 = vor.u32 1.1754944e-38, %v2215_v61  ;;  %v2230_v61 = vand.u32 2147483648, %v8571_v39 }
 0x32b   :  { %v6929_v22 = vpop.eup %6928  ;;  %6930 = vrcp.f32 %v8579_v51  ;;  %v2132_v0 = vpop.f32.mrf.mxu3  ;;  %v2268_v1 = vand.u32 2147483648, %v8579_v51  ;;  %vm2262_vm14 = vweird.f32 %v8579_v51 }
 0x32c   :  { %v2243_v57 = vmul.f32 %v6929_v22, %v2240_v43  ;;  %6932 = vtanh.f32 %v2192_v24  ;;  %v2133_v47 = vadd.f32 %v2132_v0, %v2119_v58  ;;  %v2212_v24 = vsel %vm8584_vm3, %v6921_v31, %v2208_v25 }
 0x32d   :  { %v2121_v14 = vpop.f32.mrf.mxu2  ;;  %v2108_v17 = vpop.f32.mrf.mxu1  ;;  %vm2248_vm6 = vweird.f32 %v6929_v22  ;;  %v2251_v0 = vand.u32 2147483647, %v2240_v43  ;;  %v2223_v58 = vadd.f32 %v8575_v48, %v2222_v62 }
 0x32e   :  { %v2244_v56 = vsub.f32 1.0, %v2243_v57  ;;  %v2193_v36 = vadd.f32 %v2133_v47, %v10432_v59  ;;  %v2217_v59 = vsel %vm8588_vm4, %v2216_v35, %v2212_v24  ;;  %vm2249_vm10 = vmor %vm2247_vm8, %vm2248_vm6  ;;  %v2254_v47 = vor.u32 1.1754944e-38, %v2253_v7 }
 0x32f   :  { %vm2252_vm11 = vcmp.eq.f32.partialorder %v2251_v0, 8.507059e+37  ;;  %v2227_v43 = vsel %vm8605_vm9, %v8575_v48, %v2223_v58  ;;  %v2231_v24 = vor.u32 1.1754944e-38, %v2230_v61  ;;  %v2266_v7 = vand.u32 2147483647, %v8579_v51 }
 0x330   :  { %v2245_v49 = vmul.f32 %v6929_v22, %v2244_v56  ;;  %6934 = vtanh.f32 %v2193_v36  ;;  %v2269_v58 = vor.u32 1.1754944e-38, %v2268_v1 }
 0x331   :  { %v6931_v57 = vpop.eup %6930  ;;  %vm2267_vm0 = vcmp.eq.f32.partialorder %v2266_v7, 8.507059e+37 }
 0x332   :  { %v6933_v14 = vpop.eup %6932  ;;  %v2258_v31 = vmul.f32 %v6931_v57, %v8579_v51  ;;  %v2246_v25 = vadd.f32 %v6929_v22, %v2245_v49  ;;  %vm2263_vm13 = vweird.f32 %v6931_v57 }
 0x333   :  { %v2314_v56 = vmul.f32 %v6933_v14, %v2217_v59  ;;  %v2134_v17 = vpop.f32.mrf.mxu3  ;;  %vm2264_vm15 = vmor %vm2262_vm14, %vm2263_vm13 }
 0x334   :  { %v2259_v23 = vsub.f32 1.0, %v2258_v31  ;;  %v2250_v39 = vsel %vm2249_vm10, %v6929_v22, %v2246_v25  ;;  %v2232_v31 = vsel %vm2229_vm12, %v2231_v24, %v2227_v43  ;;  %v10435_v43 = vld [vmem:[#allocation183_spill] sm:$0xff] }
 0x335   :  { %v2255_v35 = vsel %vm2252_vm11, %v2254_v47, %v2250_v39 }
 0x336   :  { %v2260_v36 = vmul.f32 %v6931_v57, %v2259_v23  ;;  %v2312_v49 = vmul.f32 %v2255_v35, %v8409_v16  ;;  %v6935_v14 = vpop.eup %6934 }
 0x337   :  { %v2315_v48 = vmul.f32 %v6935_v14, %v2232_v31 }
 0x338   :  { %v8616_v22 = vadd.f32 %v2314_v56, %v2312_v49  ;;  %v2261_v0 = vadd.f32 %v6931_v57, %v2260_v36 }
 0x33a   :  { %v2265_v59 = vsel %vm2264_vm15, %v6931_v57, %v2261_v0  ;;  %v10436_v57 = vld [vmem:[#allocation185_spill] sm:$0xff] }
 0x33b   :  { %v2270_v33 = vsel %vm2267_vm0, %v2269_v58, %v2265_v59 }
 0x33c   :  { %v2313_v61 = vmul.f32 %v2270_v33, %v8412_v50 }
 0x33e   :  { %v8619_v62 = vadd.f32 %v2315_v48, %v2313_v61 }
 0x33f   :  { %v2145_v25 = vpop.f32.mrf.mxu0 }
 0x345   :  { %v2158_v16 = vpop.f32.mrf.mxu1  ;;  %v2171_v47 = vpop.f32.mrf.mxu2 }
 0x346   :  { %v2159_v23 = vadd.f32 %v2158_v16, %v2145_v25 }
 0x347   :  { %v2147_v39 = vpop.f32.mrf.mxu0 }
 0x348   :  { %v2194_v51 = vadd.f32 %v2159_v23, %v10435_v43 }
 0x34a   :  { %v6013_v56 = vmul.f32 -1.442695, %v2194_v51 }
 0x34b   :  { %v2184_v17 = vpop.f32.mrf.mxu3 }
 0x34c   :  { %6936 = vpow2.f32 %v6013_v56  ;;  %v2185_v35 = vadd.f32 %v2184_v17, %v2171_v47 }
 0x34d   :  { %v2160_v24 = vpop.f32.mrf.mxu1  ;;  %v2173_v1 = vpop.f32.mrf.mxu2 }
 0x34e   :  { %v2195_v36 = vadd.f32 %v2185_v35, %v10436_v57 }
 0x350   :  { %v6014_v49 = vmul.f32 -1.442695, %v2195_v36 }
 0x352   :  { %v6937_v7 = vpop.eup %6936  ;;  %6938 = vpow2.f32 %v6014_v49 }
 0x353   :  { %v2280_v50 = vadd.f32 1.0, %v6937_v7  ;;  %v2186_v14 = vpop.f32.mrf.mxu3 }
 0x355   :  { %6940 = vrcp.f32 %v2280_v50  ;;  %v2293_v33 = vand.u32 2147483648, %v2280_v50  ;;  %v2291_v25 = vand.u32 2147483647, %v2280_v50  ;;  %vm2287_vm2 = vweird.f32 %v2280_v50 }
 0x357   :  { %v2294_v39 = vor.u32 1.1754944e-38, %v2293_v33  ;;  %vm2292_vm4 = vcmp.eq.f32.partialorder %v2291_v25, 8.507059e+37  ;;  %v10441_v33 = vld [vmem:[#allocation139_spill] sm:$0xff]  ;;  %v10443_v25 = vld [vmem:[#allocation134_spill] sm:$0xff] }
 0x358   :  { %v6939_v31 = vpop.eup %6938 }
 0x359   :  { %v2281_v0 = vadd.f32 1.0, %v6939_v31 }
 0x35b   :  { %v6941_v48 = vpop.eup %6940  ;;  %6942 = vrcp.f32 %v2281_v0  ;;  %v2308_v35 = vand.u32 2147483648, %v2281_v0  ;;  %v2306_v57 = vand.u32 2147483647, %v2281_v0  ;;  %vm2302_vm6 = vweird.f32 %v2281_v0 }
 0x35c   :  { %v2283_v58 = vmul.f32 %v6941_v48, %v2280_v50  ;;  %6944 = vtanh.f32 %v8616_v22  ;;  %vm2288_vm1 = vweird.f32 %v6941_v48 }
 0x35d   :  { %vm2289_vm3 = vmor %vm2287_vm2, %vm2288_vm1  ;;  %6946 = vtanh.f32 %v8619_v62  ;;  %v2309_v7 = vor.u32 1.1754944e-38, %v2308_v35  ;;  %vm2307_vm8 = vcmp.eq.f32.partialorder %v2306_v57, 8.507059e+37  ;;  %v10452_v35 = vld [vmem:[#allocation155_spill] sm:$0xff]  ;;  %v10455_v57 = vld [vmem:[#allocation153_spill] sm:$0xff] }
 0x35e   :  { %v2284_v59 = vsub.f32 1.0, %v2283_v58 }
 0x360   :  { %v2285_v61 = vmul.f32 %v6941_v48, %v2284_v59  ;;  %v10440_v59 = vld [vmem:[#allocation135_spill] sm:$0xff] }
 0x361   :  { %v6943_v16 = vpop.eup %6942 }
 0x362   :  { %v2286_v47 = vadd.f32 %v6941_v48, %v2285_v61  ;;  %v2298_v23 = vmul.f32 %v6943_v16, %v2281_v0  ;;  %v6945_v56 = vpop.eup %6944  ;;  %vm2303_vm5 = vweird.f32 %v6943_v16  ;;  %v10439_v0 = vld [vmem:[#allocation129_spill] sm:$0xff]  ;;  %v10442_v61 = vld [vmem:[#allocation132_spill] sm:$0xff] }
 0x363   :  { %vm2304_vm7 = vmor %vm2302_vm6, %vm2303_vm5  ;;  %v6947_v14 = vpop.eup %6946 }
 0x364   :  { %v2290_v43 = vsel %vm2289_vm3, %v6941_v48, %v2286_v47  ;;  %v2299_v51 = vsub.f32 1.0, %v2298_v23  ;;  %v10445_v47 = vld [vmem:[#allocation145_spill] sm:$0xff]  ;;  %v10446_v23 = vld [vmem:[#allocation138_spill] sm:$0xff] }
 0x365   :  { %v2295_v17 = vsel %vm2292_vm4, %v2294_v39, %v2290_v43  ;;  %v10447_v39 = vld [vmem:[#allocation142_spill] sm:$0xff]  ;;  %v10448_v43 = vld [vmem:[#allocation148_spill] sm:$0xff] }
 0x366   :  { %v2320_v24 = vmul.f32 %v6945_v56, %v2295_v17  ;;  %v2300_v1 = vmul.f32 %v6943_v16, %v2299_v51  ;;  %v10449_v51 = vld [vmem:[#allocation151_spill] sm:$0xff]  ;;  %v10450_v56 = vld [vmem:[#allocation144_spill] sm:$0xff]  ;;  %v10451_v17 = vld [vmem:[#allocation146_spill] sm:$0xff] }
 0x368   :  { %v8625_v36 = vpack.c.bf16 %v2320_v24, %v2320_v24  ;;  %v2301_v49 = vadd.f32 %v6943_v16, %v2300_v1  ;;  %v10453_v24 = vld [vmem:[#allocation157_spill] sm:$0xff]  ;;  %v10454_v1 = vld [vmem:[#allocation150_spill] sm:$0xff] }
 0x36a   :  { %10437 = vst [vmem:[#allocation75_spill] sm:$0xff] %v8625_v36  ;;  %v2305_v50 = vsel %vm2304_vm7, %v6943_v16, %v2301_v49  ;;  %2334 = vmatmul.bf16.vlgmr.msra.gmra.mxu0 %v8625_v36  ;;  %2360 = vmatmul.bf16.vlgmr.msra.gmra.mxu2 %v8625_v36  ;;  %v10444_v16 = vld [vmem:[#allocation143_spill] sm:$0xff] }
 0x36b   :  { %v2310_v31 = vsel %vm2307_vm8, %v2309_v7, %v2305_v50  ;;  %2430 = vmatpush.bf16.msra.mxu0 %v10209_v30  ;;  %2456 = vmatpush.bf16.msra.mxu2 %v10210_v42  ;;  %v10456_v49 = vld [vmem:[#allocation159_spill] sm:$0xff]  ;;  %v10458_v50 = vld [vmem:[#allocation156_spill] sm:$0xff] }
 0x36c   :  { %v2321_v48 = vmul.f32 %v6947_v14, %v2310_v31  ;;  %v10457_v7 = vld [vmem:[#allocation163_spill] sm:$0xff]  ;;  %v10459_v14 = vld [vmem:[#allocation158_spill] sm:$0xff] }
 0x36d   :  { %v10460_v31 = vld [vmem:[#allocation167_spill] sm:$0xff] }
 0x36e   :  { %v8631_v58 = vpack.c.bf16 %v2321_v48, %v2321_v48  ;;  %v10461_v48 = vld [vmem:[#allocation169_spill] sm:$0xff] }
 0x36f   :  { %2431 = vmatpush.bf16.msra.mxu0 %v10212_v13  ;;  %2457 = vmatpush.bf16.msra.mxu2 %v10213_v5 }
 0x370   :  { %10438 = vst [vmem:[#allocation77_spill] sm:$0xff] %v8631_v58  ;;  %2347 = vmatmul.bf16.vlgmr.msra.gmra.mxu1 %v8631_v58  ;;  %2373 = vmatmul.bf16.vlgmr.msra.gmra.mxu3 %v8631_v58 }
 0x371   :  { %2443 = vmatpush.bf16.msra.mxu1 %v10214_v27  ;;  %2469 = vmatpush.bf16.msra.mxu3 %v10215_v32 }
 0x373   :  { %2432 = vmatpush.bf16.msra.mxu0 %v10216_v9  ;;  %2458 = vmatpush.bf16.msra.mxu2 %v10217_v3 }
 0x375   :  { %2444 = vmatpush.bf16.msra.mxu1 %v10218_v45  ;;  %2470 = vmatpush.bf16.msra.mxu3 %v10219_v37 }
 0x377   :  { %2433 = vmatpush.bf16.msra.mxu0 %v10220_v29  ;;  %2459 = vmatpush.bf16.msra.mxu2 %v10221_v19 }
 0x379   :  { %2445 = vmatpush.bf16.msra.mxu1 %v10222_v28  ;;  %2471 = vmatpush.bf16.msra.mxu3 %v10223_v53 }
 0x37a   :  { %2386 = vmatmul.bf16.vlgmr.msrb.gmra.mxu0 %v8625_v36  ;;  %2412 = vmatmul.bf16.vlgmr.msrb.gmra.mxu2 %v8625_v36 }
 0x37b   :  { %2434 = vmatpush.bf16.msra.mxu0 %v10224_v11  ;;  %2460 = vmatpush.bf16.msra.mxu2 %v10225_v20 }
 0x37d   :  { %2446 = vmatpush.bf16.msra.mxu1 %v10226_v41  ;;  %2472 = vmatpush.bf16.msra.mxu3 %v10227_v46 }
 0x37f   :  { %2435 = vmatpush.bf16.msra.mxu0 %v10228_v8  ;;  %2461 = vmatpush.bf16.msra.mxu2 %v10229_v63 }
 0x380   :  { %2399 = vmatmul.bf16.vlgmr.msrb.gmra.mxu1 %v8631_v58  ;;  %2425 = vmatmul.bf16.vlgmr.msrb.gmra.mxu3 %v8631_v58 }
 0x381   :  { %2447 = vmatpush.bf16.msra.mxu1 %v10329_v2  ;;  %2473 = vmatpush.bf16.msra.mxu3 %v10330_v15 }
 0x383   :  { %2436 = vmatpush.bf16.msra.mxu0 %v10331_v40  ;;  %2462 = vmatpush.bf16.msra.mxu2 %v10332_v12 }
 0x385   :  { %2448 = vmatpush.bf16.msra.mxu1 %v10333_v44  ;;  %2474 = vmatpush.bf16.msra.mxu3 %v10334_v38 }
 0x387   :  { %2437 = vmatpush.bf16.msra.mxu0 %v10335_v21  ;;  %2463 = vmatpush.bf16.msra.mxu2 %v10336_v26 }
 0x389   :  { %2449 = vmatpush.bf16.msra.mxu1 %v10339_v60  ;;  %2475 = vmatpush.bf16.msra.mxu3 %v10340_v55 }
 0x38a   :  { %2438 = vmatmul.bf16.vlgmr.msra.gmra.mxu0 %v8625_v36  ;;  %2464 = vmatmul.bf16.vlgmr.msra.gmra.mxu2 %v8625_v36 }
 0x38b   :  { %2482 = vmatpush.bf16.msrb.mxu0 %v10337_v18  ;;  %2508 = vmatpush.bf16.msrb.mxu2 %v10338_v34 }
 0x38d   :  { %2450 = vmatpush.bf16.msra.mxu1 %v10343_v4  ;;  %2476 = vmatpush.bf16.msra.mxu3 %v10344_v6 }
 0x38f   :  { %2483 = vmatpush.bf16.msrb.mxu0 %v10341_v52  ;;  %2509 = vmatpush.bf16.msrb.mxu2 %v10342_v10 }
 0x390   :  { %2451 = vmatmul.bf16.vlgmr.msra.gmra.mxu1 %v8631_v58  ;;  %2477 = vmatmul.bf16.vlgmr.msra.gmra.mxu3 %v8631_v58 }
 0x391   :  { %2495 = vmatpush.bf16.msrb.mxu1 %v10345_v54  ;;  %2521 = vmatpush.bf16.msrb.mxu3 %v10439_v0 }
 0x393   :  { %2484 = vmatpush.bf16.msrb.mxu0 %v10440_v59  ;;  %2510 = vmatpush.bf16.msrb.mxu2 %v10441_v33 }
 0x395   :  { %2496 = vmatpush.bf16.msrb.mxu1 %v10442_v61  ;;  %2522 = vmatpush.bf16.msrb.mxu3 %v10443_v25 }
 0x397   :  { %2485 = vmatpush.bf16.msrb.mxu0 %v10444_v16  ;;  %2511 = vmatpush.bf16.msrb.mxu2 %v10445_v47 }
 0x399   :  { %2497 = vmatpush.bf16.msrb.mxu1 %v10446_v23  ;;  %2523 = vmatpush.bf16.msrb.mxu3 %v10447_v39  ;;  %v10533_v39 = vld [vmem:[#allocation114_spill] sm:$0xff] }
 0x39b   :  { %2486 = vmatpush.bf16.msrb.mxu0 %v10448_v43  ;;  %2512 = vmatpush.bf16.msrb.mxu2 %v10449_v51 }
 0x39d   :  { %2498 = vmatpush.bf16.msrb.mxu1 %v10450_v56  ;;  %2524 = vmatpush.bf16.msrb.mxu3 %v10451_v17  ;;  %v10462_v17 = vld [vmem:[#allocation9_spill] sm:$0xff] }
 0x39f   :  { %2487 = vmatpush.bf16.msrb.mxu0 %v10452_v35  ;;  %2513 = vmatpush.bf16.msrb.mxu2 %v10453_v24  ;;  %v10463_v35 = vld [vmem:[#allocation11_spill] sm:$0xff]  ;;  %v10464_v24 = vld [vmem:[#allocation162_spill] sm:$0xff] }
 0x3a1   :  { %2499 = vmatpush.bf16.msrb.mxu1 %v10454_v1  ;;  %2525 = vmatpush.bf16.msrb.mxu3 %v10455_v57  ;;  %v10465_v1 = vld [vmem:[#allocation166_spill] sm:$0xff]  ;;  %v10531_v57 = vld [vmem:[#allocation112_spill] sm:$0xff] }
 0x3a3   :  { %2488 = vmatpush.bf16.msrb.mxu0 %v10456_v49  ;;  %2514 = vmatpush.bf16.msrb.mxu2 %v10457_v7  ;;  %v10466_v7 = vld [vmem:[#allocation13_spill] sm:$0xff] }
 0x3a5   :  { %2500 = vmatpush.bf16.msrb.mxu1 %v10458_v50  ;;  %2526 = vmatpush.bf16.msrb.mxu3 %v10459_v14  ;;  %v10467_v50 = vld [vmem:[#allocation15_spill] sm:$0xff]  ;;  %v10468_v14 = vld [vmem:[#allocation168_spill] sm:$0xff] }
 0x3a7   :  { %2489 = vmatpush.bf16.msrb.mxu0 %v10460_v31  ;;  %2515 = vmatpush.bf16.msrb.mxu2 %v10461_v48  ;;  %v10469_v31 = vld [vmem:[#allocation170_spill] sm:$0xff] }
 0x3a8   :  { %v10470_v48 = vld [vmem:[#allocation10_spill] sm:$0xff] }
 0x3a9   :  { %2501 = vmatpush.bf16.msrb.mxu1 %v10464_v24  ;;  %2527 = vmatpush.bf16.msrb.mxu3 %v10465_v1  ;;  %v10472_v1 = vld [vmem:[#allocation17_spill] sm:$0xff]  ;;  %v10473_v24 = vld [vmem:[#allocation19_spill] sm:$0xff] }
 0x3aa   :  { %2490 = vmatmul.bf16.vlgmr.msrb.gmra.mxu0 %v8625_v36  ;;  %2516 = vmatmul.bf16.vlgmr.msrb.gmra.mxu2 %v8625_v36  ;;  %v10474_v36 = vld [vmem:[#allocation14_spill] sm:$0xff] }
 0x3ab   :  { %2672 = vmatpush.bf16.msra.mxu0 %v10462_v17  ;;  %2698 = vmatpush.bf16.msra.mxu2 %v10463_v35  ;;  %v10471_v17 = vld [vmem:[#allocation12_spill] sm:$0xff]  ;;  %v10481_v35 = vld [vmem:[#allocation27_spill] sm:$0xff] }
 0x3ad   :  { %2502 = vmatpush.bf16.msrb.mxu1 %v10468_v14  ;;  %2528 = vmatpush.bf16.msrb.mxu3 %v10469_v31  ;;  %v10477_v14 = vld [vmem:[#allocation23_spill] sm:$0xff]  ;;  %v10478_v31 = vld [vmem:[#allocation18_spill] sm:$0xff] }
 0x3af   :  { %2673 = vmatpush.bf16.msra.mxu0 %v10466_v7  ;;  %2699 = vmatpush.bf16.msra.mxu2 %v10467_v50  ;;  %v10475_v7 = vld [vmem:[#allocation16_spill] sm:$0xff]  ;;  %v10476_v50 = vld [vmem:[#allocation21_spill] sm:$0xff] }
 0x3b0   :  { %2503 = vmatmul.bf16.vlgmr.msrb.gmra.mxu1 %v8631_v58  ;;  %2529 = vmatmul.bf16.vlgmr.msrb.gmra.mxu3 %v8631_v58  ;;  %v10482_v58 = vld [vmem:[#allocation22_spill] sm:$0xff] }
 0x3b1   :  { %2685 = vmatpush.bf16.msra.mxu1 %v10470_v48  ;;  %2711 = vmatpush.bf16.msra.mxu3 %v10471_v17  ;;  %v10479_v48 = vld [vmem:[#allocation20_spill] sm:$0xff]  ;;  %v10480_v17 = vld [vmem:[#allocation25_spill] sm:$0xff] }
 0x3b3   :  { %2674 = vmatpush.bf16.msra.mxu0 %v10472_v1  ;;  %2700 = vmatpush.bf16.msra.mxu2 %v10473_v24  ;;  %v10483_v1 = vld [vmem:[#allocation24_spill] sm:$0xff]  ;;  %v10484_v24 = vld [vmem:[#allocation29_spill] sm:$0xff] }
 0x3b5   :  { %2686 = vmatpush.bf16.msra.mxu1 %v10474_v36  ;;  %2712 = vmatpush.bf16.msra.mxu3 %v10475_v7  ;;  %v10485_v36 = vld [vmem:[#allocation31_spill] sm:$0xff]  ;;  %v10486_v7 = vld [vmem:[#allocation26_spill] sm:$0xff] }
 0x3b7   :  { %2675 = vmatpush.bf16.msra.mxu0 %v10476_v50  ;;  %2701 = vmatpush.bf16.msra.mxu2 %v10477_v14  ;;  %v10487_v50 = vld [vmem:[#allocation28_spill] sm:$0xff]  ;;  %v10488_v14 = vld [vmem:[#allocation33_spill] sm:$0xff] }
 0x3b9   :  { %2687 = vmatpush.bf16.msra.mxu1 %v10478_v31  ;;  %2713 = vmatpush.bf16.msra.mxu3 %v10479_v48  ;;  %v10489_v31 = vld [vmem:[#allocation35_spill] sm:$0xff]  ;;  %v10490_v48 = vld [vmem:[#allocation30_spill] sm:$0xff] }
 0x3bb   :  { %2676 = vmatpush.bf16.msra.mxu0 %v10480_v17  ;;  %2702 = vmatpush.bf16.msra.mxu2 %v10481_v35  ;;  %v10491_v17 = vld [vmem:[#allocation32_spill] sm:$0xff]  ;;  %v10492_v35 = vld [vmem:[#allocation37_spill] sm:$0xff] }
 0x3bd   :  { %2688 = vmatpush.bf16.msra.mxu1 %v10482_v58  ;;  %2714 = vmatpush.bf16.msra.mxu3 %v10483_v1  ;;  %v10493_v58 = vld [vmem:[#allocation39_spill] sm:$0xff]  ;;  %v10494_v1 = vld [vmem:[#allocation41_spill] sm:$0xff] }
 0x3bf   :  { %2677 = vmatpush.bf16.msra.mxu0 %v10484_v24  ;;  %2703 = vmatpush.bf16.msra.mxu2 %v10485_v36  ;;  %v10495_v24 = vld [vmem:[#allocation43_spill] sm:$0xff]  ;;  %v10496_v36 = vld [vmem:[#allocation34_spill] sm:$0xff] }
 0x3c1   :  { %2689 = vmatpush.bf16.msra.mxu1 %v10486_v7  ;;  %2715 = vmatpush.bf16.msra.mxu3 %v10487_v50  ;;  %v10497_v7 = vld [vmem:[#allocation36_spill] sm:$0xff]  ;;  %v10498_v50 = vld [vmem:[#allocation45_spill] sm:$0xff] }
 0x3c3   :  { %2678 = vmatpush.bf16.msra.mxu0 %v10488_v14  ;;  %2704 = vmatpush.bf16.msra.mxu2 %v10489_v31  ;;  %v10499_v14 = vld [vmem:[#allocation47_spill] sm:$0xff]  ;;  %v10500_v31 = vld [vmem:[#allocation38_spill] sm:$0xff] }
 0x3c5   :  { %2690 = vmatpush.bf16.msra.mxu1 %v10490_v48  ;;  %2716 = vmatpush.bf16.msra.mxu3 %v10491_v17  ;;  %v10501_v48 = vld [vmem:[#allocation40_spill] sm:$0xff]  ;;  %v10502_v17 = vld [vmem:[#allocation42_spill] sm:$0xff] }
 0x3c7   :  { %2679 = vmatpush.bf16.msra.mxu0 %v10492_v35  ;;  %2705 = vmatpush.bf16.msra.mxu2 %v10493_v58  ;;  %v10503_v35 = vld [vmem:[#allocation44_spill] sm:$0xff]  ;;  %v10504_v58 = vld [vmem:[#allocation49_spill] sm:$0xff] }
 0x3c9   :  { %2691 = vmatpush.bf16.msra.mxu1 %v10496_v36  ;;  %2717 = vmatpush.bf16.msra.mxu3 %v10497_v7  ;;  %v10507_v36 = vld [vmem:[#allocation48_spill] sm:$0xff]  ;;  %v10508_v7 = vld [vmem:[#allocation53_spill] sm:$0xff] }
 0x3cb   :  { %2724 = vmatpush.bf16.msrb.mxu0 %v10494_v1  ;;  %2750 = vmatpush.bf16.msrb.mxu2 %v10495_v24  ;;  %v10505_v1 = vld [vmem:[#allocation51_spill] sm:$0xff]  ;;  %v10506_v24 = vld [vmem:[#allocation46_spill] sm:$0xff] }
 0x3cd   :  { %2692 = vmatpush.bf16.msra.mxu1 %v10500_v31  ;;  %2718 = vmatpush.bf16.msra.mxu3 %v10501_v48  ;;  %v10511_v31 = vld [vmem:[#allocation52_spill] sm:$0xff]  ;;  %v10512_v48 = vld [vmem:[#allocation57_spill] sm:$0xff] }
 0x3cf   :  { %2725 = vmatpush.bf16.msrb.mxu0 %v10498_v50  ;;  %2751 = vmatpush.bf16.msrb.mxu2 %v10499_v14  ;;  %v10509_v50 = vld [vmem:[#allocation55_spill] sm:$0xff]  ;;  %v10510_v14 = vld [vmem:[#allocation50_spill] sm:$0xff] }
 0x3d1   :  { %2737 = vmatpush.bf16.msrb.mxu1 %v10502_v17  ;;  %2763 = vmatpush.bf16.msrb.mxu3 %v10503_v35  ;;  %v10513_v17 = vld [vmem:[#allocation59_spill] sm:$0xff]  ;;  %v10514_v35 = vld [vmem:[#allocation54_spill] sm:$0xff] }
 0x3d3   :  { %2726 = vmatpush.bf16.msrb.mxu0 %v10504_v58  ;;  %2752 = vmatpush.bf16.msrb.mxu2 %v10505_v1  ;;  %v10515_v58 = vld [vmem:[#allocation56_spill] sm:$0xff]  ;;  %v10516_v1 = vld [vmem:[#allocation61_spill] sm:$0xff] }
 0x3d5   :  { %2738 = vmatpush.bf16.msrb.mxu1 %v10506_v24  ;;  %2764 = vmatpush.bf16.msrb.mxu3 %v10507_v36  ;;  %v10517_v24 = vld [vmem:[#allocation63_spill] sm:$0xff]  ;;  %v10518_v36 = vld [vmem:[#allocation58_spill] sm:$0xff] }
 0x3d7   :  { %2727 = vmatpush.bf16.msrb.mxu0 %v10508_v7  ;;  %2753 = vmatpush.bf16.msrb.mxu2 %v10509_v50  ;;  %v10519_v7 = vld [vmem:[#allocation60_spill] sm:$0xff]  ;;  %v10520_v50 = vld [vmem:[#allocation65_spill] sm:$0xff] }
 0x3d9   :  { %2739 = vmatpush.bf16.msrb.mxu1 %v10510_v14  ;;  %2765 = vmatpush.bf16.msrb.mxu3 %v10511_v31  ;;  %v10521_v14 = vld [vmem:[#allocation67_spill] sm:$0xff]  ;;  %v10522_v31 = vld [vmem:[#allocation62_spill] sm:$0xff] }
 0x3db   :  { %2728 = vmatpush.bf16.msrb.mxu0 %v10512_v48  ;;  %2754 = vmatpush.bf16.msrb.mxu2 %v10513_v17  ;;  %v10523_v48 = vld [vmem:[#allocation64_spill] sm:$0xff]  ;;  %v10524_v17 = vld [vmem:[#allocation69_spill] sm:$0xff] }
 0x3dd   :  { %2740 = vmatpush.bf16.msrb.mxu1 %v10514_v35  ;;  %2766 = vmatpush.bf16.msrb.mxu3 %v10515_v58  ;;  %v10525_v35 = vld [vmem:[#allocation71_spill] sm:$0xff]  ;;  %v10526_v58 = vld [vmem:[#allocation66_spill] sm:$0xff] }
 0x3df   :  { %2729 = vmatpush.bf16.msrb.mxu0 %v10516_v1  ;;  %2755 = vmatpush.bf16.msrb.mxu2 %v10517_v24  ;;  %v10527_v1 = vld [vmem:[#allocation68_spill] sm:$0xff]  ;;  %v10528_v24 = vld [vmem:[#allocation70_spill] sm:$0xff] }
 0x3e1   :  { %2741 = vmatpush.bf16.msrb.mxu1 %v10518_v36  ;;  %2767 = vmatpush.bf16.msrb.mxu3 %v10519_v7  ;;  %v10529_v36 = vld [vmem:[#allocation72_spill] sm:$0xff] }
 0x3e3   :  { %2730 = vmatpush.bf16.msrb.mxu0 %v10520_v50  ;;  %2756 = vmatpush.bf16.msrb.mxu2 %v10521_v14  ;;  %v10530_v14 = vld [vmem:[#allocation91_spill] sm:$0xff] }
 0x3e5   :  { %2742 = vmatpush.bf16.msrb.mxu1 %v10522_v31  ;;  %2768 = vmatpush.bf16.msrb.mxu3 %v10523_v48  ;;  %v305_v31 = vadd.f32 %v10531_v57, %v10530_v14 }
 0x3e7   :  { %2731 = vmatpush.bf16.msrb.mxu0 %v10524_v17  ;;  %2757 = vmatpush.bf16.msrb.mxu2 %v10525_v35  ;;  %v2335_v7 = vpop.f32.mrf.mxu0  ;;  %v10532_v35 = vld [vmem:[#allocation97_spill] sm:$0xff] }
 0x3e9   :  { %2743 = vmatpush.bf16.msrb.mxu1 %v10526_v58  ;;  %2769 = vmatpush.bf16.msrb.mxu3 %v10527_v1  ;;  %v334_v58 = vadd.f32 %v10533_v39, %v10532_v35 }
 0x3ed   :  { %2744 = vmatpush.bf16.msrb.mxu1 %v10528_v24  ;;  %2770 = vmatpush.bf16.msrb.mxu3 %v10529_v36  ;;  %v2348_v50 = vpop.f32.mrf.mxu1  ;;  %v2361_v49 = vpop.f32.mrf.mxu2 }
 0x3ee   :  { %v2349_v56 = vadd.f32 %v2348_v50, %v2335_v7  ;;  %v10534_v50 = vld [vmem:[#allocation105_spill] sm:$0xff] }
 0x3ef   :  { %v2337_v48 = vpop.f32.mrf.mxu0 }
 0x3f0   :  { %v2534_v51 = vadd.f32 %v2349_v56, %v305_v31  ;;  %v10535_v56 = vld [vmem:[#allocation122_spill] sm:$0xff] }
 0x3f2   :  { %v6015_v17 = vmul.f32 -1.442695, %v2534_v51  ;;  %v363_v51 = vadd.f32 %v10535_v56, %v10534_v50 }
 0x3f3   :  { %v2374_v43 = vpop.f32.mrf.mxu3 }
 0x3f4   :  { %6948 = vpow2.f32 %v6015_v17  ;;  %v2375_v1 = vadd.f32 %v2374_v43, %v2361_v49 }
 0x3f5   :  { %v2350_v23 = vpop.f32.mrf.mxu1  ;;  %v2363_v24 = vpop.f32.mrf.mxu2 }
 0x3f6   :  { %v2535_v47 = vadd.f32 %v2375_v1, %v334_v58 }
 0x3f7   :  { %v2387_v36 = vpop.f32.mrf.mxu0 }
 0x3f8   :  { %v6016_v16 = vmul.f32 -1.442695, %v2535_v47 }
 0x3fa   :  { %v6949_v25 = vpop.eup %6948  ;;  %6950 = vpow2.f32 %v6016_v16 }
 0x3fb   :  { %v2548_v61 = vadd.f32 1.0, %v6949_v25  ;;  %v2376_v33 = vpop.f32.mrf.mxu3  ;;  %v10536_v25 = vld [vmem:[#allocation106_spill] sm:$0xff] }
 0x3fc   :  { %v10537_v33 = vld [vmem:[#allocation125_spill] sm:$0xff] }
 0x3fd   :  { %v2400_v57 = vpop.f32.mrf.mxu1  ;;  %v2413_v7 = vpop.f32.mrf.mxu2  ;;  %6952 = vrcp.f32 %v2548_v61  ;;  %v392_v16 = vadd.f32 %v10537_v33, %v10536_v25  ;;  %v10539_v33 = vld [vmem:[#allocation184_spill] sm:$0xff]  ;;  %vm2555_vm10 = vweird.f32 %v2548_v61 }
 0x3fe   :  { %v2401_v31 = vadd.f32 %v2400_v57, %v2387_v36 }
 0x3ff   :  { %v2389_v48 = vpop.f32.mrf.mxu0 }
 0x400   :  { %v6951_v39 = vpop.eup %6950  ;;  %v2536_v17 = vadd.f32 %v2401_v31, %v363_v51 }
 0x401   :  { %v8779_v43 = vadd.f32 1.0, %v6951_v39 }
 0x402   :  { %v6017_v23 = vmul.f32 -1.442695, %v2536_v17 }
 0x403   :  { %6954 = vrcp.f32 %v8779_v43  ;;  %v2426_v58 = vpop.f32.mrf.mxu3  ;;  %v8782_v47 = vpop.eup %6952  ;;  %vm2570_vm15 = vweird.f32 %v8779_v43 }
 0x404   :  { %6956 = vpow2.f32 %v6017_v23  ;;  %v2427_v24 = vadd.f32 %v2426_v58, %v2413_v7  ;;  %v2551_v36 = vmul.f32 %v8782_v47, %v2548_v61  ;;  %v10538_v58 = vld [vmem:[#allocation175_spill] sm:$0xff]  ;;  %vm2556_vm9 = vweird.f32 %v8782_v47 }
 0x405   :  { %v2402_v1 = vpop.f32.mrf.mxu1  ;;  %v2415_v49 = vpop.f32.mrf.mxu2  ;;  %vm8802_vm11 = vmor %vm2555_vm10, %vm2556_vm9 }
 0x406   :  { %v2537_v56 = vadd.f32 %v2427_v24, %v392_v16  ;;  %v2552_v39 = vsub.f32 1.0, %v2551_v36  ;;  %v421_v16 = vadd.f32 %v10539_v33, %v10538_v58  ;;  %v10541_v33 = vld [vmem:[#allocation186_spill] sm:$0xff] }
 0x407   :  { %v2439_v57 = vpop.f32.mrf.mxu0 }
 0x408   :  { %v6018_v51 = vmul.f32 -1.442695, %v2537_v56  ;;  %v2553_v1 = vmul.f32 %v8782_v47, %v2552_v39 }
 0x409   :  { %v8787_v31 = vpop.eup %6954 }
 0x40a   :  { %v6957_v48 = vpop.eup %6956  ;;  %6958 = vpow2.f32 %v6018_v51  ;;  %v2566_v35 = vmul.f32 %v8787_v31, %v8779_v43  ;;  %v2559_v51 = vand.u32 2147483647, %v2548_v61  ;;  %v2554_v59 = vadd.f32 %v8782_v47, %v2553_v1 }
 0x40b   :  { %v2586_v17 = vadd.f32 1.0, %v6957_v48  ;;  %v2428_v50 = vpop.f32.mrf.mxu3  ;;  %vm2571_vm13 = vweird.f32 %v8787_v31 }
 0x40c   :  { %v2567_v25 = vsub.f32 1.0, %v2566_v35  ;;  %v2561_v50 = vand.u32 2147483648, %v2548_v61  ;;  %vm8806_vm12 = vcmp.eq.f32.partialorder %v2559_v51, 8.507059e+37  ;;  %v2574_v51 = vand.u32 2147483647, %v8779_v43  ;;  %vm8823_vm1 = vmor %vm2570_vm15, %vm2571_vm13 }
 0x40d   :  { %6960 = vrcp.f32 %v2586_v17  ;;  %v2465_v23 = vpop.f32.mrf.mxu2  ;;  %v2452_v7 = vpop.f32.mrf.mxu1  ;;  %v2599_v54 = vand.u32 2147483648, %v2586_v17  ;;  %vm2593_vm0 = vweird.f32 %v2586_v17 }
 0x40e   :  { %v2453_v24 = vadd.f32 %v2452_v7, %v2439_v57  ;;  %v2568_v39 = vmul.f32 %v8787_v31, %v2567_v25  ;;  %v10540_v7 = vld [vmem:[#allocation177_spill] sm:$0xff]  ;;  %v2562_v58 = vor.u32 1.1754944e-38, %v2561_v50  ;;  %v2558_v25 = vsel %vm8802_vm11, %v8782_v47, %v2554_v59 }
 0x40f   :  { %v2441_v49 = vpop.f32.mrf.mxu0  ;;  %v450_v35 = vadd.f32 %v10541_v33, %v10540_v7  ;;  %v2576_v50 = vand.u32 2147483648, %v8779_v43  ;;  %vm2575_vm4 = vcmp.eq.f32.partialorder %v2574_v51, 8.507059e+37  ;;  %v10577_v7 = vld [vmem:[#allocation169_spill] sm:$0xff] }
 0x410   :  { %v6959_v56 = vpop.eup %6958  ;;  %v2538_v36 = vadd.f32 %v2453_v24, %v421_v16  ;;  %v2563_v47 = vsel %vm8806_vm12, %v2562_v58, %v2558_v25 }
 0x411   :  { %v8794_v14 = vadd.f32 1.0, %v6959_v56  ;;  %v2577_v25 = vor.u32 1.1754944e-38, %v2576_v50 }
 0x413   :  { %v6961_v48 = vpop.eup %6960  ;;  %6962 = vrcp.f32 %v8794_v14  ;;  %v2478_v57 = vpop.f32.mrf.mxu3  ;;  %v2614_v58 = vand.u32 2147483648, %v8794_v14  ;;  %vm2608_vm6 = vweird.f32 %v8794_v14 }
 0x414   :  { %v2589_v0 = vmul.f32 %v6961_v48, %v2586_v17  ;;  %6964 = vtanh.f32 %v2538_v36  ;;  %v2479_v49 = vadd.f32 %v2478_v57, %v2465_v23  ;;  %vm2594_vm14 = vweird.f32 %v6961_v48 }
 0x415   :  { %v2467_v16 = vpop.f32.mrf.mxu2  ;;  %v2454_v36 = vpop.f32.mrf.mxu1  ;;  %v2569_v23 = vadd.f32 %v8787_v31, %v2568_v39  ;;  %vm2595_vm2 = vmor %vm2593_vm0, %vm2594_vm14 }
 0x416   :  { %v2590_v24 = vsub.f32 1.0, %v2589_v0  ;;  %v2539_v33 = vadd.f32 %v2479_v49, %v450_v35  ;;  %v2597_v0 = vand.u32 2147483647, %v2586_v17  ;;  %v2600_v49 = vor.u32 1.1754944e-38, %v2599_v54 }
 0x417   :  { %v2573_v17 = vsel %vm8823_vm1, %v8787_v31, %v2569_v23  ;;  %v2612_v54 = vand.u32 2147483647, %v8794_v14  ;;  %v2615_v23 = vor.u32 1.1754944e-38, %v2614_v58  ;;  %v10551_v58 = vld [vmem:[#allocation188_spill] sm:$0xff] }
 0x418   :  { %v2591_v61 = vmul.f32 %v6961_v48, %v2590_v24  ;;  %6966 = vtanh.f32 %v2539_v33  ;;  %vm2598_vm3 = vcmp.eq.f32.partialorder %v2597_v0, 8.507059e+37 }
 0x419   :  { %v6963_v57 = vpop.eup %6962  ;;  %vm2613_vm8 = vcmp.eq.f32.partialorder %v2612_v54, 8.507059e+37 }
 0x41a   :  { %v6965_v16 = vpop.eup %6964  ;;  %v2604_v59 = vmul.f32 %v6963_v57, %v8794_v14  ;;  %v2592_v35 = vadd.f32 %v6961_v48, %v2591_v61  ;;  %vm2609_vm5 = vweird.f32 %v6963_v57 }
 0x41b   :  { %v2660_v24 = vmul.f32 %v6965_v16, %v2563_v47  ;;  %v2480_v36 = vpop.f32.mrf.mxu3  ;;  %vm2610_vm7 = vmor %vm2608_vm6, %vm2609_vm5 }
 0x41c   :  { %v2605_v56 = vsub.f32 1.0, %v2604_v59  ;;  %v2596_v43 = vsel %vm2595_vm2, %v6961_v48, %v2592_v35  ;;  %v2578_v59 = vsel %vm2575_vm4, %v2577_v25, %v2573_v17 }
 0x41d   :  { %v2601_v1 = vsel %vm2598_vm3, %v2600_v49, %v2596_v43  ;;  %v10549_v43 = vld [vmem:[#allocation187_spill] sm:$0xff] }
 0x41e   :  { %v2606_v33 = vmul.f32 %v6963_v57, %v2605_v56  ;;  %v2658_v61 = vmul.f32 %v2601_v1, %v8616_v22  ;;  %v6967_v16 = vpop.eup %6966  ;;  %v10548_v56 = vld [vmem:[#allocation181_spill] sm:$0xff] }
 0x41f   :  { %v2661_v31 = vmul.f32 %v6967_v16, %v2578_v59  ;;  %v479_v17 = vadd.f32 %v10549_v43, %v10548_v56  ;;  %v10576_v56 = vld [vmem:[#allocation167_spill] sm:$0xff] }
 0x420   :  { %v8834_v48 = vadd.f32 %v2660_v24, %v2658_v61  ;;  %v2607_v0 = vadd.f32 %v6963_v57, %v2606_v33  ;;  %v10550_v33 = vld [vmem:[#allocation182_spill] sm:$0xff] }
 0x422   :  { %v2611_v47 = vsel %vm2610_vm7, %v6963_v57, %v2607_v0  ;;  %v508_v57 = vadd.f32 %v10551_v58, %v10550_v33  ;;  %v10575_v33 = vld [vmem:[#allocation158_spill] sm:$0xff] }
 0x423   :  { %v2616_v51 = vsel %vm2613_vm8, %v2615_v23, %v2611_v47 }
 0x424   :  { %v2659_v50 = vmul.f32 %v2616_v51, %v8619_v62 }
 0x426   :  { %v8837_v39 = vadd.f32 %v2661_v31, %v2659_v50 }
 0x427   :  { %v2491_v35 = vpop.f32.mrf.mxu0 }
 0x42d   :  { %v2504_v22 = vpop.f32.mrf.mxu1  ;;  %v2517_v49 = vpop.f32.mrf.mxu2 }
 0x42e   :  { %v2505_v14 = vadd.f32 %v2504_v22, %v2491_v35 }
 0x42f   :  { %v2493_v24 = vpop.f32.mrf.mxu0 }
 0x430   :  { %v2540_v36 = vadd.f32 %v2505_v14, %v479_v17 }
 0x432   :  { %v6019_v1 = vmul.f32 -1.442695, %v2540_v36 }
 0x433   :  { %v2530_v25 = vpop.f32.mrf.mxu3 }
 0x434   :  { %6968 = vpow2.f32 %v6019_v1  ;;  %v2531_v61 = vadd.f32 %v2530_v25, %v2517_v49 }
 0x435   :  { %v2506_v54 = vpop.f32.mrf.mxu1  ;;  %v2519_v62 = vpop.f32.mrf.mxu2 }
 0x436   :  { %v2541_v16 = vadd.f32 %v2531_v61, %v508_v57 }
 0x438   :  { %v6020_v59 = vmul.f32 -1.442695, %v2541_v16 }
 0x43a   :  { %v6969_v0 = vpop.eup %6968  ;;  %6970 = vpow2.f32 %v6020_v59 }
 0x43b   :  { %v2626_v31 = vadd.f32 1.0, %v6969_v0  ;;  %v2532_v23 = vpop.f32.mrf.mxu3 }
 0x43d   :  { %6972 = vrcp.f32 %v2626_v31  ;;  %v2639_v43 = vand.u32 2147483648, %v2626_v31  ;;  %v2637_v49 = vand.u32 2147483647, %v2626_v31  ;;  %vm2633_vm10 = vweird.f32 %v2626_v31 }
 0x43f   :  { %v2640_v1 = vor.u32 1.1754944e-38, %v2639_v43  ;;  %vm2638_vm12 = vcmp.eq.f32.partialorder %v2637_v49, 8.507059e+37  ;;  %v10556_v49 = vld [vmem:[#allocation135_spill] sm:$0xff] }
 0x440   :  { %v6971_v47 = vpop.eup %6970 }
 0x441   :  { %v2627_v51 = vadd.f32 1.0, %v6971_v47 }
 0x443   :  { %v6973_v50 = vpop.eup %6972  ;;  %6974 = vrcp.f32 %v2627_v51  ;;  %v2654_v54 = vand.u32 2147483648, %v2627_v51  ;;  %v2652_v59 = vand.u32 2147483647, %v2627_v51  ;;  %vm2648_vm14 = vweird.f32 %v2627_v51 }
 0x444   :  { %v2629_v35 = vmul.f32 %v6973_v50, %v2626_v31  ;;  %6976 = vtanh.f32 %v8834_v48  ;;  %vm2634_vm9 = vweird.f32 %v6973_v50 }
 0x445   :  { %vm2635_vm11 = vmor %vm2633_vm10, %vm2634_vm9  ;;  %6978 = vtanh.f32 %v8837_v39  ;;  %v2655_v31 = vor.u32 1.1754944e-38, %v2654_v54  ;;  %vm2653_vm0 = vcmp.eq.f32.partialorder %v2652_v59, 8.507059e+37  ;;  %v10565_v54 = vld [vmem:[#allocation151_spill] sm:$0xff] }
 0x446   :  { %v2630_v22 = vsub.f32 1.0, %v2629_v35  ;;  %v10568_v59 = vld [vmem:[#allocation155_spill] sm:$0xff] }
 0x448   :  { %v2631_v17 = vmul.f32 %v6973_v50, %v2630_v22 }
 0x449   :  { %v6975_v14 = vpop.eup %6974 }
 0x44a   :  { %v2632_v24 = vadd.f32 %v6973_v50, %v2631_v17  ;;  %v2644_v36 = vmul.f32 %v6975_v14, %v2627_v51  ;;  %v6977_v57 = vpop.eup %6976  ;;  %vm2649_vm13 = vweird.f32 %v6975_v14  ;;  %v10554_v51 = vld [vmem:[#allocation126_spill] sm:$0xff]  ;;  %v10555_v17 = vld [vmem:[#allocation129_spill] sm:$0xff] }
 0x44b   :  { %vm2650_vm15 = vmor %vm2648_vm14, %vm2649_vm13 }
 0x44c   :  { %v2636_v25 = vsel %vm2635_vm11, %v6973_v50, %v2632_v24  ;;  %v2645_v58 = vsub.f32 1.0, %v2644_v36  ;;  %v6979_v50 = vpop.eup %6978  ;;  %v10558_v24 = vld [vmem:[#allocation132_spill] sm:$0xff]  ;;  %v10559_v36 = vld [vmem:[#allocation134_spill] sm:$0xff] }
 0x44d   :  { %v2641_v61 = vsel %vm2638_vm12, %v2640_v1, %v2636_v25  ;;  %v10560_v1 = vld [vmem:[#allocation143_spill] sm:$0xff]  ;;  %v10561_v25 = vld [vmem:[#allocation145_spill] sm:$0xff] }
 0x44e   :  { %v2666_v62 = vmul.f32 %v6977_v57, %v2641_v61  ;;  %v2646_v16 = vmul.f32 %v6975_v14, %v2645_v58  ;;  %v10562_v58 = vld [vmem:[#allocation138_spill] sm:$0xff]  ;;  %v10564_v61 = vld [vmem:[#allocation148_spill] sm:$0xff] }
 0x44f   :  { %v10563_v57 = vld [vmem:[#allocation142_spill] sm:$0xff] }
 0x450   :  { %v8845_v0 = vpack.c.bf16 %v2666_v62, %v2666_v62  ;;  %v2647_v23 = vadd.f32 %v6975_v14, %v2646_v16  ;;  %v10566_v62 = vld [vmem:[#allocation144_spill] sm:$0xff]  ;;  %v10567_v16 = vld [vmem:[#allocation146_spill] sm:$0xff] }
 0x452   :  { %10552 = vst [vmem:[#allocation79_spill] sm:$0xff] %v8845_v0  ;;  %v2651_v47 = vsel %vm2650_vm15, %v6975_v14, %v2647_v23  ;;  %2680 = vmatmul.bf16.vlgmr.msra.gmra.mxu0 %v8845_v0  ;;  %2706 = vmatmul.bf16.vlgmr.msra.gmra.mxu2 %v8845_v0  ;;  %v10557_v14 = vld [vmem:[#allocation139_spill] sm:$0xff]  ;;  %v10569_v23 = vld [vmem:[#allocation157_spill] sm:$0xff] }
 0x453   :  { %v2656_v35 = vsel %vm2653_vm0, %v2655_v31, %v2651_v47  ;;  %2776 = vmatpush.bf16.msra.mxu0 %v10209_v30  ;;  %2802 = vmatpush.bf16.msra.mxu2 %v10210_v42  ;;  %v10570_v31 = vld [vmem:[#allocation150_spill] sm:$0xff]  ;;  %v10571_v47 = vld [vmem:[#allocation153_spill] sm:$0xff] }
 0x454   :  { %v2667_v22 = vmul.f32 %v6979_v50, %v2656_v35  ;;  %v10572_v50 = vld [vmem:[#allocation159_spill] sm:$0xff] }
 0x455   :  { %v10573_v35 = vld [vmem:[#allocation163_spill] sm:$0xff] }
 0x456   :  { %v8851_v43 = vpack.c.bf16 %v2667_v22, %v2667_v22  ;;  %v10574_v22 = vld [vmem:[#allocation156_spill] sm:$0xff] }
 0x457   :  { %2777 = vmatpush.bf16.msra.mxu0 %v10212_v13  ;;  %2803 = vmatpush.bf16.msra.mxu2 %v10213_v5 }
 0x458   :  { %10553 = vst [vmem:[#allocation81_spill] sm:$0xff] %v8851_v43  ;;  %2693 = vmatmul.bf16.vlgmr.msra.gmra.mxu1 %v8851_v43  ;;  %2719 = vmatmul.bf16.vlgmr.msra.gmra.mxu3 %v8851_v43 }
 0x459   :  { %2789 = vmatpush.bf16.msra.mxu1 %v10214_v27  ;;  %2815 = vmatpush.bf16.msra.mxu3 %v10215_v32 }
 0x45b   :  { %2778 = vmatpush.bf16.msra.mxu0 %v10216_v9  ;;  %2804 = vmatpush.bf16.msra.mxu2 %v10217_v3 }
 0x45d   :  { %2790 = vmatpush.bf16.msra.mxu1 %v10218_v45  ;;  %2816 = vmatpush.bf16.msra.mxu3 %v10219_v37 }
 0x45f   :  { %2779 = vmatpush.bf16.msra.mxu0 %v10220_v29  ;;  %2805 = vmatpush.bf16.msra.mxu2 %v10221_v19 }
 0x461   :  { %2791 = vmatpush.bf16.msra.mxu1 %v10222_v28  ;;  %2817 = vmatpush.bf16.msra.mxu3 %v10223_v53 }
 0x462   :  { %2732 = vmatmul.bf16.vlgmr.msrb.gmra.mxu0 %v8845_v0  ;;  %2758 = vmatmul.bf16.vlgmr.msrb.gmra.mxu2 %v8845_v0 }
 0x463   :  { %2780 = vmatpush.bf16.msra.mxu0 %v10224_v11  ;;  %2806 = vmatpush.bf16.msra.mxu2 %v10225_v20 }
 0x465   :  { %2792 = vmatpush.bf16.msra.mxu1 %v10226_v41  ;;  %2818 = vmatpush.bf16.msra.mxu3 %v10227_v46 }
 0x467   :  { %2781 = vmatpush.bf16.msra.mxu0 %v10228_v8  ;;  %2807 = vmatpush.bf16.msra.mxu2 %v10229_v63 }
 0x468   :  { %2745 = vmatmul.bf16.vlgmr.msrb.gmra.mxu1 %v8851_v43  ;;  %2771 = vmatmul.bf16.vlgmr.msrb.gmra.mxu3 %v8851_v43 }
 0x469   :  { %2793 = vmatpush.bf16.msra.mxu1 %v10329_v2  ;;  %2819 = vmatpush.bf16.msra.mxu3 %v10330_v15 }
 0x46b   :  { %2782 = vmatpush.bf16.msra.mxu0 %v10331_v40  ;;  %2808 = vmatpush.bf16.msra.mxu2 %v10332_v12 }
 0x46d   :  { %2794 = vmatpush.bf16.msra.mxu1 %v10333_v44  ;;  %2820 = vmatpush.bf16.msra.mxu3 %v10334_v38 }
 0x46f   :  { %2783 = vmatpush.bf16.msra.mxu0 %v10335_v21  ;;  %2809 = vmatpush.bf16.msra.mxu2 %v10336_v26 }
 0x471   :  { %2795 = vmatpush.bf16.msra.mxu1 %v10339_v60  ;;  %2821 = vmatpush.bf16.msra.mxu3 %v10340_v55 }
 0x472   :  { %2784 = vmatmul.bf16.vlgmr.msra.gmra.mxu0 %v8845_v0  ;;  %2810 = vmatmul.bf16.vlgmr.msra.gmra.mxu2 %v8845_v0 }
 0x473   :  { %2828 = vmatpush.bf16.msrb.mxu0 %v10337_v18  ;;  %2854 = vmatpush.bf16.msrb.mxu2 %v10338_v34 }
 0x475   :  { %2796 = vmatpush.bf16.msra.mxu1 %v10343_v4  ;;  %2822 = vmatpush.bf16.msra.mxu3 %v10344_v6 }
 0x477   :  { %2829 = vmatpush.bf16.msrb.mxu0 %v10341_v52  ;;  %2855 = vmatpush.bf16.msrb.mxu2 %v10342_v10 }
 0x478   :  { %2797 = vmatmul.bf16.vlgmr.msra.gmra.mxu1 %v8851_v43  ;;  %2823 = vmatmul.bf16.vlgmr.msra.gmra.mxu3 %v8851_v43 }
 0x479   :  { %2841 = vmatpush.bf16.msrb.mxu1 %v10554_v51  ;;  %2867 = vmatpush.bf16.msrb.mxu3 %v10555_v17  ;;  %v10655_v17 = vld [vmem:[#allocation190_spill] sm:$0xff] }
 0x47b   :  { %2830 = vmatpush.bf16.msrb.mxu0 %v10556_v49  ;;  %2856 = vmatpush.bf16.msrb.mxu2 %v10557_v14 }
 0x47d   :  { %2842 = vmatpush.bf16.msrb.mxu1 %v10558_v24  ;;  %2868 = vmatpush.bf16.msrb.mxu3 %v10559_v36 }
 0x47f   :  { %2831 = vmatpush.bf16.msrb.mxu0 %v10560_v1  ;;  %2857 = vmatpush.bf16.msrb.mxu2 %v10561_v25 }
 0x481   :  { %2843 = vmatpush.bf16.msrb.mxu1 %v10562_v58  ;;  %2869 = vmatpush.bf16.msrb.mxu3 %v10563_v57 }
 0x483   :  { %2832 = vmatpush.bf16.msrb.mxu0 %v10564_v61  ;;  %2858 = vmatpush.bf16.msrb.mxu2 %v10565_v54 }
 0x485   :  { %2844 = vmatpush.bf16.msrb.mxu1 %v10566_v62  ;;  %2870 = vmatpush.bf16.msrb.mxu3 %v10567_v16  ;;  %v10578_v16 = vld [vmem:[#allocation9_spill] sm:$0xff] }
 0x487   :  { %2833 = vmatpush.bf16.msrb.mxu0 %v10568_v59  ;;  %2859 = vmatpush.bf16.msrb.mxu2 %v10569_v23  ;;  %v10579_v59 = vld [vmem:[#allocation11_spill] sm:$0xff]  ;;  %v10580_v23 = vld [vmem:[#allocation162_spill] sm:$0xff] }
 0x489   :  { %2845 = vmatpush.bf16.msrb.mxu1 %v10570_v31  ;;  %2871 = vmatpush.bf16.msrb.mxu3 %v10571_v47  ;;  %v10581_v31 = vld [vmem:[#allocation166_spill] sm:$0xff] }
 0x48b   :  { %2834 = vmatpush.bf16.msrb.mxu0 %v10572_v50  ;;  %2860 = vmatpush.bf16.msrb.mxu2 %v10573_v35  ;;  %v10582_v35 = vld [vmem:[#allocation13_spill] sm:$0xff] }
 0x48d   :  { %2846 = vmatpush.bf16.msrb.mxu1 %v10574_v22  ;;  %2872 = vmatpush.bf16.msrb.mxu3 %v10575_v33  ;;  %v10583_v22 = vld [vmem:[#allocation15_spill] sm:$0xff]  ;;  %v10584_v33 = vld [vmem:[#allocation168_spill] sm:$0xff] }
 0x48f   :  { %2835 = vmatpush.bf16.msrb.mxu0 %v10576_v56  ;;  %2861 = vmatpush.bf16.msrb.mxu2 %v10577_v7  ;;  %v10585_v56 = vld [vmem:[#allocation170_spill] sm:$0xff] }
 0x490   :  { %v10586_v7 = vld [vmem:[#allocation10_spill] sm:$0xff] }
 0x491   :  { %2847 = vmatpush.bf16.msrb.mxu1 %v10580_v23  ;;  %2873 = vmatpush.bf16.msrb.mxu3 %v10581_v31  ;;  %v10588_v31 = vld [vmem:[#allocation17_spill] sm:$0xff]  ;;  %v10589_v23 = vld [vmem:[#allocation19_spill] sm:$0xff] }
 0x492   :  { %2836 = vmatmul.bf16.vlgmr.msrb.gmra.mxu0 %v8845_v0  ;;  %2862 = vmatmul.bf16.vlgmr.msrb.gmra.mxu2 %v8845_v0  ;;  %v10590_v0 = vld [vmem:[#allocation14_spill] sm:$0xff] }
 0x493   :  { %3018 = vmatpush.bf16.msra.mxu0 %v10578_v16  ;;  %3044 = vmatpush.bf16.msra.mxu2 %v10579_v59  ;;  %v10587_v16 = vld [vmem:[#allocation12_spill] sm:$0xff]  ;;  %v10597_v59 = vld [vmem:[#allocation27_spill] sm:$0xff] }
 0x495   :  { %2848 = vmatpush.bf16.msrb.mxu1 %v10584_v33  ;;  %2874 = vmatpush.bf16.msrb.mxu3 %v10585_v56  ;;  %v10593_v33 = vld [vmem:[#allocation23_spill] sm:$0xff]  ;;  %v10594_v56 = vld [vmem:[#allocation18_spill] sm:$0xff] }
 0x497   :  { %3019 = vmatpush.bf16.msra.mxu0 %v10582_v35  ;;  %3045 = vmatpush.bf16.msra.mxu2 %v10583_v22  ;;  %v10591_v35 = vld [vmem:[#allocation16_spill] sm:$0xff]  ;;  %v10592_v22 = vld [vmem:[#allocation21_spill] sm:$0xff] }
 0x498   :  { %2849 = vmatmul.bf16.vlgmr.msrb.gmra.mxu1 %v8851_v43  ;;  %2875 = vmatmul.bf16.vlgmr.msrb.gmra.mxu3 %v8851_v43  ;;  %v10598_v43 = vld [vmem:[#allocation22_spill] sm:$0xff] }
 0x499   :  { %3031 = vmatpush.bf16.msra.mxu1 %v10586_v7  ;;  %3057 = vmatpush.bf16.msra.mxu3 %v10587_v16  ;;  %v10595_v7 = vld [vmem:[#allocation20_spill] sm:$0xff]  ;;  %v10596_v16 = vld [vmem:[#allocation25_spill] sm:$0xff] }
 0x49b   :  { %3020 = vmatpush.bf16.msra.mxu0 %v10588_v31  ;;  %3046 = vmatpush.bf16.msra.mxu2 %v10589_v23  ;;  %v10599_v31 = vld [vmem:[#allocation24_spill] sm:$0xff]  ;;  %v10600_v23 = vld [vmem:[#allocation29_spill] sm:$0xff] }
 0x49d   :  { %3032 = vmatpush.bf16.msra.mxu1 %v10590_v0  ;;  %3058 = vmatpush.bf16.msra.mxu3 %v10591_v35  ;;  %v10601_v0 = vld [vmem:[#allocation31_spill] sm:$0xff]  ;;  %v10602_v35 = vld [vmem:[#allocation26_spill] sm:$0xff] }
 0x49f   :  { %3021 = vmatpush.bf16.msra.mxu0 %v10592_v22  ;;  %3047 = vmatpush.bf16.msra.mxu2 %v10593_v33  ;;  %v10603_v22 = vld [vmem:[#allocation28_spill] sm:$0xff]  ;;  %v10604_v33 = vld [vmem:[#allocation33_spill] sm:$0xff] }
 0x4a1   :  { %3033 = vmatpush.bf16.msra.mxu1 %v10594_v56  ;;  %3059 = vmatpush.bf16.msra.mxu3 %v10595_v7  ;;  %v10605_v56 = vld [vmem:[#allocation35_spill] sm:$0xff]  ;;  %v10606_v7 = vld [vmem:[#allocation30_spill] sm:$0xff] }
 0x4a3   :  { %3022 = vmatpush.bf16.msra.mxu0 %v10596_v16  ;;  %3048 = vmatpush.bf16.msra.mxu2 %v10597_v59  ;;  %v10607_v16 = vld [vmem:[#allocation32_spill] sm:$0xff]  ;;  %v10608_v59 = vld [vmem:[#allocation37_spill] sm:$0xff] }
 0x4a5   :  { %3034 = vmatpush.bf16.msra.mxu1 %v10598_v43  ;;  %3060 = vmatpush.bf16.msra.mxu3 %v10599_v31  ;;  %v10609_v43 = vld [vmem:[#allocation39_spill] sm:$0xff]  ;;  %v10610_v31 = vld [vmem:[#allocation41_spill] sm:$0xff] }
 0x4a7   :  { %3023 = vmatpush.bf16.msra.mxu0 %v10600_v23  ;;  %3049 = vmatpush.bf16.msra.mxu2 %v10601_v0  ;;  %v10611_v23 = vld [vmem:[#allocation43_spill] sm:$0xff]  ;;  %v10612_v0 = vld [vmem:[#allocation34_spill] sm:$0xff] }
 0x4a9   :  { %3035 = vmatpush.bf16.msra.mxu1 %v10602_v35  ;;  %3061 = vmatpush.bf16.msra.mxu3 %v10603_v22  ;;  %v10613_v35 = vld [vmem:[#allocation36_spill] sm:$0xff]  ;;  %v10614_v22 = vld [vmem:[#allocation45_spill] sm:$0xff] }
 0x4ab   :  { %3024 = vmatpush.bf16.msra.mxu0 %v10604_v33  ;;  %3050 = vmatpush.bf16.msra.mxu2 %v10605_v56  ;;  %v10615_v33 = vld [vmem:[#allocation47_spill] sm:$0xff]  ;;  %v10616_v56 = vld [vmem:[#allocation38_spill] sm:$0xff] }
 0x4ad   :  { %3036 = vmatpush.bf16.msra.mxu1 %v10606_v7  ;;  %3062 = vmatpush.bf16.msra.mxu3 %v10607_v16  ;;  %v10617_v7 = vld [vmem:[#allocation40_spill] sm:$0xff]  ;;  %v10618_v16 = vld [vmem:[#allocation42_spill] sm:$0xff] }
 0x4af   :  { %3025 = vmatpush.bf16.msra.mxu0 %v10608_v59  ;;  %3051 = vmatpush.bf16.msra.mxu2 %v10609_v43  ;;  %v10619_v59 = vld [vmem:[#allocation44_spill] sm:$0xff]  ;;  %v10620_v43 = vld [vmem:[#allocation49_spill] sm:$0xff] }
 0x4b1   :  { %3037 = vmatpush.bf16.msra.mxu1 %v10612_v0  ;;  %3063 = vmatpush.bf16.msra.mxu3 %v10613_v35  ;;  %v10623_v0 = vld [vmem:[#allocation48_spill] sm:$0xff]  ;;  %v10624_v35 = vld [vmem:[#allocation53_spill] sm:$0xff] }
 0x4b3   :  { %3070 = vmatpush.bf16.msrb.mxu0 %v10610_v31  ;;  %3096 = vmatpush.bf16.msrb.mxu2 %v10611_v23  ;;  %v10621_v31 = vld [vmem:[#allocation51_spill] sm:$0xff]  ;;  %v10622_v23 = vld [vmem:[#allocation46_spill] sm:$0xff] }
 0x4b5   :  { %3038 = vmatpush.bf16.msra.mxu1 %v10616_v56  ;;  %3064 = vmatpush.bf16.msra.mxu3 %v10617_v7  ;;  %v10627_v56 = vld [vmem:[#allocation52_spill] sm:$0xff]  ;;  %v10628_v7 = vld [vmem:[#allocation57_spill] sm:$0xff] }
 0x4b7   :  { %3071 = vmatpush.bf16.msrb.mxu0 %v10614_v22  ;;  %3097 = vmatpush.bf16.msrb.mxu2 %v10615_v33  ;;  %v10625_v22 = vld [vmem:[#allocation55_spill] sm:$0xff]  ;;  %v10626_v33 = vld [vmem:[#allocation50_spill] sm:$0xff] }
 0x4b9   :  { %3083 = vmatpush.bf16.msrb.mxu1 %v10618_v16  ;;  %3109 = vmatpush.bf16.msrb.mxu3 %v10619_v59  ;;  %v10629_v16 = vld [vmem:[#allocation59_spill] sm:$0xff]  ;;  %v10630_v59 = vld [vmem:[#allocation54_spill] sm:$0xff] }
 0x4bb   :  { %3072 = vmatpush.bf16.msrb.mxu0 %v10620_v43  ;;  %3098 = vmatpush.bf16.msrb.mxu2 %v10621_v31  ;;  %v10631_v43 = vld [vmem:[#allocation56_spill] sm:$0xff]  ;;  %v10632_v31 = vld [vmem:[#allocation61_spill] sm:$0xff] }
 0x4bd   :  { %3084 = vmatpush.bf16.msrb.mxu1 %v10622_v23  ;;  %3110 = vmatpush.bf16.msrb.mxu3 %v10623_v0  ;;  %v10633_v23 = vld [vmem:[#allocation63_spill] sm:$0xff]  ;;  %v10634_v0 = vld [vmem:[#allocation58_spill] sm:$0xff] }
 0x4bf   :  { %3073 = vmatpush.bf16.msrb.mxu0 %v10624_v35  ;;  %3099 = vmatpush.bf16.msrb.mxu2 %v10625_v22  ;;  %v10635_v35 = vld [vmem:[#allocation60_spill] sm:$0xff]  ;;  %v10636_v22 = vld [vmem:[#allocation65_spill] sm:$0xff] }
 0x4c1   :  { %3085 = vmatpush.bf16.msrb.mxu1 %v10626_v33  ;;  %3111 = vmatpush.bf16.msrb.mxu3 %v10627_v56  ;;  %v10637_v33 = vld [vmem:[#allocation67_spill] sm:$0xff]  ;;  %v10638_v56 = vld [vmem:[#allocation62_spill] sm:$0xff] }
 0x4c3   :  { %3074 = vmatpush.bf16.msrb.mxu0 %v10628_v7  ;;  %3100 = vmatpush.bf16.msrb.mxu2 %v10629_v16  ;;  %v10639_v7 = vld [vmem:[#allocation64_spill] sm:$0xff]  ;;  %v10640_v16 = vld [vmem:[#allocation69_spill] sm:$0xff] }
 0x4c5   :  { %3086 = vmatpush.bf16.msrb.mxu1 %v10630_v59  ;;  %3112 = vmatpush.bf16.msrb.mxu3 %v10631_v43  ;;  %v10641_v59 = vld [vmem:[#allocation71_spill] sm:$0xff]  ;;  %v10642_v43 = vld [vmem:[#allocation66_spill] sm:$0xff] }
 0x4c7   :  { %3075 = vmatpush.bf16.msrb.mxu0 %v10632_v31  ;;  %3101 = vmatpush.bf16.msrb.mxu2 %v10633_v23  ;;  %v10643_v31 = vld [vmem:[#allocation68_spill] sm:$0xff]  ;;  %v10644_v23 = vld [vmem:[#allocation70_spill] sm:$0xff] }
 0x4c9   :  { %3087 = vmatpush.bf16.msrb.mxu1 %v10634_v0  ;;  %3113 = vmatpush.bf16.msrb.mxu3 %v10635_v35  ;;  %v10645_v0 = vld [vmem:[#allocation72_spill] sm:$0xff] }
 0x4cb   :  { %3076 = vmatpush.bf16.msrb.mxu0 %v10636_v22  ;;  %3102 = vmatpush.bf16.msrb.mxu2 %v10637_v33 }
 0x4cd   :  { %3088 = vmatpush.bf16.msrb.mxu1 %v10638_v56  ;;  %3114 = vmatpush.bf16.msrb.mxu3 %v10639_v7  ;;  %v10646_v56 = vld [vmem:[#allocation128_spill] sm:$0xff] }
 0x4cf   :  { %3077 = vmatpush.bf16.msrb.mxu0 %v10640_v16  ;;  %3103 = vmatpush.bf16.msrb.mxu2 %v10641_v59  ;;  %v2681_v35 = vpop.f32.mrf.mxu0 }
 0x4d1   :  { %3089 = vmatpush.bf16.msrb.mxu1 %v10642_v43  ;;  %3115 = vmatpush.bf16.msrb.mxu3 %v10643_v31  ;;  %v10647_v43 = vld [vmem:[#allocation130_spill] sm:$0xff] }
 0x4d5   :  { %3090 = vmatpush.bf16.msrb.mxu1 %v10644_v23  ;;  %3116 = vmatpush.bf16.msrb.mxu3 %v10645_v0  ;;  %v2694_v22 = vpop.f32.mrf.mxu1  ;;  %v2707_v50 = vpop.f32.mrf.mxu2 }
 0x4d6   :  { %v2695_v33 = vadd.f32 %v2694_v22, %v2681_v35 }
 0x4d7   :  { %v2683_v47 = vpop.f32.mrf.mxu0 }
 0x4d8   :  { %v2880_v62 = vadd.f32 %v2695_v33, %v10646_v56  ;;  %v10648_v33 = vld [vmem:[#allocation136_spill] sm:$0xff] }
 0x4da   :  { %v6021_v7 = vmul.f32 -1.442695, %v2880_v62 }
 0x4db   :  { %v2720_v54 = vpop.f32.mrf.mxu3 }
 0x4dc   :  { %6980 = vpow2.f32 %v6021_v7  ;;  %v2721_v16 = vadd.f32 %v2720_v54, %v2707_v50 }
 0x4dd   :  { %v2696_v59 = vpop.f32.mrf.mxu1  ;;  %v2709_v61 = vpop.f32.mrf.mxu2 }
 0x4de   :  { %v2881_v57 = vadd.f32 %v2721_v16, %v10647_v43 }
 0x4df   :  { %v2733_v31 = vpop.f32.mrf.mxu0 }
 0x4e0   :  { %v6022_v58 = vmul.f32 -1.442695, %v2881_v57 }
 0x4e2   :  { %v6981_v23 = vpop.eup %6980  ;;  %6982 = vpow2.f32 %v6022_v58 }
 0x4e3   :  { %v2894_v0 = vadd.f32 1.0, %v6981_v23  ;;  %v2722_v25 = vpop.f32.mrf.mxu3 }
 0x4e4   :  { %v10649_v25 = vld [vmem:[#allocation140_spill] sm:$0xff] }
 0x4e5   :  { %v2746_v1 = vpop.f32.mrf.mxu1  ;;  %v2759_v36 = vpop.f32.mrf.mxu2  ;;  %6984 = vrcp.f32 %v2894_v0  ;;  %v2905_v14 = vand.u32 2147483647, %v2894_v0  ;;  %vm2901_vm2 = vweird.f32 %v2894_v0 }
 0x4e6   :  { %v2747_v47 = vadd.f32 %v2746_v1, %v2733_v31 }
 0x4e7   :  { %v2735_v35 = vpop.f32.mrf.mxu0  ;;  %vm9013_vm4 = vcmp.eq.f32.partialorder %v2905_v14, 8.507059e+37 }
 0x4e8   :  { %v6983_v56 = vpop.eup %6982  ;;  %v2882_v62 = vadd.f32 %v2747_v47, %v10648_v33 }
 0x4e9   :  { %v8996_v7 = vadd.f32 1.0, %v6983_v56 }
 0x4ea   :  { %v6023_v54 = vmul.f32 -1.442695, %v2882_v62 }
 0x4eb   :  { %6986 = vrcp.f32 %v8996_v7  ;;  %v2772_v43 = vpop.f32.mrf.mxu3  ;;  %v6985_v61 = vpop.eup %6984  ;;  %vm2916_vm7 = vweird.f32 %v8996_v7  ;;  %v2920_v14 = vand.u32 2147483647, %v8996_v7 }
 0x4ec   :  { %6988 = vpow2.f32 %v6023_v54  ;;  %v2773_v57 = vadd.f32 %v2772_v43, %v2759_v36  ;;  %v2897_v23 = vmul.f32 %v6985_v61, %v2894_v0  ;;  %vm2902_vm1 = vweird.f32 %v6985_v61 }
 0x4ed   :  { %v2748_v58 = vpop.f32.mrf.mxu1  ;;  %v2761_v16 = vpop.f32.mrf.mxu2  ;;  %vm9009_vm3 = vmor %vm2901_vm2, %vm2902_vm1  ;;  %vm2921_vm12 = vcmp.eq.f32.partialorder %v2920_v14, 8.507059e+37 }
 0x4ee   :  { %v2883_v59 = vadd.f32 %v2773_v57, %v10649_v25  ;;  %v2898_v47 = vsub.f32 1.0, %v2897_v23 }
 0x4ef   :  { %v2785_v50 = vpop.f32.mrf.mxu0 }
 0x4f0   :  { %v6024_v1 = vmul.f32 -1.442695, %v2883_v59  ;;  %v2899_v43 = vmul.f32 %v6985_v61, %v2898_v47  ;;  %v10650_v59 = vld [vmem:[#allocation189_spill] sm:$0xff] }
 0x4f1   :  { %v9000_v31 = vpop.eup %6986 }
 0x4f2   :  { %v6989_v22 = vpop.eup %6988  ;;  %6990 = vpow2.f32 %v6024_v1  ;;  %v2912_v33 = vmul.f32 %v9000_v31, %v8996_v7  ;;  %v2907_v1 = vand.u32 2147483648, %v2894_v0  ;;  %vm2917_vm5 = vweird.f32 %v9000_v31 }
 0x4f3   :  { %v2932_v35 = vadd.f32 1.0, %v6989_v22  ;;  %v2774_v56 = vpop.f32.mrf.mxu3  ;;  %v2900_v22 = vadd.f32 %v6985_v61, %v2899_v43  ;;  %vm9030_vm9 = vmor %vm2916_vm7, %vm2917_vm5 }
 0x4f4   :  { %v2913_v16 = vsub.f32 1.0, %v2912_v33 }
 0x4f5   :  { %6992 = vrcp.f32 %v2932_v35  ;;  %v2811_v62 = vpop.f32.mrf.mxu2  ;;  %v2798_v36 = vpop.f32.mrf.mxu1  ;;  %vm2939_vm8 = vweird.f32 %v2932_v35 }
 0x4f6   :  { %v2799_v54 = vadd.f32 %v2798_v36, %v2785_v50  ;;  %v2914_v50 = vmul.f32 %v9000_v31, %v2913_v16 }
 0x4f7   :  { %v2787_v58 = vpop.f32.mrf.mxu0 }
 0x4f8   :  { %v6991_v57 = vpop.eup %6990  ;;  %v2884_v24 = vadd.f32 %v2799_v54, %v10650_v59  ;;  %v2945_v59 = vand.u32 2147483648, %v2932_v35 }
 0x4f9   :  { %v9004_v25 = vadd.f32 1.0, %v6991_v57  ;;  %v2908_v57 = vor.u32 1.1754944e-38, %v2907_v1  ;;  %v2922_v1 = vand.u32 2147483648, %v8996_v7 }
 0x4fb   :  { %v6993_v23 = vpop.eup %6992  ;;  %6994 = vrcp.f32 %v9004_v25  ;;  %v2824_v49 = vpop.f32.mrf.mxu3  ;;  %v2960_v54 = vand.u32 2147483648, %v9004_v25  ;;  %vm2954_vm14 = vweird.f32 %v9004_v25 }
 0x4fc   :  { %v2935_v56 = vmul.f32 %v6993_v23, %v2932_v35  ;;  %6996 = vtanh.f32 %v2884_v24  ;;  %v2825_v47 = vadd.f32 %v2824_v49, %v2811_v62  ;;  %v2904_v24 = vsel %vm9009_vm3, %v6985_v61, %v2900_v22 }
 0x4fd   :  { %v2813_v36 = vpop.f32.mrf.mxu2  ;;  %v2800_v43 = vpop.f32.mrf.mxu1  ;;  %vm2940_vm6 = vweird.f32 %v6993_v23  ;;  %v2943_v49 = vand.u32 2147483647, %v2932_v35  ;;  %v2915_v62 = vadd.f32 %v9000_v31, %v2914_v50 }
 0x4fe   :  { %v2936_v33 = vsub.f32 1.0, %v2935_v56  ;;  %v2885_v16 = vadd.f32 %v2825_v47, %v10655_v17  ;;  %v2909_v17 = vsel %vm9013_vm4, %v2908_v57, %v2904_v24  ;;  %vm2941_vm10 = vmor %vm2939_vm8, %vm2940_vm6  ;;  %v2946_v47 = vor.u32 1.1754944e-38, %v2945_v59 }
 0x4ff   :  { %vm2944_vm11 = vcmp.eq.f32.partialorder %v2943_v49, 8.507059e+37  ;;  %v2919_v35 = vsel %vm9030_vm9, %v9000_v31, %v2915_v62  ;;  %v2923_v24 = vor.u32 1.1754944e-38, %v2922_v1  ;;  %v2958_v59 = vand.u32 2147483647, %v9004_v25 }
 0x500   :  { %v2937_v0 = vmul.f32 %v6993_v23, %v2936_v33  ;;  %6998 = vtanh.f32 %v2885_v16  ;;  %v2961_v62 = vor.u32 1.1754944e-38, %v2960_v54 }
 0x501   :  { %v6995_v56 = vpop.eup %6994  ;;  %vm2959_vm0 = vcmp.eq.f32.partialorder %v2958_v59, 8.507059e+37 }
 0x502   :  { %v6997_v36 = vpop.eup %6996  ;;  %v2950_v61 = vmul.f32 %v6995_v56, %v9004_v25  ;;  %v2938_v22 = vadd.f32 %v6993_v23, %v2937_v0  ;;  %vm2955_vm13 = vweird.f32 %v6995_v56 }
 0x503   :  { %v3006_v33 = vmul.f32 %v6997_v36, %v2909_v17  ;;  %v2826_v43 = vpop.f32.mrf.mxu3  ;;  %vm2956_vm15 = vmor %vm2954_vm14, %vm2955_vm13 }
 0x504   :  { %v2951_v58 = vsub.f32 1.0, %v2950_v61  ;;  %v2942_v7 = vsel %vm2941_vm10, %v6993_v23, %v2938_v22  ;;  %v2924_v61 = vsel %vm2921_vm12, %v2923_v24, %v2919_v35  ;;  %v10658_v35 = vld [vmem:[#allocation191_spill] sm:$0xff] }
 0x505   :  { %v2947_v57 = vsel %vm2944_vm11, %v2946_v47, %v2942_v7 }
 0x506   :  { %v2952_v16 = vmul.f32 %v6995_v56, %v2951_v58  ;;  %v3004_v0 = vmul.f32 %v2947_v57, %v8834_v48  ;;  %v6999_v36 = vpop.eup %6998 }
 0x507   :  { %v3007_v31 = vmul.f32 %v6999_v36, %v2924_v61 }
 0x508   :  { %v9041_v23 = vadd.f32 %v3006_v33, %v3004_v0  ;;  %v2953_v49 = vadd.f32 %v6995_v56, %v2952_v16 }
 0x50a   :  { %v2957_v17 = vsel %vm2956_vm15, %v6995_v56, %v2953_v49  ;;  %v10659_v56 = vld [vmem:[#allocation193_spill] sm:$0xff] }
 0x50b   :  { %v2962_v14 = vsel %vm2959_vm0, %v2961_v62, %v2957_v17 }
 0x50c   :  { %v3005_v1 = vmul.f32 %v2962_v14, %v8837_v39 }
 0x50e   :  { %v9044_v50 = vadd.f32 %v3007_v31, %v3005_v1 }
 0x50f   :  { %v2837_v22 = vpop.f32.mrf.mxu0 }
 0x515   :  { %v2850_v48 = vpop.f32.mrf.mxu1  ;;  %v2863_v47 = vpop.f32.mrf.mxu2 }
 0x516   :  { %v2851_v58 = vadd.f32 %v2850_v48, %v2837_v22 }
 0x517   :  { %v2839_v7 = vpop.f32.mrf.mxu0 }
 0x518   :  { %v2886_v25 = vadd.f32 %v2851_v58, %v10658_v35 }
 0x51a   :  { %v6025_v33 = vmul.f32 -1.442695, %v2886_v25 }
 0x51b   :  { %v2876_v43 = vpop.f32.mrf.mxu3 }
 0x51c   :  { %7000 = vpow2.f32 %v6025_v33  ;;  %v2877_v57 = vadd.f32 %v2876_v43, %v2863_v47 }
 0x51d   :  { %v2852_v24 = vpop.f32.mrf.mxu1  ;;  %v2865_v54 = vpop.f32.mrf.mxu2 }
 0x51e   :  { %v2887_v16 = vadd.f32 %v2877_v57, %v10659_v56 }
 0x520   :  { %v6026_v0 = vmul.f32 -1.442695, %v2887_v16 }
 0x522   :  { %v7001_v59 = vpop.eup %7000  ;;  %7002 = vpow2.f32 %v6026_v0 }
 0x523   :  { %v2972_v39 = vadd.f32 1.0, %v7001_v59  ;;  %v2878_v36 = vpop.f32.mrf.mxu3 }
 0x525   :  { %7004 = vrcp.f32 %v2972_v39  ;;  %v2985_v14 = vand.u32 2147483648, %v2972_v39  ;;  %v2983_v22 = vand.u32 2147483647, %v2972_v39  ;;  %vm2979_vm2 = vweird.f32 %v2972_v39 }
 0x527   :  { %v2986_v7 = vor.u32 1.1754944e-38, %v2985_v14  ;;  %vm2984_vm4 = vcmp.eq.f32.partialorder %v2983_v22, 8.507059e+37  ;;  %v10664_v14 = vld [vmem:[#allocation139_spill] sm:$0xff]  ;;  %v10666_v22 = vld [vmem:[#allocation134_spill] sm:$0xff] }
 0x528   :  { %v7003_v61 = vpop.eup %7002 }
 0x529   :  { %v2973_v49 = vadd.f32 1.0, %v7003_v61 }
 0x52b   :  { %v7005_v31 = vpop.eup %7004  ;;  %7006 = vrcp.f32 %v2973_v49  ;;  %v3000_v57 = vand.u32 2147483648, %v2973_v49  ;;  %v2998_v56 = vand.u32 2147483647, %v2973_v49  ;;  %vm2994_vm6 = vweird.f32 %v2973_v49 }
 0x52c   :  { %v2975_v62 = vmul.f32 %v7005_v31, %v2972_v39  ;;  %7008 = vtanh.f32 %v9041_v23  ;;  %vm2980_vm1 = vweird.f32 %v7005_v31 }
 0x52d   :  { %vm2981_vm3 = vmor %vm2979_vm2, %vm2980_vm1  ;;  %7010 = vtanh.f32 %v9044_v50  ;;  %v3001_v59 = vor.u32 1.1754944e-38, %v3000_v57  ;;  %vm2999_vm8 = vcmp.eq.f32.partialorder %v2998_v56, 8.507059e+37  ;;  %v10675_v57 = vld [vmem:[#allocation155_spill] sm:$0xff]  ;;  %v10678_v56 = vld [vmem:[#allocation153_spill] sm:$0xff] }
 0x52e   :  { %v2976_v17 = vsub.f32 1.0, %v2975_v62 }
 0x530   :  { %v2977_v1 = vmul.f32 %v7005_v31, %v2976_v17  ;;  %v10663_v17 = vld [vmem:[#allocation135_spill] sm:$0xff] }
 0x531   :  { %v7007_v48 = vpop.eup %7006 }
 0x532   :  { %v2978_v47 = vadd.f32 %v7005_v31, %v2977_v1  ;;  %v2990_v58 = vmul.f32 %v7007_v48, %v2973_v49  ;;  %v7009_v33 = vpop.eup %7008  ;;  %vm2995_vm5 = vweird.f32 %v7007_v48  ;;  %v10662_v49 = vld [vmem:[#allocation129_spill] sm:$0xff]  ;;  %v10665_v1 = vld [vmem:[#allocation132_spill] sm:$0xff] }
 0x533   :  { %vm2996_vm7 = vmor %vm2994_vm6, %vm2995_vm5  ;;  %v7011_v36 = vpop.eup %7010 }
 0x534   :  { %v2982_v35 = vsel %vm2981_vm3, %v7005_v31, %v2978_v47  ;;  %v2991_v25 = vsub.f32 1.0, %v2990_v58  ;;  %v10668_v47 = vld [vmem:[#allocation145_spill] sm:$0xff]  ;;  %v10669_v58 = vld [vmem:[#allocation138_spill] sm:$0xff] }
 0x535   :  { %v2987_v43 = vsel %vm2984_vm4, %v2986_v7, %v2982_v35  ;;  %v10670_v7 = vld [vmem:[#allocation142_spill] sm:$0xff]  ;;  %v10671_v35 = vld [vmem:[#allocation148_spill] sm:$0xff] }
 0x536   :  { %v3012_v24 = vmul.f32 %v7009_v33, %v2987_v43  ;;  %v2992_v54 = vmul.f32 %v7007_v48, %v2991_v25  ;;  %v10672_v25 = vld [vmem:[#allocation151_spill] sm:$0xff]  ;;  %v10673_v33 = vld [vmem:[#allocation144_spill] sm:$0xff]  ;;  %v10674_v43 = vld [vmem:[#allocation146_spill] sm:$0xff] }
 0x538   :  { %v9050_v16 = vpack.c.bf16 %v3012_v24, %v3012_v24  ;;  %v2993_v0 = vadd.f32 %v7007_v48, %v2992_v54  ;;  %v10676_v24 = vld [vmem:[#allocation157_spill] sm:$0xff]  ;;  %v10677_v54 = vld [vmem:[#allocation150_spill] sm:$0xff] }
 0x53a   :  { %10660 = vst [vmem:[#allocation76_spill] sm:$0xff] %v9050_v16  ;;  %v2997_v39 = vsel %vm2996_vm7, %v7007_v48, %v2993_v0  ;;  %3026 = vmatmul.bf16.vlgmr.msra.gmra.mxu0 %v9050_v16  ;;  %3052 = vmatmul.bf16.vlgmr.msra.gmra.mxu2 %v9050_v16  ;;  %v10667_v48 = vld [vmem:[#allocation143_spill] sm:$0xff] }
 0x53b   :  { %v3002_v61 = vsel %vm2999_vm8, %v3001_v59, %v2997_v39  ;;  %3122 = vmatpush.bf16.msra.mxu0 %v10209_v30  ;;  %3148 = vmatpush.bf16.msra.mxu2 %v10210_v42  ;;  %v10679_v0 = vld [vmem:[#allocation159_spill] sm:$0xff]  ;;  %v10681_v39 = vld [vmem:[#allocation156_spill] sm:$0xff] }
 0x53c   :  { %v3013_v31 = vmul.f32 %v7011_v36, %v3002_v61  ;;  %v10680_v59 = vld [vmem:[#allocation163_spill] sm:$0xff]  ;;  %v10682_v36 = vld [vmem:[#allocation158_spill] sm:$0xff] }
 0x53d   :  { %v10683_v61 = vld [vmem:[#allocation167_spill] sm:$0xff] }
 0x53e   :  { %v9056_v62 = vpack.c.bf16 %v3013_v31, %v3013_v31  ;;  %v10684_v31 = vld [vmem:[#allocation169_spill] sm:$0xff] }
 0x53f   :  { %3123 = vmatpush.bf16.msra.mxu0 %v10212_v13  ;;  %3149 = vmatpush.bf16.msra.mxu2 %v10213_v5 }
 0x540   :  { %10661 = vst [vmem:[#allocation78_spill] sm:$0xff] %v9056_v62  ;;  %3039 = vmatmul.bf16.vlgmr.msra.gmra.mxu1 %v9056_v62  ;;  %3065 = vmatmul.bf16.vlgmr.msra.gmra.mxu3 %v9056_v62 }
 0x541   :  { %3135 = vmatpush.bf16.msra.mxu1 %v10214_v27  ;;  %3161 = vmatpush.bf16.msra.mxu3 %v10215_v32 }
 0x543   :  { %3124 = vmatpush.bf16.msra.mxu0 %v10216_v9  ;;  %3150 = vmatpush.bf16.msra.mxu2 %v10217_v3 }
 0x545   :  { %3136 = vmatpush.bf16.msra.mxu1 %v10218_v45  ;;  %3162 = vmatpush.bf16.msra.mxu3 %v10219_v37 }
 0x547   :  { %3125 = vmatpush.bf16.msra.mxu0 %v10220_v29  ;;  %3151 = vmatpush.bf16.msra.mxu2 %v10221_v19 }
 0x549   :  { %3137 = vmatpush.bf16.msra.mxu1 %v10222_v28  ;;  %3163 = vmatpush.bf16.msra.mxu3 %v10223_v53 }
 0x54a   :  { %3078 = vmatmul.bf16.vlgmr.msrb.gmra.mxu0 %v9050_v16  ;;  %3104 = vmatmul.bf16.vlgmr.msrb.gmra.mxu2 %v9050_v16 }
 0x54b   :  { %3126 = vmatpush.bf16.msra.mxu0 %v10224_v11  ;;  %3152 = vmatpush.bf16.msra.mxu2 %v10225_v20 }
 0x54d   :  { %3138 = vmatpush.bf16.msra.mxu1 %v10226_v41  ;;  %3164 = vmatpush.bf16.msra.mxu3 %v10227_v46 }
 0x54f   :  { %3127 = vmatpush.bf16.msra.mxu0 %v10228_v8  ;;  %3153 = vmatpush.bf16.msra.mxu2 %v10229_v63 }
 0x550   :  { %3091 = vmatmul.bf16.vlgmr.msrb.gmra.mxu1 %v9056_v62  ;;  %3117 = vmatmul.bf16.vlgmr.msrb.gmra.mxu3 %v9056_v62 }
 0x551   :  { %3139 = vmatpush.bf16.msra.mxu1 %v10329_v2  ;;  %3165 = vmatpush.bf16.msra.mxu3 %v10330_v15 }
 0x553   :  { %3128 = vmatpush.bf16.msra.mxu0 %v10331_v40  ;;  %3154 = vmatpush.bf16.msra.mxu2 %v10332_v12 }
 0x555   :  { %3140 = vmatpush.bf16.msra.mxu1 %v10333_v44  ;;  %3166 = vmatpush.bf16.msra.mxu3 %v10334_v38 }
 0x557   :  { %3129 = vmatpush.bf16.msra.mxu0 %v10335_v21  ;;  %3155 = vmatpush.bf16.msra.mxu2 %v10336_v26 }
 0x559   :  { %3141 = vmatpush.bf16.msra.mxu1 %v10339_v60  ;;  %3167 = vmatpush.bf16.msra.mxu3 %v10340_v55 }
 0x55a   :  { %3130 = vmatmul.bf16.vlgmr.msra.gmra.mxu0 %v9050_v16  ;;  %3156 = vmatmul.bf16.vlgmr.msra.gmra.mxu2 %v9050_v16 }
 0x55b   :  { %3174 = vmatpush.bf16.msrb.mxu0 %v10337_v18  ;;  %3200 = vmatpush.bf16.msrb.mxu2 %v10338_v34 }
 0x55d   :  { %3142 = vmatpush.bf16.msra.mxu1 %v10343_v4  ;;  %3168 = vmatpush.bf16.msra.mxu3 %v10344_v6 }
 0x55f   :  { %3175 = vmatpush.bf16.msrb.mxu0 %v10341_v52  ;;  %3201 = vmatpush.bf16.msrb.mxu2 %v10342_v10 }
 0x560   :  { %3143 = vmatmul.bf16.vlgmr.msra.gmra.mxu1 %v9056_v62  ;;  %3169 = vmatmul.bf16.vlgmr.msra.gmra.mxu3 %v9056_v62 }
 0x561   :  { %3187 = vmatpush.bf16.msrb.mxu1 %v10554_v51  ;;  %3213 = vmatpush.bf16.msrb.mxu3 %v10662_v49 }
 0x563   :  { %3176 = vmatpush.bf16.msrb.mxu0 %v10663_v17  ;;  %3202 = vmatpush.bf16.msrb.mxu2 %v10664_v14 }
 0x565   :  { %3188 = vmatpush.bf16.msrb.mxu1 %v10665_v1  ;;  %3214 = vmatpush.bf16.msrb.mxu3 %v10666_v22 }
 0x567   :  { %3177 = vmatpush.bf16.msrb.mxu0 %v10667_v48  ;;  %3203 = vmatpush.bf16.msrb.mxu2 %v10668_v47 }
 0x569   :  { %3189 = vmatpush.bf16.msrb.mxu1 %v10669_v58  ;;  %3215 = vmatpush.bf16.msrb.mxu3 %v10670_v7  ;;  %v10756_v7 = vld [vmem:[#allocation141_spill] sm:$0xff] }
 0x56b   :  { %3178 = vmatpush.bf16.msrb.mxu0 %v10671_v35  ;;  %3204 = vmatpush.bf16.msrb.mxu2 %v10672_v25 }
 0x56d   :  { %3190 = vmatpush.bf16.msrb.mxu1 %v10673_v33  ;;  %3216 = vmatpush.bf16.msrb.mxu3 %v10674_v43  ;;  %v10685_v43 = vld [vmem:[#allocation9_spill] sm:$0xff] }
 0x56f   :  { %3179 = vmatpush.bf16.msrb.mxu0 %v10675_v57  ;;  %3205 = vmatpush.bf16.msrb.mxu2 %v10676_v24  ;;  %v10686_v57 = vld [vmem:[#allocation11_spill] sm:$0xff]  ;;  %v10687_v24 = vld [vmem:[#allocation162_spill] sm:$0xff] }
 0x571   :  { %3191 = vmatpush.bf16.msrb.mxu1 %v10677_v54  ;;  %3217 = vmatpush.bf16.msrb.mxu3 %v10678_v56  ;;  %v10688_v54 = vld [vmem:[#allocation166_spill] sm:$0xff]  ;;  %v10754_v56 = vld [vmem:[#allocation137_spill] sm:$0xff] }
 0x573   :  { %3180 = vmatpush.bf16.msrb.mxu0 %v10679_v0  ;;  %3206 = vmatpush.bf16.msrb.mxu2 %v10680_v59  ;;  %v10689_v59 = vld [vmem:[#allocation13_spill] sm:$0xff] }
 0x575   :  { %3192 = vmatpush.bf16.msrb.mxu1 %v10681_v39  ;;  %3218 = vmatpush.bf16.msrb.mxu3 %v10682_v36  ;;  %v10690_v39 = vld [vmem:[#allocation15_spill] sm:$0xff]  ;;  %v10691_v36 = vld [vmem:[#allocation168_spill] sm:$0xff] }
 0x577   :  { %3181 = vmatpush.bf16.msrb.mxu0 %v10683_v61  ;;  %3207 = vmatpush.bf16.msrb.mxu2 %v10684_v31  ;;  %v10692_v61 = vld [vmem:[#allocation170_spill] sm:$0xff] }
 0x578   :  { %v10693_v31 = vld [vmem:[#allocation10_spill] sm:$0xff] }
 0x579   :  { %3193 = vmatpush.bf16.msrb.mxu1 %v10687_v24  ;;  %3219 = vmatpush.bf16.msrb.mxu3 %v10688_v54  ;;  %v10695_v54 = vld [vmem:[#allocation17_spill] sm:$0xff]  ;;  %v10696_v24 = vld [vmem:[#allocation19_spill] sm:$0xff] }
 0x57a   :  { %3182 = vmatmul.bf16.vlgmr.msrb.gmra.mxu0 %v9050_v16  ;;  %3208 = vmatmul.bf16.vlgmr.msrb.gmra.mxu2 %v9050_v16  ;;  %v10697_v16 = vld [vmem:[#allocation14_spill] sm:$0xff] }
 0x57b   :  { %3364 = vmatpush.bf16.msra.mxu0 %v10685_v43  ;;  %3390 = vmatpush.bf16.msra.mxu2 %v10686_v57  ;;  %v10694_v43 = vld [vmem:[#allocation12_spill] sm:$0xff]  ;;  %v10704_v57 = vld [vmem:[#allocation27_spill] sm:$0xff] }
 0x57d   :  { %3194 = vmatpush.bf16.msrb.mxu1 %v10691_v36  ;;  %3220 = vmatpush.bf16.msrb.mxu3 %v10692_v61  ;;  %v10700_v36 = vld [vmem:[#allocation23_spill] sm:$0xff]  ;;  %v10701_v61 = vld [vmem:[#allocation18_spill] sm:$0xff] }
 0x57f   :  { %3365 = vmatpush.bf16.msra.mxu0 %v10689_v59  ;;  %3391 = vmatpush.bf16.msra.mxu2 %v10690_v39  ;;  %v10698_v59 = vld [vmem:[#allocation16_spill] sm:$0xff]  ;;  %v10699_v39 = vld [vmem:[#allocation21_spill] sm:$0xff] }
 0x580   :  { %3195 = vmatmul.bf16.vlgmr.msrb.gmra.mxu1 %v9056_v62  ;;  %3221 = vmatmul.bf16.vlgmr.msrb.gmra.mxu3 %v9056_v62  ;;  %v10705_v62 = vld [vmem:[#allocation22_spill] sm:$0xff] }
 0x581   :  { %3377 = vmatpush.bf16.msra.mxu1 %v10693_v31  ;;  %3403 = vmatpush.bf16.msra.mxu3 %v10694_v43  ;;  %v10702_v31 = vld [vmem:[#allocation20_spill] sm:$0xff]  ;;  %v10703_v43 = vld [vmem:[#allocation25_spill] sm:$0xff] }
 0x583   :  { %3366 = vmatpush.bf16.msra.mxu0 %v10695_v54  ;;  %3392 = vmatpush.bf16.msra.mxu2 %v10696_v24  ;;  %v10706_v54 = vld [vmem:[#allocation24_spill] sm:$0xff]  ;;  %v10707_v24 = vld [vmem:[#allocation29_spill] sm:$0xff] }
 0x585   :  { %3378 = vmatpush.bf16.msra.mxu1 %v10697_v16  ;;  %3404 = vmatpush.bf16.msra.mxu3 %v10698_v59  ;;  %v10708_v16 = vld [vmem:[#allocation31_spill] sm:$0xff]  ;;  %v10709_v59 = vld [vmem:[#allocation26_spill] sm:$0xff] }
 0x587   :  { %3367 = vmatpush.bf16.msra.mxu0 %v10699_v39  ;;  %3393 = vmatpush.bf16.msra.mxu2 %v10700_v36  ;;  %v10710_v39 = vld [vmem:[#allocation28_spill] sm:$0xff]  ;;  %v10711_v36 = vld [vmem:[#allocation33_spill] sm:$0xff] }
 0x589   :  { %3379 = vmatpush.bf16.msra.mxu1 %v10701_v61  ;;  %3405 = vmatpush.bf16.msra.mxu3 %v10702_v31  ;;  %v10712_v61 = vld [vmem:[#allocation35_spill] sm:$0xff]  ;;  %v10713_v31 = vld [vmem:[#allocation30_spill] sm:$0xff] }
 0x58b   :  { %3368 = vmatpush.bf16.msra.mxu0 %v10703_v43  ;;  %3394 = vmatpush.bf16.msra.mxu2 %v10704_v57  ;;  %v10714_v43 = vld [vmem:[#allocation32_spill] sm:$0xff]  ;;  %v10715_v57 = vld [vmem:[#allocation37_spill] sm:$0xff] }
 0x58d   :  { %3380 = vmatpush.bf16.msra.mxu1 %v10705_v62  ;;  %3406 = vmatpush.bf16.msra.mxu3 %v10706_v54  ;;  %v10716_v62 = vld [vmem:[#allocation39_spill] sm:$0xff]  ;;  %v10717_v54 = vld [vmem:[#allocation41_spill] sm:$0xff] }
 0x58f   :  { %3369 = vmatpush.bf16.msra.mxu0 %v10707_v24  ;;  %3395 = vmatpush.bf16.msra.mxu2 %v10708_v16  ;;  %v10718_v24 = vld [vmem:[#allocation43_spill] sm:$0xff]  ;;  %v10719_v16 = vld [vmem:[#allocation34_spill] sm:$0xff] }
 0x591   :  { %3381 = vmatpush.bf16.msra.mxu1 %v10709_v59  ;;  %3407 = vmatpush.bf16.msra.mxu3 %v10710_v39  ;;  %v10720_v59 = vld [vmem:[#allocation36_spill] sm:$0xff]  ;;  %v10721_v39 = vld [vmem:[#allocation45_spill] sm:$0xff] }
 0x593   :  { %3370 = vmatpush.bf16.msra.mxu0 %v10711_v36  ;;  %3396 = vmatpush.bf16.msra.mxu2 %v10712_v61  ;;  %v10722_v36 = vld [vmem:[#allocation47_spill] sm:$0xff]  ;;  %v10723_v61 = vld [vmem:[#allocation38_spill] sm:$0xff] }
 0x595   :  { %3382 = vmatpush.bf16.msra.mxu1 %v10713_v31  ;;  %3408 = vmatpush.bf16.msra.mxu3 %v10714_v43  ;;  %v10724_v31 = vld [vmem:[#allocation40_spill] sm:$0xff]  ;;  %v10725_v43 = vld [vmem:[#allocation42_spill] sm:$0xff] }
 0x597   :  { %3371 = vmatpush.bf16.msra.mxu0 %v10715_v57  ;;  %3397 = vmatpush.bf16.msra.mxu2 %v10716_v62  ;;  %v10726_v57 = vld [vmem:[#allocation44_spill] sm:$0xff]  ;;  %v10727_v62 = vld [vmem:[#allocation49_spill] sm:$0xff] }
 0x599   :  { %3383 = vmatpush.bf16.msra.mxu1 %v10719_v16  ;;  %3409 = vmatpush.bf16.msra.mxu3 %v10720_v59  ;;  %v10730_v16 = vld [vmem:[#allocation48_spill] sm:$0xff]  ;;  %v10731_v59 = vld [vmem:[#allocation53_spill] sm:$0xff] }
 0x59b   :  { %3416 = vmatpush.bf16.msrb.mxu0 %v10717_v54  ;;  %3442 = vmatpush.bf16.msrb.mxu2 %v10718_v24  ;;  %v10728_v54 = vld [vmem:[#allocation51_spill] sm:$0xff]  ;;  %v10729_v24 = vld [vmem:[#allocation46_spill] sm:$0xff] }
 0x59d   :  { %3384 = vmatpush.bf16.msra.mxu1 %v10723_v61  ;;  %3410 = vmatpush.bf16.msra.mxu3 %v10724_v31  ;;  %v10734_v61 = vld [vmem:[#allocation52_spill] sm:$0xff]  ;;  %v10735_v31 = vld [vmem:[#allocation57_spill] sm:$0xff] }
 0x59f   :  { %3417 = vmatpush.bf16.msrb.mxu0 %v10721_v39  ;;  %3443 = vmatpush.bf16.msrb.mxu2 %v10722_v36  ;;  %v10732_v39 = vld [vmem:[#allocation55_spill] sm:$0xff]  ;;  %v10733_v36 = vld [vmem:[#allocation50_spill] sm:$0xff] }
 0x5a1   :  { %3429 = vmatpush.bf16.msrb.mxu1 %v10725_v43  ;;  %3455 = vmatpush.bf16.msrb.mxu3 %v10726_v57  ;;  %v10736_v43 = vld [vmem:[#allocation59_spill] sm:$0xff]  ;;  %v10737_v57 = vld [vmem:[#allocation54_spill] sm:$0xff] }
 0x5a3   :  { %3418 = vmatpush.bf16.msrb.mxu0 %v10727_v62  ;;  %3444 = vmatpush.bf16.msrb.mxu2 %v10728_v54  ;;  %v10738_v62 = vld [vmem:[#allocation56_spill] sm:$0xff]  ;;  %v10739_v54 = vld [vmem:[#allocation61_spill] sm:$0xff] }
 0x5a5   :  { %3430 = vmatpush.bf16.msrb.mxu1 %v10729_v24  ;;  %3456 = vmatpush.bf16.msrb.mxu3 %v10730_v16  ;;  %v10740_v24 = vld [vmem:[#allocation63_spill] sm:$0xff]  ;;  %v10741_v16 = vld [vmem:[#allocation58_spill] sm:$0xff] }
 0x5a7   :  { %3419 = vmatpush.bf16.msrb.mxu0 %v10731_v59  ;;  %3445 = vmatpush.bf16.msrb.mxu2 %v10732_v39  ;;  %v10742_v59 = vld [vmem:[#allocation60_spill] sm:$0xff]  ;;  %v10743_v39 = vld [vmem:[#allocation65_spill] sm:$0xff] }
 0x5a9   :  { %3431 = vmatpush.bf16.msrb.mxu1 %v10733_v36  ;;  %3457 = vmatpush.bf16.msrb.mxu3 %v10734_v61  ;;  %v10744_v36 = vld [vmem:[#allocation67_spill] sm:$0xff]  ;;  %v10745_v61 = vld [vmem:[#allocation62_spill] sm:$0xff] }
 0x5ab   :  { %3420 = vmatpush.bf16.msrb.mxu0 %v10735_v31  ;;  %3446 = vmatpush.bf16.msrb.mxu2 %v10736_v43  ;;  %v10746_v31 = vld [vmem:[#allocation64_spill] sm:$0xff]  ;;  %v10747_v43 = vld [vmem:[#allocation69_spill] sm:$0xff] }
 0x5ad   :  { %3432 = vmatpush.bf16.msrb.mxu1 %v10737_v57  ;;  %3458 = vmatpush.bf16.msrb.mxu3 %v10738_v62  ;;  %v10748_v57 = vld [vmem:[#allocation71_spill] sm:$0xff]  ;;  %v10749_v62 = vld [vmem:[#allocation66_spill] sm:$0xff] }
 0x5af   :  { %3421 = vmatpush.bf16.msrb.mxu0 %v10739_v54  ;;  %3447 = vmatpush.bf16.msrb.mxu2 %v10740_v24  ;;  %v10750_v54 = vld [vmem:[#allocation68_spill] sm:$0xff]  ;;  %v10751_v24 = vld [vmem:[#allocation70_spill] sm:$0xff] }
 0x5b1   :  { %3433 = vmatpush.bf16.msrb.mxu1 %v10741_v16  ;;  %3459 = vmatpush.bf16.msrb.mxu3 %v10742_v59  ;;  %v10752_v16 = vld [vmem:[#allocation72_spill] sm:$0xff] }
 0x5b3   :  { %3422 = vmatpush.bf16.msrb.mxu0 %v10743_v39  ;;  %3448 = vmatpush.bf16.msrb.mxu2 %v10744_v36  ;;  %v10753_v36 = vld [vmem:[#allocation91_spill] sm:$0xff] }
 0x5b5   :  { %3434 = vmatpush.bf16.msrb.mxu1 %v10745_v61  ;;  %3460 = vmatpush.bf16.msrb.mxu3 %v10746_v31  ;;  %v310_v61 = vadd.f32 %v10754_v56, %v10753_v36 }
 0x5b7   :  { %3423 = vmatpush.bf16.msrb.mxu0 %v10747_v43  ;;  %3449 = vmatpush.bf16.msrb.mxu2 %v10748_v57  ;;  %v3027_v59 = vpop.f32.mrf.mxu0  ;;  %v10755_v57 = vld [vmem:[#allocation97_spill] sm:$0xff] }
 0x5b9   :  { %3435 = vmatpush.bf16.msrb.mxu1 %v10749_v62  ;;  %3461 = vmatpush.bf16.msrb.mxu3 %v10750_v54  ;;  %v339_v62 = vadd.f32 %v10756_v7, %v10755_v57 }
 0x5bd   :  { %3436 = vmatpush.bf16.msrb.mxu1 %v10751_v24  ;;  %3462 = vmatpush.bf16.msrb.mxu3 %v10752_v16  ;;  %v3040_v39 = vpop.f32.mrf.mxu1  ;;  %v3053_v0 = vpop.f32.mrf.mxu2 }
 0x5be   :  { %v3041_v33 = vadd.f32 %v3040_v39, %v3027_v59  ;;  %v10757_v39 = vld [vmem:[#allocation105_spill] sm:$0xff] }
 0x5bf   :  { %v3029_v31 = vpop.f32.mrf.mxu0 }
 0x5c0   :  { %v3226_v25 = vadd.f32 %v3041_v33, %v310_v61  ;;  %v10758_v33 = vld [vmem:[#allocation147_spill] sm:$0xff] }
 0x5c2   :  { %v6027_v43 = vmul.f32 -1.442695, %v3226_v25  ;;  %v368_v25 = vadd.f32 %v10758_v33, %v10757_v39 }
 0x5c3   :  { %v3066_v35 = vpop.f32.mrf.mxu3 }
 0x5c4   :  { %7012 = vpow2.f32 %v6027_v43  ;;  %v3067_v54 = vadd.f32 %v3066_v35, %v3053_v0 }
 0x5c5   :  { %v3042_v58 = vpop.f32.mrf.mxu1  ;;  %v3055_v24 = vpop.f32.mrf.mxu2 }
 0x5c6   :  { %v3227_v47 = vadd.f32 %v3067_v54, %v339_v62 }
 0x5c7   :  { %v3079_v16 = vpop.f32.mrf.mxu0 }
 0x5c8   :  { %v6028_v48 = vmul.f32 -1.442695, %v3227_v47 }
 0x5ca   :  { %v7013_v22 = vpop.eup %7012  ;;  %7014 = vpow2.f32 %v6028_v48 }
 0x5cb   :  { %v3240_v1 = vadd.f32 1.0, %v7013_v22  ;;  %v3068_v14 = vpop.f32.mrf.mxu3  ;;  %v10759_v22 = vld [vmem:[#allocation106_spill] sm:$0xff] }
 0x5cc   :  { %v10760_v14 = vld [vmem:[#allocation149_spill] sm:$0xff] }
 0x5cd   :  { %v3092_v56 = vpop.f32.mrf.mxu1  ;;  %v3105_v59 = vpop.f32.mrf.mxu2  ;;  %7016 = vrcp.f32 %v3240_v1  ;;  %v397_v48 = vadd.f32 %v10760_v14, %v10759_v22  ;;  %v10762_v14 = vld [vmem:[#allocation192_spill] sm:$0xff]  ;;  %vm3247_vm10 = vweird.f32 %v3240_v1 }
 0x5ce   :  { %v3093_v61 = vadd.f32 %v3092_v56, %v3079_v16 }
 0x5cf   :  { %v3081_v31 = vpop.f32.mrf.mxu0 }
 0x5d0   :  { %v7015_v7 = vpop.eup %7014  ;;  %v3228_v43 = vadd.f32 %v3093_v61, %v368_v25 }
 0x5d1   :  { %v9204_v35 = vadd.f32 1.0, %v7015_v7 }
 0x5d2   :  { %v6029_v58 = vmul.f32 -1.442695, %v3228_v43 }
 0x5d3   :  { %7018 = vrcp.f32 %v9204_v35  ;;  %v3118_v62 = vpop.f32.mrf.mxu3  ;;  %v9207_v47 = vpop.eup %7016  ;;  %vm3262_vm15 = vweird.f32 %v9204_v35 }
 0x5d4   :  { %7020 = vpow2.f32 %v6029_v58  ;;  %v3119_v24 = vadd.f32 %v3118_v62, %v3105_v59  ;;  %v3243_v16 = vmul.f32 %v9207_v47, %v3240_v1  ;;  %v10761_v62 = vld [vmem:[#allocation175_spill] sm:$0xff]  ;;  %vm3248_vm9 = vweird.f32 %v9207_v47 }
 0x5d5   :  { %v3094_v54 = vpop.f32.mrf.mxu1  ;;  %v3107_v0 = vpop.f32.mrf.mxu2  ;;  %vm9227_vm11 = vmor %vm3247_vm10, %vm3248_vm9 }
 0x5d6   :  { %v3229_v33 = vadd.f32 %v3119_v24, %v397_v48  ;;  %v3244_v7 = vsub.f32 1.0, %v3243_v16  ;;  %v426_v48 = vadd.f32 %v10762_v14, %v10761_v62  ;;  %v10764_v14 = vld [vmem:[#allocation194_spill] sm:$0xff] }
 0x5d7   :  { %v3131_v56 = vpop.f32.mrf.mxu0 }
 0x5d8   :  { %v6030_v25 = vmul.f32 -1.442695, %v3229_v33  ;;  %v3245_v54 = vmul.f32 %v9207_v47, %v3244_v7 }
 0x5d9   :  { %v9212_v61 = vpop.eup %7018 }
 0x5da   :  { %v7021_v31 = vpop.eup %7020  ;;  %7022 = vpow2.f32 %v6030_v25  ;;  %v3258_v57 = vmul.f32 %v9212_v61, %v9204_v35  ;;  %v3251_v25 = vand.u32 2147483647, %v3240_v1  ;;  %v3246_v17 = vadd.f32 %v9207_v47, %v3245_v54 }
 0x5db   :  { %v3278_v43 = vadd.f32 1.0, %v7021_v31  ;;  %v3120_v39 = vpop.f32.mrf.mxu3  ;;  %vm3263_vm13 = vweird.f32 %v9212_v61 }
 0x5dc   :  { %v3259_v22 = vsub.f32 1.0, %v3258_v57  ;;  %v3253_v39 = vand.u32 2147483648, %v3240_v1  ;;  %vm9231_vm12 = vcmp.eq.f32.partialorder %v3251_v25, 8.507059e+37  ;;  %v3266_v25 = vand.u32 2147483647, %v9204_v35  ;;  %vm9248_vm1 = vmor %vm3262_vm15, %vm3263_vm13 }
 0x5dd   :  { %7024 = vrcp.f32 %v3278_v43  ;;  %v3157_v58 = vpop.f32.mrf.mxu2  ;;  %v3144_v59 = vpop.f32.mrf.mxu1  ;;  %v3291_v51 = vand.u32 2147483648, %v3278_v43  ;;  %vm3285_vm0 = vweird.f32 %v3278_v43 }
 0x5de   :  { %v3145_v24 = vadd.f32 %v3144_v59, %v3131_v56  ;;  %v3260_v7 = vmul.f32 %v9212_v61, %v3259_v22  ;;  %v10763_v59 = vld [vmem:[#allocation177_spill] sm:$0xff]  ;;  %v3254_v62 = vor.u32 1.1754944e-38, %v3253_v39  ;;  %v3250_v22 = vsel %vm9227_vm11, %v9207_v47, %v3246_v17 }
 0x5df   :  { %v3133_v0 = vpop.f32.mrf.mxu0  ;;  %v455_v57 = vadd.f32 %v10764_v14, %v10763_v59  ;;  %v3268_v39 = vand.u32 2147483648, %v9204_v35  ;;  %vm3267_vm4 = vcmp.eq.f32.partialorder %v3266_v25, 8.507059e+37  ;;  %v10800_v59 = vld [vmem:[#allocation169_spill] sm:$0xff] }
 0x5e0   :  { %v7023_v33 = vpop.eup %7022  ;;  %v3230_v16 = vadd.f32 %v3145_v24, %v426_v48  ;;  %v3255_v47 = vsel %vm9231_vm12, %v3254_v62, %v3250_v22 }
 0x5e1   :  { %v9219_v36 = vadd.f32 1.0, %v7023_v33  ;;  %v3269_v22 = vor.u32 1.1754944e-38, %v3268_v39 }
 0x5e3   :  { %v7025_v31 = vpop.eup %7024  ;;  %7026 = vrcp.f32 %v9219_v36  ;;  %v3170_v56 = vpop.f32.mrf.mxu3  ;;  %v3306_v62 = vand.u32 2147483648, %v9219_v36  ;;  %vm3300_vm6 = vweird.f32 %v9219_v36 }
 0x5e4   :  { %v3281_v49 = vmul.f32 %v7025_v31, %v3278_v43  ;;  %7028 = vtanh.f32 %v3230_v16  ;;  %v3171_v0 = vadd.f32 %v3170_v56, %v3157_v58  ;;  %vm3286_vm14 = vweird.f32 %v7025_v31 }
 0x5e5   :  { %v3159_v48 = vpop.f32.mrf.mxu2  ;;  %v3146_v16 = vpop.f32.mrf.mxu1  ;;  %v3261_v58 = vadd.f32 %v9212_v61, %v3260_v7  ;;  %vm3287_vm2 = vmor %vm3285_vm0, %vm3286_vm14 }
 0x5e6   :  { %v3282_v24 = vsub.f32 1.0, %v3281_v49  ;;  %v3231_v14 = vadd.f32 %v3171_v0, %v455_v57  ;;  %v3289_v49 = vand.u32 2147483647, %v3278_v43  ;;  %v3292_v0 = vor.u32 1.1754944e-38, %v3291_v51 }
 0x5e7   :  { %v3265_v43 = vsel %vm9248_vm1, %v9212_v61, %v3261_v58  ;;  %v3304_v51 = vand.u32 2147483647, %v9219_v36  ;;  %v3307_v58 = vor.u32 1.1754944e-38, %v3306_v62  ;;  %v10774_v62 = vld [vmem:[#allocation196_spill] sm:$0xff] }
 0x5e8   :  { %v3283_v1 = vmul.f32 %v7025_v31, %v3282_v24  ;;  %7030 = vtanh.f32 %v3231_v14  ;;  %vm3290_vm3 = vcmp.eq.f32.partialorder %v3289_v49, 8.507059e+37 }
 0x5e9   :  { %v7027_v56 = vpop.eup %7026  ;;  %vm3305_vm8 = vcmp.eq.f32.partialorder %v3304_v51, 8.507059e+37 }
 0x5ea   :  { %v7029_v48 = vpop.eup %7028  ;;  %v3296_v17 = vmul.f32 %v7027_v56, %v9219_v36  ;;  %v3284_v57 = vadd.f32 %v7025_v31, %v3283_v1  ;;  %vm3301_vm5 = vweird.f32 %v7027_v56 }
 0x5eb   :  { %v3352_v24 = vmul.f32 %v7029_v48, %v3255_v47  ;;  %v3172_v16 = vpop.f32.mrf.mxu3  ;;  %vm3302_vm7 = vmor %vm3300_vm6, %vm3301_vm5 }
 0x5ec   :  { %v3297_v33 = vsub.f32 1.0, %v3296_v17  ;;  %v3288_v35 = vsel %vm3287_vm2, %v7025_v31, %v3284_v57  ;;  %v3270_v17 = vsel %vm3267_vm4, %v3269_v22, %v3265_v43 }
 0x5ed   :  { %v3293_v54 = vsel %vm3290_vm3, %v3292_v0, %v3288_v35  ;;  %v10772_v35 = vld [vmem:[#allocation195_spill] sm:$0xff] }
 0x5ee   :  { %v3298_v14 = vmul.f32 %v7027_v56, %v3297_v33  ;;  %v3350_v1 = vmul.f32 %v3293_v54, %v9041_v23  ;;  %v7031_v48 = vpop.eup %7030  ;;  %v10771_v33 = vld [vmem:[#allocation181_spill] sm:$0xff] }
 0x5ef   :  { %v3353_v61 = vmul.f32 %v7031_v48, %v3270_v17  ;;  %v484_v43 = vadd.f32 %v10772_v35, %v10771_v33  ;;  %v10799_v33 = vld [vmem:[#allocation167_spill] sm:$0xff] }
 0x5f0   :  { %v9259_v31 = vadd.f32 %v3352_v24, %v3350_v1  ;;  %v3299_v49 = vadd.f32 %v7027_v56, %v3298_v14  ;;  %v10773_v14 = vld [vmem:[#allocation182_spill] sm:$0xff] }
 0x5f2   :  { %v3303_v47 = vsel %vm3302_vm7, %v7027_v56, %v3299_v49  ;;  %v513_v56 = vadd.f32 %v10774_v62, %v10773_v14  ;;  %v10798_v14 = vld [vmem:[#allocation158_spill] sm:$0xff] }
 0x5f3   :  { %v3308_v25 = vsel %vm3305_vm8, %v3307_v58, %v3303_v47 }
 0x5f4   :  { %v3351_v39 = vmul.f32 %v3308_v25, %v9044_v50 }
 0x5f6   :  { %v9262_v7 = vadd.f32 %v3353_v61, %v3351_v39 }
 0x5f7   :  { %v3183_v57 = vpop.f32.mrf.mxu0 }
 0x5fd   :  { %v3196_v23 = vpop.f32.mrf.mxu1  ;;  %v3209_v0 = vpop.f32.mrf.mxu2 }
 0x5fe   :  { %v3197_v36 = vadd.f32 %v3196_v23, %v3183_v57 }
 0x5ff   :  { %v3185_v24 = vpop.f32.mrf.mxu0 }
 0x600   :  { %v3232_v16 = vadd.f32 %v3197_v36, %v484_v43 }
 0x602   :  { %v6031_v54 = vmul.f32 -1.442695, %v3232_v16 }
 0x603   :  { %v3222_v22 = vpop.f32.mrf.mxu3 }
 0x604   :  { %7032 = vpow2.f32 %v6031_v54  ;;  %v3223_v1 = vadd.f32 %v3222_v22, %v3209_v0 }
 0x605   :  { %v3198_v51 = vpop.f32.mrf.mxu1  ;;  %v3211_v50 = vpop.f32.mrf.mxu2 }
 0x606   :  { %v3233_v48 = vadd.f32 %v3223_v1, %v513_v56 }
 0x608   :  { %v6032_v17 = vmul.f32 -1.442695, %v3233_v48 }
 0x60a   :  { %v7033_v49 = vpop.eup %7032  ;;  %7034 = vpow2.f32 %v6032_v17 }
 0x60b   :  { %v3318_v61 = vadd.f32 1.0, %v7033_v49  ;;  %v3224_v58 = vpop.f32.mrf.mxu3 }
 0x60d   :  { %7036 = vrcp.f32 %v3318_v61  ;;  %v3331_v35 = vand.u32 2147483648, %v3318_v61  ;;  %v3329_v0 = vand.u32 2147483647, %v3318_v61  ;;  %vm3325_vm10 = vweird.f32 %v3318_v61 }
 0x60f   :  { %v3332_v54 = vor.u32 1.1754944e-38, %v3331_v35  ;;  %vm3330_vm12 = vcmp.eq.f32.partialorder %v3329_v0, 8.507059e+37  ;;  %v10779_v0 = vld [vmem:[#allocation135_spill] sm:$0xff] }
 0x610   :  { %v7035_v47 = vpop.eup %7034 }
 0x611   :  { %v3319_v25 = vadd.f32 1.0, %v7035_v47 }
 0x613   :  { %v7037_v39 = vpop.eup %7036  ;;  %7038 = vrcp.f32 %v3319_v25  ;;  %v3346_v51 = vand.u32 2147483648, %v3319_v25  ;;  %v3344_v17 = vand.u32 2147483647, %v3319_v25  ;;  %vm3340_vm14 = vweird.f32 %v3319_v25 }
 0x614   :  { %v3321_v57 = vmul.f32 %v7037_v39, %v3318_v61  ;;  %7040 = vtanh.f32 %v9259_v31  ;;  %vm3326_vm9 = vweird.f32 %v7037_v39 }
 0x615   :  { %vm3327_vm11 = vmor %vm3325_vm10, %vm3326_vm9  ;;  %7042 = vtanh.f32 %v9262_v7  ;;  %v3347_v61 = vor.u32 1.1754944e-38, %v3346_v51  ;;  %vm3345_vm0 = vcmp.eq.f32.partialorder %v3344_v17, 8.507059e+37  ;;  %v10788_v51 = vld [vmem:[#allocation151_spill] sm:$0xff] }
 0x616   :  { %v3322_v23 = vsub.f32 1.0, %v3321_v57  ;;  %v10791_v17 = vld [vmem:[#allocation155_spill] sm:$0xff] }
 0x618   :  { %v3323_v43 = vmul.f32 %v7037_v39, %v3322_v23 }
 0x619   :  { %v7039_v36 = vpop.eup %7038 }
 0x61a   :  { %v3324_v24 = vadd.f32 %v7037_v39, %v3323_v43  ;;  %v3336_v16 = vmul.f32 %v7039_v36, %v3319_v25  ;;  %v7041_v56 = vpop.eup %7040  ;;  %vm3341_vm13 = vweird.f32 %v7039_v36  ;;  %v10777_v25 = vld [vmem:[#allocation126_spill] sm:$0xff]  ;;  %v10778_v43 = vld [vmem:[#allocation129_spill] sm:$0xff] }
 0x61b   :  { %vm3342_vm15 = vmor %vm3340_vm14, %vm3341_vm13 }
 0x61c   :  { %v3328_v22 = vsel %vm3327_vm11, %v7037_v39, %v3324_v24  ;;  %v3337_v62 = vsub.f32 1.0, %v3336_v16  ;;  %v7043_v39 = vpop.eup %7042  ;;  %v10781_v24 = vld [vmem:[#allocation132_spill] sm:$0xff]  ;;  %v10782_v16 = vld [vmem:[#allocation134_spill] sm:$0xff] }
 0x61d   :  { %v3333_v1 = vsel %vm3330_vm12, %v3332_v54, %v3328_v22  ;;  %v10783_v54 = vld [vmem:[#allocation143_spill] sm:$0xff]  ;;  %v10784_v22 = vld [vmem:[#allocation145_spill] sm:$0xff] }
 0x61e   :  { %v3358_v50 = vmul.f32 %v7041_v56, %v3333_v1  ;;  %v3338_v48 = vmul.f32 %v7039_v36, %v3337_v62  ;;  %v10785_v62 = vld [vmem:[#allocation138_spill] sm:$0xff]  ;;  %v10787_v1 = vld [vmem:[#allocation148_spill] sm:$0xff] }
 0x61f   :  { %v10786_v56 = vld [vmem:[#allocation142_spill] sm:$0xff] }
 0x620   :  { %v9270_v49 = vpack.c.bf16 %v3358_v50, %v3358_v50  ;;  %v3339_v58 = vadd.f32 %v7039_v36, %v3338_v48  ;;  %v10789_v50 = vld [vmem:[#allocation144_spill] sm:$0xff]  ;;  %v10790_v48 = vld [vmem:[#allocation146_spill] sm:$0xff] }
 0x622   :  { %10775 = vst [vmem:[#allocation87_spill] sm:$0xff] %v9270_v49  ;;  %v3343_v47 = vsel %vm3342_vm15, %v7039_v36, %v3339_v58  ;;  %3372 = vmatmul.bf16.vlgmr.msra.gmra.mxu0 %v9270_v49  ;;  %3398 = vmatmul.bf16.vlgmr.msra.gmra.mxu2 %v9270_v49  ;;  %v10780_v36 = vld [vmem:[#allocation139_spill] sm:$0xff]  ;;  %v10792_v58 = vld [vmem:[#allocation157_spill] sm:$0xff] }
 0x623   :  { %v3348_v57 = vsel %vm3345_vm0, %v3347_v61, %v3343_v47  ;;  %3468 = vmatpush.bf16.msra.mxu0 %v10209_v30  ;;  %3494 = vmatpush.bf16.msra.mxu2 %v10210_v42  ;;  %v10793_v61 = vld [vmem:[#allocation150_spill] sm:$0xff]  ;;  %v10794_v47 = vld [vmem:[#allocation153_spill] sm:$0xff] }
 0x624   :  { %v3359_v23 = vmul.f32 %v7043_v39, %v3348_v57  ;;  %v10795_v39 = vld [vmem:[#allocation159_spill] sm:$0xff] }
 0x625   :  { %v10796_v57 = vld [vmem:[#allocation163_spill] sm:$0xff] }
 0x626   :  { %v9276_v35 = vpack.c.bf16 %v3359_v23, %v3359_v23  ;;  %v10797_v23 = vld [vmem:[#allocation156_spill] sm:$0xff] }
 0x627   :  { %3469 = vmatpush.bf16.msra.mxu0 %v10212_v13  ;;  %3495 = vmatpush.bf16.msra.mxu2 %v10213_v5 }
 0x628   :  { %10776 = vst [vmem:[#allocation89_spill] sm:$0xff] %v9276_v35  ;;  %3385 = vmatmul.bf16.vlgmr.msra.gmra.mxu1 %v9276_v35  ;;  %3411 = vmatmul.bf16.vlgmr.msra.gmra.mxu3 %v9276_v35 }
 0x629   :  { %3481 = vmatpush.bf16.msra.mxu1 %v10214_v27  ;;  %3507 = vmatpush.bf16.msra.mxu3 %v10215_v32 }
 0x62b   :  { %3470 = vmatpush.bf16.msra.mxu0 %v10216_v9  ;;  %3496 = vmatpush.bf16.msra.mxu2 %v10217_v3 }
 0x62d   :  { %3482 = vmatpush.bf16.msra.mxu1 %v10218_v45  ;;  %3508 = vmatpush.bf16.msra.mxu3 %v10219_v37 }
 0x62f   :  { %3471 = vmatpush.bf16.msra.mxu0 %v10220_v29  ;;  %3497 = vmatpush.bf16.msra.mxu2 %v10221_v19 }
 0x631   :  { %3483 = vmatpush.bf16.msra.mxu1 %v10222_v28  ;;  %3509 = vmatpush.bf16.msra.mxu3 %v10223_v53 }
 0x632   :  { %3424 = vmatmul.bf16.vlgmr.msrb.gmra.mxu0 %v9270_v49  ;;  %3450 = vmatmul.bf16.vlgmr.msrb.gmra.mxu2 %v9270_v49 }
 0x633   :  { %3472 = vmatpush.bf16.msra.mxu0 %v10224_v11  ;;  %3498 = vmatpush.bf16.msra.mxu2 %v10225_v20 }
 0x635   :  { %3484 = vmatpush.bf16.msra.mxu1 %v10226_v41  ;;  %3510 = vmatpush.bf16.msra.mxu3 %v10227_v46 }
 0x637   :  { %3473 = vmatpush.bf16.msra.mxu0 %v10228_v8  ;;  %3499 = vmatpush.bf16.msra.mxu2 %v10229_v63 }
 0x638   :  { %3437 = vmatmul.bf16.vlgmr.msrb.gmra.mxu1 %v9276_v35  ;;  %3463 = vmatmul.bf16.vlgmr.msrb.gmra.mxu3 %v9276_v35 }
 0x639   :  { %3485 = vmatpush.bf16.msra.mxu1 %v10329_v2  ;;  %3511 = vmatpush.bf16.msra.mxu3 %v10330_v15 }
 0x63b   :  { %3474 = vmatpush.bf16.msra.mxu0 %v10331_v40  ;;  %3500 = vmatpush.bf16.msra.mxu2 %v10332_v12 }
 0x63d   :  { %3486 = vmatpush.bf16.msra.mxu1 %v10333_v44  ;;  %3512 = vmatpush.bf16.msra.mxu3 %v10334_v38 }
 0x63f   :  { %3475 = vmatpush.bf16.msra.mxu0 %v10335_v21  ;;  %3501 = vmatpush.bf16.msra.mxu2 %v10336_v26 }
 0x641   :  { %3487 = vmatpush.bf16.msra.mxu1 %v10339_v60  ;;  %3513 = vmatpush.bf16.msra.mxu3 %v10340_v55 }
 0x642   :  { %3476 = vmatmul.bf16.vlgmr.msra.gmra.mxu0 %v9270_v49  ;;  %3502 = vmatmul.bf16.vlgmr.msra.gmra.mxu2 %v9270_v49 }
 0x643   :  { %3520 = vmatpush.bf16.msrb.mxu0 %v10337_v18  ;;  %3546 = vmatpush.bf16.msrb.mxu2 %v10338_v34 }
 0x645   :  { %3488 = vmatpush.bf16.msra.mxu1 %v10343_v4  ;;  %3514 = vmatpush.bf16.msra.mxu3 %v10344_v6 }
 0x647   :  { %3521 = vmatpush.bf16.msrb.mxu0 %v10341_v52  ;;  %3547 = vmatpush.bf16.msrb.mxu2 %v10342_v10 }
 0x648   :  { %3489 = vmatmul.bf16.vlgmr.msra.gmra.mxu1 %v9276_v35  ;;  %3515 = vmatmul.bf16.vlgmr.msra.gmra.mxu3 %v9276_v35 }
 0x649   :  { %3533 = vmatpush.bf16.msrb.mxu1 %v10777_v25  ;;  %3559 = vmatpush.bf16.msrb.mxu3 %v10778_v43  ;;  %v10878_v43 = vld [vmem:[#allocation198_spill] sm:$0xff] }
 0x64b   :  { %3522 = vmatpush.bf16.msrb.mxu0 %v10779_v0  ;;  %3548 = vmatpush.bf16.msrb.mxu2 %v10780_v36 }
 0x64d   :  { %3534 = vmatpush.bf16.msrb.mxu1 %v10781_v24  ;;  %3560 = vmatpush.bf16.msrb.mxu3 %v10782_v16 }
 0x64f   :  { %3523 = vmatpush.bf16.msrb.mxu0 %v10783_v54  ;;  %3549 = vmatpush.bf16.msrb.mxu2 %v10784_v22 }
 0x651   :  { %3535 = vmatpush.bf16.msrb.mxu1 %v10785_v62  ;;  %3561 = vmatpush.bf16.msrb.mxu3 %v10786_v56 }
 0x653   :  { %3524 = vmatpush.bf16.msrb.mxu0 %v10787_v1  ;;  %3550 = vmatpush.bf16.msrb.mxu2 %v10788_v51 }
 0x655   :  { %3536 = vmatpush.bf16.msrb.mxu1 %v10789_v50  ;;  %3562 = vmatpush.bf16.msrb.mxu3 %v10790_v48  ;;  %v10801_v48 = vld [vmem:[#allocation9_spill] sm:$0xff] }
 0x657   :  { %3525 = vmatpush.bf16.msrb.mxu0 %v10791_v17  ;;  %3551 = vmatpush.bf16.msrb.mxu2 %v10792_v58  ;;  %v10802_v17 = vld [vmem:[#allocation11_spill] sm:$0xff]  ;;  %v10803_v58 = vld [vmem:[#allocation162_spill] sm:$0xff] }
 0x659   :  { %3537 = vmatpush.bf16.msrb.mxu1 %v10793_v61  ;;  %3563 = vmatpush.bf16.msrb.mxu3 %v10794_v47  ;;  %v10804_v61 = vld [vmem:[#allocation166_spill] sm:$0xff] }
 0x65b   :  { %3526 = vmatpush.bf16.msrb.mxu0 %v10795_v39  ;;  %3552 = vmatpush.bf16.msrb.mxu2 %v10796_v57  ;;  %v10805_v57 = vld [vmem:[#allocation13_spill] sm:$0xff] }
 0x65d   :  { %3538 = vmatpush.bf16.msrb.mxu1 %v10797_v23  ;;  %3564 = vmatpush.bf16.msrb.mxu3 %v10798_v14  ;;  %v10806_v23 = vld [vmem:[#allocation15_spill] sm:$0xff]  ;;  %v10807_v14 = vld [vmem:[#allocation168_spill] sm:$0xff] }
 0x65f   :  { %3527 = vmatpush.bf16.msrb.mxu0 %v10799_v33  ;;  %3553 = vmatpush.bf16.msrb.mxu2 %v10800_v59  ;;  %v10808_v33 = vld [vmem:[#allocation170_spill] sm:$0xff] }
 0x660   :  { %v10809_v59 = vld [vmem:[#allocation10_spill] sm:$0xff] }
 0x661   :  { %3539 = vmatpush.bf16.msrb.mxu1 %v10803_v58  ;;  %3565 = vmatpush.bf16.msrb.mxu3 %v10804_v61  ;;  %v10812_v61 = vld [vmem:[#allocation19_spill] sm:$0xff] }
 0x662   :  { %3528 = vmatmul.bf16.vlgmr.msrb.gmra.mxu0 %v9270_v49  ;;  %3554 = vmatmul.bf16.vlgmr.msrb.gmra.mxu2 %v9270_v49  ;;  %v10813_v49 = vld [vmem:[#allocation14_spill] sm:$0xff]  ;;  %v10820_v58 = vld [vmem:[#allocation27_spill] sm:$0xff] }
 0x663   :  { %3710 = vmatpush.bf16.msra.mxu0 %v10801_v48  ;;  %3736 = vmatpush.bf16.msra.mxu2 %v10802_v17  ;;  %v10810_v48 = vld [vmem:[#allocation12_spill] sm:$0xff]  ;;  %v10811_v17 = vld [vmem:[#allocation17_spill] sm:$0xff] }
 0x665   :  { %3540 = vmatpush.bf16.msrb.mxu1 %v10807_v14  ;;  %3566 = vmatpush.bf16.msrb.mxu3 %v10808_v33  ;;  %v10816_v14 = vld [vmem:[#allocation23_spill] sm:$0xff]  ;;  %v10817_v33 = vld [vmem:[#allocation18_spill] sm:$0xff] }
 0x667   :  { %3711 = vmatpush.bf16.msra.mxu0 %v10805_v57  ;;  %3737 = vmatpush.bf16.msra.mxu2 %v10806_v23  ;;  %v10814_v57 = vld [vmem:[#allocation16_spill] sm:$0xff]  ;;  %v10815_v23 = vld [vmem:[#allocation21_spill] sm:$0xff] }
 0x668   :  { %3541 = vmatmul.bf16.vlgmr.msrb.gmra.mxu1 %v9276_v35  ;;  %3567 = vmatmul.bf16.vlgmr.msrb.gmra.mxu3 %v9276_v35  ;;  %v10821_v35 = vld [vmem:[#allocation22_spill] sm:$0xff] }
 0x669   :  { %3723 = vmatpush.bf16.msra.mxu1 %v10809_v59  ;;  %3749 = vmatpush.bf16.msra.mxu3 %v10810_v48  ;;  %v10818_v59 = vld [vmem:[#allocation20_spill] sm:$0xff]  ;;  %v10819_v48 = vld [vmem:[#allocation25_spill] sm:$0xff] }
 0x66b   :  { %3712 = vmatpush.bf16.msra.mxu0 %v10811_v17  ;;  %3738 = vmatpush.bf16.msra.mxu2 %v10812_v61  ;;  %v10822_v17 = vld [vmem:[#allocation24_spill] sm:$0xff]  ;;  %v10823_v61 = vld [vmem:[#allocation29_spill] sm:$0xff] }
 0x66d   :  { %3724 = vmatpush.bf16.msra.mxu1 %v10813_v49  ;;  %3750 = vmatpush.bf16.msra.mxu3 %v10814_v57  ;;  %v10824_v49 = vld [vmem:[#allocation31_spill] sm:$0xff]  ;;  %v10825_v57 = vld [vmem:[#allocation26_spill] sm:$0xff] }
 0x66f   :  { %3713 = vmatpush.bf16.msra.mxu0 %v10815_v23  ;;  %3739 = vmatpush.bf16.msra.mxu2 %v10816_v14  ;;  %v10826_v23 = vld [vmem:[#allocation28_spill] sm:$0xff]  ;;  %v10827_v14 = vld [vmem:[#allocation33_spill] sm:$0xff] }
 0x671   :  { %3725 = vmatpush.bf16.msra.mxu1 %v10817_v33  ;;  %3751 = vmatpush.bf16.msra.mxu3 %v10818_v59  ;;  %v10828_v33 = vld [vmem:[#allocation35_spill] sm:$0xff]  ;;  %v10829_v59 = vld [vmem:[#allocation30_spill] sm:$0xff] }
 0x673   :  { %3714 = vmatpush.bf16.msra.mxu0 %v10819_v48  ;;  %3740 = vmatpush.bf16.msra.mxu2 %v10820_v58  ;;  %v10830_v48 = vld [vmem:[#allocation32_spill] sm:$0xff]  ;;  %v10831_v58 = vld [vmem:[#allocation37_spill] sm:$0xff] }
 0x675   :  { %3726 = vmatpush.bf16.msra.mxu1 %v10821_v35  ;;  %3752 = vmatpush.bf16.msra.mxu3 %v10822_v17  ;;  %v10832_v35 = vld [vmem:[#allocation39_spill] sm:$0xff]  ;;  %v10833_v17 = vld [vmem:[#allocation41_spill] sm:$0xff] }
 0x677   :  { %3715 = vmatpush.bf16.msra.mxu0 %v10823_v61  ;;  %3741 = vmatpush.bf16.msra.mxu2 %v10824_v49  ;;  %v10834_v61 = vld [vmem:[#allocation43_spill] sm:$0xff]  ;;  %v10835_v49 = vld [vmem:[#allocation34_spill] sm:$0xff] }
 0x679   :  { %3727 = vmatpush.bf16.msra.mxu1 %v10825_v57  ;;  %3753 = vmatpush.bf16.msra.mxu3 %v10826_v23  ;;  %v10836_v57 = vld [vmem:[#allocation36_spill] sm:$0xff]  ;;  %v10837_v23 = vld [vmem:[#allocation45_spill] sm:$0xff] }
 0x67b   :  { %3716 = vmatpush.bf16.msra.mxu0 %v10827_v14  ;;  %3742 = vmatpush.bf16.msra.mxu2 %v10828_v33  ;;  %v10838_v14 = vld [vmem:[#allocation47_spill] sm:$0xff]  ;;  %v10839_v33 = vld [vmem:[#allocation38_spill] sm:$0xff] }
 0x67d   :  { %3728 = vmatpush.bf16.msra.mxu1 %v10829_v59  ;;  %3754 = vmatpush.bf16.msra.mxu3 %v10830_v48  ;;  %v10840_v59 = vld [vmem:[#allocation40_spill] sm:$0xff]  ;;  %v10841_v48 = vld [vmem:[#allocation42_spill] sm:$0xff] }
 0x67f   :  { %3717 = vmatpush.bf16.msra.mxu0 %v10831_v58  ;;  %3743 = vmatpush.bf16.msra.mxu2 %v10832_v35  ;;  %v10842_v58 = vld [vmem:[#allocation44_spill] sm:$0xff]  ;;  %v10843_v35 = vld [vmem:[#allocation49_spill] sm:$0xff] }
 0x681   :  { %3729 = vmatpush.bf16.msra.mxu1 %v10835_v49  ;;  %3755 = vmatpush.bf16.msra.mxu3 %v10836_v57  ;;  %v10846_v49 = vld [vmem:[#allocation48_spill] sm:$0xff]  ;;  %v10847_v57 = vld [vmem:[#allocation53_spill] sm:$0xff] }
 0x683   :  { %3762 = vmatpush.bf16.msrb.mxu0 %v10833_v17  ;;  %3788 = vmatpush.bf16.msrb.mxu2 %v10834_v61  ;;  %v10844_v17 = vld [vmem:[#allocation51_spill] sm:$0xff]  ;;  %v10845_v61 = vld [vmem:[#allocation46_spill] sm:$0xff] }
 0x685   :  { %3730 = vmatpush.bf16.msra.mxu1 %v10839_v33  ;;  %3756 = vmatpush.bf16.msra.mxu3 %v10840_v59  ;;  %v10850_v33 = vld [vmem:[#allocation52_spill] sm:$0xff]  ;;  %v10851_v59 = vld [vmem:[#allocation57_spill] sm:$0xff] }
 0x687   :  { %3763 = vmatpush.bf16.msrb.mxu0 %v10837_v23  ;;  %3789 = vmatpush.bf16.msrb.mxu2 %v10838_v14  ;;  %v10848_v23 = vld [vmem:[#allocation55_spill] sm:$0xff]  ;;  %v10849_v14 = vld [vmem:[#allocation50_spill] sm:$0xff] }
 0x689   :  { %3775 = vmatpush.bf16.msrb.mxu1 %v10841_v48  ;;  %3801 = vmatpush.bf16.msrb.mxu3 %v10842_v58  ;;  %v10852_v48 = vld [vmem:[#allocation59_spill] sm:$0xff]  ;;  %v10853_v58 = vld [vmem:[#allocation54_spill] sm:$0xff] }
 0x68b   :  { %3764 = vmatpush.bf16.msrb.mxu0 %v10843_v35  ;;  %3790 = vmatpush.bf16.msrb.mxu2 %v10844_v17  ;;  %v10854_v35 = vld [vmem:[#allocation56_spill] sm:$0xff]  ;;  %v10855_v17 = vld [vmem:[#allocation61_spill] sm:$0xff] }
 0x68d   :  { %3776 = vmatpush.bf16.msrb.mxu1 %v10845_v61  ;;  %3802 = vmatpush.bf16.msrb.mxu3 %v10846_v49  ;;  %v10856_v61 = vld [vmem:[#allocation63_spill] sm:$0xff]  ;;  %v10857_v49 = vld [vmem:[#allocation58_spill] sm:$0xff] }
 0x68f   :  { %3765 = vmatpush.bf16.msrb.mxu0 %v10847_v57  ;;  %3791 = vmatpush.bf16.msrb.mxu2 %v10848_v23  ;;  %v10858_v57 = vld [vmem:[#allocation60_spill] sm:$0xff]  ;;  %v10859_v23 = vld [vmem:[#allocation65_spill] sm:$0xff] }
 0x691   :  { %3777 = vmatpush.bf16.msrb.mxu1 %v10849_v14  ;;  %3803 = vmatpush.bf16.msrb.mxu3 %v10850_v33  ;;  %v10860_v14 = vld [vmem:[#allocation67_spill] sm:$0xff]  ;;  %v10861_v33 = vld [vmem:[#allocation62_spill] sm:$0xff] }
 0x693   :  { %3766 = vmatpush.bf16.msrb.mxu0 %v10851_v59  ;;  %3792 = vmatpush.bf16.msrb.mxu2 %v10852_v48  ;;  %v10862_v59 = vld [vmem:[#allocation64_spill] sm:$0xff]  ;;  %v10863_v48 = vld [vmem:[#allocation69_spill] sm:$0xff] }
 0x695   :  { %3778 = vmatpush.bf16.msrb.mxu1 %v10853_v58  ;;  %3804 = vmatpush.bf16.msrb.mxu3 %v10854_v35  ;;  %v10864_v58 = vld [vmem:[#allocation71_spill] sm:$0xff]  ;;  %v10865_v35 = vld [vmem:[#allocation66_spill] sm:$0xff] }
 0x697   :  { %3767 = vmatpush.bf16.msrb.mxu0 %v10855_v17  ;;  %3793 = vmatpush.bf16.msrb.mxu2 %v10856_v61  ;;  %v10866_v17 = vld [vmem:[#allocation68_spill] sm:$0xff]  ;;  %v10867_v61 = vld [vmem:[#allocation70_spill] sm:$0xff] }
 0x699   :  { %3779 = vmatpush.bf16.msrb.mxu1 %v10857_v49  ;;  %3805 = vmatpush.bf16.msrb.mxu3 %v10858_v57  ;;  %v10868_v49 = vld [vmem:[#allocation72_spill] sm:$0xff] }
 0x69b   :  { %3768 = vmatpush.bf16.msrb.mxu0 %v10859_v23  ;;  %3794 = vmatpush.bf16.msrb.mxu2 %v10860_v14 }
 0x69d   :  { %3780 = vmatpush.bf16.msrb.mxu1 %v10861_v33  ;;  %3806 = vmatpush.bf16.msrb.mxu3 %v10862_v59  ;;  %v10869_v33 = vld [vmem:[#allocation152_spill] sm:$0xff] }
 0x69f   :  { %3769 = vmatpush.bf16.msrb.mxu0 %v10863_v48  ;;  %3795 = vmatpush.bf16.msrb.mxu2 %v10864_v58  ;;  %v3373_v57 = vpop.f32.mrf.mxu0 }
 0x6a1   :  { %3781 = vmatpush.bf16.msrb.mxu1 %v10865_v35  ;;  %3807 = vmatpush.bf16.msrb.mxu3 %v10866_v17  ;;  %v10870_v35 = vld [vmem:[#allocation154_spill] sm:$0xff] }
 0x6a5   :  { %3782 = vmatpush.bf16.msrb.mxu1 %v10867_v61  ;;  %3808 = vmatpush.bf16.msrb.mxu3 %v10868_v49  ;;  %v3386_v23 = vpop.f32.mrf.mxu1  ;;  %v3399_v39 = vpop.f32.mrf.mxu2 }
 0x6a6   :  { %v3387_v14 = vadd.f32 %v3386_v23, %v3373_v57 }
 0x6a7   :  { %v3375_v47 = vpop.f32.mrf.mxu0 }
 0x6a8   :  { %v3572_v50 = vadd.f32 %v3387_v14, %v10869_v33 }
 0x6aa   :  { %v6033_v59 = vmul.f32 -1.442695, %v3572_v50  ;;  %v10871_v50 = vld [vmem:[#allocation160_spill] sm:$0xff] }
 0x6ab   :  { %v3412_v51 = vpop.f32.mrf.mxu3 }
 0x6ac   :  { %7044 = vpow2.f32 %v6033_v59  ;;  %v3413_v48 = vadd.f32 %v3412_v51, %v3399_v39 }
 0x6ad   :  { %v3388_v58 = vpop.f32.mrf.mxu1  ;;  %v3401_v1 = vpop.f32.mrf.mxu2 }
 0x6ae   :  { %v3573_v56 = vadd.f32 %v3413_v48, %v10870_v35 }
 0x6af   :  { %v3425_v17 = vpop.f32.mrf.mxu0 }
 0x6b0   :  { %v6034_v62 = vmul.f32 -1.442695, %v3573_v56 }
 0x6b2   :  { %v7045_v61 = vpop.eup %7044  ;;  %7046 = vpow2.f32 %v6034_v62 }
 0x6b3   :  { %v3586_v49 = vadd.f32 1.0, %v7045_v61  ;;  %v3414_v22 = vpop.f32.mrf.mxu3 }
 0x6b4   :  { %v10872_v22 = vld [vmem:[#allocation164_spill] sm:$0xff] }
 0x6b5   :  { %v3438_v54 = vpop.f32.mrf.mxu1  ;;  %v3451_v16 = vpop.f32.mrf.mxu2  ;;  %7048 = vrcp.f32 %v3586_v49  ;;  %v3597_v36 = vand.u32 2147483647, %v3586_v49  ;;  %vm3593_vm2 = vweird.f32 %v3586_v49 }
 0x6b6   :  { %v3439_v47 = vadd.f32 %v3438_v54, %v3425_v17 }
 0x6b7   :  { %v3427_v57 = vpop.f32.mrf.mxu0  ;;  %vm9438_vm4 = vcmp.eq.f32.partialorder %v3597_v36, 8.507059e+37 }
 0x6b8   :  { %v7047_v23 = vpop.eup %7046  ;;  %v3574_v14 = vadd.f32 %v3439_v47, %v10871_v50 }
 0x6b9   :  { %v9421_v33 = vadd.f32 1.0, %v7047_v23 }
 0x6ba   :  { %v6035_v51 = vmul.f32 -1.442695, %v3574_v14 }
 0x6bb   :  { %7050 = vrcp.f32 %v9421_v33  ;;  %v3464_v1 = vpop.f32.mrf.mxu3  ;;  %v7049_v39 = vpop.eup %7048  ;;  %vm3608_vm7 = vweird.f32 %v9421_v33  ;;  %v3612_v36 = vand.u32 2147483647, %v9421_v33 }
 0x6bc   :  { %7052 = vpow2.f32 %v6035_v51  ;;  %v3465_v56 = vadd.f32 %v3464_v1, %v3451_v16  ;;  %v3589_v58 = vmul.f32 %v7049_v39, %v3586_v49  ;;  %vm3594_vm1 = vweird.f32 %v7049_v39 }
 0x6bd   :  { %v3440_v62 = vpop.f32.mrf.mxu1  ;;  %v3453_v59 = vpop.f32.mrf.mxu2  ;;  %vm9434_vm3 = vmor %vm3593_vm2, %vm3594_vm1  ;;  %vm3613_vm12 = vcmp.eq.f32.partialorder %v3612_v36, 8.507059e+37 }
 0x6be   :  { %v3575_v48 = vadd.f32 %v3465_v56, %v10872_v22  ;;  %v3590_v47 = vsub.f32 1.0, %v3589_v58 }
 0x6bf   :  { %v3477_v35 = vpop.f32.mrf.mxu0 }
 0x6c0   :  { %v6036_v54 = vmul.f32 -1.442695, %v3575_v48  ;;  %v3591_v1 = vmul.f32 %v7049_v39, %v3590_v47  ;;  %v10873_v48 = vld [vmem:[#allocation197_spill] sm:$0xff] }
 0x6c1   :  { %v9425_v17 = vpop.eup %7050 }
 0x6c2   :  { %v7053_v61 = vpop.eup %7052  ;;  %7054 = vpow2.f32 %v6036_v54  ;;  %v3604_v50 = vmul.f32 %v9425_v17, %v9421_v33  ;;  %v3599_v54 = vand.u32 2147483648, %v3586_v49  ;;  %vm3609_vm5 = vweird.f32 %v9425_v17 }
 0x6c3   :  { %v3624_v57 = vadd.f32 1.0, %v7053_v61  ;;  %v3466_v23 = vpop.f32.mrf.mxu3  ;;  %v3592_v61 = vadd.f32 %v7049_v39, %v3591_v1  ;;  %vm9455_vm9 = vmor %vm3608_vm7, %vm3609_vm5 }
 0x6c4   :  { %v3605_v59 = vsub.f32 1.0, %v3604_v50 }
 0x6c5   :  { %7056 = vrcp.f32 %v3624_v57  ;;  %v3503_v14 = vpop.f32.mrf.mxu2  ;;  %v3490_v16 = vpop.f32.mrf.mxu1  ;;  %v3635_v49 = vand.u32 2147483647, %v3624_v57  ;;  %vm3631_vm8 = vweird.f32 %v3624_v57 }
 0x6c6   :  { %v3491_v51 = vadd.f32 %v3490_v16, %v3477_v35  ;;  %v3606_v35 = vmul.f32 %v9425_v17, %v3605_v59 }
 0x6c7   :  { %v3479_v62 = vpop.f32.mrf.mxu0  ;;  %vm3636_vm11 = vcmp.eq.f32.partialorder %v3635_v49, 8.507059e+37 }
 0x6c8   :  { %v7055_v56 = vpop.eup %7054  ;;  %v3576_v24 = vadd.f32 %v3491_v51, %v10873_v48  ;;  %v3637_v48 = vand.u32 2147483648, %v3624_v57 }
 0x6c9   :  { %v9429_v22 = vadd.f32 1.0, %v7055_v56  ;;  %v3600_v56 = vor.u32 1.1754944e-38, %v3599_v54  ;;  %v3614_v54 = vand.u32 2147483648, %v9421_v33 }
 0x6cb   :  { %v7057_v58 = vpop.eup %7056  ;;  %7058 = vrcp.f32 %v9429_v22  ;;  %v3516_v0 = vpop.f32.mrf.mxu3  ;;  %v3652_v51 = vand.u32 2147483648, %v9429_v22  ;;  %vm3646_vm14 = vweird.f32 %v9429_v22 }
 0x6cc   :  { %v3627_v23 = vmul.f32 %v7057_v58, %v3624_v57  ;;  %7060 = vtanh.f32 %v3576_v24  ;;  %v3517_v47 = vadd.f32 %v3516_v0, %v3503_v14  ;;  %v3596_v24 = vsel %vm9434_vm3, %v7049_v39, %v3592_v61 }
 0x6cd   :  { %v3505_v16 = vpop.f32.mrf.mxu2  ;;  %v3492_v1 = vpop.f32.mrf.mxu1  ;;  %vm3632_vm6 = vweird.f32 %v7057_v58  ;;  %v3607_v14 = vadd.f32 %v9425_v17, %v3606_v35 }
 0x6ce   :  { %v3628_v50 = vsub.f32 1.0, %v3627_v23  ;;  %v3577_v59 = vadd.f32 %v3517_v47, %v10878_v43  ;;  %v3601_v43 = vsel %vm9438_vm4, %v3600_v56, %v3596_v24  ;;  %vm3633_vm10 = vmor %vm3631_vm8, %vm3632_vm6  ;;  %v3638_v47 = vor.u32 1.1754944e-38, %v3637_v48 }
 0x6cf   :  { %v3611_v57 = vsel %vm9455_vm9, %v9425_v17, %v3607_v14  ;;  %v3615_v24 = vor.u32 1.1754944e-38, %v3614_v54  ;;  %v3650_v48 = vand.u32 2147483647, %v9429_v22  ;;  %v3653_v14 = vor.u32 1.1754944e-38, %v3652_v51 }
 0x6d0   :  { %v3629_v0 = vmul.f32 %v7057_v58, %v3628_v50  ;;  %7062 = vtanh.f32 %v3577_v59 }
 0x6d1   :  { %v7059_v23 = vpop.eup %7058  ;;  %vm3651_vm0 = vcmp.eq.f32.partialorder %v3650_v48, 8.507059e+37 }
 0x6d2   :  { %v7061_v16 = vpop.eup %7060  ;;  %v3642_v39 = vmul.f32 %v7059_v23, %v9429_v22  ;;  %v3630_v61 = vadd.f32 %v7057_v58, %v3629_v0  ;;  %vm3647_vm13 = vweird.f32 %v7059_v23 }
 0x6d3   :  { %v3698_v50 = vmul.f32 %v7061_v16, %v3601_v43  ;;  %v3518_v1 = vpop.f32.mrf.mxu3  ;;  %vm3648_vm15 = vmor %vm3646_vm14, %vm3647_vm13 }
 0x6d4   :  { %v3643_v62 = vsub.f32 1.0, %v3642_v39  ;;  %v3634_v33 = vsel %vm3633_vm10, %v7057_v58, %v3630_v61  ;;  %v3616_v39 = vsel %vm3613_vm12, %v3615_v24, %v3611_v57  ;;  %v10881_v57 = vld [vmem:[#allocation199_spill] sm:$0xff] }
 0x6d5   :  { %v3639_v56 = vsel %vm3636_vm11, %v3638_v47, %v3634_v33 }
 0x6d6   :  { %v3644_v59 = vmul.f32 %v7059_v23, %v3643_v62  ;;  %v3696_v0 = vmul.f32 %v3639_v56, %v9259_v31  ;;  %v7063_v16 = vpop.eup %7062 }
 0x6d7   :  { %v3699_v17 = vmul.f32 %v7063_v16, %v3616_v39 }
 0x6d8   :  { %v9466_v58 = vadd.f32 %v3698_v50, %v3696_v0  ;;  %v3645_v49 = vadd.f32 %v7059_v23, %v3644_v59 }
 0x6da   :  { %v3649_v43 = vsel %vm3648_vm15, %v7059_v23, %v3645_v49  ;;  %v10882_v23 = vld [vmem:[#allocation201_spill] sm:$0xff] }
 0x6db   :  { %v3654_v36 = vsel %vm3651_vm0, %v3653_v14, %v3649_v43 }
 0x6dc   :  { %v3697_v54 = vmul.f32 %v3654_v36, %v9262_v7 }
 0x6de   :  { %v9469_v35 = vadd.f32 %v3699_v17, %v3697_v54 }
 0x6df   :  { %v3529_v61 = vpop.f32.mrf.mxu0 }
 0x6e5   :  { %v3542_v31 = vpop.f32.mrf.mxu1  ;;  %v3555_v47 = vpop.f32.mrf.mxu2 }
 0x6e6   :  { %v3543_v62 = vadd.f32 %v3542_v31, %v3529_v61 }
 0x6e7   :  { %v3531_v33 = vpop.f32.mrf.mxu0 }
 0x6e8   :  { %v3578_v22 = vadd.f32 %v3543_v62, %v10881_v57 }
 0x6ea   :  { %v6037_v50 = vmul.f32 -1.442695, %v3578_v22 }
 0x6eb   :  { %v3568_v1 = vpop.f32.mrf.mxu3 }
 0x6ec   :  { %7064 = vpow2.f32 %v6037_v50  ;;  %v3569_v56 = vadd.f32 %v3568_v1, %v3555_v47 }
 0x6ed   :  { %v3544_v24 = vpop.f32.mrf.mxu1  ;;  %v3557_v51 = vpop.f32.mrf.mxu2 }
 0x6ee   :  { %v3579_v59 = vadd.f32 %v3569_v56, %v10882_v23 }
 0x6f0   :  { %v6038_v0 = vmul.f32 -1.442695, %v3579_v59 }
 0x6f2   :  { %v7065_v48 = vpop.eup %7064  ;;  %7066 = vpow2.f32 %v6038_v0 }
 0x6f3   :  { %v3664_v7 = vadd.f32 1.0, %v7065_v48  ;;  %v3570_v16 = vpop.f32.mrf.mxu3 }
 0x6f5   :  { %7068 = vrcp.f32 %v3664_v7  ;;  %v3677_v36 = vand.u32 2147483648, %v3664_v7  ;;  %v3675_v61 = vand.u32 2147483647, %v3664_v7  ;;  %vm3671_vm2 = vweird.f32 %v3664_v7 }
 0x6f7   :  { %v3678_v33 = vor.u32 1.1754944e-38, %v3677_v36  ;;  %vm3676_vm4 = vcmp.eq.f32.partialorder %v3675_v61, 8.507059e+37  ;;  %v6730_v36 = vld [vmem:[#allocation5 + $0x68] sm:$0xff]  ;;  %v6720_v61 = vld [vmem:[#allocation5 + $0x18] sm:$0xff] }
 0x6f8   :  { %v7067_v39 = vpop.eup %7066 }
 0x6f9   :  { %v3665_v49 = vadd.f32 1.0, %v7067_v39 }
 0x6fb   :  { %v7069_v17 = vpop.eup %7068  ;;  %7070 = vrcp.f32 %v3665_v49  ;;  %v3692_v56 = vand.u32 2147483648, %v3665_v49  ;;  %v3690_v23 = vand.u32 2147483647, %v3665_v49  ;;  %vm3686_vm6 = vweird.f32 %v3665_v49 }
 0x6fc   :  { %v3667_v14 = vmul.f32 %v7069_v17, %v3664_v7  ;;  %7072 = vtanh.f32 %v9466_v58  ;;  %vm3672_vm1 = vweird.f32 %v7069_v17 }
 0x6fd   :  { %vm3673_vm3 = vmor %vm3671_vm2, %vm3672_vm1  ;;  %7074 = vtanh.f32 %v9469_v35  ;;  %v3693_v48 = vor.u32 1.1754944e-38, %v3692_v56  ;;  %vm3691_vm8 = vcmp.eq.f32.partialorder %v3690_v23, 8.507059e+37  ;;  %v6734_v56 = vld [vmem:[#allocation5 + $0x88] sm:$0xff]  ;;  %v6717_v23 = vld [vmem:[#allocation5] sm:$0xff] }
 0x6fe   :  { %v3668_v43 = vsub.f32 1.0, %v3667_v14 }
 0x700   :  { %v3669_v54 = vmul.f32 %v7069_v17, %v3668_v43  ;;  %v6737_v43 = vld [vmem:[#allocation5 + $0xa0] sm:$0xff] }
 0x701   :  { %v7071_v31 = vpop.eup %7070 }
 0x702   :  { %v3670_v47 = vadd.f32 %v7069_v17, %v3669_v54  ;;  %v3682_v62 = vmul.f32 %v7071_v31, %v3665_v49  ;;  %v7073_v50 = vpop.eup %7072  ;;  %vm3687_vm5 = vweird.f32 %v7071_v31  ;;  %v6721_v49 = vld [vmem:[#allocation5 + $0x20] sm:$0xff]  ;;  %v6746_v54 = vld [vmem:[#allocation5 + $0xe8] sm:$0xff] }
 0x703   :  { %vm3688_vm7 = vmor %vm3686_vm6, %vm3687_vm5  ;;  %v7075_v16 = vpop.eup %7074 }
 0x704   :  { %v3674_v57 = vsel %vm3673_vm3, %v7069_v17, %v3670_v47  ;;  %v3683_v22 = vsub.f32 1.0, %v3682_v62  ;;  %v6729_v47 = vld [vmem:[#allocation5 + $0x60] sm:$0xff] }
 0x705   :  { %v3679_v1 = vsel %vm3676_vm4, %v3678_v33, %v3674_v57  ;;  %v6745_v62 = vld [vmem:[#allocation5 + $0xe0] sm:$0xff]  ;;  %v6719_v33 = vld [vmem:[#allocation5 + $0x10] sm:$0xff] }
 0x706   :  { %v3704_v24 = vmul.f32 %v7073_v50, %v3679_v1  ;;  %v3684_v51 = vmul.f32 %v7071_v31, %v3683_v22  ;;  %v6735_v57 = vld [vmem:[#allocation5 + $0x90] sm:$0xff]  ;;  %v6728_v22 = vld [vmem:[#allocation5 + $0x58] sm:$0xff]  ;;  %v6718_v1 = vld [vmem:[#allocation5 + $0x8] sm:$0xff] }
 0x707   :  { %v6744_v50 = vld [vmem:[#allocation5 + $0xd8] sm:$0xff] }
 0x708   :  { %v9475_v59 = vpack.c.bf16 %v3704_v24, %v3704_v24  ;;  %v3685_v0 = vadd.f32 %v7071_v31, %v3684_v51  ;;  %v6727_v24 = vld [vmem:[#allocation5 + $0x50] sm:$0xff] }
 0x709   :  { %v6743_v51 = vld [vmem:[#allocation5 + $0xd0] sm:$0xff] }
 0x70a   :  { %v3689_v7 = vsel %vm3688_vm7, %v7071_v31, %v3685_v0  ;;  %3718 = vmatmul.bf16.vlgmr.msra.gmra.mxu0 %v9475_v59  ;;  %3744 = vmatmul.bf16.vlgmr.msra.gmra.mxu2 %v9475_v59  ;;  %v6736_v31 = vld [vmem:[#allocation5 + $0x98] sm:$0xff]  ;;  %v6733_v0 = vld [vmem:[#allocation5 + $0x80] sm:$0xff] }
 0x70b   :  { %v3694_v39 = vsel %vm3691_vm8, %v3693_v48, %v3689_v7  ;;  %3814 = vmatpush.bf16.msra.mxu0 %v10209_v30  ;;  %3840 = vmatpush.bf16.msra.mxu2 %v10210_v42  ;;  %v10883_v30 = vld [vmem:[#allocation129_spill] sm:$0xff]  ;;  %v10884_v42 = vld [vmem:[#allocation135_spill] sm:$0xff]  ;;  %v6756_v48 = vld [vmem:[#allocation5 + $0x138] sm:$0xff] }
 0x70c   :  { %v3705_v17 = vmul.f32 %v7075_v16, %v3694_v39  ;;  %v6772_v7 = vld [vmem:[#allocation5 + $0x1b8] sm:$0xff]  ;;  %v6726_v16 = vld [vmem:[#allocation5 + $0x48] sm:$0xff] }
 0x70d   :  { %v6742_v39 = vld [vmem:[#allocation5 + $0xc8] sm:$0xff] }
 0x70e   :  { %v9481_v14 = vpack.c.bf16 %v3705_v17, %v3705_v17  ;;  %v6755_v17 = vld [vmem:[#allocation5 + $0x130] sm:$0xff] }
 0x70f   :  { %3815 = vmatpush.bf16.msra.mxu0 %v10212_v13  ;;  %3841 = vmatpush.bf16.msra.mxu2 %v10213_v5  ;;  %v10885_v13 = vld [vmem:[#allocation139_spill] sm:$0xff]  ;;  %v10886_v5 = vld [vmem:[#allocation132_spill] sm:$0xff] }
 0x710   :  { %3731 = vmatmul.bf16.vlgmr.msra.gmra.mxu1 %v9481_v14  ;;  %3757 = vmatmul.bf16.vlgmr.msra.gmra.mxu3 %v9481_v14 }
 0x711   :  { %3827 = vmatpush.bf16.msra.mxu1 %v10214_v27  ;;  %3853 = vmatpush.bf16.msra.mxu3 %v10215_v32  ;;  %v10887_v27 = vld [vmem:[#allocation134_spill] sm:$0xff]  ;;  %v10888_v32 = vld [vmem:[#allocation143_spill] sm:$0xff] }
 0x713   :  { %3816 = vmatpush.bf16.msra.mxu0 %v10216_v9  ;;  %3842 = vmatpush.bf16.msra.mxu2 %v10217_v3  ;;  %v10889_v9 = vld [vmem:[#allocation145_spill] sm:$0xff]  ;;  %v10890_v3 = vld [vmem:[#allocation138_spill] sm:$0xff] }
 0x715   :  { %3828 = vmatpush.bf16.msra.mxu1 %v10218_v45  ;;  %3854 = vmatpush.bf16.msra.mxu3 %v10219_v37  ;;  %v10891_v45 = vld [vmem:[#allocation142_spill] sm:$0xff]  ;;  %v10892_v37 = vld [vmem:[#allocation148_spill] sm:$0xff] }
 0x717   :  { %3817 = vmatpush.bf16.msra.mxu0 %v10220_v29  ;;  %3843 = vmatpush.bf16.msra.mxu2 %v10221_v19  ;;  %v10893_v29 = vld [vmem:[#allocation151_spill] sm:$0xff]  ;;  %v10894_v19 = vld [vmem:[#allocation144_spill] sm:$0xff] }
 0x719   :  { %3829 = vmatpush.bf16.msra.mxu1 %v10222_v28  ;;  %3855 = vmatpush.bf16.msra.mxu3 %v10223_v53  ;;  %v10895_v28 = vld [vmem:[#allocation146_spill] sm:$0xff]  ;;  %v10896_v53 = vld [vmem:[#allocation155_spill] sm:$0xff] }
 0x71a   :  { %3770 = vmatmul.bf16.vlgmr.msrb.gmra.mxu0 %v9475_v59  ;;  %3796 = vmatmul.bf16.vlgmr.msrb.gmra.mxu2 %v9475_v59 }
 0x71b   :  { %3818 = vmatpush.bf16.msra.mxu0 %v10224_v11  ;;  %3844 = vmatpush.bf16.msra.mxu2 %v10225_v20  ;;  %v10897_v11 = vld [vmem:[#allocation157_spill] sm:$0xff]  ;;  %v10898_v20 = vld [vmem:[#allocation150_spill] sm:$0xff] }
 0x71d   :  { %3830 = vmatpush.bf16.msra.mxu1 %v10226_v41  ;;  %3856 = vmatpush.bf16.msra.mxu3 %v10227_v46  ;;  %v10899_v41 = vld [vmem:[#allocation153_spill] sm:$0xff]  ;;  %v10900_v46 = vld [vmem:[#allocation159_spill] sm:$0xff] }
 0x71f   :  { %3819 = vmatpush.bf16.msra.mxu0 %v10228_v8  ;;  %3845 = vmatpush.bf16.msra.mxu2 %v10229_v63  ;;  %v10901_v8 = vld [vmem:[#allocation163_spill] sm:$0xff]  ;;  %v6724_v63 = vld [vmem:[#allocation5 + $0x38] sm:$0xff] }
 0x720   :  { %3783 = vmatmul.bf16.vlgmr.msrb.gmra.mxu1 %v9481_v14  ;;  %3809 = vmatmul.bf16.vlgmr.msrb.gmra.mxu3 %v9481_v14 }
 0x721   :  { %3831 = vmatpush.bf16.msra.mxu1 %v10329_v2  ;;  %3857 = vmatpush.bf16.msra.mxu3 %v10330_v15  ;;  %v6740_v2 = vld [vmem:[#allocation5 + $0xb8] sm:$0xff] }
 0x722   :  { %v10902_v15 = vld [vmem:[#allocation156_spill] sm:$0xff] }
 0x723   :  { %3820 = vmatpush.bf16.msra.mxu0 %v10331_v40  ;;  %3846 = vmatpush.bf16.msra.mxu2 %v10332_v12  ;;  %v10903_v40 = vld [vmem:[#allocation158_spill] sm:$0xff]  ;;  %v10904_v12 = vld [vmem:[#allocation167_spill] sm:$0xff] }
 0x725   :  { %3832 = vmatpush.bf16.msra.mxu1 %v10333_v44  ;;  %3858 = vmatpush.bf16.msra.mxu3 %v10334_v38  ;;  %v10905_v44 = vld [vmem:[#allocation169_spill] sm:$0xff]  ;;  %v6723_v38 = vld [vmem:[#allocation5 + $0x30] sm:$0xff] }
 0x727   :  { %3821 = vmatpush.bf16.msra.mxu0 %v10335_v21  ;;  %3847 = vmatpush.bf16.msra.mxu2 %v10336_v26  ;;  %v6739_v21 = vld [vmem:[#allocation5 + $0xb0] sm:$0xff]  ;;  %v10906_v26 = vld [vmem:[#allocation162_spill] sm:$0xff] }
 0x729   :  { %3833 = vmatpush.bf16.msra.mxu1 %v10339_v60  ;;  %3859 = vmatpush.bf16.msra.mxu3 %v10340_v55  ;;  %v6748_v60 = vld [vmem:[#allocation5 + $0xf8] sm:$0xff] }
 0x72a   :  { %3822 = vmatmul.bf16.vlgmr.msra.gmra.mxu0 %v9475_v59  ;;  %3848 = vmatmul.bf16.vlgmr.msra.gmra.mxu2 %v9475_v59  ;;  %v10908_v55 = vld [vmem:[#allocation168_spill] sm:$0xff] }
 0x72b   :  { %3866 = vmatpush.bf16.msrb.mxu0 %v10337_v18  ;;  %3892 = vmatpush.bf16.msrb.mxu2 %v10338_v34  ;;  %v10907_v18 = vld [vmem:[#allocation166_spill] sm:$0xff]  ;;  %v6732_v34 = vld [vmem:[#allocation5 + $0x78] sm:$0xff] }
 0x72d   :  { %3834 = vmatpush.bf16.msra.mxu1 %v10343_v4  ;;  %3860 = vmatpush.bf16.msra.mxu3 %v10344_v6  ;;  %v6738_v4 = vld [vmem:[#allocation5 + $0xa8] sm:$0xff]  ;;  %v6731_v6 = vld [vmem:[#allocation5 + $0x70] sm:$0xff] }
 0x72f   :  { %3867 = vmatpush.bf16.msrb.mxu0 %v10341_v52  ;;  %3893 = vmatpush.bf16.msrb.mxu2 %v10342_v10  ;;  %v10909_v52 = vld [vmem:[#allocation170_spill] sm:$0xff] }
 0x730   :  { %3835 = vmatmul.bf16.vlgmr.msra.gmra.mxu1 %v9481_v14  ;;  %3861 = vmatmul.bf16.vlgmr.msra.gmra.mxu3 %v9481_v14  ;;  %v6722_v10 = vld [vmem:[#allocation5 + $0x28] sm:$0xff] }
 0x731   :  { %3879 = vmatpush.bf16.msrb.mxu1 %v10777_v25  ;;  %3905 = vmatpush.bf16.msrb.mxu3 %v10883_v30  ;;  %v6747_v25 = vld [vmem:[#allocation5 + $0xf0] sm:$0xff] }
 0x732   :  { %v6771_v30 = vld [vmem:[#allocation5 + $0x1b0] sm:$0xff] }
 0x733   :  { %3868 = vmatpush.bf16.msrb.mxu0 %v10884_v42  ;;  %3894 = vmatpush.bf16.msrb.mxu2 %v10885_v13  ;;  %v6725_v42 = vld [vmem:[#allocation5 + $0x40] sm:$0xff] }
 0x734   :  { %v6741_v13 = vld [vmem:[#allocation5 + $0xc0] sm:$0xff] }
 0x735   :  { %3880 = vmatpush.bf16.msrb.mxu1 %v10886_v5  ;;  %3906 = vmatpush.bf16.msrb.mxu3 %v10887_v27  ;;  %v10910_v5 = vld [vmem:[#allocation73_spill] sm:$0xff]  ;;  %v10911_v27 = vld [vmem:[#allocation82_spill] sm:$0xff] }
 0x737   :  { %3869 = vmatpush.bf16.msrb.mxu0 %v10888_v32  ;;  %3895 = vmatpush.bf16.msrb.mxu2 %v10889_v9  ;;  %v6764_v32 = vld [vmem:[#allocation5 + $0x178] sm:$0xff] }
 0x738   :  { %v6780_v9 = vld [vmem:[#allocation5 + $0x1f8] sm:$0xff] }
 0x739   :  { %3881 = vmatpush.bf16.msrb.mxu1 %v10890_v3  ;;  %3907 = vmatpush.bf16.msrb.mxu3 %v10891_v45  ;;  %v6754_v3 = vld [vmem:[#allocation5 + $0x128] sm:$0xff] }
 0x73a   :  { %v6770_v45 = vld [vmem:[#allocation5 + $0x1a8] sm:$0xff] }
 0x73b   :  { %3870 = vmatpush.bf16.msrb.mxu0 %v10892_v37  ;;  %3896 = vmatpush.bf16.msrb.mxu2 %v10893_v29  ;;  %v6763_v37 = vld [vmem:[#allocation5 + $0x170] sm:$0xff] }
 0x73c   :  { %v6779_v29 = vld [vmem:[#allocation5 + $0x1f0] sm:$0xff] }
 0x73d   :  { %3882 = vmatpush.bf16.msrb.mxu1 %v10894_v19  ;;  %3908 = vmatpush.bf16.msrb.mxu3 %v10895_v28  ;;  %v10912_v19 = vld [vmem:[#allocation74_spill] sm:$0xff]  ;;  %v10913_v28 = vld [vmem:[#allocation84_spill] sm:$0xff] }
 0x73f   :  { %3871 = vmatpush.bf16.msrb.mxu0 %v10896_v53  ;;  %3897 = vmatpush.bf16.msrb.mxu2 %v10897_v11  ;;  %v6753_v53 = vld [vmem:[#allocation5 + $0x120] sm:$0xff] }
 0x740   :  { %v6769_v11 = vld [vmem:[#allocation5 + $0x1a0] sm:$0xff] }
 0x741   :  { %3883 = vmatpush.bf16.msrb.mxu1 %v10898_v20  ;;  %3909 = vmatpush.bf16.msrb.mxu3 %v10899_v41  ;;  %v6762_v20 = vld [vmem:[#allocation5 + $0x168] sm:$0xff] }
 0x742   :  { %v6778_v41 = vld [vmem:[#allocation5 + $0x1e8] sm:$0xff] }
 0x743   :  { %3872 = vmatpush.bf16.msrb.mxu0 %v10900_v46  ;;  %3898 = vmatpush.bf16.msrb.mxu2 %v10901_v8  ;;  %v6752_v46 = vld [vmem:[#allocation5 + $0x118] sm:$0xff] }
 0x744   :  { %v6768_v8 = vld [vmem:[#allocation5 + $0x198] sm:$0xff] }
 0x745   :  { %3884 = vmatpush.bf16.msrb.mxu1 %v10902_v15  ;;  %3910 = vmatpush.bf16.msrb.mxu3 %v10903_v40  ;;  %v6751_v15 = vld [vmem:[#allocation5 + $0x110] sm:$0xff] }
 0x746   :  { %v6767_v40 = vld [vmem:[#allocation5 + $0x190] sm:$0xff] }
 0x747   :  { %3873 = vmatpush.bf16.msrb.mxu0 %v10904_v12  ;;  %3899 = vmatpush.bf16.msrb.mxu2 %v10905_v44  ;;  %v6760_v12 = vld [vmem:[#allocation5 + $0x158] sm:$0xff] }
 0x748   :  { %v6776_v44 = vld [vmem:[#allocation5 + $0x1d8] sm:$0xff] }
 0x749   :  { %3885 = vmatpush.bf16.msrb.mxu1 %v10906_v26  ;;  %3911 = vmatpush.bf16.msrb.mxu3 %v10907_v18  ;;  %v6759_v26 = vld [vmem:[#allocation5 + $0x150] sm:$0xff] }
 0x74a   :  { %3874 = vmatmul.bf16.vlgmr.msrb.gmra.mxu0 %v9475_v59  ;;  %3900 = vmatmul.bf16.vlgmr.msrb.gmra.mxu2 %v9475_v59  ;;  %v6775_v18 = vld [vmem:[#allocation5 + $0x1d0] sm:$0xff] }
 0x74b   :  { %5110 = vmatpush.bf16.msra.mxu0 %v6724_v63  ;;  %5136 = vmatpush.bf16.msra.mxu2 %v6740_v2  ;;  %v6761_v63 = vld [vmem:[#allocation5 + $0x160] sm:$0xff] }
 0x74c   :  { %v6777_v2 = vld [vmem:[#allocation5 + $0x1e0] sm:$0xff] }
 0x74d   :  { %3886 = vmatpush.bf16.msrb.mxu1 %v10908_v55  ;;  %3912 = vmatpush.bf16.msrb.mxu3 %v10909_v52  ;;  %v6788_v55 = vld [vmem:[#allocation5 + $0x238] sm:$0xff] }
 0x74e   :  { %v6804_v52 = vld [vmem:[#allocation5 + $0x2b8] sm:$0xff] }
 0x74f   :  { %5111 = vmatpush.bf16.msra.mxu0 %v6723_v38  ;;  %5137 = vmatpush.bf16.msra.mxu2 %v6739_v21  ;;  %v6750_v38 = vld [vmem:[#allocation5 + $0x108] sm:$0xff] }
 0x750   :  { %3887 = vmatmul.bf16.vlgmr.msrb.gmra.mxu1 %v9481_v14  ;;  %3913 = vmatmul.bf16.vlgmr.msrb.gmra.mxu3 %v9481_v14  ;;  %v6766_v21 = vld [vmem:[#allocation5 + $0x188] sm:$0xff] }
 0x751   :  { %5123 = vmatpush.bf16.msra.mxu1 %v6732_v34  ;;  %5149 = vmatpush.bf16.msra.mxu3 %v6748_v60  ;;  %v6749_v34 = vld [vmem:[#allocation5 + $0x100] sm:$0xff] }
 0x752   :  { %v6765_v60 = vld [vmem:[#allocation5 + $0x180] sm:$0xff] }
 0x753   :  { %5112 = vmatpush.bf16.msra.mxu0 %v6722_v10  ;;  %5138 = vmatpush.bf16.msra.mxu2 %v6738_v4  ;;  %v6758_v10 = vld [vmem:[#allocation5 + $0x148] sm:$0xff] }
 0x754   :  { %v6774_v4 = vld [vmem:[#allocation5 + $0x1c8] sm:$0xff] }
 0x755   :  { %5124 = vmatpush.bf16.msra.mxu1 %v6731_v6  ;;  %5150 = vmatpush.bf16.msra.mxu3 %v6747_v25  ;;  %v6787_v6 = vld [vmem:[#allocation5 + $0x230] sm:$0xff] }
 0x756   :  { %v6803_v25 = vld [vmem:[#allocation5 + $0x2b0] sm:$0xff] }
 0x757   :  { %5113 = vmatpush.bf16.msra.mxu0 %v6721_v49  ;;  %5139 = vmatpush.bf16.msra.mxu2 %v6737_v43  ;;  %v6757_v49 = vld [vmem:[#allocation5 + $0x140] sm:$0xff] }
 0x758   :  { %v6773_v43 = vld [vmem:[#allocation5 + $0x1c0] sm:$0xff] }
 0x759   :  { %5125 = vmatpush.bf16.msra.mxu1 %v6730_v36  ;;  %5151 = vmatpush.bf16.msra.mxu3 %v6746_v54  ;;  %v10914_v36 = vld [vmem:[#allocation75_spill] sm:$0xff] }
 0x75a   :  { %v10915_v54 = vld [vmem:[#allocation79_spill] sm:$0xff] }
 0x75b   :  { %5114 = vmatpush.bf16.msra.mxu0 %v6720_v61  ;;  %5140 = vmatpush.bf16.msra.mxu2 %v6736_v31  ;;  %v6796_v61 = vld [vmem:[#allocation5 + $0x278] sm:$0xff] }
 0x75c   :  { %v6812_v31 = vld [vmem:[#allocation5 + $0x2f8] sm:$0xff] }
 0x75d   :  { %5126 = vmatpush.bf16.msra.mxu1 %v6729_v47  ;;  %5152 = vmatpush.bf16.msra.mxu3 %v6745_v62  ;;  %v6786_v47 = vld [vmem:[#allocation5 + $0x228] sm:$0xff] }
 0x75e   :  { %v6802_v62 = vld [vmem:[#allocation5 + $0x2a8] sm:$0xff] }
 0x75f   :  { %5115 = vmatpush.bf16.msra.mxu0 %v6719_v33  ;;  %5141 = vmatpush.bf16.msra.mxu2 %v6735_v57  ;;  %v6795_v57 = vld [vmem:[#allocation5 + $0x270] sm:$0xff] }
 0x761   :  { %5127 = vmatpush.bf16.msra.mxu1 %v6728_v22  ;;  %5153 = vmatpush.bf16.msra.mxu3 %v6744_v50  ;;  %v6811_v22 = vld [vmem:[#allocation5 + $0x2f0] sm:$0xff]  ;;  %v10916_v50 = vld [vmem:[#allocation77_spill] sm:$0xff] }
 0x763   :  { %5116 = vmatpush.bf16.msra.mxu0 %v6718_v1  ;;  %5142 = vmatpush.bf16.msra.mxu2 %v6734_v56  ;;  %v10917_v1 = vld [vmem:[#allocation81_spill] sm:$0xff] }
 0x764   :  { %v6785_v56 = vld [vmem:[#allocation5 + $0x220] sm:$0xff] }
 0x765   :  { %5128 = vmatpush.bf16.msra.mxu1 %v6727_v24  ;;  %5154 = vmatpush.bf16.msra.mxu3 %v6743_v51  ;;  %v6801_v24 = vld [vmem:[#allocation5 + $0x2a0] sm:$0xff]  ;;  %v6794_v51 = vld [vmem:[#allocation5 + $0x268] sm:$0xff] }
 0x767   :  { %5117 = vmatpush.bf16.msra.mxu0 %v6717_v23  ;;  %5143 = vmatpush.bf16.msra.mxu2 %v6733_v0  ;;  %v6810_v23 = vld [vmem:[#allocation5 + $0x2e8] sm:$0xff] }
 0x769   :  { %5129 = vmatpush.bf16.msra.mxu1 %v6726_v16  ;;  %5155 = vmatpush.bf16.msra.mxu3 %v6742_v39  ;;  %v10919_v16 = vld [vmem:[#allocation161_spill] sm:$0xff] }
 0x76a   :  { %5118 = vmatmul.bf16.vlgmr.msra.gmra.mxu0 %v10910_v5  ;;  %5144 = vmatmul.bf16.vlgmr.msra.gmra.mxu2 %v10911_v27  ;;  %v6793_v5 = vld [vmem:[#allocation5 + $0x260] sm:$0xff] }
 0x76b   :  { %5162 = vmatpush.bf16.msrb.mxu0 %v6756_v48  ;;  %5188 = vmatpush.bf16.msrb.mxu2 %v6772_v7  ;;  %v10918_v7 = vld [vmem:[#allocation91_spill] sm:$0xff]  ;;  %v6809_v27 = vld [vmem:[#allocation5 + $0x2e0] sm:$0xff] }
 0x76c   :  { %v315_v39 = vadd.f32 %v10919_v16, %v10918_v7  ;;  %v6827_v16 = vld [vmem:[#allocation5 + $0x370] sm:$0xff] }
 0x76d   :  { %5130 = vmatpush.bf16.msra.mxu1 %v6725_v42  ;;  %5156 = vmatpush.bf16.msra.mxu3 %v6741_v13  ;;  %v6800_v42 = vld [vmem:[#allocation5 + $0x298] sm:$0xff] }
 0x76f   :  { %5163 = vmatpush.bf16.msrb.mxu0 %v6755_v17  ;;  %5189 = vmatpush.bf16.msrb.mxu2 %v6771_v30  ;;  %v6784_v30 = vld [vmem:[#allocation5 + $0x218] sm:$0xff] }
 0x770   :  { %5131 = vmatmul.bf16.vlgmr.msra.gmra.mxu1 %v10912_v19  ;;  %5157 = vmatmul.bf16.vlgmr.msra.gmra.mxu3 %v10913_v28  ;;  %v6808_v19 = vld [vmem:[#allocation5 + $0x2d8] sm:$0xff]  ;;  %v10920_v28 = vld [vmem:[#allocation97_spill] sm:$0xff] }
 0x771   :  { %5175 = vmatpush.bf16.msrb.mxu1 %v6764_v32  ;;  %5201 = vmatpush.bf16.msrb.mxu3 %v6780_v9 }
 0x773   :  { %5164 = vmatpush.bf16.msrb.mxu0 %v6754_v3  ;;  %5190 = vmatpush.bf16.msrb.mxu2 %v6770_v45  ;;  %v6783_v3 = vld [vmem:[#allocation5 + $0x210] sm:$0xff] }
 0x774   :  { %v6799_v45 = vld [vmem:[#allocation5 + $0x290] sm:$0xff] }
 0x775   :  { %5176 = vmatpush.bf16.msrb.mxu1 %v6763_v37  ;;  %5202 = vmatpush.bf16.msrb.mxu3 %v6779_v29  ;;  %v6792_v29 = vld [vmem:[#allocation5 + $0x258] sm:$0xff] }
 0x777   :  { %5165 = vmatpush.bf16.msrb.mxu0 %v6753_v53  ;;  %5191 = vmatpush.bf16.msrb.mxu2 %v6769_v11  ;;  %v10921_v53 = vld [vmem:[#allocation165_spill] sm:$0xff] }
 0x778   :  { %v344_v11 = vadd.f32 %v10921_v53, %v10920_v28  ;;  %v6816_v53 = vld [vmem:[#allocation5 + $0x318] sm:$0xff] }
 0x779   :  { %5177 = vmatpush.bf16.msrb.mxu1 %v6762_v20  ;;  %5203 = vmatpush.bf16.msrb.mxu3 %v6778_v41 }
 0x77b   :  { %5166 = vmatpush.bf16.msrb.mxu0 %v6752_v46  ;;  %5192 = vmatpush.bf16.msrb.mxu2 %v6768_v8 }
 0x77d   :  { %5178 = vmatpush.bf16.msrb.mxu1 %v6761_v63  ;;  %5204 = vmatpush.bf16.msrb.mxu3 %v6777_v2  ;;  %v6782_v63 = vld [vmem:[#allocation5 + $0x208] sm:$0xff] }
 0x77e   :  { %v6798_v2 = vld [vmem:[#allocation5 + $0x288] sm:$0xff] }
 0x77f   :  { %5167 = vmatpush.bf16.msrb.mxu0 %v6751_v15  ;;  %5193 = vmatpush.bf16.msrb.mxu2 %v6767_v40  ;;  %v6791_v40 = vld [vmem:[#allocation5 + $0x250] sm:$0xff] }
 0x781   :  { %5179 = vmatpush.bf16.msrb.mxu1 %v6760_v12  ;;  %5205 = vmatpush.bf16.msrb.mxu3 %v6776_v44  ;;  %v6807_v12 = vld [vmem:[#allocation5 + $0x2d0] sm:$0xff] }
 0x783   :  { %5168 = vmatpush.bf16.msrb.mxu0 %v6750_v38  ;;  %5194 = vmatpush.bf16.msrb.mxu2 %v6766_v21  ;;  %v6781_v21 = vld [vmem:[#allocation5 + $0x200] sm:$0xff] }
 0x785   :  { %5180 = vmatpush.bf16.msrb.mxu1 %v6759_v26  ;;  %5206 = vmatpush.bf16.msrb.mxu3 %v6775_v18  ;;  %v6797_v26 = vld [vmem:[#allocation5 + $0x280] sm:$0xff] }
 0x787   :  { %5169 = vmatpush.bf16.msrb.mxu0 %v6749_v34  ;;  %5195 = vmatpush.bf16.msrb.mxu2 %v6765_v60  ;;  %v3719_v33 = vpop.f32.mrf.mxu0  ;;  %v6820_v60 = vld [vmem:[#allocation5 + $0x338] sm:$0xff] }
 0x789   :  { %5181 = vmatpush.bf16.msrb.mxu1 %v6758_v10  ;;  %5207 = vmatpush.bf16.msrb.mxu3 %v6774_v4 }
 0x78a   :  { %5170 = vmatmul.bf16.vlgmr.msrb.gmra.mxu0 %v10914_v36  ;;  %5196 = vmatmul.bf16.vlgmr.msrb.gmra.mxu2 %v10915_v54  ;;  %v6819_v54 = vld [vmem:[#allocation5 + $0x330] sm:$0xff] }
 0x78b   :  { %5214 = vmatpush.bf16.msra.mxu0 %v6788_v55  ;;  %5240 = vmatpush.bf16.msra.mxu2 %v6804_v52  ;;  %v6790_v55 = vld [vmem:[#allocation5 + $0x248] sm:$0xff] }
 0x78c   :  { %v6806_v52 = vld [vmem:[#allocation5 + $0x2c8] sm:$0xff] }
 0x78d   :  { %5182 = vmatpush.bf16.msrb.mxu1 %v6757_v49  ;;  %5208 = vmatpush.bf16.msrb.mxu3 %v6773_v43  ;;  %v3732_v0 = vpop.f32.mrf.mxu1  ;;  %v3745_v48 = vpop.f32.mrf.mxu2 }
 0x78e   :  { %v3733_v17 = vadd.f32 %v3732_v0, %v3719_v33  ;;  %v6828_v33 = vld [vmem:[#allocation5 + $0x378] sm:$0xff] }
 0x78f   :  { %5215 = vmatpush.bf16.msra.mxu0 %v6787_v6  ;;  %5241 = vmatpush.bf16.msra.mxu2 %v6803_v25  ;;  %v3721_v13 = vpop.f32.mrf.mxu0  ;;  %v10922_v6 = vld [vmem:[#allocation105_spill] sm:$0xff]  ;;  %v10923_v25 = vld [vmem:[#allocation171_spill] sm:$0xff]  ;;  %v10927_v0 = vld [vmem:[#allocation172_spill] sm:$0xff] }
 0x790   :  { %5183 = vmatmul.bf16.vlgmr.msrb.gmra.mxu1 %v10916_v50  ;;  %5209 = vmatmul.bf16.vlgmr.msrb.gmra.mxu3 %v10917_v1  ;;  %v3918_v32 = vadd.f32 %v3733_v17, %v315_v39  ;;  %v373_v49 = vadd.f32 %v10923_v25, %v10922_v6  ;;  %v10925_v50 = vld [vmem:[#allocation87_spill] sm:$0xff]  ;;  %v6814_v25 = vld [vmem:[#allocation5 + $0x308] sm:$0xff] }
 0x791   :  { %5227 = vmatpush.bf16.msra.mxu1 %v6796_v61  ;;  %5253 = vmatpush.bf16.msra.mxu3 %v6812_v31  ;;  %v6789_v61 = vld [vmem:[#allocation5 + $0x240] sm:$0xff] }
 0x792   :  { %v6039_v9 = vmul.f32 -1.442695, %v3918_v32  ;;  %v6817_v32 = vld [vmem:[#allocation5 + $0x320] sm:$0xff] }
 0x793   :  { %5216 = vmatpush.bf16.msra.mxu0 %v6786_v47  ;;  %5242 = vmatpush.bf16.msra.mxu2 %v6802_v62  ;;  %v3758_v37 = vpop.f32.mrf.mxu3  ;;  %v6805_v62 = vld [vmem:[#allocation5 + $0x2c0] sm:$0xff] }
 0x794   :  { %7076 = vpow2.f32 %v6039_v9  ;;  %v3759_v20 = vadd.f32 %v3758_v37, %v3745_v48 }
 0x795   :  { %5228 = vmatpush.bf16.msra.mxu1 %v6795_v57  ;;  %5254 = vmatpush.bf16.msra.mxu3 %v6811_v22  ;;  %v3734_v41 = vpop.f32.mrf.mxu1  ;;  %v3747_v46 = vpop.f32.mrf.mxu2  ;;  %v10924_v22 = vld [vmem:[#allocation76_spill] sm:$0xff] }
 0x796   :  { %v3919_v8 = vadd.f32 %v3759_v20, %v344_v11  ;;  %v6825_v20 = vld [vmem:[#allocation5 + $0x360] sm:$0xff] }
 0x797   :  { %5217 = vmatpush.bf16.msra.mxu0 %v6785_v56  ;;  %5243 = vmatpush.bf16.msra.mxu2 %v6801_v24  ;;  %v3771_v15 = vpop.f32.mrf.mxu0  ;;  %v6818_v24 = vld [vmem:[#allocation5 + $0x328] sm:$0xff] }
 0x798   :  { %v6040_v44 = vmul.f32 -1.442695, %v3919_v8  ;;  %v10930_v8 = vld [vmem:[#allocation175_spill] sm:$0xff] }
 0x799   :  { %5229 = vmatpush.bf16.msra.mxu1 %v6794_v51  ;;  %5255 = vmatpush.bf16.msra.mxu3 %v6810_v23  ;;  %v10926_v23 = vld [vmem:[#allocation106_spill] sm:$0xff] }
 0x79a   :  { %v7077_v38 = vpop.eup %7076  ;;  %7078 = vpow2.f32 %v6040_v44  ;;  %v402_v48 = vadd.f32 %v10927_v0, %v10926_v23  ;;  %v6815_v44 = vld [vmem:[#allocation5 + $0x310] sm:$0xff] }
 0x79b   :  { %5218 = vmatpush.bf16.msra.mxu0 %v6784_v30  ;;  %5244 = vmatpush.bf16.msra.mxu2 %v6800_v42  ;;  %v9571_v18 = vadd.f32 1.0, %v7077_v38  ;;  %v3760_v34 = vpop.f32.mrf.mxu3  ;;  %v10928_v42 = vld [vmem:[#allocation78_spill] sm:$0xff] }
 0x79d   :  { %5230 = vmatpush.bf16.msra.mxu1 %v6793_v5  ;;  %5256 = vmatpush.bf16.msra.mxu3 %v6809_v27  ;;  %v3784_v10 = vpop.f32.mrf.mxu1  ;;  %v3797_v4 = vpop.f32.mrf.mxu2  ;;  %7080 = vrcp.f32 %v9571_v18  ;;  %v10929_v5 = vld [vmem:[#allocation89_spill] sm:$0xff]  ;;  %vm3939_vm10 = vweird.f32 %v9571_v18 }
 0x79e   :  { %v3785_v43 = vadd.f32 %v3784_v10, %v3771_v15  ;;  %v3945_v10 = vand.u32 2147483648, %v9571_v18 }
 0x79f   :  { %5219 = vmatpush.bf16.msra.mxu0 %v6783_v3  ;;  %5245 = vmatpush.bf16.msra.mxu2 %v6799_v45  ;;  %v3773_v36 = vpop.f32.mrf.mxu0  ;;  %v6826_v3 = vld [vmem:[#allocation5 + $0x368] sm:$0xff] }
 0x7a0   :  { %v7079_v31 = vpop.eup %7078  ;;  %v3920_v47 = vadd.f32 %v3785_v43, %v373_v49 }
 0x7a1   :  { %5231 = vmatpush.bf16.msra.mxu1 %v6792_v29  ;;  %5257 = vmatpush.bf16.msra.mxu3 %v6808_v19  ;;  %v9576_v57 = vadd.f32 1.0, %v7079_v31  ;;  %v10933_v31 = vld [vmem:[#allocation202_spill] sm:$0xff] }
 0x7a2   :  { %v6041_v1 = vmul.f32 -1.442695, %v3920_v47 }
 0x7a3   :  { %5220 = vmatpush.bf16.msra.mxu0 %v6782_v63  ;;  %5246 = vmatpush.bf16.msra.mxu2 %v6798_v2  ;;  %7082 = vrcp.f32 %v9576_v57  ;;  %v3810_v56 = vpop.f32.mrf.mxu3  ;;  %v9581_v51 = vpop.eup %7080  ;;  %v10931_v63 = vld [vmem:[#allocation200_spill] sm:$0xff]  ;;  %vm3954_vm15 = vweird.f32 %v9576_v57 }
 0x7a4   :  { %7084 = vpow2.f32 %v6041_v1  ;;  %v3811_v7 = vadd.f32 %v3810_v56, %v3797_v4  ;;  %v3935_v13 = vmul.f32 %v9581_v51, %v9571_v18  ;;  %v431_v2 = vadd.f32 %v10931_v63, %v10930_v8  ;;  %v6838_v56 = vld [vmem:[#allocation5 + $0x3c8] sm:$0xff] }
 0x7a5   :  { %5232 = vmatpush.bf16.msra.mxu1 %v6791_v40  ;;  %5258 = vmatpush.bf16.msra.mxu3 %v6807_v12  ;;  %v3786_v39 = vpop.f32.mrf.mxu1  ;;  %v3799_v17 = vpop.f32.mrf.mxu2  ;;  %vm3940_vm9 = vweird.f32 %v9581_v51 }
 0x7a6   :  { %v3921_v30 = vadd.f32 %v3811_v7, %v402_v48  ;;  %v3936_v29 = vsub.f32 1.0, %v3935_v13  ;;  %vm9616_vm11 = vmor %vm3939_vm10, %vm3940_vm9  ;;  %v6813_v7 = vld [vmem:[#allocation5 + $0x300] sm:$0xff] }
 0x7a7   :  { %5221 = vmatpush.bf16.msra.mxu0 %v6781_v21  ;;  %5247 = vmatpush.bf16.msra.mxu2 %v6797_v26  ;;  %v3823_v27 = vpop.f32.mrf.mxu0  ;;  %v6824_v26 = vld [vmem:[#allocation5 + $0x358] sm:$0xff] }
 0x7a8   :  { %v6042_v9 = vmul.f32 -1.442695, %v3921_v30  ;;  %v3937_v40 = vmul.f32 %v9581_v51, %v3936_v29 }
 0x7a9   :  { %5233 = vmatpush.bf16.msra.mxu1 %v6790_v55  ;;  %5259 = vmatpush.bf16.msra.mxu3 %v6806_v52  ;;  %v9589_v45 = vpop.eup %7082  ;;  %v6836_v55 = vld [vmem:[#allocation5 + $0x3b8] sm:$0xff]  ;;  %v3943_v52 = vand.u32 2147483647, %v9571_v18 }
 0x7aa   :  { %5222 = vmatmul.bf16.vlgmr.msra.gmra.mxu0 %v10924_v22  ;;  %5248 = vmatmul.bf16.vlgmr.msra.gmra.mxu2 %v10925_v50  ;;  %v7085_v37 = vpop.eup %7084  ;;  %7086 = vpow2.f32 %v6042_v9  ;;  %v3950_v11 = vmul.f32 %v9589_v45, %v9576_v57  ;;  %v3938_v6 = vadd.f32 %v9581_v51, %v3937_v40  ;;  %v6835_v22 = vld [vmem:[#allocation5 + $0x3b0] sm:$0xff]  ;;  %vm3955_vm13 = vweird.f32 %v9589_v45 }
 0x7ab   :  { %5266 = vmatpush.bf16.msrb.mxu0 %v6820_v60  ;;  %v9591_v19 = vadd.f32 1.0, %v7085_v37  ;;  %v3812_v28 = vpop.f32.mrf.mxu3  ;;  %5292 = vmatpush.bf16.msrb.mxu2 %v6836_v55  ;;  %vm9620_vm12 = vcmp.eq.f32.partialorder %v3943_v52, 8.507059e+37  ;;  %vm9643_vm1 = vmor %vm3954_vm15, %vm3955_vm13 }
 0x7ac   :  { %v3951_v21 = vsub.f32 1.0, %v3950_v11  ;;  %v3942_v18 = vsel %vm9616_vm11, %v9581_v51, %v3938_v6  ;;  %v3958_v51 = vand.u32 2147483647, %v9576_v57 }
 0x7ad   :  { %5234 = vmatpush.bf16.msra.mxu1 %v6789_v61  ;;  %5260 = vmatpush.bf16.msra.mxu3 %v6805_v62  ;;  %7088 = vrcp.f32 %v9591_v19  ;;  %v3849_v41 = vpop.f32.mrf.mxu2  ;;  %v3836_v46 = vpop.f32.mrf.mxu1  ;;  %v10932_v61 = vld [vmem:[#allocation177_spill] sm:$0xff]  ;;  %v3983_v0 = vand.u32 2147483648, %v9591_v19  ;;  %v3981_v17 = vand.u32 2147483647, %v9591_v19  ;;  %vm3977_vm0 = vweird.f32 %v9591_v19 }
 0x7ae   :  { %v3837_v15 = vadd.f32 %v3836_v46, %v3823_v27  ;;  %v3952_v36 = vmul.f32 %v9589_v45, %v3951_v21  ;;  %v460_v47 = vadd.f32 %v10933_v31, %v10932_v61  ;;  %v6834_v27 = vld [vmem:[#allocation5 + $0x3a8] sm:$0xff]  ;;  %v6821_v46 = vld [vmem:[#allocation5 + $0x340] sm:$0xff]  ;;  %vm3959_vm4 = vcmp.eq.f32.partialorder %v3958_v51, 8.507059e+37 }
 0x7af   :  { %5267 = vmatpush.bf16.msrb.mxu0 %v6819_v54  ;;  %v3825_v12 = vpop.f32.mrf.mxu0  ;;  %v6823_v54 = vld [vmem:[#allocation5 + $0x350] sm:$0xff]  ;;  %5293 = vmatpush.bf16.msrb.mxu2 %v6835_v22  ;;  %vm3982_vm3 = vcmp.eq.f32.partialorder %v3981_v17, 8.507059e+37  ;;  %v6842_v21 = vld [vmem:[#allocation5 + $0x3e8] sm:$0xff]  ;;  %v10940_v31 = vld [vmem:[#allocation181_spill] sm:$0xff] }
 0x7b0   :  { %5235 = vmatmul.bf16.vlgmr.msra.gmra.mxu1 %v10928_v42  ;;  %5261 = vmatmul.bf16.vlgmr.msra.gmra.mxu3 %v10929_v5  ;;  %v7087_v38 = vpop.eup %7086  ;;  %v3922_v60 = vadd.f32 %v3837_v15, %v431_v2  ;;  %v3953_v30 = vadd.f32 %v9589_v45, %v3952_v36  ;;  %v6822_v42 = vld [vmem:[#allocation5 + $0x348] sm:$0xff]  ;;  %v3960_v5 = vand.u32 2147483648, %v9576_v57  ;;  %v3984_v57 = vor.u32 1.1754944e-38, %v3983_v0  ;;  %v6833_v15 = vld [vmem:[#allocation5 + $0x3a0] sm:$0xff]  ;;  %v10943_v0 = vld [vmem:[#allocation204_spill] sm:$0xff] }
 0x7b1   :  { %5279 = vmatpush.bf16.msrb.mxu1 %v6828_v33  ;;  %v9599_v34 = vadd.f32 1.0, %v7087_v38  ;;  %v6830_v36 = vld [vmem:[#allocation5 + $0x388] sm:$0xff]  ;;  %v6829_v22 = vld [vmem:[#allocation5 + $0x380] sm:$0xff] }
 0x7b2   :  { %v3961_v2 = vor.u32 1.1754944e-38, %v3960_v5 }
 0x7b3   :  { %5268 = vmatpush.bf16.msrb.mxu0 %v6818_v24  ;;  %v9603_v4 = vpop.eup %7088  ;;  %7090 = vrcp.f32 %v9599_v34  ;;  %v3862_v43 = vpop.f32.mrf.mxu3  ;;  %v3946_v24 = vor.u32 1.1754944e-38, %v3945_v10  ;;  %5294 = vmatpush.bf16.msrb.mxu2 %v6834_v27  ;;  %v3998_v8 = vand.u32 2147483648, %v9599_v34  ;;  %vm3992_vm6 = vweird.f32 %v9599_v34  ;;  %v6832_v10 = vld [vmem:[#allocation5 + $0x398] sm:$0xff] }
 0x7b4   :  { %v3973_v49 = vmul.f32 %v9603_v4, %v9591_v19  ;;  %7092 = vtanh.f32 %v3922_v60  ;;  %v3863_v62 = vadd.f32 %v3862_v43, %v3849_v41  ;;  %vm3978_vm14 = vweird.f32 %v9603_v4  ;;  %v6843_v19 = vld [vmem:[#allocation5 + $0x3f0] sm:$0xff]  ;;  %v6840_v43 = vld [vmem:[#allocation5 + $0x3d8] sm:$0xff] }
 0x7b5   :  { %5280 = vmatpush.bf16.msrb.mxu1 %v6827_v16  ;;  %v3851_v33 = vpop.f32.mrf.mxu2  ;;  %v3838_v23 = vpop.f32.mrf.mxu1  ;;  %v6844_v16 = vld [vmem:[#allocation5 + $0x3f8] sm:$0xff]  ;;  %vm3979_vm2 = vmor %vm3977_vm0, %vm3978_vm14  ;;  %v3999_v52 = vor.u32 1.1754944e-38, %v3998_v8 }
 0x7b6   :  { %v3974_v50 = vsub.f32 1.0, %v3973_v49  ;;  %v3923_v48 = vadd.f32 %v3863_v62, %v460_v47  ;;  %5305 = vmatpush.bf16.msrb.mxu3 %v6844_v16  ;;  %v10941_v47 = vld [vmem:[#allocation203_spill] sm:$0xff]  ;;  %v10942_v23 = vld [vmem:[#allocation182_spill] sm:$0xff] }
 0x7b7   :  { %5269 = vmatpush.bf16.msrb.mxu0 %v6817_v32  ;;  %5295 = vmatpush.bf16.msrb.mxu2 %v6833_v15  ;;  %v489_v62 = vadd.f32 %v10941_v47, %v10940_v31 }
 0x7b8   :  { %v3975_v39 = vmul.f32 %v9603_v4, %v3974_v50  ;;  %7094 = vtanh.f32 %v3923_v48 }
 0x7b9   :  { %5281 = vmatpush.bf16.msrb.mxu1 %v6826_v3  ;;  %v7091_v13 = vpop.eup %7090  ;;  %v3947_v3 = vsel %vm9620_vm12, %v3946_v24, %v3942_v18  ;;  %v518_v18 = vadd.f32 %v10943_v0, %v10942_v23 }
 0x7ba   :  { %v7093_v32 = vpop.eup %7092  ;;  %v3988_v9 = vmul.f32 %v7091_v13, %v9599_v34  ;;  %v3976_v37 = vadd.f32 %v9603_v4, %v3975_v39  ;;  %5306 = vmatpush.bf16.msrb.mxu3 %v6843_v19  ;;  %vm3993_vm5 = vweird.f32 %v7091_v13 }
 0x7bb   :  { %5270 = vmatpush.bf16.msrb.mxu0 %v6816_v53  ;;  %v4044_v28 = vmul.f32 %v7093_v32, %v3947_v3  ;;  %v3864_v41 = vpop.f32.mrf.mxu3  ;;  %vm3994_vm7 = vmor %vm3992_vm6, %vm3993_vm5  ;;  %5296 = vmatpush.bf16.msrb.mxu2 %v6832_v10 }
 0x7bc   :  { %v3989_v53 = vsub.f32 1.0, %v3988_v9  ;;  %v3980_v11 = vsel %vm3979_vm2, %v9603_v4, %v3976_v37 }
 0x7bd   :  { %5282 = vmatpush.bf16.msrb.mxu1 %v6825_v20  ;;  %v3957_v20 = vsel %vm9643_vm1, %v9589_v45, %v3953_v30  ;;  %v3985_v63 = vsel %vm3982_vm3, %v3984_v57, %v3980_v11 }
 0x7be   :  { %v3990_v40 = vmul.f32 %v7091_v13, %v3989_v53  ;;  %v4042_v12 = vmul.f32 %v3985_v63, %v9466_v58  ;;  %v7095_v38 = vpop.eup %7094  ;;  %v3962_v45 = vsel %vm3959_vm4, %v3961_v2, %v3957_v20  ;;  %5307 = vmatpush.bf16.msrb.mxu3 %v6842_v21 }
 0x7bf   :  { %5271 = vmatpush.bf16.msrb.mxu0 %v6815_v44  ;;  %v3996_v44 = vand.u32 2147483647, %v9599_v34  ;;  %v4045_v55 = vmul.f32 %v7095_v38, %v3962_v45  ;;  %v6831_v34 = vld [vmem:[#allocation5 + $0x390] sm:$0xff] }
 0x7c0   :  { %v3991_v60 = vadd.f32 %v7091_v13, %v3990_v40  ;;  %5297 = vmatpush.bf16.msrb.mxu2 %v6831_v34 }
 0x7c1   :  { %5283 = vmatpush.bf16.msrb.mxu1 %v6824_v26  ;;  %v4046_v26 = vadd.f32 %v4044_v28, %v4042_v12  ;;  %vm3997_vm8 = vcmp.eq.f32.partialorder %v3996_v44, 8.507059e+37 }
 0x7c2   :  { %v3995_v4 = vsel %vm3994_vm7, %v7091_v13, %v3991_v60 }
 0x7c3   :  { %5272 = vmatpush.bf16.msrb.mxu0 %v6814_v25  ;;  %v4000_v58 = vsel %vm3997_vm8, %v3999_v52, %v3995_v4 }
 0x7c4   :  { %v4043_v6 = vmul.f32 %v4000_v58, %v9469_v35  ;;  %5298 = vmatpush.bf16.msrb.mxu2 %v6830_v36 }
 0x7c5   :  { %5284 = vmatpush.bf16.msrb.mxu1 %v6823_v54 }
 0x7c6   :  { %v4047_v49 = vadd.f32 %v4045_v55, %v4043_v6 }
 0x7c7   :  { %5273 = vmatpush.bf16.msrb.mxu0 %v6813_v7  ;;  %v3875_v25 = vpop.f32.mrf.mxu0  ;;  %v6837_v7 = vld [vmem:[#allocation5 + $0x3c0] sm:$0xff] }
 0x7c8   :  { %5299 = vmatpush.bf16.msrb.mxu2 %v6829_v22 }
 0x7c9   :  { %5285 = vmatpush.bf16.msrb.mxu1 %v6822_v42 }
 0x7ca   :  { %5274 = vmatmul.bf16.vlgmr.msrb.gmra.mxu0 %v9475_v59  ;;  %v6841_v59 = vld [vmem:[#allocation5 + $0x3e0] sm:$0xff] }
 0x7cb   :  { %5308 = vmatpush.bf16.msrb.mxu3 %v6841_v59 }
 0x7cd   :  { %5286 = vmatpush.bf16.msrb.mxu1 %v6821_v46  ;;  %v3888_v54 = vpop.f32.mrf.mxu1  ;;  %v3901_v61 = vpop.f32.mrf.mxu2 }
 0x7ce   :  { %v3889_v33 = vadd.f32 %v3888_v54, %v3875_v25 }
 0x7cf   :  { %5309 = vmatpush.bf16.msrb.mxu3 %v6840_v43  ;;  %v3877_v50 = vpop.f32.mrf.mxu0 }
 0x7d0   :  { %5287 = vmatmul.bf16.vlgmr.msrb.gmra.mxu1 %v9481_v14  ;;  %v6839_v14 = vld [vmem:[#allocation5 + $0x3d0] sm:$0xff]  ;;  %v3924_v1 = vadd.f32 %v3889_v33, %v489_v62 }
 0x7d2   :  { %v6043_v35 = vmul.f32 -1.442695, %v3924_v1 }
 0x7d3   :  { %5310 = vmatpush.bf16.msrb.mxu3 %v6839_v14  ;;  %v3914_v24 = vpop.f32.mrf.mxu3 }
 0x7d4   :  { %7096 = vpow2.f32 %v6043_v35  ;;  %v3915_v48 = vadd.f32 %v3914_v24, %v3901_v61 }
 0x7d5   :  { %v3890_v16 = vpop.f32.mrf.mxu1  ;;  %v3903_v39 = vpop.f32.mrf.mxu2 }
 0x7d6   :  { %v3925_v17 = vadd.f32 %v3915_v48, %v518_v18 }
 0x7d7   :  { %5311 = vmatpush.bf16.msrb.mxu3 %v6838_v56 }
 0x7d8   :  { %v6044_v30 = vmul.f32 -1.442695, %v3925_v17 }
 0x7da   :  { %v7097_v42 = vpop.eup %7096  ;;  %7098 = vpow2.f32 %v6044_v30 }
 0x7db   :  { %5312 = vmatpush.bf16.msrb.mxu3 %v6837_v7  ;;  %v4010_v13 = vadd.f32 1.0, %v7097_v42  ;;  %v3916_v51 = vpop.f32.mrf.mxu3 }
 0x7dd   :  { %7100 = vrcp.f32 %v4010_v13  ;;  %v4023_v29 = vand.u32 2147483648, %v4010_v13  ;;  %v4021_v28 = vand.u32 2147483647, %v4010_v13  ;;  %vm4017_vm10 = vweird.f32 %v4010_v13 }
 0x7df   :  { %v4024_v46 = vor.u32 1.1754944e-38, %v4023_v29  ;;  %vm4022_vm12 = vcmp.eq.f32.partialorder %v4021_v28, 8.507059e+37 }
 0x7e0   :  { %v7099_v5 = vpop.eup %7098 }
 0x7e1   :  { %v4011_v27 = vadd.f32 1.0, %v7099_v5 }
 0x7e3   :  { %v7101_v32 = vpop.eup %7100  ;;  %7102 = vrcp.f32 %v4011_v27  ;;  %v4038_v40 = vand.u32 2147483648, %v4011_v27  ;;  %v4036_v38 = vand.u32 2147483647, %v4011_v27  ;;  %vm4032_vm14 = vweird.f32 %v4011_v27 }
 0x7e4   :  { %v4013_v9 = vmul.f32 %v7101_v32, %v4010_v13  ;;  %7104 = vtanh.f32 %v4046_v26  ;;  %vm4018_vm9 = vweird.f32 %v7101_v32 }
 0x7e5   :  { %vm4019_vm11 = vmor %vm4017_vm10, %vm4018_vm9  ;;  %7106 = vtanh.f32 %v4047_v49  ;;  %v4039_v10 = vor.u32 1.1754944e-38, %v4038_v40  ;;  %vm4037_vm0 = vcmp.eq.f32.partialorder %v4036_v38, 8.507059e+37 }
 0x7e6   :  { %v4014_v37 = vsub.f32 1.0, %v4013_v9 }
 0x7e7   :  { %v5119_v3 = vpop.f32.mrf.mxu0 }
 0x7e8   :  { %v4015_v57 = vmul.f32 %v7101_v32, %v4014_v37 }
 0x7e9   :  { %v7103_v19 = vpop.eup %7102 }
 0x7ea   :  { %v4028_v53 = vmul.f32 %v7103_v19, %v4011_v27  ;;  %v4016_v11 = vadd.f32 %v7101_v32, %v4015_v57  ;;  %v7105_v15 = vpop.eup %7104  ;;  %vm4033_vm13 = vweird.f32 %v7103_v19 }
 0x7eb   :  { %vm4034_vm15 = vmor %vm4032_vm14, %vm4033_vm13  ;;  %v7107_v59 = vpop.eup %7106 }
 0x7ec   :  { %v4029_v8 = vsub.f32 1.0, %v4028_v53  ;;  %v4020_v2 = vsel %vm4019_vm11, %v7101_v32, %v4016_v11 }
 0x7ed   :  { %v5132_v20 = vpop.f32.mrf.mxu1  ;;  %v5145_v41 = vpop.f32.mrf.mxu2  ;;  %v4025_v44 = vsel %vm4022_vm12, %v4024_v46, %v4020_v2 }
 0x7ee   :  { %v5133_v63 = vadd.f32 %v5132_v20, %v5119_v3  ;;  %v4030_v45 = vmul.f32 %v7103_v19, %v4029_v8  ;;  %v4050_v26 = vmul.f32 %v7105_v15, %v4025_v44 }
 0x7ef   :  { %v5121_v12 = vpop.f32.mrf.mxu0 }
 0x7f0   :  { %v5146_v21 = vadd.f32 %v5145_v41, %v5133_v63  ;;  %v4084_v60 = vpack.c.bf16 %v4050_v26, %v4050_v26  ;;  %v4031_v55 = vadd.f32 %v7103_v19, %v4030_v45 }
 0x7f2   :  { %5300 = vmatmul.bf16.vlgmr.msrb.gmra.mxu2 %v4084_v60  ;;  %v4035_v58 = vsel %vm4034_vm15, %v7103_v19, %v4031_v55 }
 0x7f3   :  { %v5158_v52 = vpop.f32.mrf.mxu3  ;;  %v4040_v34 = vsel %vm4037_vm0, %v4039_v10, %v4035_v58 }
 0x7f4   :  { %v5159_v4 = vadd.f32 %v5158_v52, %v5146_v21  ;;  %v4051_v49 = vmul.f32 %v7107_v59, %v4040_v34 }
 0x7f5   :  { %v5134_v6 = vpop.f32.mrf.mxu1  ;;  %v5147_v25 = vpop.f32.mrf.mxu2 }
 0x7f6   :  { %v4085_v43 = vpack.c.bf16 %v4051_v49, %v4051_v49 }
 0x7f8   :  { %5313 = vmatmul.bf16.vlgmr.msrb.gmra.mxu3 %v4085_v43 }
 0x7fb   :  { %v5160_v36 = vpop.f32.mrf.mxu3 }
 0x807   :  { %v5171_v54 = vpop.f32.mrf.mxu0 }
 0x808   :  { %v5172_v61 = vadd.f32 %v5171_v54, %v5159_v4 }
 0x80d   :  { %v5184_v31 = vpop.f32.mrf.mxu1  ;;  %v5197_v47 = vpop.f32.mrf.mxu2 }
 0x80e   :  { %v5185_v62 = vadd.f32 %v5184_v31, %v5172_v61 }
 0x80f   :  { %v5173_v33 = vpop.f32.mrf.mxu0 }
 0x810   :  { %v5198_v14 = vadd.f32 %v5197_v47, %v5185_v62 }
 0x813   :  { %v5210_v22 = vpop.f32.mrf.mxu3 }
 0x814   :  { %v5211_v50 = vadd.f32 %v5210_v22, %v5198_v14 }
 0x815   :  { %v5186_v1 = vpop.f32.mrf.mxu1  ;;  %v5199_v35 = vpop.f32.mrf.mxu2 }
 0x81b   :  { %v5212_v56 = vpop.f32.mrf.mxu3 }
 0x827   :  { %v5223_v24 = vpop.f32.mrf.mxu0 }
 0x828   :  { %v5224_v23 = vadd.f32 %v5223_v24, %v5211_v50 }
 0x82d   :  { %v5236_v0 = vpop.f32.mrf.mxu1  ;;  %v5249_v48 = vpop.f32.mrf.mxu2 }
 0x82e   :  { %v5237_v18 = vadd.f32 %v5236_v0, %v5224_v23 }
 0x82f   :  { %v5225_v16 = vpop.f32.mrf.mxu0 }
 0x830   :  { %v5250_v7 = vadd.f32 %v5249_v48, %v5237_v18 }
 0x833   :  { %v5262_v39 = vpop.f32.mrf.mxu3 }
 0x834   :  { %v5263_v17 = vadd.f32 %v5262_v39, %v5250_v7 }
 0x835   :  { %v5238_v30 = vpop.f32.mrf.mxu1  ;;  %v5251_v42 = vpop.f32.mrf.mxu2 }
 0x83b   :  { %v5264_v13 = vpop.f32.mrf.mxu3 }
 0x847   :  { %v5275_v51 = vpop.f32.mrf.mxu0 }
 0x848   :  { %v5276_v3 = vadd.f32 %v5275_v51, %v5263_v17 }
 0x84d   :  { %v5288_v5 = vpop.f32.mrf.mxu1 }
 0x84e   :  { %v5289_v37 = vadd.f32 %v5288_v5, %v5276_v3 }
 0x84f   :  { %v5277_v27 = vpop.f32.mrf.mxu0 }
 0x855   :  { %v5290_v32 = vpop.f32.mrf.mxu1 }
 0x875   :  { %v5301_v9 = vpop.f32.mrf.mxu2 }
 0x876   :  { %v5302_v29 = vadd.f32 %v5301_v9, %v5289_v37 }
 0x87b   :  { %v5314_v57 = vpop.f32.mrf.mxu3 }
 0x87c   :  { %v5315_v28 = vadd.f32 %v5314_v57, %v5302_v29 }
 0x87d   :  { %v5303_v19 = vpop.f32.mrf.mxu2 }
 0x87e   :  { %5318 = vst [vmem:[%s9672_s5] sm:$0xff] %v5315_v28 }
 0x883   :  { %v5316_v53 = vpop.f32.mrf.mxu3 }
 0x884   :  { %5323 = vsyncpa [#allocation4], 1 }
 0x885   :  { %5324 = vsyncpa [#allocation6], 1 }

</bundles_post_ra>
